<compile_context>
chip_gen: v6e
topology: v6e:2x2x1
jax: 0.10.0
libtpu: 0.0.40
codegen_flags: <defaults>
</compile_context>

<pallas_src>
import functools

import jax
import jax.numpy as jnp
from jax.experimental import pallas as pl
from jax.experimental.pallas import tpu as pltpu

# Keep the pure-JAX reference matmuls at full f32 precision so the tolerance
# check against the Pallas (f32-accumulating) kernels is tight.
jax.config.update("jax_default_matmul_precision", "float32")

# Explicit scoped-VMEM limit: keeps headroom on v7x (64 MiB physical per TC).
_VMEM_LIMIT = 48 * 1024 * 1024


# ---------------------------------------------------------------------------
# In-kernel exact GELU
# ---------------------------------------------------------------------------
# erf via the Abramowitz & Stegun 7.1.26 minimax polynomial (|err| <= 1.5e-7),
# built only from exp/mul/add/select so it lowers on Mosaic without relying on
# an erf primitive.  Matches torch F.gelu (exact) far inside the 5e-4 tolerance.
# TODO(synk): switch to jax.lax.erf in-kernel once its Mosaic lowering is
#             guaranteed on all targeted jax versions.

def _erf_approx(x):
    a = jnp.abs(x)
    t = 1.0 / (1.0 + 0.3275911 * a)
    poly = ((((1.061405429 * t - 1.453152027) * t + 1.421413741) * t
             - 0.284496736) * t + 0.254829592) * t
    e = 1.0 - poly * jnp.exp(-a * a)
    return jnp.where(x < 0, -e, e)


def _gelu_exact(x):
    return 0.5 * x * (1.0 + _erf_approx(x * 0.7071067811865476))


# ---------------------------------------------------------------------------
# Row blocking helper: multiple-of-8 sublanes, >= 2 grid steps when possible
# (v7x has two TensorCores sharded via dimension_semantics=("parallel",)).
# ---------------------------------------------------------------------------

def _row_block(n_rows, max_rows=1024):
    if n_rows <= 8:
        return n_rows
    bn = min(max_rows, -(-n_rows // 2))        # ceil(N/2) -> at least 2 steps
    bn = max(8, (bn // 8) * 8)
    return bn


# ---------------------------------------------------------------------------
# Pallas kernel 1: plain linear (fc0)
# ---------------------------------------------------------------------------

def _linear_kernel(x_ref, w_ref, b_ref, o_ref):
    y = jnp.dot(x_ref[...], w_ref[...], preferred_element_type=jnp.float32)
    o_ref[...] = (y + b_ref[...]).astype(o_ref.dtype)


def linear_pallas(x2d, w, b, *, max_rows=1024):
    """x2d: (N, Din) f32, w: (Din, Dout), b: (Dout,) -> (N, Dout) f32."""
    N, din = x2d.shape
    dout = w.shape[1]
    bn = _row_block(N, max_rows)
    grid = (pl.cdiv(N, bn),)
    cost = pl.CostEstimate(
        flops=2 * N * din * dout + N * dout,
        transcendentals=0,
        bytes_accessed=4 * (N * din + din * dout + dout + N * dout))
    return pl.pallas_call(
        _linear_kernel,
        grid=grid,
        in_specs=[pl.BlockSpec((bn, din), lambda i: (i, 0)),
                  pl.BlockSpec((din, dout), lambda i: (0, 0)),
                  pl.BlockSpec((1, dout), lambda i: (0, 0))],
        out_specs=pl.BlockSpec((bn, dout), lambda i: (i, 0)),
        out_shape=jax.ShapeDtypeStruct((N, dout), jnp.float32),
        compiler_params=pltpu.CompilerParams(
            dimension_semantics=("parallel",),
            vmem_limit_bytes=_VMEM_LIMIT),
        cost_estimate=cost,
    )(x2d.astype(jnp.float32), w.astype(jnp.float32),
      b.reshape(1, dout).astype(jnp.float32))


# ---------------------------------------------------------------------------
# Pallas kernel 2: fused FNO-layer epilogue
#   out = [GELU]( h @ cw + cb + x1 )   (x1 = SpectralConv2d output)
# ---------------------------------------------------------------------------

def _layer_epilogue_kernel(h_ref, x1_ref, w_ref, b_ref, o_ref, *, apply_gelu):
    y = jnp.dot(h_ref[...], w_ref[...], preferred_element_type=jnp.float32)
    y = y + b_ref[...] + x1_ref[...]
    if apply_gelu:
        y = _gelu_exact(y)
    o_ref[...] = y.astype(o_ref.dtype)


def fused_layer_pallas(h2d, x1_2d, w, b, apply_gelu, *, max_rows=1024):
    """h2d, x1_2d: (N, C) f32; w: (C, C); b: (C,) -> (N, C) f32."""
    N, C = h2d.shape
    bn = _row_block(N, max_rows)
    grid = (pl.cdiv(N, bn),)
    kernel = functools.partial(_layer_epilogue_kernel, apply_gelu=apply_gelu)
    cost = pl.CostEstimate(
        flops=2 * N * C * C + 6 * N * C,
        transcendentals=N * C if apply_gelu else 0,
        bytes_accessed=4 * (2 * N * C + C * C + C + N * C))
    return pl.pallas_call(
        kernel,
        grid=grid,
        in_specs=[pl.BlockSpec((bn, C), lambda i: (i, 0)),
                  pl.BlockSpec((bn, C), lambda i: (i, 0)),
                  pl.BlockSpec((C, C), lambda i: (0, 0)),
                  pl.BlockSpec((1, C), lambda i: (0, 0))],
        out_specs=pl.BlockSpec((bn, C), lambda i: (i, 0)),
        out_shape=jax.ShapeDtypeStruct((N, C), jnp.float32),
        compiler_params=pltpu.CompilerParams(
            dimension_semantics=("parallel",),
            vmem_limit_bytes=_VMEM_LIMIT),
        cost_estimate=cost,
    )(h2d, x1_2d, w.astype(jnp.float32), b.reshape(1, C).astype(jnp.float32))


# ---------------------------------------------------------------------------
# Pallas kernel 3: fused MLP head  fc1 -> GELU -> fc2
# ---------------------------------------------------------------------------

def _mlp_head_kernel(x_ref, w1_ref, b1_ref, w2_ref, b2_ref, o_ref):
    h = jnp.dot(x_ref[...], w1_ref[...],
                preferred_element_type=jnp.float32) + b1_ref[...]
    h = _gelu_exact(h)
    y = jnp.dot(h, w2_ref[...], preferred_element_type=jnp.float32) + b2_ref[...]
    o_ref[...] = y.astype(o_ref.dtype)


def mlp_head_pallas(x2d, w1, b1, w2, b2, *, max_rows=1024):
    """x2d: (N, C) f32 -> (N, Dout) f32 through fc1/GELU/fc2, all in-VMEM."""
    N, C = x2d.shape
    H = w1.shape[1]
    dout = w2.shape[1]
    bn = _row_block(N, max_rows)
    grid = (pl.cdiv(N, bn),)
    cost = pl.CostEstimate(
        flops=2 * N * C * H + 2 * N * H * dout + N * (H + dout),
        transcendentals=N * H,
        bytes_accessed=4 * (N * C + C * H + H + H * dout + dout + N * dout))
    return pl.pallas_call(
        _mlp_head_kernel,
        grid=grid,
        in_specs=[pl.BlockSpec((bn, C), lambda i: (i, 0)),
                  pl.BlockSpec((C, H), lambda i: (0, 0)),
                  pl.BlockSpec((1, H), lambda i: (0, 0)),
                  pl.BlockSpec((H, dout), lambda i: (0, 0)),
                  pl.BlockSpec((1, dout), lambda i: (0, 0))],
        out_specs=pl.BlockSpec((bn, dout), lambda i: (i, 0)),
        out_shape=jax.ShapeDtypeStruct((N, dout), jnp.float32),
        compiler_params=pltpu.CompilerParams(
            dimension_semantics=("parallel",),
            vmem_limit_bytes=_VMEM_LIMIT),
        cost_estimate=cost,
    )(x2d, w1.astype(jnp.float32), b1.reshape(1, H).astype(jnp.float32),
      w2.astype(jnp.float32), b2.reshape(1, dout).astype(jnp.float32))


# ---------------------------------------------------------------------------
# Pallas kernel 4: grouped complex mode mixing for SpectralConv2d
# ---------------------------------------------------------------------------

def _spectral_matmul_kernel(x_ref, w_ref, o_ref):
    # x_ref: (Mblk, B, G*2Cin), w_ref: (Mblk, G*2Cin, G*2Cout) block-diagonal,
    # o_ref: (Mblk, B, G*2Cout) — lane dim is a full 128 multiple when G is
    # chosen so that G*2Cout >= 128.
    o_ref[...] = jnp.einsum("mbi,mio->mbo", x_ref[...], w_ref[...],
                            preferred_element_type=jnp.float32)


def spectral_matmul_pallas(xs, ws, *, vmem_budget_bytes=24 * 1024 * 1024):
    """xs: (Mg, B, K) f32, ws: (Mg, K, O) f32 -> (Mg, B, O) f32."""
    Mg, B, K = xs.shape
    O = ws.shape[-1]

    per_group = 4 * (B * K + K * O + B * O)
    mblk = max(1, min(Mg, vmem_budget_bytes // (2 * per_group)))
    if Mg >= 2:                       # >= 2 grid steps -> both v7x TCs busy
        mblk = min(mblk, pl.cdiv(Mg, 2))
    while Mg % mblk:
        mblk -= 1
    grid = (Mg // mblk,)

    x_spec = pl.BlockSpec((mblk, B, K), lambda m: (m, 0, 0))
    w_spec = pl.BlockSpec((mblk, K, O), lambda m: (m, 0, 0))
    if grid[0] >= 4:
        # Deeper buffering once there are enough steps to hide the per-step DMA.
        x_spec = pl.BlockSpec((mblk, B, K), lambda m: (m, 0, 0),
                              pipeline_mode=pl.Buffered(3))
        w_spec = pl.BlockSpec((mblk, K, O), lambda m: (m, 0, 0),
                              pipeline_mode=pl.Buffered(3))

    cost = pl.CostEstimate(
        flops=2 * Mg * B * K * O,
        transcendentals=0,
        bytes_accessed=4 * (Mg * B * K + Mg * K * O + Mg * B * O))

    return pl.pallas_call(
        _spectral_matmul_kernel,
        grid=grid,
        in_specs=[x_spec, w_spec],
        out_specs=pl.BlockSpec((mblk, B, O), lambda m: (m, 0, 0)),
        out_shape=jax.ShapeDtypeStruct((Mg, B, O), jnp.float32),
        compiler_params=pltpu.CompilerParams(
            dimension_semantics=("parallel",),
            vmem_limit_bytes=_VMEM_LIMIT),
        cost_estimate=cost,
    )(xs, ws)


# ---------------------------------------------------------------------------
# Spectral weight packing (hoisted out of the forward pass)
# ---------------------------------------------------------------------------

def _mode_group(M, Cout, lane=128):
    g = max(1, lane // (2 * Cout))
    g = min(g, M)
    while M % g:
        g -= 1
    return g


def _pack_spectral_weight(w1, w2, group):
    """(Cin,Cout,m1,m2) complex x2 -> (Mg, G*2Cin, G*2Cout) f32 block-diagonal."""
    Cin, Cout, m1, m2 = w1.shape
    M = 2 * m1 * m2
    wm = jnp.concatenate([w1, w2], axis=2)                      # (Cin,Cout,2m1,m2)
    wm = jnp.transpose(wm, (2, 3, 0, 1)).reshape(M, Cin, Cout)  # mode-major
    wr = jnp.real(wm).astype(jnp.float32)
    wi = jnp.imag(wm).astype(jnp.float32)
    # complex matmul as one real matmul: [xr|xi] @ [[wr, wi], [-wi, wr]]
    ws = jnp.concatenate([jnp.concatenate([wr, wi], axis=-1),
                          jnp.concatenate([-wi, wr], axis=-1)], axis=1)
    Mg = M // group
    ws = ws.reshape(Mg, group, 2 * Cin, 2 * Cout)
    eye = jnp.eye(group, dtype=jnp.float32)
    wbd = jnp.einsum("mgio,gh->mgiho", ws, eye)                 # block-diagonal
    return wbd.reshape(Mg, group * 2 * Cin, group * 2 * Cout)


def prepare_params(params, modes1, modes2):
    """One-time re-layout of parameters (keeps it out of every forward call)."""
    width = params["fc0_w"].shape[1]
    M = 2 * modes1 * modes2
    group = _mode_group(M, width)
    prep = {
        "fc0_w": params["fc0_w"].astype(jnp.float32),
        "fc0_b": params["fc0_b"].astype(jnp.float32),
        "fc1_w": params["fc1_w"].astype(jnp.float32),
        "fc1_b": params["fc1_b"].astype(jnp.float32),
        "fc2_w": params["fc2_w"].astype(jnp.float32),
        "fc2_b": params["fc2_b"].astype(jnp.float32),
        "layers": [],
    }
    for lp in params["layers"]:
        prep["layers"].append({
            "ws_bd": _pack_spectral_weight(lp["sw1"], lp["sw2"], group),
            "cw": lp["cw"].astype(jnp.float32),
            "cb": lp["cb"].astype(jnp.float32),
        })
    return prep


# ---------------------------------------------------------------------------
# SpectralConv2d forward (FFT in XLA, mode mixing in Pallas), channel-last
# ---------------------------------------------------------------------------

def spectral_conv2d(h, ws_bd, modes1, modes2):
    """h: (B, X, Wp, Cin) f32; ws_bd: (Mg, G*2Cin, G*2Cout) f32."""
    B, X, Wp, Cin = h.shape
    M = 2 * modes1 * modes2
    Mg = ws_bd.shape[0]
    group = M // Mg
    Cout = ws_bd.shape[2] // (2 * group)
    Wf = Wp // 2 + 1

    # TODO(synk): rfft2 / irfft2 have no Pallas TPU primitive; they stay in XLA.
    x_ft = jnp.fft.rfft2(h, axes=(1, 2))                        # (B,X,Wf,Cin) c64

    xm = jnp.concatenate([x_ft[:, :modes1, :modes2, :],
                          x_ft[:, X - modes1:, :modes2, :]], axis=1)
    xm = xm.reshape(B, M, Cin)                                  # (B, M, Cin) c64
    xp = jnp.concatenate([jnp.real(xm), jnp.imag(xm)],
                         axis=-1).astype(jnp.float32)           # (B, M, 2Cin)
    xs = (xp.reshape(B, Mg, group, 2 * Cin)
            .transpose(1, 0, 2, 3)
            .reshape(Mg, B, group * 2 * Cin))                   # (Mg,B,G*2Cin)

    out = spectral_matmul_pallas(xs, ws_bd)                     # (Mg,B,G*2Cout)
    out = (out.reshape(Mg, B, group, 2 * Cout)
              .transpose(1, 0, 2, 3)
              .reshape(B, M, 2 * Cout))
    o = (out[..., :Cout] + 1j * out[..., Cout:]).reshape(B, 2 * modes1, modes2, Cout)

    out_ft = jnp.zeros((B, X, Wf, Cout), dtype=jnp.complex64)
    out_ft = out_ft.at[:, :modes1, :modes2, :].set(o[:, :modes1])
    out_ft = out_ft.at[:, X - modes1:, :modes2, :].set(o[:, modes1:])
    return jnp.fft.irfft2(out_ft, s=(X, Wp), axes=(1, 2))       # (B,X,Wp,Cout)


# ---------------------------------------------------------------------------
# Full FNO_space1D_time forward (channel-last end-to-end)
# ---------------------------------------------------------------------------

def get_grid(B, X, Tt):
    gx = jnp.linspace(0.0, 1.0, X, dtype=jnp.float32).reshape(1, X, 1, 1)
    gx = jnp.broadcast_to(gx, (B, X, Tt, 1))
    gt = jnp.linspace(0.0, 1.0, Tt, dtype=jnp.float32).reshape(1, 1, Tt, 1)
    gt = jnp.broadcast_to(gt, (B, X, Tt, 1))
    return jnp.concatenate([gx, gt], axis=-1)                   # (B, X, Tt, 2)


def fno_forward(x, prep, *, modes1, modes2, padding=6):
    """x: (B, dim_x, T_out, T) f32 -> (B, dim_x, T_out, 1) f32."""
    B, X, Tt, _ = x.shape
    width = prep["fc0_w"].shape[1]

    h = jnp.concatenate([x, get_grid(B, X, Tt)], axis=-1)       # (B,X,Tt,T+2)
    h = linear_pallas(h.reshape(-1, h.shape[-1]), prep["fc0_w"], prep["fc0_b"])
    h = h.reshape(B, X, Tt, width)
    h = jnp.pad(h, ((0, 0), (0, 0), (0, padding), (0, 0)))      # pad time axis
    Wp = Tt + padding

    n_layers = len(prep["layers"])
    for li, lp in enumerate(prep["layers"]):
        x1 = spectral_conv2d(h, lp["ws_bd"], modes1, modes2)    # (B,X,Wp,width)
        h2 = fused_layer_pallas(h.reshape(-1, width), x1.reshape(-1, width),
                                lp["cw"], lp["cb"],
                                apply_gelu=(li != n_layers - 1))
        h = h2.reshape(B, X, Wp, width)

    h = h[:, :, :Tt, :]                                         # crop padding
    y = mlp_head_pallas(h.reshape(-1, width), prep["fc1_w"], prep["fc1_b"],
                        prep["fc2_w"], prep["fc2_b"])
    return y.reshape(B, X, Tt, 1)


# ---------------------------------------------------------------------------
# Pure-JAX reference (mirrors the PyTorch module exactly, channel-first)
# ---------------------------------------------------------------------------

def _reference_spectral(x, w1, w2, modes1, modes2):
    B, Cin, H, W = x.shape
    Cout = w1.shape[1]
    x_ft = jnp.fft.rfft2(x)
    mul = lambda a, w: jnp.einsum("bixt,ioxt->boxt", a, w)
    out_ft = jnp.zeros((B, Cout, H, W // 2 + 1), dtype=jnp.complex64)
    out_ft = out_ft.at[:, :, :modes1, :modes2].set(
        mul(x_ft[:, :, :modes1, :modes2], w1))
    out_ft = out_ft.at[:, :, H - modes1:, :modes2].set(
        mul(x_ft[:, :, H - modes1:, :modes2], w2))
    return jnp.fft.irfft2(out_ft, s=(H, W))


def _reference_forward(x, params, *, modes1, modes2, padding=6):
    B, X, Tt, _ = x.shape
    h = jnp.concatenate([x, get_grid(B, X, Tt)], axis=-1)
    h = h @ params["fc0_w"] + params["fc0_b"]
    h = jnp.transpose(h, (0, 3, 1, 2))
    h = jnp.pad(h, ((0, 0), (0, 0), (0, 0), (0, padding)))
    n_layers = len(params["layers"])
    for li, lp in enumerate(params["layers"]):
        x1 = _reference_spectral(h, lp["sw1"], lp["sw2"], modes1, modes2)
        x2 = jnp.einsum("bchw,co->bohw", h, lp["cw"]) \
            + lp["cb"][None, :, None, None]
        h = x1 + x2
        if li != n_layers - 1:
            h = jax.nn.gelu(h, approximate=False)
    h = h[..., :-padding]
    h = jnp.transpose(h, (0, 2, 3, 1))
    h = h @ params["fc1_w"] + params["fc1_b"]
    h = jax.nn.gelu(h, approximate=False)
    h = h @ params["fc2_w"] + params["fc2_b"]
    return h


# ---------------------------------------------------------------------------
# Setup / test
# ---------------------------------------------------------------------------

def init_params(key, T, width, L, modes1, modes2):
    keys = jax.random.split(key, L + 3)

    def lin(k, din, dout, scale):
        kw, kb = jax.random.split(k)
        return (scale * jax.random.normal(kw, (din, dout), jnp.float32),
                scale * jax.random.normal(kb, (dout,), jnp.float32))

    p = {}
    p["fc0_w"], p["fc0_b"] = lin(keys[0], T + 2, width, 0.2)
    layers = []
    cscale = 1.0 / (width * width)
    for li in range(L):
        k1, k2, k3, k4, k5 = jax.random.split(keys[1 + li], 5)
        shp = (width, width, modes1, modes2)
        sw1 = (cscale * (jax.random.uniform(k1, shp)
                         + 1j * jax.random.uniform(k2, shp))).astype(jnp.complex64)
        sw2 = (cscale * (jax.random.uniform(k3, shp)
                         + 1j * jax.random.uniform(k4, shp))).astype(jnp.complex64)
        cw, cb = lin(k5, width, width, 0.2)
        layers.append({"sw1": sw1, "sw2": sw2, "cw": cw, "cb": cb})
    p["layers"] = layers
    p["fc1_w"], p["fc1_b"] = lin(keys[L + 1], width, 128, 0.1)
    p["fc2_w"], p["fc2_b"] = lin(keys[L + 2], 128, 1, 0.1)
    return p


if __name__ == "__main__":
    B, X, T = 2, 16, 8                  # batch, spatial points, timesteps
    modes1, modes2, width, L = 4, 4, 16, 2

    key = jax.random.PRNGKey(0)
    kp, kx = jax.random.split(key)
    params = init_params(kp, T, width, L, modes1, modes2)
    x = jax.random.normal(kx, (B, X, T, T), dtype=jnp.float32)

    # One-time parameter re-layout (spectral weights -> grouped block-diagonal).
    prep = prepare_params(params, modes1, modes2)

    fwd = jax.jit(functools.partial(fno_forward, modes1=modes1, modes2=modes2))
    y = jax.block_until_ready(fwd(x, prep))

    y_ref = _reference_forward(x, params, modes1=modes1, modes2=modes2)
    assert y.shape == (B, X, T, 1), y.shape
    max_err = float(jnp.max(jnp.abs(y - y_ref)))
    assert jnp.allclose(y, y_ref, atol=5e-4, rtol=5e-4), f"mismatch: {max_err}"

    print("KERNEL_OK")
</pallas_src>

<mosaic_0001>
module attributes {stable_mosaic.version = 11 : i64} {
  func.func @_linear_kernel(%arg0: i32, %arg1: memref<128x10xf32, #tpu.memory_space<vmem>>, %arg2: memref<10x16xf32, #tpu.memory_space<vmem>>, %arg3: memref<1x16xf32, #tpu.memory_space<vmem>>, %arg4: memref<128x16xf32, #tpu.memory_space<vmem>>) attributes {dimension_semantics = [#tpu.dimension_semantics<parallel>], iteration_bounds = array<i64: 2>, scalar_prefetch = 0 : i64, scratch_operands = 0 : i64, tpu.core_type = #tpu.core_type<tc>, window_params = [{transform_indices = @transform_0, window_bounds = array<i64: 128, 10>}, {pipeline_mode = #tpu.pipeline_mode<synchronous>, transform_indices = @transform_1, window_bounds = array<i64: 10, 16>}, {pipeline_mode = #tpu.pipeline_mode<synchronous>, transform_indices = @transform_2, window_bounds = array<i64: 1, 16>}, {transform_indices = @transform_3, window_bounds = array<i64: 128, 16>}]} {
    %c0 = arith.constant 0 : index
    %c0_0 = arith.constant 0 : index
    %0 = vector.load %arg1[%c0, %c0_0] : memref<128x10xf32, #tpu.memory_space<vmem>>, vector<128x10xf32>
    %c0_1 = arith.constant 0 : index
    %c0_2 = arith.constant 0 : index
    %1 = vector.load %arg2[%c0_1, %c0_2] : memref<10x16xf32, #tpu.memory_space<vmem>>, vector<10x16xf32>
    %cst = arith.constant dense<0.000000e+00> : vector<128x16xf32>
    %2 = tpu.matmul %0, %1, %cst {dimension_numbers = #tpu.dot_dimension_numbers<[1], [0], [0], [1], [0, 0, 1, 1], [], []>, precision = #tpu.contract_precision<fp32>} : vector<128x10xf32>, vector<10x16xf32>, vector<128x16xf32> -> vector<128x16xf32>
    %c0_3 = arith.constant 0 : index
    %c0_4 = arith.constant 0 : index
    %3 = vector.load %arg3[%c0_3, %c0_4] : memref<1x16xf32, #tpu.memory_space<vmem>>, vector<1x16xf32>
    %4 = vector.broadcast %3 : vector<1x16xf32> to vector<128x16xf32>
    %5 = arith.addf %2, %4 : vector<128x16xf32>
    %c0_5 = arith.constant 0 : index
    %c0_6 = arith.constant 0 : index
    %6 = vector.load %arg4[%c0_5, %c0_6] : memref<128x16xf32, #tpu.memory_space<vmem>>, vector<128x16xf32>
    tpu.vector_store %arg4[%c0_5, %c0_6], %5 {strides = array<i32>} : memref<128x16xf32, #tpu.memory_space<vmem>>, vector<128x16xf32>,
    return
  }
  func.func @transform_0(%arg0: i32) -> (i32, i32) {
    %c0_i32 = arith.constant 0 : i32
    %c0_i32_0 = arith.constant 0 : i32
    return %arg0, %c0_i32 : i32, i32
  }
  func.func @transform_1(%arg0: i32) -> (i32, i32) {
    %c0_i32 = arith.constant 0 : i32
    %c0_i32_0 = arith.constant 0 : i32
    %c0_i32_1 = arith.constant 0 : i32
    return %c0_i32, %c0_i32_0 : i32, i32
  }
  func.func @transform_2(%arg0: i32) -> (i32, i32) {
    %c0_i32 = arith.constant 0 : i32
    %c0_i32_0 = arith.constant 0 : i32
    %c0_i32_1 = arith.constant 0 : i32
    return %c0_i32, %c0_i32_0 : i32, i32
  }
  func.func @transform_3(%arg0: i32) -> (i32, i32) {
    %c0_i32 = arith.constant 0 : i32
    %c0_i32_0 = arith.constant 0 : i32
    return %arg0, %c0_i32 : i32, i32
  }
}

module attributes {stable_mosaic.version = 11 : i64} {
  func.func @_spectral_matmul_kernel(%arg0: i32, %arg1: memref<4x2x128xf32, #tpu.memory_space<vmem>>, %arg2: memref<4x128x128xf32, #tpu.memory_space<vmem>>, %arg3: memref<4x2x128xf32, #tpu.memory_space<vmem>>) attributes {dimension_semantics = [#tpu.dimension_semantics<parallel>], iteration_bounds = array<i64: 2>, scalar_prefetch = 0 : i64, scratch_operands = 0 : i64, tpu.core_type = #tpu.core_type<tc>, window_params = [{transform_indices = @transform_0, window_bounds = array<i64: 4, 2, 128>}, {transform_indices = @transform_1, window_bounds = array<i64: 4, 128, 128>}, {transform_indices = @transform_2, window_bounds = array<i64: 4, 2, 128>}]} {
    %c0 = arith.constant 0 : index
    %c0_0 = arith.constant 0 : index
    %c0_1 = arith.constant 0 : index
    %0 = vector.load %arg1[%c0, %c0_0, %c0_1] : memref<4x2x128xf32, #tpu.memory_space<vmem>>, vector<4x2x128xf32>
    %c0_2 = arith.constant 0 : index
    %c0_3 = arith.constant 0 : index
    %c0_4 = arith.constant 0 : index
    %1 = vector.load %arg2[%c0_2, %c0_3, %c0_4] : memref<4x128x128xf32, #tpu.memory_space<vmem>>, vector<4x128x128xf32>
    "tpu.trace_start"() <{level = 10 : i32, message = "mbi,mio->mbo"}> : () -> ()
    %cst = arith.constant dense<0.000000e+00> : vector<4x2x128xf32>
    %2 = tpu.matmul %0, %1, %cst {dimension_numbers = #tpu.dot_dimension_numbers<[2], [1], [1], [2], [0, 0, 0, 1, 1, 2], [0], [0]>, precision = #tpu.contract_precision<fp32>} : vector<4x2x128xf32>, vector<4x128x128xf32>, vector<4x2x128xf32> -> vector<4x2x128xf32>
    "tpu.trace_stop"() : () -> ()
    %c0_5 = arith.constant 0 : index
    %c0_6 = arith.constant 0 : index
    %c0_7 = arith.constant 0 : index
    %3 = vector.load %arg3[%c0_5, %c0_6, %c0_7] : memref<4x2x128xf32, #tpu.memory_space<vmem>>, vector<4x2x128xf32>
    tpu.vector_store %arg3[%c0_5, %c0_6, %c0_7], %2 {strides = array<i32>} : memref<4x2x128xf32, #tpu.memory_space<vmem>>, vector<4x2x128xf32>,
    return
  }
  func.func @transform_0(%arg0: i32) -> (i32, i32, i32) {
    %c0_i32 = arith.constant 0 : i32
    %c0_i32_0 = arith.constant 0 : i32
    %c0_i32_1 = arith.constant 0 : i32
    return %arg0, %c0_i32, %c0_i32_0 : i32, i32, i32
  }
  func.func @transform_1(%arg0: i32) -> (i32, i32, i32) {
    %c0_i32 = arith.constant 0 : i32
    %c0_i32_0 = arith.constant 0 : i32
    %c0_i32_1 = arith.constant 0 : i32
    return %arg0, %c0_i32, %c0_i32_0 : i32, i32, i32
  }
  func.func @transform_2(%arg0: i32) -> (i32, i32, i32) {
    %c0_i32 = arith.constant 0 : i32
    %c0_i32_0 = arith.constant 0 : i32
    %c0_i32_1 = arith.constant 0 : i32
    return %arg0, %c0_i32, %c0_i32_0 : i32, i32, i32
  }
}

module attributes {stable_mosaic.version = 11 : i64} {
  func.func @_layer_epilogue_kernel(%arg0: i32, %arg1: memref<224x16xf32, #tpu.memory_space<vmem>>, %arg2: memref<224x16xf32, #tpu.memory_space<vmem>>, %arg3: memref<16x16xf32, #tpu.memory_space<vmem>>, %arg4: memref<1x16xf32, #tpu.memory_space<vmem>>, %arg5: memref<224x16xf32, #tpu.memory_space<vmem>>) attributes {dimension_semantics = [#tpu.dimension_semantics<parallel>], iteration_bounds = array<i64: 2>, scalar_prefetch = 0 : i64, scratch_operands = 0 : i64, tpu.core_type = #tpu.core_type<tc>, window_params = [{transform_indices = @transform_0, window_bounds = array<i64: 224, 16>}, {transform_indices = @transform_1, window_bounds = array<i64: 224, 16>}, {pipeline_mode = #tpu.pipeline_mode<synchronous>, transform_indices = @transform_2, window_bounds = array<i64: 16, 16>}, {pipeline_mode = #tpu.pipeline_mode<synchronous>, transform_indices = @transform_3, window_bounds = array<i64: 1, 16>}, {transform_indices = @transform_4, window_bounds = array<i64: 224, 16>}]} {
    %c0 = arith.constant 0 : index
    %c0_0 = arith.constant 0 : index
    %0 = vector.load %arg1[%c0, %c0_0] : memref<224x16xf32, #tpu.memory_space<vmem>>, vector<224x16xf32>
    %c0_1 = arith.constant 0 : index
    %c0_2 = arith.constant 0 : index
    %1 = vector.load %arg3[%c0_1, %c0_2] : memref<16x16xf32, #tpu.memory_space<vmem>>, vector<16x16xf32>
    %cst = arith.constant dense<0.000000e+00> : vector<224x16xf32>
    %2 = tpu.matmul %0, %1, %cst {dimension_numbers = #tpu.dot_dimension_numbers<[1], [0], [0], [1], [0, 0, 1, 1], [], []>, precision = #tpu.contract_precision<fp32>} : vector<224x16xf32>, vector<16x16xf32>, vector<224x16xf32> -> vector<224x16xf32>
    %c0_3 = arith.constant 0 : index
    %c0_4 = arith.constant 0 : index
    %3 = vector.load %arg4[%c0_3, %c0_4] : memref<1x16xf32, #tpu.memory_space<vmem>>, vector<1x16xf32>
    %4 = vector.broadcast %3 : vector<1x16xf32> to vector<224x16xf32>
    %5 = arith.addf %2, %4 : vector<224x16xf32>
    %c0_5 = arith.constant 0 : index
    %c0_6 = arith.constant 0 : index
    %6 = vector.load %arg2[%c0_5, %c0_6] : memref<224x16xf32, #tpu.memory_space<vmem>>, vector<224x16xf32>
    %7 = arith.addf %5, %6 : vector<224x16xf32>
    %cst_7 = arith.constant 5.000000e-01 : f32
    %8 = vector.broadcast %cst_7 : f32 to vector<224x16xf32>
    %9 = arith.mulf %8, %7 : vector<224x16xf32>
    %cst_8 = arith.constant 0.707106769 : f32
    %10 = vector.broadcast %cst_8 : f32 to vector<224x16xf32>
    %11 = arith.mulf %7, %10 : vector<224x16xf32>
    %12 = math.absf %11 : vector<224x16xf32>
    %cst_9 = arith.constant 0.327591091 : f32
    %13 = vector.broadcast %cst_9 : f32 to vector<224x16xf32>
    %14 = arith.mulf %13, %12 : vector<224x16xf32>
    %cst_10 = arith.constant 1.000000e+00 : f32
    %15 = vector.broadcast %cst_10 : f32 to vector<224x16xf32>
    %16 = arith.addf %15, %14 : vector<224x16xf32>
    %cst_11 = arith.constant 1.000000e+00 : f32
    %17 = vector.broadcast %cst_11 : f32 to vector<224x16xf32>
    %18 = arith.divf %17, %16 : vector<224x16xf32>
    %cst_12 = arith.constant 1.06140542 : f32
    %19 = vector.broadcast %cst_12 : f32 to vector<224x16xf32>
    %20 = arith.mulf %19, %18 : vector<224x16xf32>
    %cst_13 = arith.constant 1.45315206 : f32
    %21 = vector.broadcast %cst_13 : f32 to vector<224x16xf32>
    %22 = arith.subf %20, %21 : vector<224x16xf32>
    %23 = arith.mulf %22, %18 : vector<224x16xf32>
    %cst_14 = arith.constant 1.42141378 : f32
    %24 = vector.broadcast %cst_14 : f32 to vector<224x16xf32>
    %25 = arith.addf %23, %24 : vector<224x16xf32>
    %26 = arith.mulf %25, %18 : vector<224x16xf32>
    %cst_15 = arith.constant 0.284496725 : f32
    %27 = vector.broadcast %cst_15 : f32 to vector<224x16xf32>
    %28 = arith.subf %26, %27 : vector<224x16xf32>
    %29 = arith.mulf %28, %18 : vector<224x16xf32>
    %cst_16 = arith.constant 0.254829586 : f32
    %30 = vector.broadcast %cst_16 : f32 to vector<224x16xf32>
    %31 = arith.addf %29, %30 : vector<224x16xf32>
    %32 = arith.mulf %31, %18 : vector<224x16xf32>
    %cst_17 = arith.constant 0.000000e+00 : f32
    %33 = vector.broadcast %cst_17 : f32 to vector<224x16xf32>
    %34 = arith.subf %33, %12 : vector<224x16xf32>
    %35 = arith.mulf %34, %12 : vector<224x16xf32>
    %36 = math.exp %35 : vector<224x16xf32>
    %37 = arith.mulf %32, %36 : vector<224x16xf32>
    %cst_18 = arith.constant 1.000000e+00 : f32
    %38 = vector.broadcast %cst_18 : f32 to vector<224x16xf32>
    %39 = arith.subf %38, %37 : vector<224x16xf32>
    %cst_19 = arith.constant 0.000000e+00 : f32
    %40 = vector.broadcast %cst_19 : f32 to vector<224x16xf32>
    %41 = arith.cmpf olt, %11, %40 : vector<224x16xf32>
    %cst_20 = arith.constant 0.000000e+00 : f32
    %42 = vector.broadcast %cst_20 : f32 to vector<224x16xf32>
    %43 = arith.subf %42, %39 : vector<224x16xf32>
    %44 = arith.select %41, %43, %39 : vector<224x16xi1>, vector<224x16xf32>
    %cst_21 = arith.constant 1.000000e+00 : f32
    %45 = vector.broadcast %cst_21 : f32 to vector<224x16xf32>
    %46 = arith.addf %45, %44 : vector<224x16xf32>
    %47 = arith.mulf %9, %46 : vector<224x16xf32>
    %c0_22 = arith.constant 0 : index
    %c0_23 = arith.constant 0 : index
    %48 = vector.load %arg5[%c0_22, %c0_23] : memref<224x16xf32, #tpu.memory_space<vmem>>, vector<224x16xf32>
    tpu.vector_store %arg5[%c0_22, %c0_23], %47 {strides = array<i32>} : memref<224x16xf32, #tpu.memory_space<vmem>>, vector<224x16xf32>,
    return
  }
  func.func @transform_0(%arg0: i32) -> (i32, i32) {
    %c0_i32 = arith.constant 0 : i32
    %c0_i32_0 = arith.constant 0 : i32
    return %arg0, %c0_i32 : i32, i32
  }
  func.func @transform_1(%arg0: i32) -> (i32, i32) {
    %c0_i32 = arith.constant 0 : i32
    %c0_i32_0 = arith.constant 0 : i32
    return %arg0, %c0_i32 : i32, i32
  }
  func.func @transform_2(%arg0: i32) -> (i32, i32) {
    %c0_i32 = arith.constant 0 : i32
    %c0_i32_0 = arith.constant 0 : i32
    %c0_i32_1 = arith.constant 0 : i32
    return %c0_i32, %c0_i32_0 : i32, i32
  }
  func.func @transform_3(%arg0: i32) -> (i32, i32) {
    %c0_i32 = arith.constant 0 : i32
    %c0_i32_0 = arith.constant 0 : i32
    %c0_i32_1 = arith.constant 0 : i32
    return %c0_i32, %c0_i32_0 : i32, i32
  }
  func.func @transform_4(%arg0: i32) -> (i32, i32) {
    %c0_i32 = arith.constant 0 : i32
    %c0_i32_0 = arith.constant 0 : i32
    return %arg0, %c0_i32 : i32, i32
  }
}

module attributes {stable_mosaic.version = 11 : i64} {
  func.func @_layer_epilogue_kernel(%arg0: i32, %arg1: memref<224x16xf32, #tpu.memory_space<vmem>>, %arg2: memref<224x16xf32, #tpu.memory_space<vmem>>, %arg3: memref<16x16xf32, #tpu.memory_space<vmem>>, %arg4: memref<1x16xf32, #tpu.memory_space<vmem>>, %arg5: memref<224x16xf32, #tpu.memory_space<vmem>>) attributes {dimension_semantics = [#tpu.dimension_semantics<parallel>], iteration_bounds = array<i64: 2>, scalar_prefetch = 0 : i64, scratch_operands = 0 : i64, tpu.core_type = #tpu.core_type<tc>, window_params = [{transform_indices = @transform_0, window_bounds = array<i64: 224, 16>}, {transform_indices = @transform_1, window_bounds = array<i64: 224, 16>}, {pipeline_mode = #tpu.pipeline_mode<synchronous>, transform_indices = @transform_2, window_bounds = array<i64: 16, 16>}, {pipeline_mode = #tpu.pipeline_mode<synchronous>, transform_indices = @transform_3, window_bounds = array<i64: 1, 16>}, {transform_indices = @transform_4, window_bounds = array<i64: 224, 16>}]} {
    %c0 = arith.constant 0 : index
    %c0_0 = arith.constant 0 : index
    %0 = vector.load %arg1[%c0, %c0_0] : memref<224x16xf32, #tpu.memory_space<vmem>>, vector<224x16xf32>
    %c0_1 = arith.constant 0 : index
    %c0_2 = arith.constant 0 : index
    %1 = vector.load %arg3[%c0_1, %c0_2] : memref<16x16xf32, #tpu.memory_space<vmem>>, vector<16x16xf32>
    %cst = arith.constant dense<0.000000e+00> : vector<224x16xf32>
    %2 = tpu.matmul %0, %1, %cst {dimension_numbers = #tpu.dot_dimension_numbers<[1], [0], [0], [1], [0, 0, 1, 1], [], []>, precision = #tpu.contract_precision<fp32>} : vector<224x16xf32>, vector<16x16xf32>, vector<224x16xf32> -> vector<224x16xf32>
    %c0_3 = arith.constant 0 : index
    %c0_4 = arith.constant 0 : index
    %3 = vector.load %arg4[%c0_3, %c0_4] : memref<1x16xf32, #tpu.memory_space<vmem>>, vector<1x16xf32>
    %4 = vector.broadcast %3 : vector<1x16xf32> to vector<224x16xf32>
    %5 = arith.addf %2, %4 : vector<224x16xf32>
    %c0_5 = arith.constant 0 : index
    %c0_6 = arith.constant 0 : index
    %6 = vector.load %arg2[%c0_5, %c0_6] : memref<224x16xf32, #tpu.memory_space<vmem>>, vector<224x16xf32>
    %7 = arith.addf %5, %6 : vector<224x16xf32>
    %c0_7 = arith.constant 0 : index
    %c0_8 = arith.constant 0 : index
    %8 = vector.load %arg5[%c0_7, %c0_8] : memref<224x16xf32, #tpu.memory_space<vmem>>, vector<224x16xf32>
    tpu.vector_store %arg5[%c0_7, %c0_8], %7 {strides = array<i32>} : memref<224x16xf32, #tpu.memory_space<vmem>>, vector<224x16xf32>,
    return
  }
  func.func @transform_0(%arg0: i32) -> (i32, i32) {
    %c0_i32 = arith.constant 0 : i32
    %c0_i32_0 = arith.constant 0 : i32
    return %arg0, %c0_i32 : i32, i32
  }
  func.func @transform_1(%arg0: i32) -> (i32, i32) {
    %c0_i32 = arith.constant 0 : i32
    %c0_i32_0 = arith.constant 0 : i32
    return %arg0, %c0_i32 : i32, i32
  }
  func.func @transform_2(%arg0: i32) -> (i32, i32) {
    %c0_i32 = arith.constant 0 : i32
    %c0_i32_0 = arith.constant 0 : i32
    %c0_i32_1 = arith.constant 0 : i32
    return %c0_i32, %c0_i32_0 : i32, i32
  }
  func.func @transform_3(%arg0: i32) -> (i32, i32) {
    %c0_i32 = arith.constant 0 : i32
    %c0_i32_0 = arith.constant 0 : i32
    %c0_i32_1 = arith.constant 0 : i32
    return %c0_i32, %c0_i32_0 : i32, i32
  }
  func.func @transform_4(%arg0: i32) -> (i32, i32) {
    %c0_i32 = arith.constant 0 : i32
    %c0_i32_0 = arith.constant 0 : i32
    return %arg0, %c0_i32 : i32, i32
  }
}

module attributes {stable_mosaic.version = 11 : i64} {
  func.func @_mlp_head_kernel(%arg0: i32, %arg1: memref<128x16xf32, #tpu.memory_space<vmem>>, %arg2: memref<16x128xf32, #tpu.memory_space<vmem>>, %arg3: memref<1x128xf32, #tpu.memory_space<vmem>>, %arg4: memref<128x1xf32, #tpu.memory_space<vmem>>, %arg5: memref<1x1xf32, #tpu.memory_space<vmem>>, %arg6: memref<128x1xf32, #tpu.memory_space<vmem>>) attributes {dimension_semantics = [#tpu.dimension_semantics<parallel>], iteration_bounds = array<i64: 2>, scalar_prefetch = 0 : i64, scratch_operands = 0 : i64, tpu.core_type = #tpu.core_type<tc>, window_params = [{transform_indices = @transform_0, window_bounds = array<i64: 128, 16>}, {pipeline_mode = #tpu.pipeline_mode<synchronous>, transform_indices = @transform_1, window_bounds = array<i64: 16, 128>}, {pipeline_mode = #tpu.pipeline_mode<synchronous>, transform_indices = @transform_2, window_bounds = array<i64: 1, 128>}, {pipeline_mode = #tpu.pipeline_mode<synchronous>, transform_indices = @transform_3, window_bounds = array<i64: 128, 1>}, {pipeline_mode = #tpu.pipeline_mode<synchronous>, transform_indices = @transform_4, window_bounds = array<i64: 1, 1>}, {transform_indices = @transform_5, window_bounds = array<i64: 128, 1>}]} {
    %c0 = arith.constant 0 : index
    %c0_0 = arith.constant 0 : index
    %0 = vector.load %arg1[%c0, %c0_0] : memref<128x16xf32, #tpu.memory_space<vmem>>, vector<128x16xf32>
    %c0_1 = arith.constant 0 : index
    %c0_2 = arith.constant 0 : index
    %1 = vector.load %arg2[%c0_1, %c0_2] : memref<16x128xf32, #tpu.memory_space<vmem>>, vector<16x128xf32>
    %cst = arith.constant dense<0.000000e+00> : vector<128x128xf32>
    %2 = tpu.matmul %0, %1, %cst {dimension_numbers = #tpu.dot_dimension_numbers<[1], [0], [0], [1], [0, 0, 1, 1], [], []>, precision = #tpu.contract_precision<fp32>} : vector<128x16xf32>, vector<16x128xf32>, vector<128x128xf32> -> vector<128x128xf32>
    %c0_3 = arith.constant 0 : index
    %c0_4 = arith.constant 0 : index
    %3 = vector.load %arg3[%c0_3, %c0_4] : memref<1x128xf32, #tpu.memory_space<vmem>>, vector<1x128xf32>
    %4 = vector.broadcast %3 : vector<1x128xf32> to vector<128x128xf32>
    %5 = arith.addf %2, %4 : vector<128x128xf32>
    %cst_5 = arith.constant 5.000000e-01 : f32
    %6 = vector.broadcast %cst_5 : f32 to vector<128x128xf32>
    %7 = arith.mulf %6, %5 : vector<128x128xf32>
    %cst_6 = arith.constant 0.707106769 : f32
    %8 = vector.broadcast %cst_6 : f32 to vector<128x128xf32>
    %9 = arith.mulf %5, %8 : vector<128x128xf32>
    %10 = math.absf %9 : vector<128x128xf32>
    %cst_7 = arith.constant 0.327591091 : f32
    %11 = vector.broadcast %cst_7 : f32 to vector<128x128xf32>
    %12 = arith.mulf %11, %10 : vector<128x128xf32>
    %cst_8 = arith.constant 1.000000e+00 : f32
    %13 = vector.broadcast %cst_8 : f32 to vector<128x128xf32>
    %14 = arith.addf %13, %12 : vector<128x128xf32>
    %cst_9 = arith.constant 1.000000e+00 : f32
    %15 = vector.broadcast %cst_9 : f32 to vector<128x128xf32>
    %16 = arith.divf %15, %14 : vector<128x128xf32>
    %cst_10 = arith.constant 1.06140542 : f32
    %17 = vector.broadcast %cst_10 : f32 to vector<128x128xf32>
    %18 = arith.mulf %17, %16 : vector<128x128xf32>
    %cst_11 = arith.constant 1.45315206 : f32
    %19 = vector.broadcast %cst_11 : f32 to vector<128x128xf32>
    %20 = arith.subf %18, %19 : vector<128x128xf32>
    %21 = arith.mulf %20, %16 : vector<128x128xf32>
    %cst_12 = arith.constant 1.42141378 : f32
    %22 = vector.broadcast %cst_12 : f32 to vector<128x128xf32>
    %23 = arith.addf %21, %22 : vector<128x128xf32>
    %24 = arith.mulf %23, %16 : vector<128x128xf32>
    %cst_13 = arith.constant 0.284496725 : f32
    %25 = vector.broadcast %cst_13 : f32 to vector<128x128xf32>
    %26 = arith.subf %24, %25 : vector<128x128xf32>
    %27 = arith.mulf %26, %16 : vector<128x128xf32>
    %cst_14 = arith.constant 0.254829586 : f32
    %28 = vector.broadcast %cst_14 : f32 to vector<128x128xf32>
    %29 = arith.addf %27, %28 : vector<128x128xf32>
    %30 = arith.mulf %29, %16 : vector<128x128xf32>
    %cst_15 = arith.constant 0.000000e+00 : f32
    %31 = vector.broadcast %cst_15 : f32 to vector<128x128xf32>
    %32 = arith.subf %31, %10 : vector<128x128xf32>
    %33 = arith.mulf %32, %10 : vector<128x128xf32>
    %34 = math.exp %33 : vector<128x128xf32>
    %35 = arith.mulf %30, %34 : vector<128x128xf32>
    %cst_16 = arith.constant 1.000000e+00 : f32
    %36 = vector.broadcast %cst_16 : f32 to vector<128x128xf32>
    %37 = arith.subf %36, %35 : vector<128x128xf32>
    %cst_17 = arith.constant 0.000000e+00 : f32
    %38 = vector.broadcast %cst_17 : f32 to vector<128x128xf32>
    %39 = arith.cmpf olt, %9, %38 : vector<128x128xf32>
    %cst_18 = arith.constant 0.000000e+00 : f32
    %40 = vector.broadcast %cst_18 : f32 to vector<128x128xf32>
    %41 = arith.subf %40, %37 : vector<128x128xf32>
    %42 = arith.select %39, %41, %37 : vector<128x128xi1>, vector<128x128xf32>
    %cst_19 = arith.constant 1.000000e+00 : f32
    %43 = vector.broadcast %cst_19 : f32 to vector<128x128xf32>
    %44 = arith.addf %43, %42 : vector<128x128xf32>
    %45 = arith.mulf %7, %44 : vector<128x128xf32>
    %c0_20 = arith.constant 0 : index
    %c0_21 = arith.constant 0 : index
    %46 = vector.load %arg4[%c0_20, %c0_21] : memref<128x1xf32, #tpu.memory_space<vmem>>, vector<128x1xf32>
    %cst_22 = arith.constant dense<0.000000e+00> : vector<128x1xf32>
    %47 = tpu.matmul %45, %46, %cst_22 {dimension_numbers = #tpu.dot_dimension_numbers<[1], [0], [0], [1], [0, 0, 1, 1], [], []>, precision = #tpu.contract_precision<fp32>} : vector<128x128xf32>, vector<128x1xf32>, vector<128x1xf32> -> vector<128x1xf32>
    %c0_23 = arith.constant 0 : index
    %c0_24 = arith.constant 0 : index
    %48 = vector.load %arg5[%c0_23, %c0_24] : memref<1x1xf32, #tpu.memory_space<vmem>>, vector<1x1xf32>
    %49 = vector.broadcast %48 : vector<1x1xf32> to vector<128x1xf32>
    %50 = arith.addf %47, %49 : vector<128x1xf32>
    %c0_25 = arith.constant 0 : index
    %c0_26 = arith.constant 0 : index
    %51 = vector.load %arg6[%c0_25, %c0_26] : memref<128x1xf32, #tpu.memory_space<vmem>>, vector<128x1xf32>
    tpu.vector_store %arg6[%c0_25, %c0_26], %50 {strides = array<i32>} : memref<128x1xf32, #tpu.memory_space<vmem>>, vector<128x1xf32>,
    return
  }
  func.func @transform_0(%arg0: i32) -> (i32, i32) {
    %c0_i32 = arith.constant 0 : i32
    %c0_i32_0 = arith.constant 0 : i32
    return %arg0, %c0_i32 : i32, i32
  }
  func.func @transform_1(%arg0: i32) -> (i32, i32) {
    %c0_i32 = arith.constant 0 : i32
    %c0_i32_0 = arith.constant 0 : i32
    %c0_i32_1 = arith.constant 0 : i32
    return %c0_i32, %c0_i32_0 : i32, i32
  }
  func.func @transform_2(%arg0: i32) -> (i32, i32) {
    %c0_i32 = arith.constant 0 : i32
    %c0_i32_0 = arith.constant 0 : i32
    %c0_i32_1 = arith.constant 0 : i32
    return %c0_i32, %c0_i32_0 : i32, i32
  }
  func.func @transform_3(%arg0: i32) -> (i32, i32) {
    %c0_i32 = arith.constant 0 : i32
    %c0_i32_0 = arith.constant 0 : i32
    %c0_i32_1 = arith.constant 0 : i32
    return %c0_i32, %c0_i32_0 : i32, i32
  }
  func.func @transform_4(%arg0: i32) -> (i32, i32) {
    %c0_i32 = arith.constant 0 : i32
    %c0_i32_0 = arith.constant 0 : i32
    %c0_i32_1 = arith.constant 0 : i32
    return %c0_i32, %c0_i32_0 : i32, i32
  }
  func.func @transform_5(%arg0: i32) -> (i32, i32) {
    %c0_i32 = arith.constant 0 : i32
    %c0_i32_0 = arith.constant 0 : i32
    return %arg0, %c0_i32 : i32, i32
  }
}

</mosaic_0001>

<bundles_post_ra>
// kernel: fno_forward.6
= control target key start
LH: loop header
LB: loop body
LE: loop exit
PB: predicated region body
PF: predicated region fallthrough
CT: control target
= control target key end

     0   :  { %s1753_s12 = smov 0   ;;  %s2289_s0 = inlined_call_operand.vmem [shape: f32[256,10], index: 0, kind: input, shape index: {}]   ;;  %s2290_s1 = inlined_call_operand.vmem [shape: f32[10,16], index: 1, kind: input, shape index: {}]   ;;  %s2291_s2 = inlined_call_operand.vmem [shape: f32[1,16], index: 2, kind: input, shape index: {}]   ;;  %s2292_s3 = inlined_call_operand.vmem [shape: f32[256,16], index: 3, kind: output, shape index: {}]  }
   0x1 LB: > { %s1429_s13 = sadd.s32 4294967295, %s1731_s12   ;;  %p1433_p0 = scmp.ge.s32.totalorder %s1731_s12, 1  ;;  %s1731_s12 = sphi %s1753_s12, %s13_s12  }
   0x2   : > { %p138_p1 = scmp.lt.s32.totalorder %s1731_s12, 3 }
   0x4   : > { %p139_p2 = pnand %p1433_p0, %p138_p1 }
   0x6   : > { %142 = sbr.rel (%p139_p2) target bundleno = 323 (0x143), region = 32 }
   0xb   : > { %v191_v0 = vld [vmem:[%s2290_s1 + $0x8] sm:$0x3]  ;;  %vm248_vm0 = vcmask 1041408   ;;  %v190_v1 = vld [vmem:[%s2290_s1] sm:$0xff]  ;;  %s1434_s18 = sshll.u32 %s1429_s13, 4  ;;  %vm199_vm1 = vcmask 80896  }
   0xc   : > { %v250_v2 = vsel %vm248_vm0, %v191_v0, 0  ;;  %v1767_v3 = vand.u32 4294901760, %v190_v1  ;;  %p163_p3 = scmp.lt.s32.totalorder %s1434_s18, 31  ;;  %vm1356_vm2 = vcmask 130048  }
   0xd   : > { %v1769_v4 = vand.u32 4294901760, %v250_v2 }
   0xe   : > { %v1772_v5 = vsub.f32 %v190_v1, %v1767_v3  ;;  %s2314_s18 = smov (!%p163_p3, %s1434_s18), 31 }
   0xf   : > { %1549 = vmatprep.subr.mxu0 %v1769_v4  ;;  %v1778_v6 = vsub.f32 %v250_v2, %v1769_v4  ;;  %s1435_s19 = sshll.u32 %s2314_s18, 3 }
  0x10   : > { %1550 = vmatpush3.msra.mxu0 %v1769_v4  ;;  %v1782_v7 = vand.u32 4294901760, %v1772_v5  ;;  %s1794_s22 = scalar_lea.vmem %s2289_s0, %s1435_s19  ;;  %s2203_s27 = scalar_lea.vmem %s2292_s3, %s1435_s19 }
  0x11   : > { %v1786_v8 = vand.u32 4294901760, %v1778_v6  ;;  %1551 = vmatprep.subr.mxu0 %v1767_v3  ;;  %v174_v10 = vld [vmem:[%s1794_s22] sm:$0xff]  ;;  %v175_v11 = vld [vmem:[%s1794_s22 + $0x8] sm:$0xff]  ;;  %v176_v12 = vld [vmem:[%s1794_s22 + $0x10] sm:$0xff] }
  0x12   : > { %1552 = vmatpush3.msra.mxu0 %v1767_v3  ;;  %v518_v9 = vsub.f32 %v1772_v5, %v1782_v7  ;;  %v201_v14 = vsel %vm199_vm1, %v174_v10, 0  ;;  %v204_v15 = vsel %vm199_vm1, %v175_v11, 0  ;;  %v207_v16 = vsel %vm199_vm1, %v176_v12, 0  ;;  %v177_v17 = vld [vmem:[%s1794_s22 + $0x18] sm:$0xff]  ;;  %v178_v18 = vld [vmem:[%s1794_s22 + $0x20] sm:$0xff]  ;;  %v179_v19 = vld [vmem:[%s1794_s22 + $0x28] sm:$0xff] }
  0x13   : > { %v511_v13 = vsub.f32 %v1778_v6, %v1786_v8  ;;  %1605 = vmatprep.subr.mxu0 %v1778_v6  ;;  %v1811_v21 = vand.u32 4294901760, %v201_v14  ;;  %v1813_v22 = vand.u32 4294901760, %v204_v15  ;;  %v1815_v23 = vand.u32 4294901760, %v207_v16  ;;  %v180_v24 = vld [vmem:[%s1794_s22 + $0x30] sm:$0xff]  ;;  %v181_v25 = vld [vmem:[%s1794_s22 + $0x38] sm:$0xff]  ;;  %v182_v54 = vld [vmem:[%s1794_s22 + $0x40] sm:$0xff] }
  0x14   : > { %v519_v20 = vand.u32 4294901760, %v518_v9  ;;  %v210_v27 = vsel %vm199_vm1, %v177_v17, 0  ;;  %v213_v28 = vsel %vm199_vm1, %v178_v18, 0  ;;  %v216_v29 = vsel %vm199_vm1, %v179_v19, 0  ;;  %v183_v55 = vld [vmem:[%s1794_s22 + $0x48] sm:$0xff]  ;;  %v184_v56 = vld [vmem:[%s1794_s22 + $0x50] sm:$0xff] }
  0x15   : > { %v512_v26 = vand.u32 4294901760, %v511_v13  ;;  %v1823_v30 = vsub.f32 %v201_v14, %v1811_v21  ;;  %1581 = vmatprep.mubr.f32.mxu1 %v1811_v21  ;;  %v1827_v31 = vsub.f32 %v204_v15, %v1813_v22  ;;  %v1830_v32 = vsub.f32 %v207_v16, %v1815_v23  ;;  %v185_v1 = vld [vmem:[%s1794_s22 + $0x58] sm:$0xff]  ;;  %v186_v11 = vld [vmem:[%s1794_s22 + $0x60] sm:$0xff]  ;;  %v187_v16 = vld [vmem:[%s1794_s22 + $0x68] sm:$0xff] }
  0x16   : > { %v1832_v33 = vand.u32 4294901760, %v210_v27  ;;  %v1834_v34 = vand.u32 4294901760, %v213_v28  ;;  %v1836_v35 = vand.u32 4294901760, %v216_v29  ;;  %v219_v36 = vsel %vm199_vm1, %v180_v24, 0  ;;  %v188_v24 = vld [vmem:[%s1794_s22 + $0x70] sm:$0xff] }
  0x17   : > { %1577 = vmatprep.subr.mxu1 %v512_v26  ;;  %v222_v37 = vsel %vm199_vm1, %v181_v25, 0  ;;  %v321_v38 = vand.u32 4294901760, %v1823_v30  ;;  %v331_v39 = vand.u32 4294901760, %v1827_v31  ;;  %v341_v40 = vand.u32 4294901760, %v1830_v32  ;;  %v189_v25 = vld [vmem:[%s1794_s22 + $0x78] sm:$0xff] }
  0x18   : > { %1578 = vmatpush3.msra.mxu1 %v512_v26  ;;  %v1844_v41 = vsub.f32 %v210_v27, %v1832_v33  ;;  %v1847_v42 = vsub.f32 %v213_v28, %v1834_v34  ;;  %v1850_v43 = vsub.f32 %v216_v29, %v1836_v35  ;;  %v1852_v44 = vand.u32 4294901760, %v219_v36 }
  0x19   : > { %1579 = vmatprep.subr.mxu1 %v519_v20  ;;  %v1854_v45 = vand.u32 4294901760, %v222_v37  ;;  %v322_v46 = vsub.f32 %v1823_v30, %v321_v38  ;;  %v332_v47 = vsub.f32 %v1827_v31, %v331_v39  ;;  %v342_v48 = vsub.f32 %v1830_v32, %v341_v40 }
  0x1a   : > { %1580 = vmatpush3.msra.mxu1 %v519_v20  ;;  %v351_v49 = vand.u32 4294901760, %v1844_v41  ;;  %v361_v50 = vand.u32 4294901760, %v1847_v42  ;;  %v371_v51 = vand.u32 4294901760, %v1850_v43  ;;  %v1871_v52 = vsub.f32 %v219_v36, %v1852_v44 }
  0x1b   : > { %1582 = vmatmul.mubr.f32.vlgmr.msra.gmra.mxu1 %v1813_v22  ;;  %1633 = vmatprep.subr.mxu1 %v1769_v4  ;;  %v1874_v53 = vsub.f32 %v222_v37, %v1854_v45  ;;  %v323_v57 = vand.u32 4294901760, %v322_v46  ;;  %v333_v58 = vand.u32 4294901760, %v332_v47  ;;  %v343_v59 = vand.u32 4294901760, %v342_v48 }
  0x1c   : > { %1634 = vmatpush3.msra.mxu1 %v1769_v4  ;;  %1584 = vmatprep.mubr.f32.mxu1 %v1815_v23  ;;  %v352_v60 = vsub.f32 %v1844_v41, %v351_v49  ;;  %v362_v61 = vsub.f32 %v1847_v42, %v361_v50  ;;  %v372_v62 = vsub.f32 %v1850_v43, %v371_v51  ;;  %v381_v63 = vand.u32 4294901760, %v1871_v52 }
  0x1d   : > { %v391_v0 = vand.u32 4294901760, %v1874_v53  ;;  %1635 = vmatprep.subr.mxu1 %v1767_v3  ;;  %1553 = vmatprep.mubr.f32.mxu0 %v323_v57  ;;  %v225_v2 = vsel %vm199_vm1, %v182_v54, 0  ;;  %v228_v9 = vsel %vm199_vm1, %v183_v55, 0  ;;  %v231_v10 = vsel %vm199_vm1, %v184_v56, 0 }
  0x1e   : > { %1636 = vmatpush3.msra.mxu1 %v1767_v3  ;;  %1554 = vmatmul.mubr.f32.vlgmr.msra.gmra.mxu0 %v333_v58  ;;  %v353_v12 = vand.u32 4294901760, %v352_v60  ;;  %v363_v13 = vand.u32 4294901760, %v362_v61  ;;  %v373_v14 = vand.u32 4294901760, %v372_v62  ;;  %v382_v15 = vsub.f32 %v1871_v52, %v381_v63 }
  0x1f   : > { %1585 = vmatmul.mubr.f32.gmra.mxu1 %v1832_v33  ;;  %1606 = vmatpush3.msra.mxu0 %v1778_v6  ;;  %v1905_v17 = vand.u32 4294901760, %v225_v2  ;;  %v1907_v18 = vand.u32 4294901760, %v228_v9  ;;  %v1909_v19 = vand.u32 4294901760, %v231_v10  ;;  %v234_v20 = vsel %vm199_vm1, %v185_v1, 0 }
  0x20   : > { %1556 = vmatprep.mubr.f32.mxu0 %v343_v59  ;;  %1587 = vmatprep.mubr.f32.mxu1 %v1834_v34  ;;  %v383_v26 = vand.u32 4294901760, %v382_v15  ;;  %v392_v27 = vsub.f32 %v1874_v53, %v391_v0  ;;  %v1919_v6 = vand.u32 4294901760, %v234_v20  ;;  %v237_v28 = vsel %vm199_vm1, %v186_v11, 0 }
  0x21   : > { %1607 = vmatprep.subr.mxu0 %v1772_v5  ;;  %v1923_v29 = vsub.f32 %v225_v2, %v1905_v17  ;;  %v1926_v36 = vsub.f32 %v228_v9, %v1907_v18  ;;  %v1930_v37 = vsub.f32 %v231_v10, %v1909_v19  ;;  %v1932_v46 = vand.u32 4294901760, %v237_v28  ;;  %1689 = vmatprep.subr.mxu1 %v1769_v4 }
  0x22   : > { %1608 = vmatpush3.msra.mxu0 %v1772_v5  ;;  %v1937_v47 = vsub.f32 %v234_v20, %v1919_v6  ;;  %v240_v48 = vsel %vm199_vm1, %v187_v16, 0  ;;  %v243_v54 = vsel %vm199_vm1, %v188_v24, 0  ;;  %v246_v55 = vsel %vm199_vm1, %v189_v25, 0 }
  0x23   : > { %1557 = vmatmul.mubr.f32.gmra.mxu0 %v353_v12  ;;  %1588 = vmatmul.mubr.f32.gmra.mxu1 %v1836_v35  ;;  %v401_v5 = vand.u32 4294901760, %v1923_v29  ;;  %v411_v56 = vand.u32 4294901760, %v1926_v36  ;;  %v421_v57 = vand.u32 4294901760, %v1930_v37  ;;  %v1947_v58 = vsub.f32 %v237_v28, %v1932_v46 }
  0x24   : > { %1559 = vmatprep.mubr.f32.mxu0 %v363_v13  ;;  %1590 = vmatprep.mubr.f32.mxu1 %v1852_v44  ;;  %v1949_v59 = vand.u32 4294901760, %v240_v48  ;;  %v1951_v60 = vand.u32 4294901760, %v243_v54  ;;  %v393_v61 = vand.u32 4294901760, %v392_v27  ;;  %v431_v2 = vand.u32 4294901760, %v1937_v47 }
  0x25   : > { %1661 = vmatprep.subr.mxu0 %v1786_v8  ;;  %v402_v62 = vsub.f32 %v1923_v29, %v401_v5  ;;  %v412_v1 = vsub.f32 %v1926_v36, %v411_v56  ;;  %v1965_v10 = vand.u32 4294901760, %v246_v55  ;;  %v422_v12 = vsub.f32 %v1930_v37, %v421_v57 }
  0x26   : > { %v1963_v9 = vsub.f32 %v240_v48, %v1949_v59  ;;  %v441_v13 = vand.u32 4294901760, %v1947_v58  ;;  %v432_v16 = vsub.f32 %v1937_v47, %v431_v2 }
  0x27   : > { %1560 = vmatmul.mubr.f32.gmra.mxu0 %v373_v14  ;;  %1591 = vmatmul.mubr.f32.gmra.mxu1 %v1854_v45  ;;  %v403_v11 = vand.u32 4294901760, %v402_v62  ;;  %v1973_v14 = vsub.f32 %v243_v54, %v1951_v60  ;;  %v413_v15 = vand.u32 4294901760, %v412_v1  ;;  %v1981_v24 = vsub.f32 %v246_v55, %v1965_v10 }
  0x28   : > { %1562 = vmatprep.mubr.f32.mxu0 %v383_v26  ;;  %1593 = vmatprep.mubr.f32.mxu1 %v1905_v17  ;;  %v451_v20 = vand.u32 4294901760, %v1963_v9  ;;  %v423_v25 = vand.u32 4294901760, %v422_v12  ;;  %v442_v26 = vsub.f32 %v1947_v58, %v441_v13  ;;  %v433_v28 = vand.u32 4294901760, %v432_v16 }
  0x29   : > { %v461_v27 = vand.u32 4294901760, %v1973_v14  ;;  %v471_v54 = vand.u32 4294901760, %v1981_v24 }
  0x2a   : > { %v452_v48 = vsub.f32 %v1963_v9, %v451_v20 }
  0x2b   : > { %1563 = vmatmul.mubr.f32.gmra.mxu0 %v393_v61  ;;  %1594 = vmatmul.mubr.f32.gmra.mxu1 %v1907_v18  ;;  %v443_v61 = vand.u32 4294901760, %v442_v26  ;;  %v462_v55 = vsub.f32 %v1973_v14, %v461_v27  ;;  %v472_v1 = vsub.f32 %v1981_v24, %v471_v54 }
  0x2c   : > { %1565 = vmatprep.mubr.f32.mxu0 %v403_v11  ;;  %1596 = vmatprep.mubr.f32.mxu1 %v1909_v19  ;;  %v453_v62 = vand.u32 4294901760, %v452_v48 }
  0x2d   : > { %v463_v11 = vand.u32 4294901760, %v462_v55  ;;  %v473_v12 = vand.u32 4294901760, %v472_v1 }
  0x2f   : > { %1566 = vmatmul.mubr.f32.gmra.mxu0 %v413_v15  ;;  %1597 = vmatmul.mubr.f32.gmra.mxu1 %v1919_v6 }
  0x30   : > { %1568 = vmatprep.mubr.f32.mxu0 %v423_v25  ;;  %1599 = vmatprep.mubr.f32.mxu1 %v1932_v46  ;;  %v2154_v25 = vld [vmem:[%s2291_s2] ss:$0 sm:$0xff] }
  0x33   : > { %1569 = vmatmul.mubr.f32.gmra.mxu0 %v433_v28  ;;  %1600 = vmatmul.mubr.f32.gmra.mxu1 %v1949_v59 }
  0x34   : > { %1571 = vmatprep.mubr.f32.mxu0 %v443_v61  ;;  %1602 = vmatprep.mubr.f32.mxu1 %v1951_v60 }
  0x37   : > { %1572 = vmatmul.mubr.f32.gmra.mxu0 %v453_v62  ;;  %1603 = vmatmul.mubr.f32.gmra.mxu1 %v1965_v10 }
  0x38   : > { %1574 = vmatprep.mubr.f32.mxu0 %v463_v11  ;;  %1637 = vmatprep.mubr.f32.mxu1 %v321_v38 }
  0x3b   : > { %1575 = vmatmul.mubr.f32.gmra.mxu0 %v473_v12  ;;  %1638 = vmatmul.mubr.f32.vlgmr.msra.gmra.mxu1 %v331_v39 }
  0x3c   : > { %1609 = vmatprep.mubr.f32.mxu0 %v1823_v30  ;;  %1690 = vmatpush3.msra.mxu1 %v1769_v4 }
  0x3d   : > { %1640 = vmatprep.mubr.f32.mxu1 %v341_v40  ;;  %1691 = vmatprep.subr.mxu1 %v1767_v3 }
  0x3e   : > { %1692 = vmatpush3.msra.mxu1 %v1767_v3 }
  0x3f   : > { %1610 = vmatmul.mubr.f32.vlgmr.msra.gmra.mxu0 %v1827_v31  ;;  %1641 = vmatmul.mubr.f32.gmra.mxu1 %v351_v49 }
  0x40   : > { %1662 = vmatpush3.msra.mxu0 %v1786_v8  ;;  %1612 = vmatprep.mubr.f32.mxu0 %v1830_v32 }
  0x41   : > { %1643 = vmatprep.mubr.f32.mxu1 %v361_v50  ;;  %1663 = vmatprep.subr.mxu0 %v1782_v7 }
  0x42   : > { %1664 = vmatpush3.msra.mxu0 %v1782_v7 }
  0x43   : > { %1613 = vmatmul.mubr.f32.gmra.mxu0 %v1844_v41  ;;  %1644 = vmatmul.mubr.f32.gmra.mxu1 %v371_v51 }
  0x44   : > { %1615 = vmatprep.mubr.f32.mxu0 %v1847_v42  ;;  %1646 = vmatprep.mubr.f32.mxu1 %v381_v63 }
  0x47   : > { %1616 = vmatmul.mubr.f32.gmra.mxu0 %v1850_v43  ;;  %1647 = vmatmul.mubr.f32.gmra.mxu1 %v391_v0 }
  0x48   : > { %1618 = vmatprep.mubr.f32.mxu0 %v1871_v52  ;;  %1649 = vmatprep.mubr.f32.mxu1 %v401_v5 }
  0x4b   : > { %1619 = vmatmul.mubr.f32.gmra.mxu0 %v1874_v53  ;;  %1650 = vmatmul.mubr.f32.gmra.mxu1 %v411_v56 }
  0x4c   : > { %1621 = vmatprep.mubr.f32.mxu0 %v1923_v29  ;;  %1652 = vmatprep.mubr.f32.mxu1 %v421_v57 }
  0x4f   : > { %1622 = vmatmul.mubr.f32.gmra.mxu0 %v1926_v36  ;;  %1653 = vmatmul.mubr.f32.gmra.mxu1 %v431_v2 }
  0x50   : > { %1624 = vmatprep.mubr.f32.mxu0 %v1930_v37  ;;  %1655 = vmatprep.mubr.f32.mxu1 %v441_v13 }
  0x53   : > { %1625 = vmatmul.mubr.f32.gmra.mxu0 %v1937_v47  ;;  %1656 = vmatmul.mubr.f32.gmra.mxu1 %v451_v20 }
  0x54   : > { %1627 = vmatprep.mubr.f32.mxu0 %v1947_v58  ;;  %1658 = vmatprep.mubr.f32.mxu1 %v461_v27 }
  0x57   : > { %1628 = vmatmul.mubr.f32.gmra.mxu0 %v1963_v9  ;;  %1659 = vmatmul.mubr.f32.gmra.mxu1 %v471_v54 }
  0x58   : > { %1630 = vmatprep.mubr.f32.mxu0 %v1973_v14  ;;  %1693 = vmatprep.mubr.f32.mxu1 %v1811_v21 }
  0x5b   : > { %1631 = vmatmul.mubr.f32.gmra.mxu0 %v1981_v24  ;;  %1694 = vmatmul.mubr.f32.vlgmr.msra.gmra.mxu1 %v1813_v22 }
  0x5c   : > { %1665 = vmatprep.mubr.f32.mxu0 %v1811_v21  ;;  %1696 = vmatprep.mubr.f32.mxu1 %v1815_v23 }
  0x5f   : > { %1666 = vmatmul.mubr.f32.vlgmr.msra.gmra.mxu0 %v1813_v22  ;;  %1697 = vmatmul.mubr.f32.gmra.mxu1 %v1832_v33 }
  0x60   : > { %1668 = vmatprep.mubr.f32.mxu0 %v1815_v23  ;;  %1699 = vmatprep.mubr.f32.mxu1 %v1834_v34 }
  0x63   : > { %1669 = vmatmul.mubr.f32.gmra.mxu0 %v1832_v33  ;;  %1700 = vmatmul.mubr.f32.gmra.mxu1 %v1836_v35 }
  0x64   : > { %1671 = vmatprep.mubr.f32.mxu0 %v1834_v34  ;;  %1702 = vmatprep.mubr.f32.mxu1 %v1852_v44 }
  0x67   : > { %1672 = vmatmul.mubr.f32.gmra.mxu0 %v1836_v35  ;;  %1703 = vmatmul.mubr.f32.gmra.mxu1 %v1854_v45 }
  0x68   : > { %1674 = vmatprep.mubr.f32.mxu0 %v1852_v44  ;;  %1705 = vmatprep.mubr.f32.mxu1 %v1905_v17 }
  0x6b   : > { %1675 = vmatmul.mubr.f32.gmra.mxu0 %v1854_v45  ;;  %1706 = vmatmul.mubr.f32.gmra.mxu1 %v1907_v18 }
  0x6c   : > { %1677 = vmatprep.mubr.f32.mxu0 %v1905_v17  ;;  %1708 = vmatprep.mubr.f32.mxu1 %v1909_v19 }
  0x6f   : > { %1678 = vmatmul.mubr.f32.gmra.mxu0 %v1907_v18  ;;  %1709 = vmatmul.mubr.f32.gmra.mxu1 %v1919_v6 }
  0x70   : > { %1680 = vmatprep.mubr.f32.mxu0 %v1909_v19  ;;  %1711 = vmatprep.mubr.f32.mxu1 %v1932_v46 }
  0x73   : > { %1681 = vmatmul.mubr.f32.gmra.mxu0 %v1919_v6  ;;  %1712 = vmatmul.mubr.f32.gmra.mxu1 %v1949_v59 }
  0x74   : > { %1683 = vmatprep.mubr.f32.mxu0 %v1932_v46  ;;  %1714 = vmatprep.mubr.f32.mxu1 %v1951_v60 }
  0x77   : > { %1684 = vmatmul.mubr.f32.gmra.mxu0 %v1949_v59  ;;  %1715 = vmatmul.mubr.f32.gmra.mxu1 %v1965_v10 }
  0x78   : > { %1686 = vmatprep.mubr.f32.mxu0 %v1951_v60 }
  0x7b   : > { %1687 = vmatmul.mubr.f32.gmra.mxu0 %v1965_v10 }
  0xdb   : > { %v2073_v3 = vpop.f32.mrf.mxu1 }
  0xdd   : > { %v2075_v4 = vpop.f32.mrf.mxu1 }
  0xde   : > { %v1555_v7 = vpop.f32.mrf.mxu0 }
  0xdf   : > { %v2077_v8 = vpop.f32.mrf.mxu1  ;;  %v336_v54 = vadd.f32 %v1555_v7, %v2154_v25 }
  0xe0   : > { %v325_v21 = vpop.f32.mrf.mxu0 }
  0xe1   : > { %v2079_v22 = vpop.f32.mrf.mxu1  ;;  %v326_v62 = vadd.f32 %v2154_v25, %v325_v21  ;;  %v563_v12 = vadd.f32 %v2073_v3, %v336_v54 }
  0xe3   : > { %v1558_v23 = vpop.f32.mrf.mxu0  ;;  %v2081_v30 = vpop.f32.mrf.mxu1  ;;  %v557_v7 = vadd.f32 %v2075_v4, %v326_v62 }
  0xe5   : > { %v345_v31 = vpop.f32.mrf.mxu0  ;;  %v2083_v32 = vpop.f32.mrf.mxu1 }
  0xe7   : > { %v2085_v33 = vpop.f32.mrf.mxu0  ;;  %v2087_v34 = vpop.f32.mrf.mxu1 }
  0xe9   : > { %v2089_v35 = vpop.f32.mrf.mxu0  ;;  %v2091_v38 = vpop.f32.mrf.mxu1 }
  0xeb   : > { %v2093_v39 = vpop.f32.mrf.mxu0  ;;  %v2095_v40 = vpop.f32.mrf.mxu1 }
  0xec   : > { %v396_v62 = vadd.f32 %v2093_v39, %v2154_v25 }
  0xed   : > { %v2097_v41 = vpop.f32.mrf.mxu0  ;;  %v2099_v42 = vpop.f32.mrf.mxu1 }
  0xef   : > { %v2101_v43 = vpop.f32.mrf.mxu0  ;;  %v2103_v44 = vpop.f32.mrf.mxu1 }
  0xf1   : > { %v2105_v45 = vpop.f32.mrf.mxu0  ;;  %v2107_v49 = vpop.f32.mrf.mxu1 }
  0xf3   : > { %v2109_v50 = vpop.f32.mrf.mxu0  ;;  %v2111_v51 = vpop.f32.mrf.mxu1 }
  0xf5   : > { %v2113_v52 = vpop.f32.mrf.mxu0  ;;  %v2115_v53 = vpop.f32.mrf.mxu1 }
  0xf7   : > { %v2117_v63 = vpop.f32.mrf.mxu0  ;;  %v2119_v0 = vpop.f32.mrf.mxu1 }
  0xf8   : > { %2293 = vst [vmem:[#allocation2_spill] sm:$0xff] %v2119_v0 }
  0xf9   : > { %v2121_v17 = vpop.f32.mrf.mxu0  ;;  %v2123_v18 = vpop.f32.mrf.mxu1 }
  0xfa   : > { %2294 = vst [vmem:[#allocation3_spill] sm:$0xff] %v2123_v18  ;;  %v356_v18 = vadd.f32 %v1558_v23, %v2154_v25  ;;  %v366_v23 = vadd.f32 %v2154_v25, %v2089_v35  ;;  %v386_v35 = vadd.f32 %v2154_v25, %v2097_v41  ;;  %v416_v41 = vadd.f32 %v2101_v43, %v2154_v25 }
  0xfb   : > { %v2125_v19 = vpop.f32.mrf.mxu0  ;;  %v1639_v6 = vpop.f32.mrf.mxu1 }
  0xfd   : > { %v2127_v29 = vpop.f32.mrf.mxu0  ;;  %v902_v36 = vpop.f32.mrf.mxu1 }
  0xff   : > { %v1611_v37 = vpop.f32.mrf.mxu0  ;;  %v1642_v46 = vpop.f32.mrf.mxu1 }
 0x101   : > { %v722_v47 = vpop.f32.mrf.mxu0  ;;  %v2129_v5 = vpop.f32.mrf.mxu1 }
 0x102   : > { %v723_v3 = vadd.f32 %v722_v47, %v557_v7 }
 0x103   : > { %v1614_v56 = vpop.f32.mrf.mxu0  ;;  %v2131_v57 = vpop.f32.mrf.mxu1 }
 0x105   : > { %v736_v58 = vpop.f32.mrf.mxu0  ;;  %v2133_v59 = vpop.f32.mrf.mxu1 }
 0x107   : > { %v1617_v60 = vpop.f32.mrf.mxu0  ;;  %v2135_v2 = vpop.f32.mrf.mxu1 }
 0x109   : > { %v750_v9 = vpop.f32.mrf.mxu0  ;;  %v2137_v10 = vpop.f32.mrf.mxu1 }
 0x10b   : > { %v2139_v13 = vpop.f32.mrf.mxu0  ;;  %v2141_v14 = vpop.f32.mrf.mxu1 }
 0x10d   : > { %v2143_v15 = vpop.f32.mrf.mxu0  ;;  %v2145_v16 = vpop.f32.mrf.mxu1 }
 0x10f   : > { %v2147_v20 = vpop.f32.mrf.mxu0  ;;  %v2149_v24 = vpop.f32.mrf.mxu1 }
 0x110   : > { %2295 = vst [vmem:[#allocation4_spill] sm:$0xff] %v2149_v24  ;;  %v730_v24 = vadd.f32 %v1611_v37, %v563_v12 }
 0x111   : > { %v2156_v26 = vpop.f32.mrf.mxu0  ;;  %v2158_v27 = vpop.f32.mrf.mxu1 }
 0x112   : > { %2296 = vst [vmem:[#allocation5_spill] sm:$0xff] %v2158_v27 }
 0x113   : > { %v2160_v28 = vpop.f32.mrf.mxu0  ;;  %v2162_v48 = vpop.f32.mrf.mxu1 }
 0x114   : > { %2297 = vst [vmem:[#allocation6_spill] sm:$0xff] %v2162_v48  ;;  %v346_v48 = vadd.f32 %v2154_v25, %v345_v31  ;;  %v911_v31 = vadd.f32 %v1639_v6, %v730_v24 }
 0x115   : > { %v2165_v61 = vpop.f32.mrf.mxu0  ;;  %v2167_v55 = vpop.f32.mrf.mxu1 }
 0x116   : > { %2298 = vst [vmem:[#allocation7_spill] sm:$0xff] %v2167_v55  ;;  %v569_v4 = vadd.f32 %v2079_v22, %v346_v48 }
 0x117   : > { %v2170_v1 = vpop.f32.mrf.mxu0  ;;  %v2172_v11 = vpop.f32.mrf.mxu1 }
 0x118   : > { %2299 = vst [vmem:[#allocation8_spill] sm:$0xff] %v2170_v1  ;;  %2300 = vst [vmem:[#allocation9_spill] sm:$0xff] %v2172_v11  ;;  %v575_v1 = vadd.f32 %v2077_v8, %v356_v18  ;;  %v376_v11 = vadd.f32 %v2085_v33, %v2154_v25  ;;  %v903_v33 = vadd.f32 %v902_v36, %v723_v3 }
 0x119   : > { %v2176_v27 = vpop.f32.mrf.mxu0  ;;  %v2178_v0 = vpop.f32.mrf.mxu1  ;;  %v737_v47 = vadd.f32 %v736_v58, %v569_v4 }
 0x11a   : > { %2301 = vst [vmem:[#allocation10_spill] sm:$0xff] %v2178_v0  ;;  %v744_v37 = vadd.f32 %v1614_v56, %v575_v1  ;;  %v587_v18 = vadd.f32 %v2081_v30, %v376_v11 }
 0x11b   : > { %v2182_v55 = vpop.f32.mrf.mxu0  ;;  %v1695_v21 = vpop.f32.mrf.mxu1  ;;  %v919_v48 = vadd.f32 %v2129_v5, %v737_v47 }
 0x11c   : > { %2302 = vst [vmem:[#allocation11_spill] sm:$0xff] %v2182_v55  ;;  %v581_v55 = vadd.f32 %v2083_v32, %v366_v23  ;;  %v927_v6 = vadd.f32 %v1642_v46, %v744_v37  ;;  %v758_v30 = vadd.f32 %v1617_v60, %v587_v18  ;;  %v599_v32 = vadd.f32 %v2087_v34, %v396_v62 }
 0x11d   : > { %v2189_v54 = vpop.f32.mrf.mxu0  ;;  %v1262_v0 = vpop.f32.mrf.mxu1  ;;  %v593_v46 = vadd.f32 %v2091_v38, %v386_v35  ;;  %v406_v60 = vadd.f32 %v2154_v25, %v2105_v45  ;;  %v426_v62 = vadd.f32 %v2154_v25, %v2113_v52 }
 0x11e   : > { %v751_v1 = vadd.f32 %v750_v9, %v581_v55  ;;  %v943_v23 = vadd.f32 %v2131_v57, %v758_v30  ;;  %v772_v43 = vadd.f32 %v2139_v13, %v599_v32  ;;  %v436_v55 = vadd.f32 %v2109_v50, %v2154_v25 }
 0x11f   : > { %v1667_v12 = vpop.f32.mrf.mxu0  ;;  %v1698_v8 = vpop.f32.mrf.mxu1  ;;  %v605_v37 = vadd.f32 %v2099_v42, %v406_v60  ;;  %v617_v35 = vadd.f32 %v2107_v49, %v426_v62 }
 0x120   : > { %v1106_v7 = vadd.f32 %v1667_v12, %v911_v31  ;;  %v935_v45 = vadd.f32 %v2133_v59, %v751_v1  ;;  %v765_v31 = vadd.f32 %v2143_v15, %v593_v46  ;;  %v959_v50 = vadd.f32 %v2135_v2, %v772_v43  ;;  %v2304_v1 = vld [vmem:[#allocation8_spill] sm:$0xff]  ;;  %v2307_v43 = vld [vmem:[#allocation3_spill] sm:$0xff] }
 0x121   : > { %v1099_v22 = vpop.f32.mrf.mxu0  ;;  %v1274_v39 = vpop.f32.mrf.mxu1  ;;  %v623_v18 = vadd.f32 %v2103_v44, %v436_v55  ;;  %v793_v32 = vadd.f32 %v2165_v61, %v617_v35 }
 0x122   : > { %v1269_v36 = vadd.f32 %v1695_v21, %v1106_v7  ;;  %v1100_v56 = vadd.f32 %v1099_v22, %v903_v33  ;;  %v456_v33 = vadd.f32 %v2117_v63, %v2154_v25  ;;  %v951_v52 = vadd.f32 %v2137_v10, %v765_v31 }
 0x123   : > { %v1670_v58 = vpop.f32.mrf.mxu0  ;;  %v1701_v24 = vpop.f32.mrf.mxu1  ;;  %v779_v7 = vadd.f32 %v2156_v26, %v605_v37  ;;  %v446_v22 = vadd.f32 %v2154_v25, %v2121_v17 }
 0x124   : > { %1358 = vst.msk [vmem:[%s2203_s27 + $0x8] sm:$0xff] %vm1356_vm2, %v1269_v36  ;;  %v1263_v11 = vadd.f32 %v1262_v0, %v1100_v56  ;;  %v1118_v3 = vadd.f32 %v1670_v58, %v927_v6  ;;  %v611_v0 = vadd.f32 %v2095_v40, %v416_v41  ;;  %v800_v6 = vadd.f32 %v2160_v28, %v623_v18 }
 0x125   : > { %v1111_v21 = vpop.f32.mrf.mxu0  ;;  %v1286_v34 = vpop.f32.mrf.mxu1  ;;  %v635_v30 = vadd.f32 %v2111_v51, %v456_v33  ;;  %v476_v36 = vadd.f32 %v2125_v19, %v2154_v25  ;;  %v967_v17 = vadd.f32 %v2145_v16, %v779_v7  ;;  %v629_v41 = vadd.f32 %v2115_v53, %v446_v22 }
 0x126   : > { %1357 = vst.msk [vmem:[%s2203_s27] sm:$0xff] %vm1356_vm2, %v1263_v11  ;;  %v1281_v5 = vadd.f32 %v1698_v8, %v1118_v3  ;;  %v1112_v9 = vadd.f32 %v1111_v21, %v919_v48  ;;  %v786_v8 = vadd.f32 %v2147_v20, %v611_v0  ;;  %v466_v58 = vadd.f32 %v2154_v25, %v2127_v29  ;;  %v2303_v48 = vld [vmem:[#allocation4_spill] sm:$0xff]  ;;  %v2305_v3 = vld [vmem:[#allocation2_spill] sm:$0xff] }
 0x127   : > { %v1673_v38 = vpop.f32.mrf.mxu0  ;;  %v1704_v4 = vpop.f32.mrf.mxu1  ;;  %v991_v19 = vadd.f32 %v2303_v48, %v800_v6  ;;  %v814_v11 = vadd.f32 %v2304_v1, %v635_v30  ;;  %v647_v46 = vadd.f32 %v2305_v3, %v476_v36  ;;  %v807_v29 = vadd.f32 %v2176_v27, %v629_v41  ;;  %v2308_v0 = vld [vmem:[#allocation6_spill] sm:$0xff]  ;;  %v2310_v27 = vld [vmem:[#allocation7_spill] sm:$0xff] }
 0x128   : > { %1360 = vst.msk [vmem:[%s2203_s27 + $0x18] sm:$0xff] %vm1356_vm2, %v1281_v5  ;;  %v1275_v57 = vadd.f32 %v1274_v39, %v1112_v9  ;;  %v1130_v13 = vadd.f32 %v1673_v38, %v943_v23  ;;  %v975_v63 = vadd.f32 %v2141_v14, %v786_v8  ;;  %v641_v5 = vadd.f32 %v2307_v43, %v466_v58  ;;  %v2309_v38 = vld [vmem:[#allocation11_spill] sm:$0xff]  ;;  %v2311_v8 = vld [vmem:[#allocation9_spill] sm:$0xff] }
 0x129   : > { %v1123_v40 = vpop.f32.mrf.mxu0  ;;  %v1298_v12 = vpop.f32.mrf.mxu1  ;;  %v1007_v55 = vadd.f32 %v2308_v0, %v814_v11  ;;  %v999_v37 = vadd.f32 %v2310_v27, %v807_v29 }
 0x12a   : > { %1359 = vst.msk [vmem:[%s2203_s27 + $0x10] sm:$0xff] %vm1356_vm2, %v1275_v57  ;;  %v1293_v59 = vadd.f32 %v1701_v24, %v1130_v13  ;;  %v1124_v15 = vadd.f32 %v1123_v40, %v935_v45  ;;  %v821_v62 = vadd.f32 %v2189_v54, %v641_v5 }
 0x12b   : > { %v1676_v42 = vpop.f32.mrf.mxu0  ;;  %v1707_v47 = vpop.f32.mrf.mxu1 }
 0x12c   : > { %1362 = vst.msk [vmem:[%s2203_s27 + $0x28] sm:$0xff] %vm1356_vm2, %v1293_v59  ;;  %v1287_v2 = vadd.f32 %v1286_v34, %v1124_v15  ;;  %v1142_v20 = vadd.f32 %v1676_v42, %v959_v50  ;;  %v2306_v34 = vld [vmem:[#allocation5_spill] sm:$0xff] }
 0x12d   : > { %v1135_v44 = vpop.f32.mrf.mxu0  ;;  %v1310_v39 = vpop.f32.mrf.mxu1  ;;  %v983_v53 = vadd.f32 %v2306_v34, %v793_v32 }
 0x12e   : > { %1361 = vst.msk [vmem:[%s2203_s27 + $0x20] sm:$0xff] %vm1356_vm2, %v1287_v2  ;;  %v1305_v10 = vadd.f32 %v1704_v4, %v1142_v20  ;;  %v1136_v26 = vadd.f32 %v1135_v44, %v951_v52  ;;  %v828_v4 = vadd.f32 %v2309_v38, %v647_v46 }
 0x12f   : > { %v1679_v49 = vpop.f32.mrf.mxu0  ;;  %v1710_v56 = vpop.f32.mrf.mxu1 }
 0x130   : > { %1364 = vst.msk [vmem:[%s2203_s27 + $0x38] sm:$0xff] %vm1356_vm2, %v1305_v10  ;;  %v1299_v14 = vadd.f32 %v1298_v12, %v1136_v26  ;;  %v1154_v28 = vadd.f32 %v1679_v49, %v975_v63  ;;  %v1023_v59 = vadd.f32 %v2311_v8, %v828_v4 }
 0x131   : > { %v1147_v51 = vpop.f32.mrf.mxu0  ;;  %v1322_v24 = vpop.f32.mrf.mxu1 }
 0x132   : > { %1363 = vst.msk [vmem:[%s2203_s27 + $0x30] sm:$0xff] %vm1356_vm2, %v1299_v14  ;;  %v1317_v16 = vadd.f32 %v1707_v47, %v1154_v28  ;;  %v1148_v61 = vadd.f32 %v1147_v51, %v967_v17  ;;  %v2312_v47 = vld [vmem:[#allocation10_spill] sm:$0xff] }
 0x133   : > { %v1682_v60 = vpop.f32.mrf.mxu0  ;;  %v1713_v21 = vpop.f32.mrf.mxu1  ;;  %v1015_v52 = vadd.f32 %v2312_v47, %v821_v62 }
 0x134   : > { %1366 = vst.msk [vmem:[%s2203_s27 + $0x48] sm:$0xff] %vm1356_vm2, %v1317_v16  ;;  %v1311_v25 = vadd.f32 %v1310_v39, %v1148_v61  ;;  %v1166_v23 = vadd.f32 %v1682_v60, %v991_v19 }
 0x135   : > { %v1159_v9 = vpop.f32.mrf.mxu0  ;;  %v1334_v13 = vpop.f32.mrf.mxu1 }
 0x136   : > { %1365 = vst.msk [vmem:[%s2203_s27 + $0x40] sm:$0xff] %vm1356_vm2, %v1311_v25  ;;  %v1329_v45 = vadd.f32 %v1710_v56, %v1166_v23  ;;  %v1160_v31 = vadd.f32 %v1159_v9, %v983_v53 }
 0x137   : > { %v1685_v57 = vpop.f32.mrf.mxu0  ;;  %v1716_v42 = vpop.f32.mrf.mxu1 }
 0x138   : > { %1368 = vst.msk [vmem:[%s2203_s27 + $0x58] sm:$0xff] %vm1356_vm2, %v1329_v45  ;;  %v1323_v40 = vadd.f32 %v1322_v24, %v1160_v31  ;;  %v1178_v12 = vadd.f32 %v1685_v57, %v1007_v55 }
 0x139   : > { %v1171_v50 = vpop.f32.mrf.mxu0  ;;  %v1346_v22 = vpop.f32.mrf.mxu1 }
 0x13a   : > { %1367 = vst.msk [vmem:[%s2203_s27 + $0x50] sm:$0xff] %vm1356_vm2, %v1323_v40  ;;  %v1341_v15 = vadd.f32 %v1713_v21, %v1178_v12  ;;  %v1172_v18 = vadd.f32 %v1171_v50, %v999_v37 }
 0x13b   : > { %v1688_v33 = vpop.f32.mrf.mxu0 }
 0x13c   : > { %1370 = vst.msk [vmem:[%s2203_s27 + $0x68] sm:$0xff] %vm1356_vm2, %v1341_v15  ;;  %v1335_v54 = vadd.f32 %v1334_v13, %v1172_v18  ;;  %v1190_v7 = vadd.f32 %v1688_v33, %v1023_v59 }
 0x13d   : > { %v1183_v2 = vpop.f32.mrf.mxu0 }
 0x13e   : > { %1369 = vst.msk [vmem:[%s2203_s27 + $0x60] sm:$0xff] %vm1356_vm2, %v1335_v54  ;;  %v1353_v20 = vadd.f32 %v1716_v42, %v1190_v7  ;;  %v1184_v35 = vadd.f32 %v1183_v2, %v1015_v52 }
 0x140   : > { %1372 = vst.msk [vmem:[%s2203_s27 + $0x78] sm:$0xff] %vm1356_vm2, %v1353_v20  ;;  %v1347_v44 = vadd.f32 %v1346_v22, %v1184_v35 }
 0x142   : > { %1371 = vst.msk [vmem:[%s2203_s27 + $0x70] sm:$0xff] %vm1356_vm2, %v1347_v44 }
 0x143 PF: > { %s13_s12 = sadd.s32 1, %s1731_s12  }
 0x144   : > { %p10_p4 = scmp.ge.s32.totalorder %s13_s12, 4  }
 0x146   :  { %12 = sbr.rel (!%p10_p4) target bundleno = 1 (0x1), region = 62 }

// kernel: reverse.4
= control target key start
LH: loop header
LB: loop body
LE: loop exit
PB: predicated region body
PF: predicated region fallthrough
CT: control target
= control target key end

     0   :  { %s296_s0 = inlined_call_operand.vmem [shape: f32[2,16,16,6], index: 0, kind: input, shape index: {}]   ;;  %s297_s1 = inlined_call_operand.vmem [shape: f32[2,16,16,6], index: 1, kind: output, shape index: {}]  }
   0x1   :  { %v96_v0 = vld [vmem:[%s296_s0 + $0x50] sm:$0xff]  ;;  %v99_v2 = vld [vmem:[%s296_s0 + $0x40] sm:$0xff]  ;;  %v118_v12 = vld [vmem:[%s296_s0 + $0x58] sm:$0xff] }
   0x2   :  { %v97_v1 = vld [vmem:[%s296_s0 + $0xb0] sm:$0xff]  ;;  %4 = vst [vmem:[%s297_s1] sm:$0xff] %v96_v0  ;;  %100 = vst [vmem:[%s297_s1 + $0x10] sm:$0xff] %v99_v2  ;;  %v101_v3 = vld [vmem:[%s296_s0 + $0xa0] sm:$0xff] }
   0x3   :  { %98 = vst [vmem:[%s297_s1 + $0x60] sm:$0xff] %v97_v1  ;;  %v103_v4 = vld [vmem:[%s296_s0 + $0x30] sm:$0xff]  ;;  %102 = vst [vmem:[%s297_s1 + $0x70] sm:$0xff] %v101_v3  ;;  %v107_v6 = vld [vmem:[%s296_s0 + $0x20] sm:$0xff] }
   0x4   :  { %v105_v5 = vld [vmem:[%s296_s0 + $0x90] sm:$0xff]  ;;  %104 = vst [vmem:[%s297_s1 + $0x20] sm:$0xff] %v103_v4  ;;  %v109_v7 = vld [vmem:[%s296_s0 + $0x80] sm:$0xff]  ;;  %108 = vst [vmem:[%s297_s1 + $0x30] sm:$0xff] %v107_v6 }
   0x5   :  { %106 = vst [vmem:[%s297_s1 + $0x80] sm:$0xff] %v105_v5  ;;  %v111_v8 = vld [vmem:[%s296_s0 + $0x10] sm:$0xff]  ;;  %110 = vst [vmem:[%s297_s1 + $0x90] sm:$0xff] %v109_v7  ;;  %v41_v10 = vld [vmem:[%s296_s0] sm:$0xff] }
   0x6   :  { %112 = vst [vmem:[%s297_s1 + $0x40] sm:$0xff] %v111_v8  ;;  %v113_v9 = vld [vmem:[%s296_s0 + $0x70] sm:$0xff]  ;;  %v116_v11 = vld [vmem:[%s296_s0 + $0x60] sm:$0xff]  ;;  %115 = vst [vmem:[%s297_s1 + $0x50] sm:$0xff] %v41_v10 }
   0x7   :  { %114 = vst [vmem:[%s297_s1 + $0xa0] sm:$0xff] %v113_v9  ;;  %117 = vst [vmem:[%s297_s1 + $0xb0] sm:$0xff] %v116_v11  ;;  %v120_v13 = vld [vmem:[%s296_s0 + $0xb8] sm:$0xff]  ;;  %v122_v14 = vld [vmem:[%s296_s0 + $0x48] sm:$0xff] }
   0x8   :  { %119 = vst [vmem:[%s297_s1 + $0x8] sm:$0xff] %v118_v12  ;;  %121 = vst [vmem:[%s297_s1 + $0x68] sm:$0xff] %v120_v13  ;;  %v124_v15 = vld [vmem:[%s296_s0 + $0xa8] sm:$0xff]  ;;  %v126_v16 = vld [vmem:[%s296_s0 + $0x38] sm:$0xff] }
   0x9   :  { %123 = vst [vmem:[%s297_s1 + $0x18] sm:$0xff] %v122_v14  ;;  %v128_v17 = vld [vmem:[%s296_s0 + $0x98] sm:$0xff]  ;;  %125 = vst [vmem:[%s297_s1 + $0x78] sm:$0xff] %v124_v15  ;;  %v130_v18 = vld [vmem:[%s296_s0 + $0x28] sm:$0xff] }
   0xa   :  { %127 = vst [vmem:[%s297_s1 + $0x28] sm:$0xff] %v126_v16  ;;  %129 = vst [vmem:[%s297_s1 + $0x88] sm:$0xff] %v128_v17  ;;  %v132_v19 = vld [vmem:[%s296_s0 + $0x88] sm:$0xff]  ;;  %v134_v20 = vld [vmem:[%s296_s0 + $0x18] sm:$0xff] }
   0xb   :  { %131 = vst [vmem:[%s297_s1 + $0x38] sm:$0xff] %v130_v18  ;;  %133 = vst [vmem:[%s297_s1 + $0x98] sm:$0xff] %v132_v19  ;;  %v136_v21 = vld [vmem:[%s296_s0 + $0x78] sm:$0xff]  ;;  %v138_v22 = vld [vmem:[%s296_s0 + $0x8] sm:$0xff] }
   0xc   :  { %135 = vst [vmem:[%s297_s1 + $0x48] sm:$0xff] %v134_v20  ;;  %v140_v23 = vld [vmem:[%s296_s0 + $0x68] sm:$0xff]  ;;  %137 = vst [vmem:[%s297_s1 + $0xa8] sm:$0xff] %v136_v21 }
   0xd   :  { %139 = vst [vmem:[%s297_s1 + $0x58] sm:$0xff] %v138_v22  ;;  %141 = vst [vmem:[%s297_s1 + $0xb8] sm:$0xff] %v140_v23 }

// kernel: fno_forward.7
= control target key start
LH: loop header
LB: loop body
LE: loop exit
PB: predicated region body
PF: predicated region fallthrough
CT: control target
= control target key end

     0   :  { %s4174_s9 = smov 0   ;;  %s5756_s0 = inlined_call_operand.vmem [shape: f32[8,2,128], index: 0, kind: input, shape index: {}]   ;;  %s5757_s1 = inlined_call_operand.vmem [shape: f32[8,128,128], index: 1, kind: input, shape index: {}]   ;;  %s5758_s2 = inlined_call_operand.vmem [shape: f32[8,2,128], index: 2, kind: output, shape index: {}]  }
   0x1 LB: > { %s2876_s10 = sadd.s32 4294967295, %s4155_s9   ;;  %p2880_p0 = scmp.ge.s32.totalorder %s4155_s9, 1  ;;  %s4155_s9 = sphi %s4174_s9, %s12_s9  }
   0x2   : > { %p125_p1 = scmp.lt.s32.totalorder %s4155_s9, 3 }
   0x4   : > { %p126_p2 = pnand %p2880_p0, %p125_p1 }
   0x5   : > { %s2881_s11 = sshll.u32 (!%p126_p2), %s2876_s10, 2 }
   0x6   : > { %129 = sbr.rel (%p126_p2) target bundleno = 626 (0x272), region = 28  ;;  %p154_p3 = scmp.lt.s32.totalorder (!%p126_p2), %s2881_s11, 7 }
   0xb   : > { %v4157_v0 = vmov 0.0   ;;  %vm4158_vm0 = vmmov 0   ;;  %s5760_s11 = smov (!%p154_p3, %s2881_s11), 7 }
   0xc   : > { %3299 = vmatprep.subr.mxu0 %v4157_v0  ;;  %3334 = vmatprep.subr.mxu1 %v4157_v0  ;;  %s2890_s12 = sshll.u32 %s5760_s11, 7  ;;  %s2882_s16 = sshll.u32 %s5760_s11, 1 }
   0xd   : > { %3331 = vmatprep.mubr.msk.f32.mxu0 %vm4158_vm0, %v4157_v0  ;;  %3366 = vmatprep.mubr.msk.f32.mxu1 %vm4158_vm0, %v4157_v0  ;;  %s4194_s15 = scalar_lea.vmem %s5757_s1, %s2890_s12  ;;  %s4280_s19 = scalar_lea.vmem %s5756_s0, %s2882_s16 }
   0xe   : > { %v191_v1 = vld [vmem:[%s4194_s15 + $0x78] sm:$0xff]  ;;  %v190_v2 = vld [vmem:[%s4194_s15 + $0x70] sm:$0xff]  ;;  %v189_v3 = vld [vmem:[%s4194_s15 + $0x68] sm:$0xff]  ;;  %s5355_s22 = scalar_lea.vmem %s5758_s2, %s2882_s16 }
   0xf   : > { %v4199_v4 = vand.u32 4294901760, %v191_v1  ;;  %v4201_v5 = vand.u32 4294901760, %v190_v2  ;;  %v4203_v6 = vand.u32 4294901760, %v189_v3  ;;  %v188_v7 = vld [vmem:[%s4194_s15 + $0x60] sm:$0xff]  ;;  %v187_v8 = vld [vmem:[%s4194_s15 + $0x58] sm:$0xff]  ;;  %v186_v9 = vld [vmem:[%s4194_s15 + $0x50] sm:$0xff] }
  0x10   : > { %v4208_v10 = vand.u32 4294901760, %v188_v7  ;;  %v4210_v11 = vand.u32 4294901760, %v187_v8  ;;  %v4212_v12 = vand.u32 4294901760, %v186_v9  ;;  %v185_v13 = vld [vmem:[%s4194_s15 + $0x48] sm:$0xff]  ;;  %v184_v14 = vld [vmem:[%s4194_s15 + $0x40] sm:$0xff]  ;;  %v183_v19 = vld [vmem:[%s4194_s15 + $0x38] sm:$0xff] }
  0x11   : > { %3300 = vmatpush3.msra.mxu0 %v4199_v4  ;;  %v4218_v15 = vsub.f32 %v191_v1, %v4199_v4  ;;  %v4221_v16 = vsub.f32 %v190_v2, %v4201_v5  ;;  %v4223_v17 = vand.u32 4294901760, %v185_v13  ;;  %v4226_v18 = vsub.f32 %v189_v3, %v4203_v6  ;;  %v182_v26 = vld [vmem:[%s4194_s15 + $0x30] sm:$0xff]  ;;  %v181_v36 = vld [vmem:[%s4194_s15 + $0x28] sm:$0xff]  ;;  %v180_v41 = vld [vmem:[%s4194_s15 + $0x20] sm:$0xff] }
  0x12   : > { %3301 = vmatprep.subr.mxu0 %v4157_v0  ;;  %v4231_v20 = vsub.f32 %v188_v7, %v4208_v10  ;;  %v4234_v21 = vsub.f32 %v187_v8, %v4210_v11  ;;  %v4240_v25 = vand.u32 4294901760, %v184_v14  ;;  %v4245_v28 = vand.u32 4294901760, %v183_v19  ;;  %v179_v49 = vld [vmem:[%s4194_s15 + $0x18] sm:$0xff]  ;;  %v172_v50 = vld [vmem:[%s4280_s19] sm:$0x3]  ;;  %v178_v54 = vld [vmem:[%s4194_s15 + $0x10] sm:$0xff] }
  0x13   : > { %3302 = vmatpush3.msra.mxu0 %v4201_v5  ;;  %v334_v22 = vand.u32 4294901760, %v4218_v15  ;;  %v341_v23 = vand.u32 4294901760, %v4221_v16  ;;  %v348_v24 = vand.u32 4294901760, %v4226_v18  ;;  %v4249_v30 = vsub.f32 %v186_v9, %v4212_v12  ;;  %v177_v60 = vld [vmem:[%s4194_s15 + $0x8] sm:$0xff]  ;;  %v176_v7 = vld [vmem:[%s4194_s15] sm:$0xff] }
  0x14   : > { %3303 = vmatprep.subr.mxu0 %v4157_v0  ;;  %v355_v27 = vand.u32 4294901760, %v4231_v20  ;;  %v362_v29 = vand.u32 4294901760, %v4234_v21  ;;  %v4263_v34 = vsub.f32 %v185_v13, %v4223_v17  ;;  %v4266_v35 = vand.u32 4294901760, %v182_v26 }
  0x15   : > { %3304 = vmatpush3.msra.mxu0 %v4203_v6  ;;  %v335_v31 = vsub.f32 %v4218_v15, %v334_v22  ;;  %v342_v32 = vsub.f32 %v4221_v16, %v341_v23  ;;  %v349_v33 = vsub.f32 %v4226_v18, %v348_v24  ;;  %v369_v40 = vand.u32 4294901760, %v4249_v30 }
  0x16   : > { %3305 = vmatprep.subr.mxu0 %v4157_v0  ;;  %v356_v39 = vsub.f32 %v4231_v20, %v355_v27  ;;  %v363_v42 = vsub.f32 %v4234_v21, %v362_v29  ;;  %v4287_v43 = vsub.f32 %v184_v14, %v4240_v25  ;;  %v4290_v45 = vand.u32 4294901760, %v181_v36 }
  0x17   : > { %3306 = vmatpush3.msra.mxu0 %v4208_v10  ;;  %v336_v37 = vand.u32 4294901760, %v335_v31  ;;  %v343_v38 = vand.u32 4294901760, %v342_v32  ;;  %v350_v44 = vand.u32 4294901760, %v349_v33  ;;  %v376_v46 = vand.u32 4294901760, %v4263_v34 }
  0x18   : > { %3307 = vmatprep.subr.mxu0 %v4157_v0  ;;  %v4294_v47 = vsub.f32 %v183_v19, %v4245_v28  ;;  %v4298_v48 = vand.u32 4294901760, %v180_v41  ;;  %v357_v51 = vand.u32 4294901760, %v356_v39  ;;  %v370_v52 = vsub.f32 %v4249_v30, %v369_v40 }
  0x19   : > { %3308 = vmatpush3.msra.mxu0 %v4210_v11  ;;  %3335 = vmatpush3.msra.mxu1 %v336_v37  ;;  %v383_v53 = vand.u32 4294901760, %v4287_v43  ;;  %v4309_v55 = vsub.f32 %v182_v26, %v4266_v35  ;;  %v364_v56 = vand.u32 4294901760, %v363_v42  ;;  %v377_v58 = vsub.f32 %v4263_v34, %v376_v46 }
  0x1a   : > { %3309 = vmatprep.subr.mxu0 %v4157_v0  ;;  %3336 = vmatprep.subr.mxu1 %v4157_v0  ;;  %v390_v57 = vand.u32 4294901760, %v4294_v47  ;;  %v4318_v59 = vand.u32 4294901760, %v179_v49  ;;  %v4322_v61 = vsub.f32 %v181_v36, %v4290_v45  ;;  %v4324_v62 = vand.u32 4294901760, %v172_v50 }
  0x1b   : > { %3310 = vmatpush3.msra.mxu0 %v4212_v12  ;;  %3337 = vmatpush3.msra.mxu1 %v343_v38  ;;  %v4328_v63 = vand.u32 4294901760, %v178_v54  ;;  %v371_v1 = vand.u32 4294901760, %v370_v52  ;;  %v384_v2 = vsub.f32 %v4287_v43, %v383_v53  ;;  %v397_v3 = vand.u32 4294901760, %v4309_v55 }
  0x1c   : > { %3311 = vmatprep.subr.mxu0 %v4157_v0  ;;  %3338 = vmatprep.subr.mxu1 %v4157_v0  ;;  %v4337_v8 = vsub.f32 %v180_v41, %v4298_v48  ;;  %v391_v9 = vsub.f32 %v4294_v47, %v390_v57  ;;  %v4344_v13 = vand.u32 4294901760, %v177_v60  ;;  %v378_v14 = vand.u32 4294901760, %v377_v58 }
  0x1d   : > { %3312 = vmatpush3.msra.mxu0 %v4223_v17  ;;  %3339 = vmatpush3.msra.mxu1 %v350_v44  ;;  %v404_v19 = vand.u32 4294901760, %v4322_v61  ;;  %v4349_v26 = vsub.f32 %v172_v50, %v4324_v62  ;;  %v4352_v31 = vsub.f32 %v179_v49, %v4318_v59  ;;  %v4356_v32 = vand.u32 4294901760, %v176_v7 }
  0x1e   : > { %3313 = vmatprep.subr.mxu0 %v4157_v0  ;;  %3340 = vmatprep.subr.mxu1 %v4157_v0  ;;  %v385_v33 = vand.u32 4294901760, %v384_v2  ;;  %v398_v36 = vsub.f32 %v4309_v55, %v397_v3  ;;  %v411_v37 = vand.u32 4294901760, %v4337_v8  ;;  %v4364_v38 = vsub.f32 %v178_v54, %v4328_v63 }
  0x1f   : > { %3314 = vmatpush3.msra.mxu0 %v4240_v25  ;;  %3341 = vmatpush3.msra.mxu1 %v357_v51  ;;  %v392_v39 = vand.u32 4294901760, %v391_v9  ;;  %v405_v41 = vsub.f32 %v4322_v61, %v404_v19  ;;  %v323_v42 = vand.u32 4294901760, %v4349_v26  ;;  %v418_v44 = vand.u32 4294901760, %v4352_v31 }
  0x20   : > { %3315 = vmatprep.subr.mxu0 %v4157_v0  ;;  %3342 = vmatprep.subr.mxu1 %v4157_v0  ;;  %v4375_v49 = vsub.f32 %v177_v60, %v4344_v13  ;;  %v399_v50 = vand.u32 4294901760, %v398_v36  ;;  %v412_v51 = vsub.f32 %v4337_v8, %v411_v37  ;;  %v425_v52 = vand.u32 4294901760, %v4364_v38 }
  0x21   : > { %3316 = vmatpush3.msra.mxu0 %v4245_v28  ;;  %3343 = vmatpush3.msra.mxu1 %v364_v56  ;;  %v4385_v54 = vsub.f32 %v176_v7, %v4356_v32  ;;  %v406_v56 = vand.u32 4294901760, %v405_v41  ;;  %v324_v58 = vsub.f32 %v4349_v26, %v323_v42  ;;  %v419_v60 = vsub.f32 %v4352_v31, %v418_v44 }
  0x22   : > { %3317 = vmatprep.subr.mxu0 %v4157_v0  ;;  %3344 = vmatprep.subr.mxu1 %v4157_v0  ;;  %v413_v2 = vand.u32 4294901760, %v412_v51  ;;  %v426_v7 = vsub.f32 %v4364_v38, %v425_v52 }
  0x23   : > { %3318 = vmatpush3.msra.mxu0 %v4266_v35  ;;  %3345 = vmatpush3.msra.mxu1 %v371_v1  ;;  %v432_v1 = vand.u32 4294901760, %v4375_v49  ;;  %v439_v9 = vand.u32 4294901760, %v4385_v54 }
  0x24   : > { %3319 = vmatprep.subr.mxu0 %v4157_v0  ;;  %3346 = vmatprep.subr.mxu1 %v4157_v0 }
  0x25   : > { %3320 = vmatpush3.msra.mxu0 %v4290_v45  ;;  %3347 = vmatpush3.msra.mxu1 %v378_v14  ;;  %v325_v14 = vand.u32 4294901760, %v324_v58  ;;  %v433_v36 = vsub.f32 %v4375_v49, %v432_v1  ;;  %v440_v41 = vsub.f32 %v4385_v54, %v439_v9 }
  0x26   : > { %3321 = vmatprep.subr.mxu0 %v4157_v0  ;;  %3348 = vmatprep.subr.mxu1 %v4157_v0 }
  0x27   : > { %3322 = vmatpush3.msra.mxu0 %v4298_v48  ;;  %3349 = vmatpush3.msra.mxu1 %v385_v33  ;;  %v420_v33 = vand.u32 4294901760, %v419_v60  ;;  %v441_v51 = vand.u32 4294901760, %v440_v41 }
  0x28   : > { %3323 = vmatprep.subr.mxu0 %v4157_v0  ;;  %3350 = vmatprep.subr.mxu1 %v4157_v0 }
  0x29   : > { %3324 = vmatpush3.msra.mxu0 %v4318_v59  ;;  %3351 = vmatpush3.msra.mxu1 %v392_v39  ;;  %v427_v39 = vand.u32 4294901760, %v426_v7 }
  0x2a   : > { %3325 = vmatprep.subr.mxu0 %v4157_v0  ;;  %3352 = vmatprep.subr.mxu1 %v4157_v0 }
  0x2b   : > { %3326 = vmatpush3.msra.mxu0 %v4328_v63  ;;  %3353 = vmatpush3.msra.mxu1 %v399_v50  ;;  %v434_v50 = vand.u32 4294901760, %v433_v36  ;;  %v194_v36 = vld [vmem:[%s4194_s15 + $0x90] sm:$0xff] }
  0x2c   : > { %3327 = vmatprep.subr.mxu0 %v4157_v0  ;;  %3354 = vmatprep.subr.mxu1 %v4157_v0 }
  0x2d   : > { %3328 = vmatpush3.msra.mxu0 %v4344_v13  ;;  %3355 = vmatpush3.msra.mxu1 %v406_v56 }
  0x2e   : > { %3329 = vmatprep.subr.mxu0 %v4157_v0  ;;  %3356 = vmatprep.subr.mxu1 %v4157_v0 }
  0x2f   : > { %3330 = vmatpush3.msra.mxu0 %v4356_v32  ;;  %3357 = vmatpush3.msra.mxu1 %v413_v2  ;;  %v195_v2 = vld [vmem:[%s4194_s15 + $0x98] sm:$0xff] }
  0x30   : > { %3358 = vmatprep.subr.mxu1 %v4157_v0  ;;  %3369 = vmatprep.subr.mxu0 %v4157_v0  ;;  %v4701_v41 = vand.u32 4294901760, %v195_v2 }
  0x31   : > { %3332 = vmatmul.mubr.f32.vlgmr.msra.gmra.mxu0 %v325_v14  ;;  %3359 = vmatpush3.msra.mxu1 %v420_v33 }
  0x32   : > { %3370 = vmatpush3.msra.mxu0 %v4218_v15  ;;  %3360 = vmatprep.subr.mxu1 %v4157_v0 }
  0x33   : > { %3371 = vmatprep.subr.mxu0 %v4157_v0  ;;  %3361 = vmatpush3.msra.mxu1 %v427_v39 }
  0x34   : > { %3372 = vmatpush3.msra.mxu0 %v4221_v16  ;;  %3362 = vmatprep.subr.mxu1 %v4157_v0 }
  0x35   : > { %3373 = vmatprep.subr.mxu0 %v4157_v0  ;;  %3363 = vmatpush3.msra.mxu1 %v434_v50 }
  0x36   : > { %3374 = vmatpush3.msra.mxu0 %v4226_v18  ;;  %3364 = vmatprep.subr.mxu1 %v4157_v0 }
  0x37   : > { %3375 = vmatprep.subr.mxu0 %v4157_v0  ;;  %3365 = vmatpush3.msra.mxu1 %v441_v51 }
  0x38   : > { %3376 = vmatpush3.msra.mxu0 %v4231_v20  ;;  %3367 = vmatmul.mubr.f32.vlgmr.msra.gmra.mxu1 %v4324_v62 }
  0x39   : > { %3377 = vmatprep.subr.mxu0 %v4157_v0  ;;  %3404 = vmatprep.subr.mxu1 %v4157_v0 }
  0x3a   : > { %3378 = vmatpush3.msra.mxu0 %v4234_v21  ;;  %3405 = vmatpush3.msra.mxu1 %v4199_v4 }
  0x3b   : > { %3379 = vmatprep.subr.mxu0 %v4157_v0  ;;  %3406 = vmatprep.subr.mxu1 %v4157_v0 }
  0x3c   : > { %3380 = vmatpush3.msra.mxu0 %v4249_v30  ;;  %3407 = vmatpush3.msra.mxu1 %v4201_v5 }
  0x3d   : > { %3381 = vmatprep.subr.mxu0 %v4157_v0  ;;  %3408 = vmatprep.subr.mxu1 %v4157_v0 }
  0x3e   : > { %3382 = vmatpush3.msra.mxu0 %v4263_v34  ;;  %3409 = vmatpush3.msra.mxu1 %v4203_v6  ;;  %v200_v34 = vld [vmem:[%s4194_s15 + $0xc0] sm:$0xff] }
  0x3f   : > { %3383 = vmatprep.subr.mxu0 %v4157_v0  ;;  %3410 = vmatprep.subr.mxu1 %v4157_v0 }
  0x40   : > { %3384 = vmatpush3.msra.mxu0 %v4287_v43  ;;  %3411 = vmatpush3.msra.mxu1 %v4208_v10 }
  0x41   : > { %3385 = vmatprep.subr.mxu0 %v4157_v0  ;;  %3412 = vmatprep.subr.mxu1 %v4157_v0 }
  0x42   : > { %3386 = vmatpush3.msra.mxu0 %v4294_v47  ;;  %3413 = vmatpush3.msra.mxu1 %v4210_v11 }
  0x43   : > { %3387 = vmatprep.subr.mxu0 %v4157_v0  ;;  %3414 = vmatprep.subr.mxu1 %v4157_v0 }
  0x44   : > { %3388 = vmatpush3.msra.mxu0 %v4309_v55  ;;  %3415 = vmatpush3.msra.mxu1 %v4212_v12 }
  0x45   : > { %3389 = vmatprep.subr.mxu0 %v4157_v0  ;;  %3416 = vmatprep.subr.mxu1 %v4157_v0 }
  0x46   : > { %3390 = vmatpush3.msra.mxu0 %v4322_v61  ;;  %3417 = vmatpush3.msra.mxu1 %v4223_v17 }
  0x47   : > { %3391 = vmatprep.subr.mxu0 %v4157_v0  ;;  %3418 = vmatprep.subr.mxu1 %v4157_v0 }
  0x48   : > { %3392 = vmatpush3.msra.mxu0 %v4337_v8  ;;  %3419 = vmatpush3.msra.mxu1 %v4240_v25 }
  0x49   : > { %3393 = vmatprep.subr.mxu0 %v4157_v0  ;;  %3420 = vmatprep.subr.mxu1 %v4157_v0 }
  0x4a   : > { %3394 = vmatpush3.msra.mxu0 %v4352_v31  ;;  %3421 = vmatpush3.msra.mxu1 %v4245_v28 }
  0x4b   : > { %3395 = vmatprep.subr.mxu0 %v4157_v0  ;;  %3422 = vmatprep.subr.mxu1 %v4157_v0 }
  0x4c   : > { %3396 = vmatpush3.msra.mxu0 %v4364_v38  ;;  %3423 = vmatpush3.msra.mxu1 %v4266_v35  ;;  %v196_v38 = vld [vmem:[%s4194_s15 + $0xa0] sm:$0xff] }
  0x4d   : > { %3397 = vmatprep.subr.mxu0 %v4157_v0  ;;  %3424 = vmatprep.subr.mxu1 %v4157_v0  ;;  %v4682_v60 = vand.u32 4294901760, %v196_v38 }
  0x4e   : > { %3398 = vmatpush3.msra.mxu0 %v4375_v49  ;;  %3425 = vmatpush3.msra.mxu1 %v4290_v45 }
  0x4f   : > { %3399 = vmatprep.subr.mxu0 %v4157_v0  ;;  %3426 = vmatprep.subr.mxu1 %v4157_v0  ;;  %v4705_v51 = vsub.f32 %v196_v38, %v4682_v60 }
  0x50   : > { %3400 = vmatpush3.msra.mxu0 %v4385_v54  ;;  %3401 = vmatprep.mubr.msk.f32.mxu0 %vm4158_vm0, %v4157_v0  ;;  %v173_v54 = vld [vmem:[%s4280_s19 + $0x2] sm:$0x3] }
  0x51   : > { %3427 = vmatpush3.msra.mxu1 %v4298_v48  ;;  %3402 = vmatmul.mubr.f32.vlgmr.msra.gmra.mxu0 %v4349_v26  ;;  %v4697_v39 = vand.u32 4294901760, %v173_v54 }
  0x52   : > { %3428 = vmatprep.subr.mxu1 %v4157_v0  ;;  %3439 = vmatprep.subr.mxu0 %v4157_v0 }
  0x53   : > { %3429 = vmatpush3.msra.mxu1 %v4318_v59  ;;  %3440 = vmatpush3.msra.mxu0 %v334_v22  ;;  %v202_v22 = vld [vmem:[%s4194_s15 + $0xd0] sm:$0xff] }
  0x54   : > { %3430 = vmatprep.subr.mxu1 %v4157_v0  ;;  %3441 = vmatprep.subr.mxu0 %v4157_v0 }
  0x55   : > { %3431 = vmatpush3.msra.mxu1 %v4328_v63  ;;  %3442 = vmatpush3.msra.mxu0 %v341_v23 }
  0x56   : > { %3432 = vmatprep.subr.mxu1 %v4157_v0  ;;  %3443 = vmatprep.subr.mxu0 %v4157_v0 }
  0x57   : > { %3433 = vmatpush3.msra.mxu1 %v4344_v13  ;;  %3444 = vmatpush3.msra.mxu0 %v348_v24 }
  0x58   : > { %3434 = vmatprep.subr.mxu1 %v4157_v0  ;;  %3445 = vmatprep.subr.mxu0 %v4157_v0 }
  0x59   : > { %3435 = vmatpush3.msra.mxu1 %v4356_v32  ;;  %3436 = vmatprep.mubr.msk.f32.mxu1 %vm4158_vm0, %v4157_v0 }
  0x5a   : > { %3446 = vmatpush3.msra.mxu0 %v355_v27  ;;  %3437 = vmatmul.mubr.f32.vlgmr.msra.gmra.mxu1 %v323_v42  ;;  %v201_v27 = vld [vmem:[%s4194_s15 + $0xc8] sm:$0xff] }
  0x5b   : > { %3447 = vmatprep.subr.mxu0 %v4157_v0  ;;  %3474 = vmatprep.subr.mxu1 %v4157_v0 }
  0x5c   : > { %3448 = vmatpush3.msra.mxu0 %v362_v29  ;;  %3475 = vmatpush3.msra.mxu1 %v4199_v4  ;;  %v207_v4 = vld [vmem:[%s4194_s15 + $0xf8] sm:$0xff] }
  0x5d   : > { %3449 = vmatprep.subr.mxu0 %v4157_v0  ;;  %3476 = vmatprep.subr.mxu1 %v4157_v0 }
  0x5e   : > { %3450 = vmatpush3.msra.mxu0 %v369_v40  ;;  %3477 = vmatpush3.msra.mxu1 %v4201_v5  ;;  %v206_v5 = vld [vmem:[%s4194_s15 + $0xf0] sm:$0xff]  ;;  %v4613_v40 = vand.u32 4294901760, %v201_v27 }
  0x5f   : > { %3451 = vmatprep.subr.mxu0 %v4157_v0  ;;  %3478 = vmatprep.subr.mxu1 %v4157_v0 }
  0x60   : > { %3452 = vmatpush3.msra.mxu0 %v376_v46  ;;  %3479 = vmatpush3.msra.mxu1 %v4203_v6  ;;  %v4546_v6 = vand.u32 4294901760, %v207_v4  ;;  %v199_v46 = vld [vmem:[%s4194_s15 + $0xb8] sm:$0xff]  ;;  %v4637_v61 = vsub.f32 %v201_v27, %v4613_v40 }
  0x61   : > { %3453 = vmatprep.subr.mxu0 %v4157_v0  ;;  %3480 = vmatprep.subr.mxu1 %v4157_v0 }
  0x62   : > { %3454 = vmatpush3.msra.mxu0 %v383_v53  ;;  %3481 = vmatpush3.msra.mxu1 %v4208_v10  ;;  %v205_v10 = vld [vmem:[%s4194_s15 + $0xe8] sm:$0xff]  ;;  %v4563_v15 = vsub.f32 %v207_v4, %v4546_v6  ;;  %v4628_v53 = vand.u32 4294901760, %v200_v34  ;;  %v1017_v49 = vand.u32 4294901760, %v4637_v61 }
  0x63   : > { %3455 = vmatprep.subr.mxu0 %v4157_v0  ;;  %3482 = vmatprep.subr.mxu1 %v4157_v0  ;;  %v4565_v16 = vand.u32 4294901760, %v205_v10 }
  0x64   : > { %3456 = vmatpush3.msra.mxu0 %v390_v57  ;;  %3483 = vmatpush3.msra.mxu1 %v4210_v11  ;;  %v4554_v11 = vand.u32 4294901760, %v206_v5  ;;  %v975_v24 = vand.u32 4294901760, %v4563_v15  ;;  %v198_v57 = vld [vmem:[%s4194_s15 + $0xb0] sm:$0xff]  ;;  %v4654_v26 = vsub.f32 %v200_v34, %v4628_v53  ;;  %v1018_v14 = vsub.f32 %v4637_v61, %v1017_v49  ;;  %v192_v34 = vld [vmem:[%s4194_s15 + $0x80] sm:$0xff] }
  0x65   : > { %3457 = vmatprep.subr.mxu0 %v4157_v0  ;;  %3484 = vmatprep.subr.mxu1 %v4157_v0  ;;  %v4588_v23 = vsub.f32 %v205_v10, %v4565_v16  ;;  %v4656_v31 = vand.u32 4294901760, %v198_v57  ;;  %v193_v10 = vld [vmem:[%s4194_s15 + $0x88] sm:$0xff] }
  0x66   : > { %3458 = vmatpush3.msra.mxu0 %v397_v3  ;;  %3485 = vmatpush3.msra.mxu1 %v4212_v12  ;;  %v204_v12 = vld [vmem:[%s4194_s15 + $0xe0] sm:$0xff]  ;;  %v4576_v20 = vsub.f32 %v206_v5, %v4554_v11  ;;  %v4642_v3 = vand.u32 4294901760, %v199_v46 }
  0x67   : > { %3459 = vmatprep.subr.mxu0 %v4157_v0  ;;  %3486 = vmatprep.subr.mxu1 %v4157_v0  ;;  %v4570_v18 = vand.u32 4294901760, %v204_v12  ;;  %v989_v43 = vand.u32 4294901760, %v4588_v23  ;;  %v4677_v56 = vsub.f32 %v198_v57, %v4656_v31 }
  0x68   : > { %3460 = vmatpush3.msra.mxu0 %v404_v19  ;;  %3487 = vmatpush3.msra.mxu1 %v4223_v17  ;;  %v203_v17 = vld [vmem:[%s4194_s15 + $0xd8] sm:$0xff]  ;;  %v982_v29 = vand.u32 4294901760, %v4576_v20  ;;  %v4667_v42 = vsub.f32 %v199_v46, %v4642_v3  ;;  %v4728_v46 = vsub.f32 %v195_v2, %v4701_v41 }
  0x69   : > { %3461 = vmatprep.subr.mxu0 %v4157_v0  ;;  %3488 = vmatprep.subr.mxu1 %v4157_v0  ;;  %v4580_v21 = vand.u32 4294901760, %v203_v17  ;;  %v1038_v5 = vand.u32 4294901760, %v4677_v56 }
  0x6a   : > { %3462 = vmatpush3.msra.mxu0 %v411_v37  ;;  %3489 = vmatpush3.msra.mxu1 %v4240_v25  ;;  %v4594_v25 = vsub.f32 %v204_v12, %v4570_v18  ;;  %v1031_v33 = vand.u32 4294901760, %v4667_v42  ;;  %v4714_v12 = vand.u32 4294901760, %v194_v36 }
  0x6b   : > { %3463 = vmatprep.subr.mxu0 %v4157_v0  ;;  %3490 = vmatprep.subr.mxu1 %v4157_v0  ;;  %v4605_v30 = vsub.f32 %v203_v17, %v4580_v21  ;;  %v1019_v17 = vand.u32 4294901760, %v1018_v14 }
  0x6c   : > { %3464 = vmatpush3.msra.mxu0 %v418_v44  ;;  %3491 = vmatpush3.msra.mxu1 %v4245_v28  ;;  %v4599_v28 = vand.u32 4294901760, %v202_v22 }
  0x6d   : > { %3465 = vmatprep.subr.mxu0 %v4157_v0  ;;  %3492 = vmatprep.subr.mxu1 %v4157_v0  ;;  %v1003_v55 = vand.u32 4294901760, %v4605_v30 }
  0x6e   : > { %3466 = vmatpush3.msra.mxu0 %v425_v52  ;;  %3493 = vmatpush3.msra.mxu1 %v4266_v35  ;;  %v976_v35 = vsub.f32 %v4563_v15, %v975_v24  ;;  %v4623_v47 = vsub.f32 %v202_v22, %v4599_v28  ;;  %v1032_v22 = vsub.f32 %v4667_v42, %v1031_v33 }
  0x6f   : > { %3467 = vmatprep.subr.mxu0 %v4157_v0  ;;  %3494 = vmatprep.subr.mxu1 %v4157_v0  ;;  %v1004_v37 = vsub.f32 %v4605_v30, %v1003_v55 }
  0x70   : > { %3468 = vmatpush3.msra.mxu0 %v432_v1  ;;  %3495 = vmatpush3.msra.mxu1 %v4290_v45  ;;  %v996_v45 = vand.u32 4294901760, %v4594_v25  ;;  %v1024_v1 = vand.u32 4294901760, %v4654_v26 }
  0x71   : > { %3469 = vmatprep.subr.mxu0 %v4157_v0  ;;  %3496 = vmatprep.subr.mxu1 %v4157_v0  ;;  %v1005_v7 = vand.u32 4294901760, %v1004_v37 }
  0x72   : > { %3470 = vmatpush3.msra.mxu0 %v439_v9  ;;  %3471 = vmatprep.mubr.msk.f32.mxu0 %vm4158_vm0, %v4157_v0  ;;  %v997_v8 = vsub.f32 %v4594_v25, %v996_v45  ;;  %v1025_v4 = vsub.f32 %v4654_v26, %v1024_v1 }
  0x73   : > { %3497 = vmatpush3.msra.mxu1 %v4298_v48  ;;  %3472 = vmatmul.mubr.f32.vlgmr.msra.gmra.mxu0 %v4324_v62  ;;  %v983_v48 = vsub.f32 %v4576_v20, %v982_v29 }
  0x74   : > { %3498 = vmatprep.subr.mxu1 %v4157_v0  ;;  %3509 = vmatprep.subr.mxu0 %v4157_v0  ;;  %v998_v52 = vand.u32 4294901760, %v997_v8  ;;  %v1026_v57 = vand.u32 4294901760, %v1025_v4  ;;  %v4740_v8 = vsub.f32 %v194_v36, %v4714_v12 }
  0x75   : > { %3499 = vmatpush3.msra.mxu1 %v4318_v59  ;;  %3510 = vmatpush3.msra.mxu0 %v4546_v6  ;;  %v977_v59 = vand.u32 4294901760, %v976_v35  ;;  %v984_v19 = vand.u32 4294901760, %v983_v48  ;;  %v4723_v35 = vsub.f32 %v173_v54, %v4697_v39  ;;  %v4730_v48 = vand.u32 4294901760, %v193_v10 }
  0x76   : > { %3500 = vmatprep.subr.mxu1 %v4157_v0  ;;  %3511 = vmatprep.subr.mxu0 %v4157_v0 }
  0x77   : > { %3501 = vmatpush3.msra.mxu1 %v4328_v63  ;;  %3512 = vmatpush3.msra.mxu0 %v4554_v11  ;;  %v990_v63 = vsub.f32 %v4588_v23, %v989_v43  ;;  %v964_v38 = vand.u32 4294901760, %v4723_v35 }
  0x78   : > { %3502 = vmatprep.subr.mxu1 %v4157_v0  ;;  %3513 = vmatprep.subr.mxu0 %v4157_v0 }
  0x79   : > { %3503 = vmatpush3.msra.mxu1 %v4344_v13  ;;  %3514 = vmatpush3.msra.mxu0 %v4565_v16  ;;  %v197_v13 = vld [vmem:[%s4194_s15 + $0xa8] sm:$0xff]  ;;  %v965_v36 = vsub.f32 %v4723_v35, %v964_v38 }
  0x7a   : > { %3504 = vmatprep.subr.mxu1 %v4157_v0  ;;  %3515 = vmatprep.subr.mxu0 %v4157_v0  ;;  %v4669_v44 = vand.u32 4294901760, %v197_v13 }
  0x7b   : > { %3505 = vmatpush3.msra.mxu1 %v4356_v32  ;;  %3506 = vmatprep.mubr.msk.f32.mxu1 %vm4158_vm0, %v4157_v0  ;;  %v1010_v32 = vand.u32 4294901760, %v4623_v47 }
  0x7c   : > { %3516 = vmatpush3.msra.mxu0 %v4570_v18  ;;  %3507 = vmatmul.mubr.f32.vlgmr.msra.gmra.mxu1 %v4324_v62  ;;  %v991_v62 = vand.u32 4294901760, %v990_v63  ;;  %v4690_v9 = vsub.f32 %v197_v13, %v4669_v44  ;;  %v1052_v63 = vand.u32 4294901760, %v4705_v51  ;;  %v4742_v13 = vand.u32 4294901760, %v192_v34 }
  0x7d   : > { %3517 = vmatprep.subr.mxu0 %v4157_v0  ;;  %3544 = vmatprep.subr.mxu1 %v4157_v0  ;;  %v1011_v58 = vsub.f32 %v4623_v47, %v1010_v32 }
  0x7e   : > { %3518 = vmatpush3.msra.mxu0 %v4580_v21  ;;  %3545 = vmatpush3.msra.mxu1 %v977_v59  ;;  %v1045_v27 = vand.u32 4294901760, %v4690_v9  ;;  %v1039_v59 = vsub.f32 %v4677_v56, %v1038_v5  ;;  %v4762_v2 = vsub.f32 %v192_v34, %v4742_v13  ;;  %v966_v34 = vand.u32 4294901760, %v965_v36 }
  0x7f   : > { %3519 = vmatprep.subr.mxu0 %v4157_v0  ;;  %3546 = vmatprep.subr.mxu1 %v4157_v0  ;;  %v1012_v50 = vand.u32 4294901760, %v1011_v58  ;;  %v1053_v58 = vsub.f32 %v4705_v51, %v1052_v63 }
  0x80   : > { %3520 = vmatpush3.msra.mxu0 %v4599_v28  ;;  %3547 = vmatpush3.msra.mxu1 %v984_v19  ;;  %v1033_v19 = vand.u32 4294901760, %v1032_v22  ;;  %v1046_v37 = vsub.f32 %v4690_v9, %v1045_v27  ;;  %v1040_v54 = vand.u32 4294901760, %v1039_v59  ;;  %v1080_v22 = vand.u32 4294901760, %v4762_v2 }
  0x81   : > { %3521 = vmatprep.subr.mxu0 %v4157_v0  ;;  %3548 = vmatprep.subr.mxu1 %v4157_v0 }
  0x82   : > { %3522 = vmatpush3.msra.mxu0 %v4613_v40  ;;  %3549 = vmatpush3.msra.mxu1 %v991_v62  ;;  %v4752_v62 = vsub.f32 %v193_v10, %v4730_v48  ;;  %v1047_v14 = vand.u32 4294901760, %v1046_v37  ;;  %v1054_v10 = vand.u32 4294901760, %v1053_v58  ;;  %v1081_v37 = vsub.f32 %v4762_v2, %v1080_v22 }
  0x83   : > { %3523 = vmatprep.subr.mxu0 %v4157_v0  ;;  %3550 = vmatprep.subr.mxu1 %v4157_v0 }
  0x84   : > { %3524 = vmatpush3.msra.mxu0 %v4628_v53  ;;  %3551 = vmatpush3.msra.mxu1 %v998_v52  ;;  %v1059_v52 = vand.u32 4294901760, %v4728_v46  ;;  %v1073_v4 = vand.u32 4294901760, %v4752_v62  ;;  %v1082_v58 = vand.u32 4294901760, %v1081_v37 }
  0x85   : > { %3525 = vmatprep.subr.mxu0 %v4157_v0  ;;  %3552 = vmatprep.subr.mxu1 %v4157_v0 }
  0x86   : > { %3526 = vmatpush3.msra.mxu0 %v4642_v3  ;;  %3553 = vmatpush3.msra.mxu1 %v1005_v7  ;;  %v1066_v7 = vand.u32 4294901760, %v4740_v8  ;;  %v1074_v59 = vsub.f32 %v4752_v62, %v1073_v4 }
  0x87   : > { %3527 = vmatprep.subr.mxu0 %v4157_v0  ;;  %3554 = vmatprep.subr.mxu1 %v4157_v0 }
  0x88   : > { %3528 = vmatpush3.msra.mxu0 %v4656_v31  ;;  %3555 = vmatpush3.msra.mxu1 %v1012_v50  ;;  %v1060_v50 = vsub.f32 %v4728_v46, %v1059_v52 }
  0x89   : > { %3529 = vmatprep.subr.mxu0 %v4157_v0  ;;  %3556 = vmatprep.subr.mxu1 %v4157_v0 }
  0x8a   : > { %3530 = vmatpush3.msra.mxu0 %v4669_v44  ;;  %3557 = vmatpush3.msra.mxu1 %v1019_v17  ;;  %v1067_v17 = vsub.f32 %v4740_v8, %v1066_v7 }
  0x8b   : > { %3531 = vmatprep.subr.mxu0 %v4157_v0  ;;  %3558 = vmatprep.subr.mxu1 %v4157_v0 }
  0x8c   : > { %3532 = vmatpush3.msra.mxu0 %v4682_v60  ;;  %3559 = vmatpush3.msra.mxu1 %v1026_v57  ;;  %v1061_v57 = vand.u32 4294901760, %v1060_v50 }
  0x8d   : > { %3533 = vmatprep.subr.mxu0 %v4157_v0  ;;  %3560 = vmatprep.subr.mxu1 %v4157_v0 }
  0x8e   : > { %3534 = vmatpush3.msra.mxu0 %v4701_v41  ;;  %3561 = vmatpush3.msra.mxu1 %v1033_v19  ;;  %v1068_v19 = vand.u32 4294901760, %v1067_v17 }
  0x8f   : > { %3535 = vmatprep.subr.mxu0 %v4157_v0  ;;  %3562 = vmatprep.subr.mxu1 %v4157_v0 }
  0x90   : > { %3536 = vmatpush3.msra.mxu0 %v4714_v12  ;;  %3563 = vmatpush3.msra.mxu1 %v1040_v54  ;;  %v1075_v54 = vand.u32 4294901760, %v1074_v59  ;;  %v210_v59 = vld [vmem:[%s4194_s15 + $0x110] sm:$0xff] }
  0x91   : > { %3537 = vmatprep.subr.mxu0 %v4157_v0  ;;  %3564 = vmatprep.subr.mxu1 %v4157_v0 }
  0x92   : > { %3538 = vmatpush3.msra.mxu0 %v4730_v48  ;;  %3565 = vmatpush3.msra.mxu1 %v1047_v14 }
  0x93   : > { %3539 = vmatprep.subr.mxu0 %v4157_v0  ;;  %3566 = vmatprep.subr.mxu1 %v4157_v0 }
  0x94   : > { %3540 = vmatpush3.msra.mxu0 %v4742_v13  ;;  %3567 = vmatpush3.msra.mxu1 %v1054_v10  ;;  %v211_v10 = vld [vmem:[%s4194_s15 + $0x118] sm:$0xff] }
  0x95   : > { %3541 = vmatprep.mubr.msk.f32.mxu0 %vm4158_vm0, %v4157_v0  ;;  %3568 = vmatprep.subr.mxu1 %v4157_v0  ;;  %v5081_v37 = vand.u32 4294901760, %v211_v10 }
  0x96   : > { %3579 = vmatprep.subr.mxu0 %v4157_v0  ;;  %3542 = vmatmul.mubr.f32.vlgmr.msra.gmra.mxu0 %v966_v34 }
  0x97   : > { %3569 = vmatpush3.msra.mxu1 %v1061_v57  ;;  %3580 = vmatpush3.msra.mxu0 %v4563_v15 }
  0x98   : > { %3570 = vmatprep.subr.mxu1 %v4157_v0  ;;  %3581 = vmatprep.subr.mxu0 %v4157_v0 }
  0x99   : > { %3571 = vmatpush3.msra.mxu1 %v1068_v19  ;;  %3582 = vmatpush3.msra.mxu0 %v4576_v20  ;;  %v220_v20 = vld [vmem:[%s4194_s15 + $0x160] sm:$0xff] }
  0x9a   : > { %3572 = vmatprep.subr.mxu1 %v4157_v0  ;;  %3583 = vmatprep.subr.mxu0 %v4157_v0 }
  0x9b   : > { %3573 = vmatpush3.msra.mxu1 %v1075_v54  ;;  %3584 = vmatpush3.msra.mxu0 %v4588_v23 }
  0x9c   : > { %3574 = vmatprep.subr.mxu1 %v4157_v0  ;;  %3585 = vmatprep.subr.mxu0 %v4157_v0 }
  0x9d   : > { %3575 = vmatpush3.msra.mxu1 %v1082_v58  ;;  %3576 = vmatprep.mubr.msk.f32.mxu1 %vm4158_vm0, %v4157_v0 }
  0x9e   : > { %3586 = vmatpush3.msra.mxu0 %v4594_v25  ;;  %3577 = vmatmul.mubr.f32.vlgmr.msra.gmra.mxu1 %v4697_v39  ;;  %v4950_v25 = vand.u32 4294901760, %v220_v20 }
  0x9f   : > { %3587 = vmatprep.subr.mxu0 %v4157_v0  ;;  %3614 = vmatprep.subr.mxu1 %v4157_v0 }
  0xa0   : > { %3588 = vmatpush3.msra.mxu0 %v4605_v30  ;;  %3615 = vmatpush3.msra.mxu1 %v4546_v6  ;;  %v218_v30 = vld [vmem:[%s4194_s15 + $0x150] sm:$0xff] }
  0xa1   : > { %3589 = vmatprep.subr.mxu0 %v4157_v0  ;;  %3616 = vmatprep.subr.mxu1 %v4157_v0 }
  0xa2   : > { %3590 = vmatpush3.msra.mxu0 %v4623_v47  ;;  %3617 = vmatpush3.msra.mxu1 %v4554_v11  ;;  %v217_v47 = vld [vmem:[%s4194_s15 + $0x148] sm:$0xff] }
  0xa3   : > { %3591 = vmatprep.subr.mxu0 %v4157_v0  ;;  %3618 = vmatprep.subr.mxu1 %v4157_v0 }
  0xa4   : > { %3592 = vmatpush3.msra.mxu0 %v4637_v61  ;;  %3619 = vmatpush3.msra.mxu1 %v4565_v16 }
  0xa5   : > { %3593 = vmatprep.subr.mxu0 %v4157_v0  ;;  %3620 = vmatprep.subr.mxu1 %v4157_v0 }
  0xa6   : > { %3594 = vmatpush3.msra.mxu0 %v4654_v26  ;;  %3621 = vmatpush3.msra.mxu1 %v4570_v18 }
  0xa7   : > { %3595 = vmatprep.subr.mxu0 %v4157_v0  ;;  %3622 = vmatprep.subr.mxu1 %v4157_v0 }
  0xa8   : > { %3596 = vmatpush3.msra.mxu0 %v4667_v42  ;;  %3623 = vmatpush3.msra.mxu1 %v4580_v21 }
  0xa9   : > { %3597 = vmatprep.subr.mxu0 %v4157_v0  ;;  %3624 = vmatprep.subr.mxu1 %v4157_v0 }
  0xaa   : > { %3598 = vmatpush3.msra.mxu0 %v4677_v56  ;;  %3625 = vmatpush3.msra.mxu1 %v4599_v28 }
  0xab   : > { %3599 = vmatprep.subr.mxu0 %v4157_v0  ;;  %3626 = vmatprep.subr.mxu1 %v4157_v0 }
  0xac   : > { %3600 = vmatpush3.msra.mxu0 %v4690_v9  ;;  %3627 = vmatpush3.msra.mxu1 %v4613_v40  ;;  %v214_v9 = vld [vmem:[%s4194_s15 + $0x130] sm:$0xff] }
  0xad   : > { %3601 = vmatprep.subr.mxu0 %v4157_v0  ;;  %3628 = vmatprep.subr.mxu1 %v4157_v0 }
  0xae   : > { %3602 = vmatpush3.msra.mxu0 %v4705_v51  ;;  %3629 = vmatpush3.msra.mxu1 %v4628_v53 }
  0xaf   : > { %3603 = vmatprep.subr.mxu0 %v4157_v0  ;;  %3630 = vmatprep.subr.mxu1 %v4157_v0 }
  0xb0   : > { %3604 = vmatpush3.msra.mxu0 %v4728_v46  ;;  %3631 = vmatpush3.msra.mxu1 %v4642_v3 }
  0xb1   : > { %3605 = vmatprep.subr.mxu0 %v4157_v0  ;;  %3632 = vmatprep.subr.mxu1 %v4157_v0 }
  0xb2   : > { %3606 = vmatpush3.msra.mxu0 %v4740_v8  ;;  %3633 = vmatpush3.msra.mxu1 %v4656_v31 }
  0xb3   : > { %3607 = vmatprep.subr.mxu0 %v4157_v0  ;;  %3634 = vmatprep.subr.mxu1 %v4157_v0 }
  0xb4   : > { %3608 = vmatpush3.msra.mxu0 %v4752_v62  ;;  %3635 = vmatpush3.msra.mxu1 %v4669_v44 }
  0xb5   : > { %3609 = vmatprep.subr.mxu0 %v4157_v0  ;;  %3636 = vmatprep.subr.mxu1 %v4157_v0 }
  0xb6   : > { %3610 = vmatpush3.msra.mxu0 %v4762_v2  ;;  %3611 = vmatprep.mubr.msk.f32.mxu0 %vm4158_vm0, %v4157_v0 }
  0xb7   : > { %3637 = vmatpush3.msra.mxu1 %v4682_v60  ;;  %3612 = vmatmul.mubr.f32.vlgmr.msra.gmra.mxu0 %v4723_v35 }
  0xb8   : > { %3638 = vmatprep.subr.mxu1 %v4157_v0  ;;  %3649 = vmatprep.subr.mxu0 %v4157_v0 }
  0xb9   : > { %3639 = vmatpush3.msra.mxu1 %v4701_v41  ;;  %3650 = vmatpush3.msra.mxu0 %v975_v24  ;;  %v219_v24 = vld [vmem:[%s4194_s15 + $0x158] sm:$0xff] }
  0xba   : > { %3640 = vmatprep.subr.mxu1 %v4157_v0  ;;  %3651 = vmatprep.subr.mxu0 %v4157_v0 }
  0xbb   : > { %3641 = vmatpush3.msra.mxu1 %v4714_v12  ;;  %3652 = vmatpush3.msra.mxu0 %v982_v29  ;;  %v4960_v29 = vand.u32 4294901760, %v219_v24 }
  0xbc   : > { %3642 = vmatprep.subr.mxu1 %v4157_v0  ;;  %3653 = vmatprep.subr.mxu0 %v4157_v0 }
  0xbd   : > { %3643 = vmatpush3.msra.mxu1 %v4730_v48  ;;  %3654 = vmatpush3.msra.mxu0 %v989_v43  ;;  %v4985_v61 = vsub.f32 %v219_v24, %v4960_v29 }
  0xbe   : > { %3644 = vmatprep.subr.mxu1 %v4157_v0  ;;  %3655 = vmatprep.subr.mxu0 %v4157_v0 }
  0xbf   : > { %3645 = vmatpush3.msra.mxu1 %v4742_v13  ;;  %3646 = vmatprep.mubr.msk.f32.mxu1 %vm4158_vm0, %v4157_v0 }
  0xc0   : > { %3656 = vmatpush3.msra.mxu0 %v996_v45  ;;  %3647 = vmatmul.mubr.f32.vlgmr.msra.gmra.mxu1 %v964_v38  ;;  %v4974_v45 = vsub.f32 %v220_v20, %v4950_v25  ;;  %v5094_v20 = vand.u32 4294901760, %v210_v59 }
  0xc1   : > { %3657 = vmatprep.subr.mxu0 %v4157_v0  ;;  %3684 = vmatprep.subr.mxu1 %v4157_v0 }
  0xc2   : > { %3658 = vmatpush3.msra.mxu0 %v1003_v55  ;;  %3685 = vmatpush3.msra.mxu1 %v4546_v6  ;;  %v223_v6 = vld [vmem:[%s4194_s15 + $0x178] sm:$0xff]  ;;  %v1637_v42 = vand.u32 4294901760, %v4974_v45 }
  0xc3   : > { %3659 = vmatprep.subr.mxu0 %v4157_v0  ;;  %3686 = vmatprep.subr.mxu1 %v4157_v0  ;;  %v4926_v15 = vand.u32 4294901760, %v223_v6 }
  0xc4   : > { %3660 = vmatpush3.msra.mxu0 %v1010_v32  ;;  %3687 = vmatpush3.msra.mxu1 %v4554_v11  ;;  %v222_v11 = vld [vmem:[%s4194_s15 + $0x170] sm:$0xff] }
  0xc5   : > { %3661 = vmatprep.subr.mxu0 %v4157_v0  ;;  %3688 = vmatprep.subr.mxu1 %v4157_v0 }
  0xc6   : > { %3662 = vmatpush3.msra.mxu0 %v1017_v49  ;;  %3689 = vmatpush3.msra.mxu1 %v4565_v16  ;;  %v221_v16 = vld [vmem:[%s4194_s15 + $0x168] sm:$0xff] }
  0xc7   : > { %3663 = vmatprep.subr.mxu0 %v4157_v0  ;;  %3690 = vmatprep.subr.mxu1 %v4157_v0  ;;  %v4945_v23 = vand.u32 4294901760, %v221_v16 }
  0xc8   : > { %3664 = vmatpush3.msra.mxu0 %v1024_v1  ;;  %3691 = vmatpush3.msra.mxu1 %v4570_v18  ;;  %v4934_v18 = vand.u32 4294901760, %v222_v11  ;;  %v1644_v1 = vand.u32 4294901760, %v4985_v61 }
  0xc9   : > { %3665 = vmatprep.subr.mxu0 %v4157_v0  ;;  %3692 = vmatprep.subr.mxu1 %v4157_v0 }
  0xca   : > { %3666 = vmatpush3.msra.mxu0 %v1031_v33  ;;  %3693 = vmatpush3.msra.mxu1 %v4580_v21  ;;  %v4943_v21 = vsub.f32 %v223_v6, %v4926_v15  ;;  %v1645_v8 = vsub.f32 %v4985_v61, %v1644_v1 }
  0xcb   : > { %3667 = vmatprep.subr.mxu0 %v4157_v0  ;;  %3694 = vmatprep.subr.mxu1 %v4157_v0 }
  0xcc   : > { %3668 = vmatpush3.msra.mxu0 %v1038_v5  ;;  %3695 = vmatpush3.msra.mxu1 %v4599_v28  ;;  %v4956_v28 = vsub.f32 %v222_v11, %v4934_v18  ;;  %v1616_v43 = vand.u32 4294901760, %v4943_v21  ;;  %v1646_v17 = vand.u32 4294901760, %v1645_v8 }
  0xcd   : > { %3669 = vmatprep.subr.mxu0 %v4157_v0  ;;  %3696 = vmatprep.subr.mxu1 %v4157_v0 }
  0xce   : > { %3670 = vmatpush3.msra.mxu0 %v1045_v27  ;;  %3697 = vmatpush3.msra.mxu1 %v4613_v40  ;;  %v4968_v40 = vsub.f32 %v221_v16, %v4945_v23  ;;  %v1623_v55 = vand.u32 4294901760, %v4956_v28  ;;  %v1617_v26 = vsub.f32 %v4943_v21, %v1616_v43  ;;  %v213_v27 = vld [vmem:[%s4194_s15 + $0x128] sm:$0xff] }
  0xcf   : > { %3671 = vmatprep.subr.mxu0 %v4157_v0  ;;  %3698 = vmatprep.subr.mxu1 %v4157_v0  ;;  %v5049_v62 = vand.u32 4294901760, %v213_v27  ;;  %v209_v16 = vld [vmem:[%s4194_s15 + $0x108] sm:$0xff] }
  0xd0   : > { %3672 = vmatpush3.msra.mxu0 %v1052_v63  ;;  %3699 = vmatpush3.msra.mxu1 %v4628_v53  ;;  %v4979_v53 = vand.u32 4294901760, %v218_v30  ;;  %v1630_v32 = vand.u32 4294901760, %v4968_v40  ;;  %v1624_v56 = vsub.f32 %v4956_v28, %v1623_v55  ;;  %v1618_v33 = vand.u32 4294901760, %v1617_v26 }
  0xd1   : > { %3673 = vmatprep.subr.mxu0 %v4157_v0  ;;  %3700 = vmatprep.subr.mxu1 %v4157_v0 }
  0xd2   : > { %3674 = vmatpush3.msra.mxu0 %v1059_v52  ;;  %3701 = vmatpush3.msra.mxu1 %v4642_v3  ;;  %v216_v3 = vld [vmem:[%s4194_s15 + $0x140] sm:$0xff]  ;;  %v5003_v49 = vsub.f32 %v218_v30, %v4979_v53  ;;  %v1631_v51 = vsub.f32 %v4968_v40, %v1630_v32  ;;  %v1625_v35 = vand.u32 4294901760, %v1624_v56  ;;  %v5110_v56 = vand.u32 4294901760, %v209_v16 }
  0xd3   : > { %3675 = vmatprep.subr.mxu0 %v4157_v0  ;;  %3702 = vmatprep.subr.mxu1 %v4157_v0 }
  0xd4   : > { %3676 = vmatpush3.msra.mxu0 %v1066_v7  ;;  %3703 = vmatpush3.msra.mxu1 %v4656_v31  ;;  %v4993_v31 = vand.u32 4294901760, %v217_v47  ;;  %v1651_v63 = vand.u32 4294901760, %v5003_v49  ;;  %v174_v7 = vld [vmem:[%s4280_s19 + $0x4] sm:$0x3] }
  0xd5   : > { %3677 = vmatprep.subr.mxu0 %v4157_v0  ;;  %3704 = vmatprep.subr.mxu1 %v4157_v0  ;;  %v5077_v19 = vand.u32 4294901760, %v174_v7 }
  0xd6   : > { %3678 = vmatpush3.msra.mxu0 %v1073_v4  ;;  %3705 = vmatpush3.msra.mxu1 %v4669_v44  ;;  %v215_v44 = vld [vmem:[%s4194_s15 + $0x138] sm:$0xff]  ;;  %v1652_v36 = vsub.f32 %v5003_v49, %v1651_v63 }
  0xd7   : > { %3679 = vmatprep.subr.mxu0 %v4157_v0  ;;  %3706 = vmatprep.subr.mxu1 %v4157_v0  ;;  %v5022_v5 = vand.u32 4294901760, %v215_v44  ;;  %v5103_v26 = vsub.f32 %v174_v7, %v5077_v19 }
  0xd8   : > { %3680 = vmatpush3.msra.mxu0 %v1080_v22  ;;  %3681 = vmatprep.mubr.msk.f32.mxu0 %vm4158_vm0, %v4157_v0  ;;  %v5070_v22 = vsub.f32 %v213_v27, %v5049_v62  ;;  %v1653_v54 = vand.u32 4294901760, %v1652_v36 }
  0xd9   : > { %3707 = vmatpush3.msra.mxu1 %v4682_v60  ;;  %3682 = vmatmul.mubr.f32.vlgmr.msra.gmra.mxu0 %v4697_v39  ;;  %v5008_v60 = vand.u32 4294901760, %v216_v3  ;;  %v5047_v38 = vsub.f32 %v215_v44, %v5022_v5  ;;  %v5108_v44 = vsub.f32 %v211_v10, %v5081_v37 }
  0xda   : > { %3708 = vmatprep.subr.mxu1 %v4157_v0  ;;  %3719 = vmatprep.subr.mxu0 %v4157_v0 }
  0xdb   : > { %3709 = vmatpush3.msra.mxu1 %v4701_v41  ;;  %3720 = vmatpush3.msra.mxu0 %v4926_v15  ;;  %v5017_v41 = vsub.f32 %v217_v47, %v4993_v31  ;;  %v5034_v46 = vsub.f32 %v216_v3, %v5008_v60  ;;  %v1672_v57 = vand.u32 4294901760, %v5047_v38  ;;  %v1686_v47 = vand.u32 4294901760, %v5070_v22  ;;  %v208_v3 = vld [vmem:[%s4194_s15 + $0x100] sm:$0xff] }
  0xdc   : > { %3710 = vmatprep.subr.mxu1 %v4157_v0  ;;  %3721 = vmatprep.subr.mxu0 %v4157_v0  ;;  %v5122_v27 = vand.u32 4294901760, %v208_v3 }
  0xdd   : > { %3711 = vmatpush3.msra.mxu1 %v4714_v12  ;;  %3722 = vmatpush3.msra.mxu0 %v4934_v18  ;;  %v1638_v12 = vsub.f32 %v4974_v45, %v1637_v42  ;;  %v1658_v52 = vand.u32 4294901760, %v5017_v41  ;;  %v1665_v4 = vand.u32 4294901760, %v5034_v46  ;;  %v1673_v30 = vsub.f32 %v5047_v38, %v1672_v57 }
  0xde   : > { %3712 = vmatprep.subr.mxu1 %v4157_v0  ;;  %3723 = vmatprep.subr.mxu0 %v4157_v0  ;;  %v1687_v8 = vsub.f32 %v5070_v22, %v1686_v47 }
  0xdf   : > { %3713 = vmatpush3.msra.mxu1 %v4730_v48  ;;  %3724 = vmatpush3.msra.mxu0 %v4945_v23  ;;  %v5036_v48 = vand.u32 4294901760, %v214_v9  ;;  %v1639_v2 = vand.u32 4294901760, %v1638_v12  ;;  %v1659_v34 = vsub.f32 %v5017_v41, %v1658_v52  ;;  %v1666_v6 = vsub.f32 %v5034_v46, %v1665_v4 }
  0xe0   : > { %3714 = vmatprep.subr.mxu1 %v4157_v0  ;;  %3725 = vmatprep.subr.mxu0 %v4157_v0  ;;  %v5120_v12 = vsub.f32 %v210_v59, %v5094_v20 }
  0xe1   : > { %3715 = vmatpush3.msra.mxu1 %v4742_v13  ;;  %3716 = vmatprep.mubr.msk.f32.mxu1 %vm4158_vm0, %v4157_v0  ;;  %v212_v13 = vld [vmem:[%s4194_s15 + $0x120] sm:$0xff]  ;;  %v5057_v14 = vsub.f32 %v214_v9, %v5036_v48  ;;  %v1660_v24 = vand.u32 4294901760, %v1659_v34  ;;  %v1667_v9 = vand.u32 4294901760, %v1666_v6 }
  0xe2   : > { %3726 = vmatpush3.msra.mxu0 %v4950_v25  ;;  %3717 = vmatmul.mubr.f32.vlgmr.msra.gmra.mxu1 %v4697_v39  ;;  %v1632_v39 = vand.u32 4294901760, %v1631_v51  ;;  %v5062_v50 = vand.u32 4294901760, %v212_v13  ;;  %v1707_v34 = vand.u32 4294901760, %v5120_v12 }
  0xe3   : > { %3727 = vmatprep.subr.mxu0 %v4157_v0  ;;  %3754 = vmatprep.subr.mxu1 %v4157_v0  ;;  %v1679_v11 = vand.u32 4294901760, %v5057_v14 }
  0xe4   : > { %3728 = vmatpush3.msra.mxu0 %v4960_v29  ;;  %3755 = vmatpush3.msra.mxu1 %v1618_v33  ;;  %v5085_v58 = vsub.f32 %v212_v13, %v5062_v50  ;;  %v1605_v13 = vand.u32 4294901760, %v5103_v26 }
  0xe5   : > { %3729 = vmatprep.subr.mxu0 %v4157_v0  ;;  %3756 = vmatprep.subr.mxu1 %v4157_v0  ;;  %v1680_v33 = vsub.f32 %v5057_v14, %v1679_v11 }
  0xe6   : > { %3730 = vmatpush3.msra.mxu0 %v4979_v53  ;;  %3757 = vmatpush3.msra.mxu1 %v1625_v35  ;;  %v1693_v51 = vand.u32 4294901760, %v5085_v58  ;;  %v1674_v35 = vand.u32 4294901760, %v1673_v30  ;;  %v1606_v6 = vsub.f32 %v5103_v26, %v1605_v13 }
  0xe7   : > { %3731 = vmatprep.subr.mxu0 %v4157_v0  ;;  %3758 = vmatprep.subr.mxu1 %v4157_v0  ;;  %v1681_v36 = vand.u32 4294901760, %v1680_v33 }
  0xe8   : > { %3732 = vmatpush3.msra.mxu0 %v4993_v31  ;;  %3759 = vmatpush3.msra.mxu1 %v1632_v39  ;;  %v5132_v39 = vsub.f32 %v209_v16, %v5110_v56  ;;  %v1694_v10 = vsub.f32 %v5085_v58, %v1693_v51  ;;  %v1607_v33 = vand.u32 4294901760, %v1606_v6 }
  0xe9   : > { %3733 = vmatprep.subr.mxu0 %v4157_v0  ;;  %3760 = vmatprep.subr.mxu1 %v4157_v0 }
  0xea   : > { %3734 = vmatpush3.msra.mxu0 %v5008_v60  ;;  %3761 = vmatpush3.msra.mxu1 %v1639_v2  ;;  %v1700_v2 = vand.u32 4294901760, %v5108_v44  ;;  %v1695_v30 = vand.u32 4294901760, %v1694_v10 }
  0xeb   : > { %3735 = vmatprep.subr.mxu0 %v4157_v0  ;;  %3762 = vmatprep.subr.mxu1 %v4157_v0 }
  0xec   : > { %3736 = vmatpush3.msra.mxu0 %v5022_v5  ;;  %3763 = vmatpush3.msra.mxu1 %v1646_v17  ;;  %v5144_v17 = vsub.f32 %v208_v3, %v5122_v27  ;;  %v1701_v16 = vsub.f32 %v5108_v44, %v1700_v2  ;;  %v1708_v3 = vsub.f32 %v5120_v12, %v1707_v34 }
  0xed   : > { %3737 = vmatprep.subr.mxu0 %v4157_v0  ;;  %3764 = vmatprep.subr.mxu1 %v4157_v0 }
  0xee   : > { %3738 = vmatpush3.msra.mxu0 %v5036_v48  ;;  %3765 = vmatpush3.msra.mxu1 %v1653_v54  ;;  %v1688_v54 = vand.u32 4294901760, %v1687_v8  ;;  %v1702_v8 = vand.u32 4294901760, %v1701_v16 }
  0xef   : > { %3739 = vmatprep.subr.mxu0 %v4157_v0  ;;  %3766 = vmatprep.subr.mxu1 %v4157_v0 }
  0xf0   : > { %3740 = vmatpush3.msra.mxu0 %v5049_v62  ;;  %3767 = vmatpush3.msra.mxu1 %v1660_v24  ;;  %v1714_v24 = vand.u32 4294901760, %v5132_v39 }
  0xf1   : > { %3741 = vmatprep.subr.mxu0 %v4157_v0  ;;  %3768 = vmatprep.subr.mxu1 %v4157_v0  ;;  %v5135_v7 = vpop.f32.mrf.mxu0 }
  0xf2   : > { %3742 = vmatpush3.msra.mxu0 %v5062_v50  ;;  %3769 = vmatpush3.msra.mxu1 %v1667_v9  ;;  %v1721_v9 = vand.u32 4294901760, %v5144_v17 }
  0xf3   : > { %3743 = vmatprep.subr.mxu0 %v4157_v0  ;;  %3770 = vmatprep.subr.mxu1 %v4157_v0  ;;  %v3333_v59 = vpop.f32.mrf.mxu0 }
  0xf4   : > { %3744 = vmatpush3.msra.mxu0 %v5081_v37  ;;  %3771 = vmatpush3.msra.mxu1 %v1674_v35  ;;  %v1709_v59 = vand.u32 4294901760, %v1708_v3 }
  0xf5   : > { %3745 = vmatprep.subr.mxu0 %v4157_v0  ;;  %3772 = vmatprep.subr.mxu1 %v4157_v0 }
  0xf6   : > { %3746 = vmatpush3.msra.mxu0 %v5094_v20  ;;  %3773 = vmatpush3.msra.mxu1 %v1681_v36  ;;  %v1715_v36 = vsub.f32 %v5132_v39, %v1714_v24 }
  0xf7   : > { %3747 = vmatprep.subr.mxu0 %v4157_v0  ;;  %3774 = vmatprep.subr.mxu1 %v4157_v0 }
  0xf8   : > { %3748 = vmatpush3.msra.mxu0 %v5110_v56  ;;  %3775 = vmatpush3.msra.mxu1 %v1688_v54  ;;  %v5165_v35 = vpop.f32.mrf.mxu1  ;;  %v1722_v54 = vsub.f32 %v5144_v17, %v1721_v9  ;;  %v1716_v6 = vand.u32 4294901760, %v1715_v36 }
  0xf9   : > { %3749 = vmatprep.subr.mxu0 %v4157_v0  ;;  %3776 = vmatprep.subr.mxu1 %v4157_v0 }
  0xfa   : > { %3750 = vmatpush3.msra.mxu0 %v5122_v27  ;;  %3777 = vmatpush3.msra.mxu1 %v1695_v30  ;;  %v3368_v10 = vpop.f32.mrf.mxu1  ;;  %v1723_v16 = vand.u32 4294901760, %v1722_v54 }
  0xfb   : > { %3751 = vmatprep.mubr.msk.f32.mxu0 %vm4158_vm0, %v4157_v0  ;;  %3778 = vmatprep.subr.mxu1 %v4157_v0 }
  0xfc   : > { %3789 = vmatprep.subr.mxu0 %v4157_v0  ;;  %3752 = vmatmul.mubr.f32.vlgmr.msra.gmra.mxu0 %v1607_v33 }
  0xfd   : > { %3779 = vmatpush3.msra.mxu1 %v1702_v8  ;;  %3790 = vmatpush3.msra.mxu0 %v4943_v21  ;;  %v479_v21 = vadd.f32 %v5165_v35, %v5135_v7  ;;  %v229_v7 = vld [vmem:[%s4194_s15 + $0x1a8] sm:$0xff]  ;;  %v228_v35 = vld [vmem:[%s4194_s15 + $0x1a0] sm:$0xff] }
  0xfe   : > { %3780 = vmatprep.subr.mxu1 %v4157_v0  ;;  %3791 = vmatprep.subr.mxu0 %v4157_v0  ;;  %v5449_v10 = vand.u32 4294901760, %v229_v7 }
  0xff   : > { %3781 = vmatpush3.msra.mxu1 %v1709_v59  ;;  %3792 = vmatpush3.msra.mxu0 %v4956_v28 }
 0x100   : > { %3782 = vmatprep.subr.mxu1 %v4157_v0  ;;  %3793 = vmatprep.subr.mxu0 %v4157_v0 }
 0x101   : > { %3783 = vmatpush3.msra.mxu1 %v1716_v6  ;;  %3794 = vmatpush3.msra.mxu0 %v4968_v40  ;;  %v237_v40 = vld [vmem:[%s4194_s15 + $0x1e8] sm:$0xff]  ;;  %v175_v6 = vld [vmem:[%s4280_s19 + $0x6] sm:$0x3] }
 0x102   : > { %3784 = vmatprep.subr.mxu1 %v4157_v0  ;;  %3795 = vmatprep.subr.mxu0 %v4157_v0 }
 0x103   : > { %3785 = vmatpush3.msra.mxu1 %v1723_v16  ;;  %3786 = vmatprep.mubr.msk.f32.mxu1 %vm4158_vm0, %v4157_v0 }
 0x104   : > { %3796 = vmatpush3.msra.mxu0 %v4974_v45  ;;  %3787 = vmatmul.mubr.f32.vlgmr.msra.gmra.mxu1 %v5077_v19  ;;  %v236_v45 = vld [vmem:[%s4194_s15 + $0x1e0] sm:$0xff] }
 0x105   : > { %3797 = vmatprep.subr.mxu0 %v4157_v0  ;;  %3824 = vmatprep.subr.mxu1 %v4157_v0 }
 0x106   : > { %3798 = vmatpush3.msra.mxu0 %v4985_v61  ;;  %3825 = vmatpush3.msra.mxu1 %v4926_v15  ;;  %v5337_v61 = vand.u32 4294901760, %v237_v40 }
 0x107   : > { %3799 = vmatprep.subr.mxu0 %v4157_v0  ;;  %3826 = vmatprep.subr.mxu1 %v4157_v0 }
 0x108   : > { %3800 = vmatpush3.msra.mxu0 %v5003_v49  ;;  %3827 = vmatpush3.msra.mxu1 %v4934_v18 }
 0x109   : > { %3801 = vmatprep.subr.mxu0 %v4157_v0  ;;  %3828 = vmatprep.subr.mxu1 %v4157_v0 }
 0x10a   : > { %3802 = vmatpush3.msra.mxu0 %v5017_v41  ;;  %3829 = vmatpush3.msra.mxu1 %v4945_v23 }
 0x10b   : > { %3803 = vmatprep.subr.mxu0 %v4157_v0  ;;  %3830 = vmatprep.subr.mxu1 %v4157_v0 }
 0x10c   : > { %3804 = vmatpush3.msra.mxu0 %v5034_v46  ;;  %3831 = vmatpush3.msra.mxu1 %v4950_v25  ;;  %v5367_v46 = vsub.f32 %v237_v40, %v5337_v61 }
 0x10d   : > { %3805 = vmatprep.subr.mxu0 %v4157_v0  ;;  %3832 = vmatprep.subr.mxu1 %v4157_v0 }
 0x10e   : > { %3806 = vmatpush3.msra.mxu0 %v5047_v38  ;;  %3833 = vmatpush3.msra.mxu1 %v4960_v29 }
 0x10f   : > { %3807 = vmatprep.subr.mxu0 %v4157_v0  ;;  %3834 = vmatprep.subr.mxu1 %v4157_v0 }
 0x110   : > { %3808 = vmatpush3.msra.mxu0 %v5057_v14  ;;  %3835 = vmatpush3.msra.mxu1 %v4979_v53 }
 0x111   : > { %3809 = vmatprep.subr.mxu0 %v4157_v0  ;;  %3836 = vmatprep.subr.mxu1 %v4157_v0  ;;  %v5219_v30 = vpop.f32.mrf.mxu0 }
 0x112   : > { %3810 = vmatpush3.msra.mxu0 %v5070_v22  ;;  %3837 = vmatpush3.msra.mxu1 %v4993_v31 }
 0x113   : > { %3811 = vmatprep.subr.mxu0 %v4157_v0  ;;  %3838 = vmatprep.subr.mxu1 %v4157_v0  ;;  %v3403_v3 = vpop.f32.mrf.mxu0 }
 0x114   : > { %3812 = vmatpush3.msra.mxu0 %v5085_v58  ;;  %3839 = vmatpush3.msra.mxu1 %v5008_v60  ;;  %v2271_v58 = vand.u32 4294901760, %v5367_v46  ;;  %v5462_v3 = vand.u32 4294901760, %v228_v35 }
 0x115   : > { %3813 = vmatprep.subr.mxu0 %v4157_v0  ;;  %3840 = vmatprep.subr.mxu1 %v4157_v0 }
 0x116   : > { %3814 = vmatpush3.msra.mxu0 %v5108_v44  ;;  %3841 = vmatpush3.msra.mxu1 %v5022_v5 }
 0x117   : > { %3815 = vmatprep.subr.mxu0 %v4157_v0  ;;  %3842 = vmatprep.subr.mxu1 %v4157_v0 }
 0x118   : > { %3816 = vmatpush3.msra.mxu0 %v5120_v12  ;;  %3843 = vmatpush3.msra.mxu1 %v5036_v48 }
 0x119   : > { %3817 = vmatprep.subr.mxu0 %v4157_v0  ;;  %3844 = vmatprep.subr.mxu1 %v4157_v0 }
 0x11a   : > { %3818 = vmatpush3.msra.mxu0 %v5132_v39  ;;  %3845 = vmatpush3.msra.mxu1 %v5049_v62  ;;  %v5239_v33 = vpop.f32.mrf.mxu1  ;;  %v2272_v39 = vsub.f32 %v5367_v46, %v2271_v58 }
 0x11b   : > { %3819 = vmatprep.subr.mxu0 %v4157_v0  ;;  %3846 = vmatprep.subr.mxu1 %v4157_v0 }
 0x11c   : > { %3820 = vmatpush3.msra.mxu0 %v5144_v17  ;;  %3821 = vmatprep.mubr.msk.f32.mxu0 %vm4158_vm0, %v4157_v0  ;;  %v3438_v8 = vpop.f32.mrf.mxu1 }
 0x11d   : > { %3847 = vmatpush3.msra.mxu1 %v5062_v50  ;;  %3822 = vmatmul.mubr.f32.vlgmr.msra.gmra.mxu0 %v5103_v26  ;;  %v227_v8 = vld [vmem:[%s4194_s15 + $0x198] sm:$0xff] }
 0x11e   : > { %3848 = vmatprep.subr.mxu1 %v4157_v0  ;;  %3859 = vmatprep.subr.mxu0 %v4157_v0  ;;  %v5481_v40 = vand.u32 4294901760, %v227_v8 }
 0x11f   : > { %3849 = vmatpush3.msra.mxu1 %v5081_v37  ;;  %3860 = vmatpush3.msra.mxu0 %v1616_v43 }
 0x120   : > { %3850 = vmatprep.subr.mxu1 %v4157_v0  ;;  %3861 = vmatprep.subr.mxu0 %v4157_v0 }
 0x121   : > { %3851 = vmatpush3.msra.mxu1 %v5094_v20  ;;  %3862 = vmatpush3.msra.mxu0 %v1623_v55 }
 0x122   : > { %3852 = vmatprep.subr.mxu1 %v4157_v0  ;;  %3863 = vmatprep.subr.mxu0 %v4157_v0 }
 0x123   : > { %3853 = vmatpush3.msra.mxu1 %v5110_v56  ;;  %3864 = vmatpush3.msra.mxu0 %v1630_v32 }
 0x124   : > { %3854 = vmatprep.subr.mxu1 %v4157_v0  ;;  %3865 = vmatprep.subr.mxu0 %v4157_v0 }
 0x125   : > { %3855 = vmatpush3.msra.mxu1 %v5122_v27  ;;  %3856 = vmatprep.mubr.msk.f32.mxu1 %vm4158_vm0, %v4157_v0 }
 0x126   : > { %3866 = vmatpush3.msra.mxu0 %v1637_v42  ;;  %3857 = vmatmul.mubr.f32.vlgmr.msra.gmra.mxu1 %v1605_v13  ;;  %v5342_v42 = vand.u32 4294901760, %v236_v45 }
 0x127   : > { %3867 = vmatprep.subr.mxu0 %v4157_v0  ;;  %3894 = vmatprep.subr.mxu1 %v4157_v0 }
 0x128   : > { %3868 = vmatpush3.msra.mxu0 %v1644_v1  ;;  %3895 = vmatpush3.msra.mxu1 %v4926_v15  ;;  %v5373_v38 = vsub.f32 %v236_v45, %v5342_v42 }
 0x129   : > { %3869 = vmatprep.subr.mxu0 %v4157_v0  ;;  %3896 = vmatprep.subr.mxu1 %v4157_v0 }
 0x12a   : > { %3870 = vmatpush3.msra.mxu0 %v1651_v63  ;;  %3897 = vmatpush3.msra.mxu1 %v4934_v18  ;;  %v239_v18 = vld [vmem:[%s4194_s15 + $0x1f8] sm:$0xff] }
 0x12b   : > { %3871 = vmatprep.subr.mxu0 %v4157_v0  ;;  %3898 = vmatprep.subr.mxu1 %v4157_v0  ;;  %v5316_v28 = vand.u32 4294901760, %v239_v18 }
 0x12c   : > { %3872 = vmatpush3.msra.mxu0 %v1658_v52  ;;  %3899 = vmatpush3.msra.mxu1 %v4945_v23  ;;  %v238_v23 = vld [vmem:[%s4194_s15 + $0x1f0] sm:$0xff] }
 0x12d   : > { %3873 = vmatprep.subr.mxu0 %v4157_v0  ;;  %3900 = vmatprep.subr.mxu1 %v4157_v0  ;;  %v5325_v43 = vand.u32 4294901760, %v238_v23  ;;  %v5335_v55 = vsub.f32 %v239_v18, %v5316_v28  ;;  %v5470_v18 = vsub.f32 %v229_v7, %v5449_v10 }
 0x12e   : > { %3874 = vmatpush3.msra.mxu0 %v1665_v4  ;;  %3901 = vmatpush3.msra.mxu1 %v4950_v25  ;;  %v232_v4 = vld [vmem:[%s4194_s15 + $0x1c0] sm:$0xff] }
 0x12f   : > { %3875 = vmatprep.subr.mxu0 %v4157_v0  ;;  %3902 = vmatprep.subr.mxu1 %v4157_v0  ;;  %v5348_v49 = vsub.f32 %v238_v23, %v5325_v43  ;;  %v5408_v44 = vand.u32 4294901760, %v232_v4 }
 0x130   : > { %3876 = vmatpush3.msra.mxu0 %v1672_v57  ;;  %3903 = vmatpush3.msra.mxu1 %v4960_v29  ;;  %v583_v29 = vadd.f32 %v5219_v30, %v479_v21 }
 0x131   : > { %3877 = vmatprep.subr.mxu0 %v4157_v0  ;;  %3904 = vmatprep.subr.mxu1 %v4157_v0  ;;  %v2264_v14 = vand.u32 4294901760, %v5348_v49 }
 0x132   : > { %3878 = vmatpush3.msra.mxu0 %v1679_v11  ;;  %3905 = vmatpush3.msra.mxu1 %v4979_v53  ;;  %v672_v53 = vadd.f32 %v5239_v33, %v583_v29  ;;  %v231_v11 = vld [vmem:[%s4194_s15 + $0x1b8] sm:$0xff]  ;;  %v5477_v29 = vand.u32 4294901760, %v175_v6 }
 0x133   : > { %3879 = vmatprep.subr.mxu0 %v4157_v0  ;;  %3906 = vmatprep.subr.mxu1 %v4157_v0  ;;  %v790_v15 = vpop.f32.mrf.mxu0  ;;  %v2265_v26 = vsub.f32 %v5348_v49, %v2264_v14 }
 0x134   : > { %3880 = vmatpush3.msra.mxu0 %v1686_v47  ;;  %3907 = vmatpush3.msra.mxu1 %v4993_v31  ;;  %v235_v31 = vld [vmem:[%s4194_s15 + $0x1d8] sm:$0xff]  ;;  %v791_v32 = vadd.f32 %v790_v15, %v672_v53  ;;  %v5485_v53 = vsub.f32 %v228_v35, %v5462_v3 }
 0x135   : > { %3881 = vmatprep.subr.mxu0 %v4157_v0  ;;  %3908 = vmatprep.subr.mxu1 %v4157_v0  ;;  %v3473_v25 = vpop.f32.mrf.mxu0  ;;  %v5359_v41 = vand.u32 4294901760, %v235_v31  ;;  %v2266_v17 = vand.u32 4294901760, %v2265_v26 }
 0x136   : > { %3882 = vmatpush3.msra.mxu0 %v1693_v51  ;;  %3909 = vmatpush3.msra.mxu1 %v5008_v60  ;;  %v230_v51 = vld [vmem:[%s4194_s15 + $0x1b0] sm:$0xff] }
 0x137   : > { %3883 = vmatprep.subr.mxu0 %v4157_v0  ;;  %3910 = vmatprep.subr.mxu1 %v4157_v0  ;;  %v226_v25 = vld [vmem:[%s4194_s15 + $0x190] sm:$0xff] }
 0x138   : > { %3884 = vmatpush3.msra.mxu0 %v1700_v2  ;;  %3911 = vmatpush3.msra.mxu1 %v5022_v5  ;;  %v234_v5 = vld [vmem:[%s4194_s15 + $0x1d0] sm:$0xff]  ;;  %v5422_v2 = vand.u32 4294901760, %v231_v11 }
 0x139   : > { %3885 = vmatprep.subr.mxu0 %v4157_v0  ;;  %3912 = vmatprep.subr.mxu1 %v4157_v0  ;;  %v5379_v52 = vand.u32 4294901760, %v234_v5 }
 0x13a   : > { %3886 = vmatpush3.msra.mxu0 %v1707_v34  ;;  %3913 = vmatpush3.msra.mxu1 %v5036_v48  ;;  %v2257_v48 = vand.u32 4294901760, %v5335_v55  ;;  %v5434_v34 = vsub.f32 %v232_v4, %v5408_v44  ;;  %v5447_v36 = vsub.f32 %v231_v11, %v5422_v2  ;;  %v224_v4 = vld [vmem:[%s4194_s15 + $0x180] sm:$0xff]  ;;  %v5508_v11 = vsub.f32 %v227_v8, %v5481_v40 }
 0x13b   : > { %3887 = vmatprep.subr.mxu0 %v4157_v0  ;;  %3914 = vmatprep.subr.mxu1 %v4157_v0  ;;  %v5403_v47 = vsub.f32 %v234_v5, %v5379_v52  ;;  %v5522_v7 = vand.u32 4294901760, %v224_v4 }
 0x13c   : > { %3888 = vmatpush3.msra.mxu0 %v1714_v24  ;;  %3915 = vmatpush3.msra.mxu1 %v5049_v62  ;;  %v877_v60 = vpop.f32.mrf.mxu1  ;;  %v233_v62 = vld [vmem:[%s4194_s15 + $0x1c8] sm:$0xff]  ;;  %v2258_v22 = vsub.f32 %v5335_v55, %v2257_v48  ;;  %v5436_v24 = vand.u32 4294901760, %v230_v51  ;;  %v2306_v33 = vand.u32 4294901760, %v5434_v34  ;;  %v2313_v23 = vand.u32 4294901760, %v5447_v36 }
 0x13d   : > { %3889 = vmatprep.subr.mxu0 %v4157_v0  ;;  %3916 = vmatprep.subr.mxu1 %v4157_v0  ;;  %v878_v1 = vadd.f32 %v877_v60, %v791_v32  ;;  %v5393_v57 = vand.u32 4294901760, %v233_v62  ;;  %v225_v60 = vld [vmem:[%s4194_s15 + $0x188] sm:$0xff] }
 0x13e   : > { %3890 = vmatpush3.msra.mxu0 %v1721_v9  ;;  %3891 = vmatprep.mubr.msk.f32.mxu0 %vm4158_vm0, %v4157_v0  ;;  %v3508_v63 = vpop.f32.mrf.mxu1  ;;  %v2259_v12 = vand.u32 4294901760, %v2258_v22  ;;  %v5457_v16 = vsub.f32 %v230_v51, %v5436_v24  ;;  %v5503_v22 = vsub.f32 %v175_v6, %v5477_v29  ;;  %v5510_v26 = vand.u32 4294901760, %v225_v60 }
 0x13f   : > { %3917 = vmatpush3.msra.mxu1 %v5062_v50  ;;  %3892 = vmatmul.mubr.f32.vlgmr.msra.gmra.mxu0 %v5077_v19  ;;  %2804 = vst [vmem:[%s5355_s22] sm:$0x3] %v878_v1  ;;  %v5385_v50 = vsub.f32 %v235_v31, %v5359_v41  ;;  %v5417_v13 = vsub.f32 %v233_v62, %v5393_v57  ;;  %v5494_v1 = vand.u32 4294901760, %v226_v25  ;;  %v2327_v62 = vand.u32 4294901760, %v5470_v18 }
 0x140   : > { %3918 = vmatprep.subr.mxu1 %v4157_v0  ;;  %3929 = vmatprep.subr.mxu0 %v4157_v0  ;;  %v2307_v31 = vsub.f32 %v5434_v34, %v2306_v33  ;;  %v2320_v32 = vand.u32 4294901760, %v5457_v16  ;;  %v2314_v63 = vsub.f32 %v5447_v36, %v2313_v23  ;;  %v2246_v35 = vand.u32 4294901760, %v5503_v22 }
 0x141   : > { %3919 = vmatpush3.msra.mxu1 %v5081_v37  ;;  %3930 = vmatpush3.msra.mxu0 %v5316_v28  ;;  %v2278_v37 = vand.u32 4294901760, %v5373_v38  ;;  %v2299_v59 = vand.u32 4294901760, %v5417_v13  ;;  %v2341_v6 = vand.u32 4294901760, %v5508_v11 }
 0x142   : > { %3920 = vmatprep.subr.mxu1 %v4157_v0  ;;  %3931 = vmatprep.subr.mxu0 %v4157_v0  ;;  %v2308_v51 = vand.u32 4294901760, %v2307_v31  ;;  %v2247_v31 = vsub.f32 %v5503_v22, %v2246_v35 }
 0x143   : > { %3921 = vmatpush3.msra.mxu1 %v5094_v20  ;;  %3932 = vmatpush3.msra.mxu0 %v5325_v43  ;;  %v2285_v20 = vand.u32 4294901760, %v5385_v50  ;;  %v2300_v21 = vsub.f32 %v5417_v13, %v2299_v59 }
 0x144   : > { %3922 = vmatprep.subr.mxu1 %v4157_v0  ;;  %3933 = vmatprep.subr.mxu0 %v4157_v0 }
 0x145   : > { %3923 = vmatpush3.msra.mxu1 %v5110_v56  ;;  %3934 = vmatpush3.msra.mxu0 %v5337_v61  ;;  %v2279_v56 = vsub.f32 %v5373_v38, %v2278_v37  ;;  %v2286_v9 = vsub.f32 %v5385_v50, %v2285_v20  ;;  %v2301_v5 = vand.u32 4294901760, %v2300_v21  ;;  %v5544_v21 = vsub.f32 %v224_v4, %v5522_v7 }
 0x146   : > { %3924 = vmatprep.subr.mxu1 %v4157_v0  ;;  %3935 = vmatprep.subr.mxu0 %v4157_v0 }
 0x147   : > { %3925 = vmatpush3.msra.mxu1 %v5122_v27  ;;  %3926 = vmatprep.mubr.msk.f32.mxu1 %vm4158_vm0, %v4157_v0  ;;  %v2292_v27 = vand.u32 4294901760, %v5403_v47  ;;  %v2280_v54 = vand.u32 4294901760, %v2279_v56  ;;  %v2287_v15 = vand.u32 4294901760, %v2286_v9  ;;  %v5520_v56 = vsub.f32 %v226_v25, %v5494_v1 }
 0x148   : > { %3936 = vmatpush3.msra.mxu0 %v5342_v42  ;;  %3927 = vmatmul.mubr.f32.vlgmr.msra.gmra.mxu1 %v5077_v19  ;;  %v2273_v19 = vand.u32 4294901760, %v2272_v39  ;;  %v2334_v39 = vand.u32 4294901760, %v5485_v53  ;;  %v2328_v9 = vsub.f32 %v5470_v18, %v2327_v62 }
 0x149   : > { %3937 = vmatprep.subr.mxu0 %v4157_v0  ;;  %3964 = vmatprep.subr.mxu1 %v4157_v0  ;;  %v2293_v30 = vsub.f32 %v5403_v47, %v2292_v27  ;;  %v2348_v25 = vand.u32 4294901760, %v5520_v56 }
 0x14a   : > { %3938 = vmatpush3.msra.mxu0 %v5359_v41  ;;  %3965 = vmatpush3.msra.mxu1 %v2259_v12  ;;  %v2321_v12 = vsub.f32 %v5457_v16, %v2320_v32  ;;  %v2335_v8 = vsub.f32 %v5485_v53, %v2334_v39 }
 0x14b   : > { %3939 = vmatprep.subr.mxu0 %v4157_v0  ;;  %3966 = vmatprep.subr.mxu1 %v4157_v0  ;;  %v2294_v45 = vand.u32 4294901760, %v2293_v30  ;;  %v2349_v4 = vsub.f32 %v5520_v56, %v2348_v25 }
 0x14c   : > { %3940 = vmatpush3.msra.mxu0 %v5379_v52  ;;  %3967 = vmatpush3.msra.mxu1 %v2266_v17  ;;  %v2315_v17 = vand.u32 4294901760, %v2314_v63  ;;  %v2322_v30 = vand.u32 4294901760, %v2321_v12  ;;  %v2336_v63 = vand.u32 4294901760, %v2335_v8  ;;  %v2248_v12 = vand.u32 4294901760, %v2247_v31 }
 0x14d   : > { %3941 = vmatprep.subr.mxu0 %v4157_v0  ;;  %3968 = vmatprep.subr.mxu1 %v4157_v0 }
 0x14e   : > { %3942 = vmatpush3.msra.mxu0 %v5393_v57  ;;  %3969 = vmatpush3.msra.mxu1 %v2273_v19 }
 0x14f   : > { %3943 = vmatprep.subr.mxu0 %v4157_v0  ;;  %3970 = vmatprep.subr.mxu1 %v4157_v0 }
 0x150   : > { %3944 = vmatpush3.msra.mxu0 %v5408_v44  ;;  %3971 = vmatpush3.msra.mxu1 %v2280_v54  ;;  %v5534_v54 = vsub.f32 %v225_v60, %v5510_v26  ;;  %v2342_v60 = vsub.f32 %v5508_v11, %v2341_v6 }
 0x151   : > { %3945 = vmatprep.subr.mxu0 %v4157_v0  ;;  %3972 = vmatprep.subr.mxu1 %v4157_v0 }
 0x152   : > { %3946 = vmatpush3.msra.mxu0 %v5422_v2  ;;  %3973 = vmatpush3.msra.mxu1 %v2287_v15 }
 0x153   : > { %3947 = vmatprep.subr.mxu0 %v4157_v0  ;;  %3974 = vmatprep.subr.mxu1 %v4157_v0 }
 0x154   : > { %3948 = vmatpush3.msra.mxu0 %v5436_v24  ;;  %3975 = vmatpush3.msra.mxu1 %v2294_v45  ;;  %v2329_v45 = vand.u32 4294901760, %v2328_v9  ;;  %v2343_v9 = vand.u32 4294901760, %v2342_v60 }
 0x155   : > { %3949 = vmatprep.subr.mxu0 %v4157_v0  ;;  %3976 = vmatprep.subr.mxu1 %v4157_v0 }
 0x156   : > { %3950 = vmatpush3.msra.mxu0 %v5449_v10  ;;  %3977 = vmatpush3.msra.mxu1 %v2301_v5  ;;  %v5529_v19 = vpop.f32.mrf.mxu0  ;;  %v2355_v5 = vand.u32 4294901760, %v5534_v54 }
 0x157   : > { %3951 = vmatprep.subr.mxu0 %v4157_v0  ;;  %3978 = vmatprep.subr.mxu1 %v4157_v0 }
 0x158   : > { %3952 = vmatpush3.msra.mxu0 %v5462_v3  ;;  %3979 = vmatpush3.msra.mxu1 %v2308_v51  ;;  %v3543_v15 = vpop.f32.mrf.mxu0  ;;  %v2362_v51 = vand.u32 4294901760, %v5544_v21 }
 0x159   : > { %3953 = vmatprep.subr.mxu0 %v4157_v0  ;;  %3980 = vmatprep.subr.mxu1 %v4157_v0  ;;  %v2350_v15 = vand.u32 4294901760, %v2349_v4 }
 0x15a   : > { %3954 = vmatpush3.msra.mxu0 %v5481_v40  ;;  %3981 = vmatpush3.msra.mxu1 %v2315_v17 }
 0x15b   : > { %3955 = vmatprep.subr.mxu0 %v4157_v0  ;;  %3982 = vmatprep.subr.mxu1 %v4157_v0 }
 0x15c   : > { %3956 = vmatpush3.msra.mxu0 %v5494_v1  ;;  %3983 = vmatpush3.msra.mxu1 %v2322_v30  ;;  %v2356_v30 = vsub.f32 %v5534_v54, %v2355_v5 }
 0x15d   : > { %3957 = vmatprep.subr.mxu0 %v4157_v0  ;;  %3984 = vmatprep.subr.mxu1 %v4157_v0 }
 0x15e   : > { %3958 = vmatpush3.msra.mxu0 %v5510_v26  ;;  %3985 = vmatpush3.msra.mxu1 %v2329_v45  ;;  %v5565_v17 = vpop.f32.mrf.mxu1  ;;  %v2363_v45 = vsub.f32 %v5544_v21, %v2362_v51  ;;  %v2357_v31 = vand.u32 4294901760, %v2356_v30 }
 0x15f   : > { %3959 = vmatprep.subr.mxu0 %v4157_v0  ;;  %3986 = vmatprep.subr.mxu1 %v4157_v0 }
 0x160   : > { %3960 = vmatpush3.msra.mxu0 %v5522_v7  ;;  %3987 = vmatpush3.msra.mxu1 %v2336_v63  ;;  %v3578_v8 = vpop.f32.mrf.mxu1  ;;  %v2364_v60 = vand.u32 4294901760, %v2363_v45 }
 0x161   : > { %3961 = vmatprep.mubr.msk.f32.mxu0 %vm4158_vm0, %v4157_v0  ;;  %3988 = vmatprep.subr.mxu1 %v4157_v0 }
 0x162   : > { %3999 = vmatprep.subr.mxu0 %v4157_v0  ;;  %3962 = vmatmul.mubr.f32.vlgmr.msra.gmra.mxu0 %v2248_v12 }
 0x163   : > { %3989 = vmatpush3.msra.mxu1 %v2343_v9  ;;  %4000 = vmatpush3.msra.mxu0 %v5335_v55 }
 0x164   : > { %3990 = vmatprep.subr.mxu1 %v4157_v0  ;;  %4001 = vmatprep.subr.mxu0 %v4157_v0 }
 0x165   : > { %3991 = vmatpush3.msra.mxu1 %v2350_v15  ;;  %4002 = vmatpush3.msra.mxu0 %v5348_v49 }
 0x166   : > { %3992 = vmatprep.subr.mxu1 %v4157_v0  ;;  %4003 = vmatprep.subr.mxu0 %v4157_v0 }
 0x167   : > { %3993 = vmatpush3.msra.mxu1 %v2357_v31  ;;  %4004 = vmatpush3.msra.mxu0 %v5367_v46 }
 0x168   : > { %3994 = vmatprep.subr.mxu1 %v4157_v0  ;;  %4005 = vmatprep.subr.mxu0 %v4157_v0 }
 0x169   : > { %3995 = vmatpush3.msra.mxu1 %v2364_v60  ;;  %3996 = vmatprep.mubr.msk.f32.mxu1 %vm4158_vm0, %v4157_v0 }
 0x16a   : > { %4006 = vmatpush3.msra.mxu0 %v5373_v38  ;;  %3997 = vmatmul.mubr.f32.vlgmr.msra.gmra.mxu1 %v5477_v29 }
 0x16b   : > { %4007 = vmatprep.subr.mxu0 %v4157_v0  ;;  %4034 = vmatprep.subr.mxu1 %v4157_v0 }
 0x16c   : > { %4008 = vmatpush3.msra.mxu0 %v5385_v50  ;;  %4035 = vmatpush3.msra.mxu1 %v5316_v28 }
 0x16d   : > { %4009 = vmatprep.subr.mxu0 %v4157_v0  ;;  %4036 = vmatprep.subr.mxu1 %v4157_v0 }
 0x16e   : > { %4010 = vmatpush3.msra.mxu0 %v5403_v47  ;;  %4037 = vmatpush3.msra.mxu1 %v5325_v43 }
 0x16f   : > { %4011 = vmatprep.subr.mxu0 %v4157_v0  ;;  %4038 = vmatprep.subr.mxu1 %v4157_v0 }
 0x170   : > { %4012 = vmatpush3.msra.mxu0 %v5417_v13  ;;  %4039 = vmatpush3.msra.mxu1 %v5337_v61 }
 0x171   : > { %4013 = vmatprep.subr.mxu0 %v4157_v0  ;;  %4040 = vmatprep.subr.mxu1 %v4157_v0 }
 0x172   : > { %4014 = vmatpush3.msra.mxu0 %v5434_v34  ;;  %4041 = vmatpush3.msra.mxu1 %v5342_v42 }
 0x173   : > { %4015 = vmatprep.subr.mxu0 %v4157_v0  ;;  %4042 = vmatprep.subr.mxu1 %v4157_v0 }
 0x174   : > { %4016 = vmatpush3.msra.mxu0 %v5447_v36  ;;  %4043 = vmatpush3.msra.mxu1 %v5359_v41 }
 0x175   : > { %4017 = vmatprep.subr.mxu0 %v4157_v0  ;;  %4044 = vmatprep.subr.mxu1 %v4157_v0 }
 0x176   : > { %4018 = vmatpush3.msra.mxu0 %v5457_v16  ;;  %4045 = vmatpush3.msra.mxu1 %v5379_v52 }
 0x177   : > { %4019 = vmatprep.subr.mxu0 %v4157_v0  ;;  %4046 = vmatprep.subr.mxu1 %v4157_v0  ;;  %v5619_v63 = vpop.f32.mrf.mxu0 }
 0x178   : > { %4020 = vmatpush3.msra.mxu0 %v5470_v18  ;;  %4047 = vmatpush3.msra.mxu1 %v5393_v57 }
 0x179   : > { %4021 = vmatprep.subr.mxu0 %v4157_v0  ;;  %4048 = vmatprep.subr.mxu1 %v4157_v0  ;;  %v3613_v4 = vpop.f32.mrf.mxu0 }
 0x17a   : > { %4022 = vmatpush3.msra.mxu0 %v5485_v53  ;;  %4049 = vmatpush3.msra.mxu1 %v5408_v44 }
 0x17b   : > { %4023 = vmatprep.subr.mxu0 %v4157_v0  ;;  %4050 = vmatprep.subr.mxu1 %v4157_v0 }
 0x17c   : > { %4024 = vmatpush3.msra.mxu0 %v5508_v11  ;;  %4051 = vmatpush3.msra.mxu1 %v5422_v2 }
 0x17d   : > { %4025 = vmatprep.subr.mxu0 %v4157_v0  ;;  %4052 = vmatprep.subr.mxu1 %v4157_v0 }
 0x17e   : > { %4026 = vmatpush3.msra.mxu0 %v5520_v56  ;;  %4053 = vmatpush3.msra.mxu1 %v5436_v24 }
 0x17f   : > { %4027 = vmatprep.subr.mxu0 %v4157_v0  ;;  %4054 = vmatprep.subr.mxu1 %v4157_v0 }
 0x180   : > { %4028 = vmatpush3.msra.mxu0 %v5534_v54  ;;  %4055 = vmatpush3.msra.mxu1 %v5449_v10  ;;  %v5639_v12 = vpop.f32.mrf.mxu1 }
 0x181   : > { %4029 = vmatprep.subr.mxu0 %v4157_v0  ;;  %4056 = vmatprep.subr.mxu1 %v4157_v0 }
 0x182   : > { %4030 = vmatpush3.msra.mxu0 %v5544_v21  ;;  %4031 = vmatprep.mubr.msk.f32.mxu0 %vm4158_vm0, %v4157_v0  ;;  %v3648_v9 = vpop.f32.mrf.mxu1 }
 0x183   : > { %4057 = vmatpush3.msra.mxu1 %v5462_v3  ;;  %4032 = vmatmul.mubr.f32.vlgmr.msra.gmra.mxu0 %v5503_v22 }
 0x184   : > { %4058 = vmatprep.subr.mxu1 %v4157_v0  ;;  %4069 = vmatprep.subr.mxu0 %v4157_v0 }
 0x185   : > { %4059 = vmatpush3.msra.mxu1 %v5481_v40  ;;  %4070 = vmatpush3.msra.mxu0 %v2257_v48 }
 0x186   : > { %4060 = vmatprep.subr.mxu1 %v4157_v0  ;;  %4071 = vmatprep.subr.mxu0 %v4157_v0 }
 0x187   : > { %4061 = vmatpush3.msra.mxu1 %v5494_v1  ;;  %4072 = vmatpush3.msra.mxu0 %v2264_v14 }
 0x188   : > { %4062 = vmatprep.subr.mxu1 %v4157_v0  ;;  %4073 = vmatprep.subr.mxu0 %v4157_v0 }
 0x189   : > { %4063 = vmatpush3.msra.mxu1 %v5510_v26  ;;  %4074 = vmatpush3.msra.mxu0 %v2271_v58 }
 0x18a   : > { %4064 = vmatprep.subr.mxu1 %v4157_v0  ;;  %4075 = vmatprep.subr.mxu0 %v4157_v0 }
 0x18b   : > { %4065 = vmatpush3.msra.mxu1 %v5522_v7  ;;  %4066 = vmatprep.mubr.msk.f32.mxu1 %vm4158_vm0, %v4157_v0 }
 0x18c   : > { %4076 = vmatpush3.msra.mxu0 %v2278_v37  ;;  %4067 = vmatmul.mubr.f32.vlgmr.msra.gmra.mxu1 %v2246_v35 }
 0x18d   : > { %4077 = vmatprep.subr.mxu0 %v4157_v0  ;;  %4104 = vmatprep.subr.mxu1 %v4157_v0 }
 0x18e   : > { %4078 = vmatpush3.msra.mxu0 %v2285_v20  ;;  %4105 = vmatpush3.msra.mxu1 %v5316_v28 }
 0x18f   : > { %4079 = vmatprep.subr.mxu0 %v4157_v0  ;;  %4106 = vmatprep.subr.mxu1 %v4157_v0 }
 0x190   : > { %4080 = vmatpush3.msra.mxu0 %v2292_v27  ;;  %4107 = vmatpush3.msra.mxu1 %v5325_v43  ;;  %v1120_v43 = vadd.f32 %v5565_v17, %v5529_v19 }
 0x191   : > { %4081 = vmatprep.subr.mxu0 %v4157_v0  ;;  %4108 = vmatprep.subr.mxu1 %v4157_v0 }
 0x192   : > { %4082 = vmatpush3.msra.mxu0 %v2299_v59  ;;  %4109 = vmatpush3.msra.mxu1 %v5337_v61  ;;  %v1224_v61 = vadd.f32 %v5619_v63, %v1120_v43 }
 0x193   : > { %4083 = vmatprep.subr.mxu0 %v4157_v0  ;;  %4110 = vmatprep.subr.mxu1 %v4157_v0 }
 0x194   : > { %4084 = vmatpush3.msra.mxu0 %v2306_v33  ;;  %4111 = vmatpush3.msra.mxu1 %v5342_v42  ;;  %v1313_v42 = vadd.f32 %v5639_v12, %v1224_v61 }
 0x195   : > { %4085 = vmatprep.subr.mxu0 %v4157_v0  ;;  %4112 = vmatprep.subr.mxu1 %v4157_v0 }
 0x196   : > { %4086 = vmatpush3.msra.mxu0 %v2313_v23  ;;  %4113 = vmatpush3.msra.mxu1 %v5359_v41 }
 0x197   : > { %4087 = vmatprep.subr.mxu0 %v4157_v0  ;;  %4114 = vmatprep.subr.mxu1 %v4157_v0 }
 0x198   : > { %4088 = vmatpush3.msra.mxu0 %v2320_v32  ;;  %4115 = vmatpush3.msra.mxu1 %v5379_v52 }
 0x199   : > { %4089 = vmatprep.subr.mxu0 %v4157_v0  ;;  %4116 = vmatprep.subr.mxu1 %v4157_v0  ;;  %v1431_v28 = vpop.f32.mrf.mxu0 }
 0x19a   : > { %4090 = vmatpush3.msra.mxu0 %v2327_v62  ;;  %4117 = vmatpush3.msra.mxu1 %v5393_v57  ;;  %v1432_v49 = vadd.f32 %v1431_v28, %v1313_v42 }
 0x19b   : > { %4091 = vmatprep.subr.mxu0 %v4157_v0  ;;  %4118 = vmatprep.subr.mxu1 %v4157_v0  ;;  %v3683_v55 = vpop.f32.mrf.mxu0 }
 0x19c   : > { %4092 = vmatpush3.msra.mxu0 %v2334_v39  ;;  %4119 = vmatpush3.msra.mxu1 %v5408_v44 }
 0x19d   : > { %4093 = vmatprep.subr.mxu0 %v4157_v0  ;;  %4120 = vmatprep.subr.mxu1 %v4157_v0 }
 0x19e   : > { %4094 = vmatpush3.msra.mxu0 %v2341_v6  ;;  %4121 = vmatpush3.msra.mxu1 %v5422_v2 }
 0x19f   : > { %4095 = vmatprep.subr.mxu0 %v4157_v0  ;;  %4122 = vmatprep.subr.mxu1 %v4157_v0 }
 0x1a0   : > { %4096 = vmatpush3.msra.mxu0 %v2348_v25  ;;  %4123 = vmatpush3.msra.mxu1 %v5436_v24 }
 0x1a1   : > { %4097 = vmatprep.subr.mxu0 %v4157_v0  ;;  %4124 = vmatprep.subr.mxu1 %v4157_v0 }
 0x1a2   : > { %4098 = vmatpush3.msra.mxu0 %v2355_v5  ;;  %4125 = vmatpush3.msra.mxu1 %v5449_v10  ;;  %v1518_v41 = vpop.f32.mrf.mxu1 }
 0x1a3   : > { %4099 = vmatprep.subr.mxu0 %v4157_v0  ;;  %4126 = vmatprep.subr.mxu1 %v4157_v0  ;;  %v1519_v46 = vadd.f32 %v1518_v41, %v1432_v49 }
 0x1a4   : > { %4100 = vmatpush3.msra.mxu0 %v2362_v51  ;;  %4101 = vmatprep.mubr.msk.f32.mxu0 %vm4158_vm0, %v4157_v0  ;;  %v3718_v48 = vpop.f32.mrf.mxu1 }
 0x1a5   : > { %4127 = vmatpush3.msra.mxu1 %v5462_v3  ;;  %4102 = vmatmul.mubr.f32.vlgmr.msra.gmra.mxu0 %v5477_v29  ;;  %2805 = vst [vmem:[%s5355_s22 + $0x2] sm:$0x3] %v1519_v46 }
 0x1a6   : > { %4128 = vmatprep.subr.mxu1 %v4157_v0  ;;  %4136 = vmatprep.mubr.msk.f32.mxu1 %vm4158_vm0, %v4157_v0 }
 0x1a7   : > { %4129 = vmatpush3.msra.mxu1 %v5481_v40 }
 0x1a8   : > { %4130 = vmatprep.subr.mxu1 %v4157_v0 }
 0x1a9   : > { %4131 = vmatpush3.msra.mxu1 %v5494_v1 }
 0x1aa   : > { %4132 = vmatprep.subr.mxu1 %v4157_v0 }
 0x1ab   : > { %4133 = vmatpush3.msra.mxu1 %v5510_v26 }
 0x1ac   : > { %4134 = vmatprep.subr.mxu1 %v4157_v0 }
 0x1ad   : > { %4135 = vmatpush3.msra.mxu1 %v5522_v7 }
 0x1ae   : > { %4137 = vmatmul.mubr.f32.vlgmr.msra.gmra.mxu1 %v5477_v29 }
 0x1bc   : > { %v1609_v38 = vpop.f32.mrf.mxu0 }
 0x1be   : > { %v3753_v52 = vpop.f32.mrf.mxu0 }
 0x1c4   : > { %v1760_v14 = vpop.f32.mrf.mxu1 }
 0x1c5   : > { %v1761_v20 = vadd.f32 %v1760_v14, %v1609_v38 }
 0x1c6   : > { %v3788_v50 = vpop.f32.mrf.mxu1 }
 0x1dd   : > { %v1864_v57 = vpop.f32.mrf.mxu0 }
 0x1de   : > { %v1865_v2 = vadd.f32 %v1864_v57, %v1761_v20 }
 0x1df   : > { %v3823_v58 = vpop.f32.mrf.mxu0 }
 0x1e6   : > { %v1953_v37 = vpop.f32.mrf.mxu1 }
 0x1e7   : > { %v1954_v34 = vadd.f32 %v1953_v37, %v1865_v2 }
 0x1e8   : > { %v3858_v47 = vpop.f32.mrf.mxu1 }
 0x1ff   : > { %v2072_v44 = vpop.f32.mrf.mxu0 }
 0x200   : > { %v2073_v24 = vadd.f32 %v2072_v44, %v1954_v34 }
 0x201   : > { %v3893_v13 = vpop.f32.mrf.mxu0 }
 0x208   : > { %v2159_v0 = vpop.f32.mrf.mxu1 }
 0x209   : > { %v2160_v27 = vadd.f32 %v2159_v0, %v2073_v24 }
 0x20a   : > { %v3928_v36 = vpop.f32.mrf.mxu1 }
 0x20b   : > { %2806 = vst [vmem:[%s5355_s22 + $0x4] sm:$0x3] %v2160_v27 }
 0x222   : > { %v2250_v10 = vpop.f32.mrf.mxu0 }
 0x224   : > { %v3963_v59 = vpop.f32.mrf.mxu0 }
 0x22a   : > { %v2401_v16 = vpop.f32.mrf.mxu1 }
 0x22b   : > { %v2402_v53 = vadd.f32 %v2401_v16, %v2250_v10 }
 0x22c   : > { %v3998_v3 = vpop.f32.mrf.mxu1 }
 0x243   : > { %v2505_v33 = vpop.f32.mrf.mxu0 }
 0x244   : > { %v2506_v1 = vadd.f32 %v2505_v33, %v2402_v53 }
 0x245   : > { %v4033_v18 = vpop.f32.mrf.mxu0 }
 0x24c   : > { %v2594_v23 = vpop.f32.mrf.mxu1 }
 0x24d   : > { %v2595_v62 = vadd.f32 %v2594_v23, %v2506_v1 }
 0x24e   : > { %v4068_v29 = vpop.f32.mrf.mxu1 }
 0x265   : > { %v2713_v40 = vpop.f32.mrf.mxu0 }
 0x266   : > { %v2714_v22 = vadd.f32 %v2713_v40, %v2595_v62 }
 0x267   : > { %v4103_v32 = vpop.f32.mrf.mxu0 }
 0x26e   : > { %v2800_v11 = vpop.f32.mrf.mxu1 }
 0x26f   : > { %v2801_v26 = vadd.f32 %v2800_v11, %v2714_v22 }
 0x270   : > { %v4138_v39 = vpop.f32.mrf.mxu1 }
 0x271   : > { %2807 = vst [vmem:[%s5355_s22 + $0x6] sm:$0x3] %v2801_v26 }
 0x272 PF: > { %s12_s9 = sadd.s32 1, %s4155_s9  }
 0x273   : > { %p9_p4 = scmp.ge.s32.totalorder %s12_s9, 4  }
 0x275   :  { %11 = sbr.rel (!%p9_p4) target bundleno = 1 (0x1), region = 61 }

// kernel: fno_forward.8
= control target key start
LH: loop header
LB: loop body
LE: loop exit
PB: predicated region body
PF: predicated region fallthrough
CT: control target
= control target key end

     0   :  { %s3549_s15 = smov 0   ;;  %s4928_s0 = inlined_call_operand.vmem [shape: f32[448,16], index: 0, kind: input, shape index: {}]   ;;  %s4929_s1 = inlined_call_operand.vmem [shape: f32[448,16], index: 1, kind: input, shape index: {}]   ;;  %s4930_s2 = inlined_call_operand.vmem [shape: f32[16,16], index: 2, kind: input, shape index: {}]   ;;  %s4931_s3 = inlined_call_operand.vmem [shape: f32[1,16], index: 3, kind: input, shape index: {}]   ;;  %s4932_s4 = inlined_call_operand.vmem [shape: f32[448,16], index: 4, kind: output, shape index: {}]  }
   0x1 LB: > { %s2873_s16 = sadd.s32 4294967295, %s3522_s15   ;;  %p2877_p0 = scmp.ge.s32.totalorder %s3522_s15, 1  ;;  %s3522_s15 = sphi %s3549_s15, %s14_s15  }
   0x2   : > { %p174_p1 = scmp.lt.s32.totalorder %s3522_s15, 3 }
   0x4   : > { %p175_p2 = pnand %p2877_p0, %p174_p1 }
   0x6   : > { %178 = sbr.rel (%p175_p2) target bundleno = 565 (0x235), region = 36 }
   0xb   : > { %v252_v0 = vld [vmem:[%s4930_s2 + $0x8] sm:$0xff]  ;;  %v251_v1 = vld [vmem:[%s4930_s2] sm:$0xff]  ;;  %s205_s21 = smul.u32 28, %s2873_s16  ;;  %vm260_vm0 = vcmask 130048  }
   0xc   : > { %v3563_v2 = vand.u32 4294901760, %v252_v0  ;;  %v3565_v3 = vand.u32 4294901760, %v251_v1 }
   0xd   : > { %p206_p3 = scmp.lt.s32.totalorder %s205_s21, 55 }
   0xe   : > { %3120 = vmatprep.subr.mxu0 %v3563_v2  ;;  %v3569_v4 = vsub.f32 %v252_v0, %v3563_v2  ;;  %v3572_v5 = vsub.f32 %v251_v1, %v3565_v3 }
   0xf   : > { %3121 = vmatpush3.msra.mxu0 %v3563_v2  ;;  %s5032_s21 = smov (!%p206_p3, %s205_s21), 55 }
  0x10   : > { %v3576_v6 = vand.u32 4294901760, %v3569_v4  ;;  %3122 = vmatprep.subr.mxu0 %v3565_v3  ;;  %v3580_v7 = vand.u32 4294901760, %v3572_v5  ;;  %s3583_s22 = sshll.u32 %s5032_s21, 3 }
  0x11   : > { %3123 = vmatpush3.msra.mxu0 %v3565_v3  ;;  %s3593_s25 = scalar_lea.vmem %s4928_s0, %s3583_s22  ;;  %s4277_s30 = scalar_lea.vmem %s4929_s1, %s3583_s22 }
  0x12   : > { %v724_v8 = vsub.f32 %v3569_v4, %v3576_v6  ;;  %v731_v9 = vsub.f32 %v3572_v5, %v3580_v7  ;;  %3212 = vmatprep.subr.mxu0 %v3569_v4  ;;  %v223_v10 = vld [vmem:[%s3593_s25] sm:$0xff]  ;;  %v224_v11 = vld [vmem:[%s3593_s25 + $0x8] sm:$0xff]  ;;  %v225_v12 = vld [vmem:[%s3593_s25 + $0x10] sm:$0xff]  ;;  %s4436_s7 = scalar_lea.vmem %s4932_s4, %s3583_s22 }
  0x13   : > { %v262_v15 = vsel %vm260_vm0, %v223_v10, 0  ;;  %v265_v16 = vsel %vm260_vm0, %v224_v11, 0  ;;  %v226_v17 = vld [vmem:[%s3593_s25 + $0x18] sm:$0xff]  ;;  %v227_v18 = vld [vmem:[%s3593_s25 + $0x20] sm:$0xff]  ;;  %v268_v21 = vsel %vm260_vm0, %v225_v12, 0  ;;  %v228_v23 = vld [vmem:[%s3593_s25 + $0x28] sm:$0xff] }
  0x14   : > { %v725_v13 = vand.u32 4294901760, %v724_v8  ;;  %v732_v14 = vand.u32 4294901760, %v731_v9  ;;  %v3603_v19 = vand.u32 4294901760, %v262_v15  ;;  %v3605_v20 = vand.u32 4294901760, %v265_v16  ;;  %v229_v24 = vld [vmem:[%s3593_s25 + $0x30] sm:$0xff]  ;;  %v230_v29 = vld [vmem:[%s3593_s25 + $0x38] sm:$0xff] }
  0x15   : > { %v271_v22 = vsel %vm260_vm0, %v226_v17, 0  ;;  %v3611_v25 = vand.u32 4294901760, %v268_v21  ;;  %v274_v27 = vsel %vm260_vm0, %v227_v18, 0  ;;  %v277_v28 = vsel %vm260_vm0, %v228_v23, 0  ;;  %v231_v54 = vld [vmem:[%s3593_s25 + $0x40] sm:$0xff]  ;;  %v232_v55 = vld [vmem:[%s3593_s25 + $0x48] sm:$0xff] }
  0x16   : > { %3166 = vmatprep.subr.mxu1 %v725_v13  ;;  %v3613_v26 = vand.u32 4294901760, %v271_v22  ;;  %v3619_v30 = vsub.f32 %v262_v15, %v3603_v19  ;;  %3170 = vmatprep.mubr.f32.mxu1 %v3603_v19  ;;  %v3623_v31 = vsub.f32 %v265_v16, %v3605_v20  ;;  %v3625_v32 = vand.u32 4294901760, %v274_v27  ;;  %v233_v59 = vld [vmem:[%s3593_s25 + $0x50] sm:$0xff]  ;;  %v234_v0 = vld [vmem:[%s3593_s25 + $0x58] sm:$0xff]  ;;  %v235_v1 = vld [vmem:[%s3593_s25 + $0x60] sm:$0xff] }
  0x17   : > { %3167 = vmatpush3.msra.mxu1 %v725_v13  ;;  %v3627_v33 = vand.u32 4294901760, %v277_v28  ;;  %v3630_v34 = vsub.f32 %v268_v21, %v3611_v25  ;;  %v280_v36 = vsel %vm260_vm0, %v229_v24, 0  ;;  %v283_v37 = vsel %vm260_vm0, %v230_v29, 0  ;;  %v236_v8 = vld [vmem:[%s3593_s25 + $0x68] sm:$0xff]  ;;  %v238_v23 = vld [vmem:[%s3593_s25 + $0x78] sm:$0xff] }
  0x18   : > { %3168 = vmatprep.subr.mxu1 %v732_v14  ;;  %v3633_v35 = vsub.f32 %v271_v22, %v3613_v26  ;;  %v4947_v38 = vand.u32 4294901760, %v3619_v30  ;;  %v4946_v39 = vand.u32 4294901760, %v3623_v31  ;;  %v3640_v40 = vsub.f32 %v274_v27, %v3625_v32  ;;  %v237_v22 = vld [vmem:[%s3593_s25 + $0x70] sm:$0xff] }
  0x19   : > { %3169 = vmatpush3.msra.mxu1 %v732_v14  ;;  %v3643_v41 = vsub.f32 %v277_v28, %v3627_v33  ;;  %v4945_v42 = vand.u32 4294901760, %v3630_v34  ;;  %v3649_v44 = vand.u32 4294901760, %v280_v36  ;;  %v3651_v45 = vand.u32 4294901760, %v283_v37 }
  0x1a   : > { %3171 = vmatmul.mubr.f32.vlgmr.msra.gmra.mxu1 %v3605_v20  ;;  %3258 = vmatprep.subr.mxu1 %v3563_v2  ;;  %v4943_v43 = vand.u32 4294901760, %v3633_v35  ;;  %v415_v46 = vsub.f32 %v3619_v30, %v4947_v38  ;;  %v425_v47 = vsub.f32 %v3623_v31, %v4946_v39  ;;  %v4942_v48 = vand.u32 4294901760, %v3640_v40 }
  0x1b   : > { %3259 = vmatpush3.msra.mxu1 %v3563_v2  ;;  %3173 = vmatprep.mubr.f32.mxu1 %v3611_v25  ;;  %v4940_v49 = vand.u32 4294901760, %v3643_v41  ;;  %v435_v50 = vsub.f32 %v3630_v34, %v4945_v42  ;;  %v3670_v52 = vsub.f32 %v280_v36, %v3649_v44  ;;  %v3673_v53 = vsub.f32 %v283_v37, %v3651_v45  ;;  %v247_v42 = vld [vmem:[%s3593_s25 + $0xc0] sm:$0xff] }
  0x1c   : > { %v445_v51 = vsub.f32 %v3633_v35, %v4943_v43  ;;  %3260 = vmatprep.subr.mxu1 %v3565_v3  ;;  %v416_v56 = vand.u32 4294901760, %v415_v46  ;;  %v426_v57 = vand.u32 4294901760, %v425_v47  ;;  %v455_v58 = vsub.f32 %v3640_v40, %v4942_v48 }
  0x1d   : > { %3261 = vmatpush3.msra.mxu1 %v3565_v3  ;;  %v436_v60 = vand.u32 4294901760, %v435_v50  ;;  %v465_v61 = vsub.f32 %v3643_v41, %v4940_v49  ;;  %v4939_v62 = vand.u32 4294901760, %v3670_v52  ;;  %v4937_v63 = vand.u32 4294901760, %v3673_v53 }
  0x1e   : > { %3174 = vmatmul.mubr.f32.gmra.mxu1 %v3613_v26  ;;  %3350 = vmatprep.subr.mxu1 %v3563_v2  ;;  %v446_v9 = vand.u32 4294901760, %v445_v51  ;;  %v286_v10 = vsel %vm260_vm0, %v231_v54, 0  ;;  %v289_v11 = vsel %vm260_vm0, %v232_v55, 0  ;;  %v456_v12 = vand.u32 4294901760, %v455_v58 }
  0x1f   : > { %3124 = vmatprep.mubr.f32.mxu0 %v416_v56  ;;  %3176 = vmatprep.mubr.f32.mxu1 %v3625_v32  ;;  %v475_v13 = vsub.f32 %v3670_v52, %v4939_v62  ;;  %v3699_v14 = vand.u32 4294901760, %v286_v10  ;;  %v3701_v15 = vand.u32 4294901760, %v289_v11  ;;  %v292_v16 = vsel %vm260_vm0, %v233_v59, 0  ;;  %v245_v62 = vld [vmem:[%s3593_s25 + $0xb0] sm:$0xff] }
  0x20   : > { %3125 = vmatmul.mubr.f32.vlgmr.msra.gmra.mxu0 %v426_v57  ;;  %v295_v17 = vsel %vm260_vm0, %v234_v0, 0  ;;  %v298_v18 = vsel %vm260_vm0, %v235_v1, 0  ;;  %v301_v21 = vsel %vm260_vm0, %v236_v8, 0  ;;  %v466_v24 = vand.u32 4294901760, %v465_v61 }
  0x21   : > { %3213 = vmatpush3.msra.mxu0 %v3569_v4  ;;  %3127 = vmatprep.mubr.f32.mxu0 %v436_v60  ;;  %v485_v27 = vsub.f32 %v3673_v53, %v4937_v63  ;;  %v3715_v4 = vsub.f32 %v286_v10, %v3699_v14  ;;  %v3718_v28 = vsub.f32 %v289_v11, %v3701_v15  ;;  %v3722_v29 = vand.u32 4294901760, %v292_v16  ;;  %v240_v10 = vld [vmem:[%s3593_s25 + $0x88] sm:$0xff] }
  0x22   : > { %3177 = vmatmul.mubr.f32.gmra.mxu1 %v3627_v33  ;;  %3214 = vmatprep.subr.mxu0 %v3572_v5  ;;  %v3724_v36 = vand.u32 4294901760, %v295_v17  ;;  %v3726_v37 = vand.u32 4294901760, %v298_v18  ;;  %v3728_v46 = vand.u32 4294901760, %v301_v21  ;;  %v304_v51 = vsel %vm260_vm0, %v237_v22, 0  ;;  %v244_v63 = vld [vmem:[%s3593_s25 + $0xa8] sm:$0xff] }
  0x23   : > { %3179 = vmatprep.mubr.f32.mxu1 %v3649_v44  ;;  %3215 = vmatpush3.msra.mxu0 %v3572_v5  ;;  %v4935_v47 = vand.u32 4294901760, %v3715_v4  ;;  %v4934_v50 = vand.u32 4294901760, %v3718_v28  ;;  %v307_v54 = vsel %vm260_vm0, %v238_v23, 0  ;;  %v476_v55 = vand.u32 4294901760, %v475_v13  ;;  %v241_v23 = vld [vmem:[%s3593_s25 + $0x90] sm:$0xff] }
  0x24   : > { %4972 = vst [vmem:[#allocation2_spill] sm:$0xff] %v3724_v36  ;;  %4973 = vst [vmem:[#allocation3_spill] sm:$0xff] %v3726_v37  ;;  %3128 = vmatmul.mubr.f32.gmra.mxu0 %v446_v9  ;;  %3304 = vmatprep.subr.mxu0 %v3576_v6  ;;  %v3737_v56 = vsub.f32 %v292_v16, %v3722_v29  ;;  %v3740_v5 = vsub.f32 %v295_v17, %v3724_v36  ;;  %v3752_v60 = vand.u32 4294901760, %v304_v51  ;;  %v239_v9 = vld [vmem:[%s3593_s25 + $0x80] sm:$0xff] }
  0x25   : > { %4974 = vst [vmem:[#allocation4_spill] sm:$0xff] %v3728_v46  ;;  %3130 = vmatprep.mubr.f32.mxu0 %v456_v12  ;;  %v3743_v57 = vsub.f32 %v298_v18, %v3726_v37  ;;  %v495_v58 = vsub.f32 %v3715_v4, %v4935_v47  ;;  %v3750_v59 = vsub.f32 %v301_v21, %v3728_v46  ;;  %v3760_v8 = vand.u32 4294901760, %v307_v54 }
  0x26   : > { %3180 = vmatmul.mubr.f32.gmra.mxu1 %v3651_v45  ;;  %4975 = vst [vmem:[#allocation5_spill] sm:$0xff] %v3752_v60  ;;  %v505_v61 = vsub.f32 %v3718_v28, %v4934_v50  ;;  %v4933_v0 = vand.u32 4294901760, %v3737_v56  ;;  %v4936_v1 = vand.u32 4294901760, %v3740_v5  ;;  %v486_v11 = vand.u32 4294901760, %v485_v27  ;;  %v243_v27 = vld [vmem:[%s3593_s25 + $0xa0] sm:$0xff] }
  0x27   : > { %3182 = vmatprep.mubr.f32.mxu1 %v3699_v14  ;;  %4976 = vst [vmem:[#allocation6_spill] sm:$0xff] %v3760_v8  ;;  %v4938_v12 = vand.u32 4294901760, %v3743_v57  ;;  %v3766_v13 = vsub.f32 %v304_v51, %v3752_v60  ;;  %v496_v16 = vand.u32 4294901760, %v495_v58  ;;  %v4941_v18 = vand.u32 4294901760, %v3750_v59 }
  0x28   : > { %3131 = vmatmul.mubr.f32.gmra.mxu0 %v466_v24  ;;  %v515_v17 = vsub.f32 %v3737_v56, %v4933_v0  ;;  %v310_v21 = vsel %vm260_vm0, %v239_v9, 0  ;;  %v313_v22 = vsel %vm260_vm0, %v240_v10, 0  ;;  %v242_v24 = vld [vmem:[%s3593_s25 + $0x98] sm:$0xff]  ;;  %v506_v51 = vand.u32 4294901760, %v505_v61 }
  0x29   : > { %3133 = vmatprep.mubr.f32.mxu0 %v476_v55  ;;  %v525_v55 = vsub.f32 %v3740_v5, %v4936_v1  ;;  %v3783_v58 = vsub.f32 %v307_v54, %v3760_v8  ;;  %v535_v9 = vsub.f32 %v3743_v57, %v4938_v12  ;;  %v4944_v10 = vand.u32 4294901760, %v3766_v13 }
  0x2a   : > { %3183 = vmatmul.mubr.f32.gmra.mxu1 %v3701_v15  ;;  %v3789_v0 = vand.u32 4294901760, %v310_v21  ;;  %v3791_v61 = vand.u32 4294901760, %v313_v22  ;;  %v516_v50 = vand.u32 4294901760, %v515_v17  ;;  %v316_v47 = vsel %vm260_vm0, %v241_v23, 0 }
  0x2b   : > { %3185 = vmatprep.mubr.f32.mxu1 %v3722_v29  ;;  %v319_v1 = vsel %vm260_vm0, %v242_v24, 0  ;;  %v322_v54 = vsel %vm260_vm0, %v243_v27, 0  ;;  %v4948_v17 = vand.u32 4294901760, %v3783_v58  ;;  %v3810_v24 = vand.u32 4294901760, %v316_v47 }
  0x2c   : > { %3134 = vmatmul.mubr.f32.gmra.mxu0 %v486_v11  ;;  %4977 = vst [vmem:[#allocation7_spill] sm:$0xff] %v3789_v0  ;;  %4978 = vst [vmem:[#allocation8_spill] sm:$0xff] %v3791_v61  ;;  %v545_v11 = vsub.f32 %v3750_v59, %v4941_v18  ;;  %v3802_v12 = vsub.f32 %v310_v21, %v3789_v0  ;;  %v3808_v23 = vsub.f32 %v313_v22, %v3791_v61 }
  0x2d   : > { %3136 = vmatprep.mubr.f32.mxu0 %v496_v16  ;;  %v526_v16 = vand.u32 4294901760, %v525_v55  ;;  %4979 = vst [vmem:[#allocation9_spill] sm:$0xff] %v3810_v24  ;;  %v536_v27 = vand.u32 4294901760, %v535_v9  ;;  %v3812_v49 = vand.u32 4294901760, %v319_v1  ;;  %v3814_v18 = vand.u32 4294901760, %v322_v54  ;;  %v246_v9 = vld [vmem:[%s3593_s25 + $0xb8] sm:$0xff] }
  0x2e   : > { %3186 = vmatmul.mubr.f32.gmra.mxu1 %v3724_v36  ;;  %v325_v21 = vsel %vm260_vm0, %v244_v63, 0  ;;  %v555_v55 = vsub.f32 %v3766_v13, %v4944_v10  ;;  %v4951_v48 = vand.u32 4294901760, %v3802_v12  ;;  %v3822_v22 = vsub.f32 %v316_v47, %v3810_v24 }
  0x2f   : > { %3188 = vmatprep.mubr.f32.mxu1 %v3726_v37  ;;  %4980 = vst [vmem:[#allocation10_spill] sm:$0xff] %v3812_v49  ;;  %4981 = vst [vmem:[#allocation11_spill] sm:$0xff] %v3814_v18  ;;  %v546_v43 = vand.u32 4294901760, %v545_v11  ;;  %v565_v63 = vsub.f32 %v3783_v58, %v4948_v17  ;;  %v3832_v10 = vand.u32 4294901760, %v325_v21  ;;  %v3839_v47 = vsub.f32 %v322_v54, %v3814_v18 }
  0x30   : > { %3137 = vmatmul.mubr.f32.gmra.mxu0 %v506_v51  ;;  %v328_v51 = vsel %vm260_vm0, %v245_v62, 0  ;;  %v3836_v62 = vsub.f32 %v319_v1, %v3812_v49  ;;  %v331_v39 = vsel %vm260_vm0, %v246_v9, 0  ;;  %v556_v38 = vand.u32 4294901760, %v555_v55  ;;  %v249_v9 = vld [vmem:[%s3593_s25 + $0xd0] sm:$0xff] }
  0x31   : > { %3139 = vmatprep.mubr.f32.mxu0 %v516_v50  ;;  %v3841_v11 = vand.u32 4294901760, %v328_v51  ;;  %v575_v17 = vsub.f32 %v3802_v12, %v4951_v48  ;;  %v334_v1 = vsel %vm260_vm0, %v247_v42, 0  ;;  %v4982_v54 = vand.u32 4294901760, %v3808_v23 }
  0x32   : > { %3189 = vmatmul.mubr.f32.gmra.mxu1 %v3728_v46  ;;  %v3858_v55 = vand.u32 4294901760, %v331_v39  ;;  %v566_v48 = vand.u32 4294901760, %v565_v63  ;;  %v4962_v42 = vand.u32 4294901760, %v3839_v47  ;;  %v250_v63 = vld [vmem:[%s3593_s25 + $0xd8] sm:$0xff] }
  0x33   : > { %3191 = vmatprep.mubr.f32.mxu1 %v3752_v60  ;;  %v585_v60 = vsub.f32 %v3808_v23, %v4982_v54  ;;  %v4983_v54 = vand.u32 4294901760, %v3822_v22 }
  0x34   : > { %3140 = vmatmul.mubr.f32.gmra.mxu0 %v526_v16  ;;  %v248_v16 = vld [vmem:[%s3593_s25 + $0xc8] sm:$0xff] }
  0x35   : > { %3142 = vmatprep.mubr.f32.mxu0 %v536_v27  ;;  %v3856_v27 = vsub.f32 %v325_v21, %v3832_v10  ;;  %v595_v46 = vsub.f32 %v3822_v22, %v4983_v54  ;;  %v3869_v21 = vand.u32 4294901760, %v334_v1  ;;  %v337_v37 = vsel %vm260_vm0, %v248_v16, 0 }
  0x36   : > { %3192 = vmatmul.mubr.f32.gmra.mxu1 %v3760_v8  ;;  %v3864_v8 = vsub.f32 %v328_v51, %v3841_v11  ;;  %v586_v50 = vand.u32 4294901760, %v585_v60  ;;  %v615_v16 = vsub.f32 %v3839_v47, %v4962_v42 }
  0x37   : > { %3194 = vmatprep.mubr.f32.mxu1 %v3789_v0  ;;  %v576_v0 = vand.u32 4294901760, %v575_v17  ;;  %v4984_v17 = vand.u32 4294901760, %v3836_v62  ;;  %v596_v60 = vand.u32 4294901760, %v595_v46  ;;  %v3890_v51 = vsub.f32 %v334_v1, %v3869_v21 }
  0x38   : > { %3143 = vmatmul.mubr.f32.gmra.mxu0 %v546_v43  ;;  %v340_v43 = vsel %vm260_vm0, %v249_v9, 0 }
  0x39   : > { %3145 = vmatprep.mubr.f32.mxu0 %v556_v38  ;;  %v3878_v38 = vsub.f32 %v331_v39, %v3858_v55  ;;  %v605_v54 = vsub.f32 %v3836_v62, %v4984_v17  ;;  %v3892_v39 = vand.u32 4294901760, %v340_v43  ;;  %v4985_v17 = vand.u32 4294901760, %v3856_v27 }
  0x3a   : > { %3195 = vmatmul.mubr.f32.gmra.mxu1 %v3791_v61  ;;  %v3887_v61 = vand.u32 4294901760, %v337_v37 }
  0x3b   : > { %3197 = vmatprep.mubr.f32.mxu1 %v3810_v24  ;;  %v625_v42 = vsub.f32 %v3856_v27, %v4985_v17  ;;  %v606_v9 = vand.u32 4294901760, %v605_v54  ;;  %v616_v24 = vand.u32 4294901760, %v615_v16  ;;  %v3911_v36 = vsub.f32 %v340_v43, %v3892_v39 }
  0x3c   : > { %3146 = vmatmul.mubr.f32.gmra.mxu0 %v566_v48  ;;  %v343_v48 = vsel %vm260_vm0, %v250_v63, 0  ;;  %v3902_v46 = vsub.f32 %v337_v37, %v3887_v61  ;;  %v4986_v63 = vand.u32 4294901760, %v3864_v8 }
  0x3d   : > { %3148 = vmatprep.mubr.f32.mxu0 %v576_v0  ;;  %v644_v0 = vand.u32 4294901760, %v3878_v38  ;;  %v3904_v1 = vand.u32 4294901760, %v343_v48  ;;  %v626_v37 = vand.u32 4294901760, %v625_v42  ;;  %v4971_v17 = vand.u32 4294901760, %v3911_v36 }
  0x3e   : > { %3198 = vmatmul.mubr.f32.gmra.mxu1 %v3812_v49  ;;  %v635_v49 = vsub.f32 %v3864_v8, %v4986_v63  ;;  %v664_v54 = vand.u32 4294901760, %v3902_v46 }
  0x3f   : > { %3200 = vmatprep.mubr.f32.mxu1 %v3814_v18  ;;  %v654_v18 = vand.u32 4294901760, %v3890_v51  ;;  %v3920_v16 = vsub.f32 %v343_v48, %v3904_v1 }
  0x40   : > { %3149 = vmatmul.mubr.f32.gmra.mxu0 %v586_v50  ;;  %v645_v50 = vsub.f32 %v3878_v38, %v644_v0 }
  0x41   : > { %3151 = vmatprep.mubr.f32.mxu0 %v596_v60  ;;  %v636_v60 = vand.u32 4294901760, %v635_v49  ;;  %v655_v43 = vsub.f32 %v3890_v51, %v654_v18  ;;  %v684_v48 = vand.u32 4294901760, %v3920_v16 }
  0x42   : > { %3201 = vmatmul.mubr.f32.gmra.mxu1 %v3832_v10  ;;  %v646_v42 = vand.u32 4294901760, %v645_v50 }
  0x43   : > { %3203 = vmatprep.mubr.f32.mxu1 %v3841_v11  ;;  %v656_v49 = vand.u32 4294901760, %v655_v43 }
  0x44   : > { %3152 = vmatmul.mubr.f32.gmra.mxu0 %v606_v9  ;;  %v665_v9 = vsub.f32 %v3902_v46, %v664_v54 }
  0x45   : > { %3154 = vmatprep.mubr.f32.mxu0 %v616_v24  ;;  %v675_v24 = vsub.f32 %v3911_v36, %v4971_v17  ;;  %v4988_v17 = vand.u32 4294901760, %v3623_v31 }
  0x46   : > { %3204 = vmatmul.mubr.f32.gmra.mxu1 %v3858_v55  ;;  %v666_v63 = vand.u32 4294901760, %v665_v9  ;;  %v4990_v9 = vand.u32 4294901760, %v3633_v35 }
  0x47   : > { %3206 = vmatprep.mubr.f32.mxu1 %v3869_v21  ;;  %v676_v50 = vand.u32 4294901760, %v675_v24 }
  0x48   : > { %3155 = vmatmul.mubr.f32.gmra.mxu0 %v626_v37  ;;  %v685_v37 = vsub.f32 %v3920_v16, %v684_v48 }
  0x49   : > { %3157 = vmatprep.mubr.f32.mxu0 %v636_v60  ;;  %v4987_v60 = vand.u32 4294901760, %v3619_v30 }
  0x4a   : > { %3207 = vmatmul.mubr.f32.gmra.mxu1 %v3887_v61  ;;  %v686_v43 = vand.u32 4294901760, %v685_v37 }
  0x4b   : > { %3209 = vmatprep.mubr.f32.mxu1 %v3892_v39 }
  0x4c   : > { %3158 = vmatmul.mubr.f32.gmra.mxu0 %v646_v42  ;;  %v4989_v42 = vand.u32 4294901760, %v3630_v34 }
  0x4d   : > { %3160 = vmatprep.mubr.f32.mxu0 %v656_v49  ;;  %v4991_v49 = vand.u32 4294901760, %v3640_v40 }
  0x4e   : > { %3210 = vmatmul.mubr.f32.gmra.mxu1 %v3904_v1 }
  0x4f   : > { %3262 = vmatprep.mubr.f32.mxu1 %v4987_v60 }
  0x50   : > { %3161 = vmatmul.mubr.f32.gmra.mxu0 %v666_v63 }
  0x51   : > { %3163 = vmatprep.mubr.f32.mxu0 %v676_v50 }
  0x52   : > { %3263 = vmatmul.mubr.f32.vlgmr.msra.gmra.mxu1 %v4988_v17 }
  0x53   : > { %3351 = vmatpush3.msra.mxu1 %v3563_v2  ;;  %3265 = vmatprep.mubr.f32.mxu1 %v4989_v42  ;;  %v4992_v2 = vand.u32 4294901760, %v3643_v41 }
  0x54   : > { %3164 = vmatmul.mubr.f32.gmra.mxu0 %v686_v43  ;;  %3352 = vmatprep.subr.mxu1 %v3565_v3 }
  0x55   : > { %3216 = vmatprep.mubr.f32.mxu0 %v3619_v30  ;;  %3353 = vmatpush3.msra.mxu1 %v3565_v3  ;;  %v4993_v30 = vand.u32 4294901760, %v3670_v52  ;;  %v4994_v3 = vand.u32 4294901760, %v3673_v53 }
  0x56   : > { %3266 = vmatmul.mubr.f32.gmra.mxu1 %v4990_v9 }
  0x57   : > { %3268 = vmatprep.mubr.f32.mxu1 %v4991_v49 }
  0x58   : > { %3217 = vmatmul.mubr.f32.vlgmr.msra.gmra.mxu0 %v3623_v31  ;;  %v4996_v31 = vand.u32 4294901760, %v3718_v28 }
  0x59   : > { %3305 = vmatpush3.msra.mxu0 %v3576_v6  ;;  %3219 = vmatprep.mubr.f32.mxu0 %v3630_v34  ;;  %v4995_v6 = vand.u32 4294901760, %v3715_v4  ;;  %v4997_v34 = vand.u32 4294901760, %v3737_v56 }
  0x5a   : > { %3269 = vmatmul.mubr.f32.gmra.mxu1 %v4992_v2  ;;  %3306 = vmatprep.subr.mxu0 %v3580_v7 }
  0x5b   : > { %3271 = vmatprep.mubr.f32.mxu1 %v4993_v30  ;;  %3307 = vmatpush3.msra.mxu0 %v3580_v7  ;;  %v4998_v7 = vand.u32 4294901760, %v3740_v5 }
  0x5c   : > { %3220 = vmatmul.mubr.f32.gmra.mxu0 %v3633_v35  ;;  %v4999_v35 = vand.u32 4294901760, %v3743_v57 }
  0x5d   : > { %3222 = vmatprep.mubr.f32.mxu0 %v3640_v40  ;;  %v5000_v40 = vand.u32 4294901760, %v3750_v59 }
  0x5e   : > { %3272 = vmatmul.mubr.f32.gmra.mxu1 %v4994_v3 }
  0x5f   : > { %3274 = vmatprep.mubr.f32.mxu1 %v4995_v6 }
  0x60   : > { %3223 = vmatmul.mubr.f32.gmra.mxu0 %v3643_v41  ;;  %v5001_v41 = vand.u32 4294901760, %v3766_v13 }
  0x61   : > { %3225 = vmatprep.mubr.f32.mxu0 %v3670_v52  ;;  %v5002_v52 = vand.u32 4294901760, %v3783_v58 }
  0x62   : > { %3275 = vmatmul.mubr.f32.gmra.mxu1 %v4996_v31 }
  0x63   : > { %3277 = vmatprep.mubr.f32.mxu1 %v4997_v34 }
  0x64   : > { %3226 = vmatmul.mubr.f32.gmra.mxu0 %v3673_v53  ;;  %v5003_v53 = vand.u32 4294901760, %v3802_v12 }
  0x65   : > { %3228 = vmatprep.mubr.f32.mxu0 %v3715_v4  ;;  %v5004_v4 = vand.u32 4294901760, %v3808_v23 }
  0x66   : > { %3278 = vmatmul.mubr.f32.gmra.mxu1 %v4998_v7 }
  0x67   : > { %3280 = vmatprep.mubr.f32.mxu1 %v4999_v35 }
  0x68   : > { %3229 = vmatmul.mubr.f32.gmra.mxu0 %v3718_v28  ;;  %v5005_v28 = vand.u32 4294901760, %v3822_v22 }
  0x69   : > { %3231 = vmatprep.mubr.f32.mxu0 %v3737_v56  ;;  %v5006_v56 = vand.u32 4294901760, %v3836_v62 }
  0x6a   : > { %3281 = vmatmul.mubr.f32.gmra.mxu1 %v5000_v40 }
  0x6b   : > { %3283 = vmatprep.mubr.f32.mxu1 %v5001_v41 }
  0x6c   : > { %3232 = vmatmul.mubr.f32.gmra.mxu0 %v3740_v5  ;;  %v5007_v5 = vand.u32 4294901760, %v3839_v47 }
  0x6d   : > { %3234 = vmatprep.mubr.f32.mxu0 %v3743_v57  ;;  %v5008_v57 = vand.u32 4294901760, %v3856_v27 }
  0x6e   : > { %3284 = vmatmul.mubr.f32.gmra.mxu1 %v5002_v52 }
  0x6f   : > { %3286 = vmatprep.mubr.f32.mxu1 %v5003_v53 }
  0x70   : > { %3235 = vmatmul.mubr.f32.gmra.mxu0 %v3750_v59  ;;  %v5009_v59 = vand.u32 4294901760, %v3864_v8 }
  0x71   : > { %3237 = vmatprep.mubr.f32.mxu0 %v3766_v13 }
  0x72   : > { %3287 = vmatmul.mubr.f32.gmra.mxu1 %v5004_v4 }
  0x73   : > { %3289 = vmatprep.mubr.f32.mxu1 %v5005_v28 }
  0x74   : > { %3238 = vmatmul.mubr.f32.gmra.mxu0 %v3783_v58 }
  0x75   : > { %3240 = vmatprep.mubr.f32.mxu0 %v3802_v12  ;;  %v5010_v12 = vand.u32 4294901760, %v3911_v36 }
  0x76   : > { %3290 = vmatmul.mubr.f32.gmra.mxu1 %v5006_v56 }
  0x77   : > { %3292 = vmatprep.mubr.f32.mxu1 %v5007_v5 }
  0x78   : > { %3241 = vmatmul.mubr.f32.gmra.mxu0 %v3808_v23 }
  0x79   : > { %3243 = vmatprep.mubr.f32.mxu0 %v3822_v22 }
  0x7a   : > { %3293 = vmatmul.mubr.f32.gmra.mxu1 %v5008_v57 }
  0x7b   : > { %3295 = vmatprep.mubr.f32.mxu1 %v5009_v59 }
  0x7c   : > { %3244 = vmatmul.mubr.f32.gmra.mxu0 %v3836_v62 }
  0x7d   : > { %3246 = vmatprep.mubr.f32.mxu0 %v3839_v47 }
  0x7e   : > { %3296 = vmatmul.mubr.f32.gmra.mxu1 %v644_v0 }
  0x7f   : > { %3298 = vmatprep.mubr.f32.mxu1 %v654_v18 }
  0x80   : > { %3247 = vmatmul.mubr.f32.gmra.mxu0 %v3856_v27 }
  0x81   : > { %3249 = vmatprep.mubr.f32.mxu0 %v3864_v8  ;;  %v4090_v8 = vld [vmem:[%s4931_s3] ss:$0 sm:$0xff] }
  0x82   : > { %3299 = vmatmul.mubr.f32.gmra.mxu1 %v664_v54 }
  0x83   : > { %3301 = vmatprep.mubr.f32.mxu1 %v5010_v12 }
  0x84   : > { %3250 = vmatmul.mubr.f32.gmra.mxu0 %v3878_v38 }
  0x85   : > { %3252 = vmatprep.mubr.f32.mxu0 %v3890_v51 }
  0x86   : > { %3302 = vmatmul.mubr.f32.gmra.mxu1 %v684_v48 }
  0x87   : > { %3354 = vmatprep.mubr.f32.mxu1 %v3603_v19 }
  0x88   : > { %3253 = vmatmul.mubr.f32.gmra.mxu0 %v3902_v46 }
  0x89   : > { %3255 = vmatprep.mubr.f32.mxu0 %v3911_v36 }
  0x8a   : > { %3355 = vmatmul.mubr.f32.vlgmr.msra.gmra.mxu1 %v3605_v20 }
  0x8b   : > { %3357 = vmatprep.mubr.f32.mxu1 %v3611_v25 }
  0x8c   : > { %3256 = vmatmul.mubr.f32.gmra.mxu0 %v3920_v16 }
  0x8d   : > { %3308 = vmatprep.mubr.f32.mxu0 %v3603_v19  ;;  %v5011_v19 = vld [vmem:[#allocation2_spill] sm:$0xff] }
  0x8e   : > { %3358 = vmatmul.mubr.f32.gmra.mxu1 %v3613_v26 }
  0x8f   : > { %3360 = vmatprep.mubr.f32.mxu1 %v3625_v32 }
  0x90   : > { %3309 = vmatmul.mubr.f32.vlgmr.msra.gmra.mxu0 %v3605_v20  ;;  %v5012_v20 = vld [vmem:[#allocation3_spill] sm:$0xff] }
  0x91   : > { %3311 = vmatprep.mubr.f32.mxu0 %v3611_v25  ;;  %v5013_v25 = vld [vmem:[#allocation4_spill] sm:$0xff] }
  0x92   : > { %3361 = vmatmul.mubr.f32.gmra.mxu1 %v3627_v33 }
  0x93   : > { %3363 = vmatprep.mubr.f32.mxu1 %v3649_v44 }
  0x94   : > { %3312 = vmatmul.mubr.f32.gmra.mxu0 %v3613_v26  ;;  %v5014_v26 = vld [vmem:[#allocation5_spill] sm:$0xff] }
  0x95   : > { %3314 = vmatprep.mubr.f32.mxu0 %v3625_v32  ;;  %v5015_v32 = vld [vmem:[#allocation6_spill] sm:$0xff] }
  0x96   : > { %3364 = vmatmul.mubr.f32.gmra.mxu1 %v3651_v45 }
  0x97   : > { %3366 = vmatprep.mubr.f32.mxu1 %v3699_v14 }
  0x98   : > { %3315 = vmatmul.mubr.f32.gmra.mxu0 %v3627_v33  ;;  %v5016_v33 = vld [vmem:[#allocation7_spill] sm:$0xff] }
  0x99   : > { %3317 = vmatprep.mubr.f32.mxu0 %v3649_v44  ;;  %v5017_v44 = vld [vmem:[#allocation8_spill] sm:$0xff] }
  0x9a   : > { %3367 = vmatmul.mubr.f32.gmra.mxu1 %v3701_v15 }
  0x9b   : > { %3369 = vmatprep.mubr.f32.mxu1 %v3722_v29 }
  0x9c   : > { %3318 = vmatmul.mubr.f32.gmra.mxu0 %v3651_v45  ;;  %v5018_v45 = vld [vmem:[#allocation9_spill] sm:$0xff] }
  0x9d   : > { %3320 = vmatprep.mubr.f32.mxu0 %v3699_v14  ;;  %v5019_v14 = vld [vmem:[#allocation10_spill] sm:$0xff] }
  0x9e   : > { %3370 = vmatmul.mubr.f32.gmra.mxu1 %v5011_v19 }
  0x9f   : > { %3372 = vmatprep.mubr.f32.mxu1 %v5012_v20 }
  0xa0   : > { %3321 = vmatmul.mubr.f32.gmra.mxu0 %v3701_v15  ;;  %v5020_v15 = vld [vmem:[#allocation11_spill] sm:$0xff] }
  0xa1   : > { %3323 = vmatprep.mubr.f32.mxu0 %v3722_v29 }
  0xa2   : > { %3373 = vmatmul.mubr.f32.gmra.mxu1 %v5013_v25 }
  0xa3   : > { %3375 = vmatprep.mubr.f32.mxu1 %v5014_v26 }
  0xa4   : > { %3324 = vmatmul.mubr.f32.gmra.mxu0 %v5011_v19 }
  0xa5   : > { %3326 = vmatprep.mubr.f32.mxu0 %v5012_v20 }
  0xa6   : > { %3376 = vmatmul.mubr.f32.gmra.mxu1 %v5015_v32 }
  0xa7   : > { %3378 = vmatprep.mubr.f32.mxu1 %v5016_v33 }
  0xa8   : > { %3327 = vmatmul.mubr.f32.gmra.mxu0 %v5013_v25 }
  0xa9   : > { %3329 = vmatprep.mubr.f32.mxu0 %v5014_v26 }
  0xaa   : > { %3379 = vmatmul.mubr.f32.gmra.mxu1 %v5017_v44 }
  0xab   : > { %3381 = vmatprep.mubr.f32.mxu1 %v5018_v45 }
  0xac   : > { %3330 = vmatmul.mubr.f32.gmra.mxu0 %v5015_v32 }
  0xad   : > { %3332 = vmatprep.mubr.f32.mxu0 %v5016_v33 }
  0xae   : > { %3382 = vmatmul.mubr.f32.gmra.mxu1 %v5019_v14 }
  0xaf   : > { %3384 = vmatprep.mubr.f32.mxu1 %v5020_v15 }
  0xb0   : > { %3333 = vmatmul.mubr.f32.gmra.mxu0 %v5017_v44 }
  0xb1   : > { %3335 = vmatprep.mubr.f32.mxu0 %v5018_v45 }
  0xb2   : > { %3385 = vmatmul.mubr.f32.gmra.mxu1 %v3832_v10 }
  0xb3   : > { %3387 = vmatprep.mubr.f32.mxu1 %v3841_v11 }
  0xb4   : > { %3336 = vmatmul.mubr.f32.gmra.mxu0 %v5019_v14 }
  0xb5   : > { %3338 = vmatprep.mubr.f32.mxu0 %v5020_v15 }
  0xb6   : > { %3388 = vmatmul.mubr.f32.gmra.mxu1 %v3858_v55 }
  0xb7   : > { %3390 = vmatprep.mubr.f32.mxu1 %v3869_v21 }
  0xb8   : > { %3339 = vmatmul.mubr.f32.gmra.mxu0 %v3832_v10 }
  0xb9   : > { %3341 = vmatprep.mubr.f32.mxu0 %v3841_v11 }
  0xba   : > { %3391 = vmatmul.mubr.f32.gmra.mxu1 %v3887_v61 }
  0xbb   : > { %3393 = vmatprep.mubr.f32.mxu1 %v3892_v39 }
  0xbc   : > { %3342 = vmatmul.mubr.f32.gmra.mxu0 %v3858_v55 }
  0xbd   : > { %3344 = vmatprep.mubr.f32.mxu0 %v3869_v21 }
  0xbe   : > { %3394 = vmatmul.mubr.f32.gmra.mxu1 %v3904_v1 }
  0xc0   : > { %3345 = vmatmul.mubr.f32.gmra.mxu0 %v3887_v61 }
  0xc1   : > { %3347 = vmatprep.mubr.f32.mxu0 %v3892_v39 }
  0xc4   : > { %3348 = vmatmul.mubr.f32.gmra.mxu0 %v3904_v1 }
  0xda   : > { %v3172_v29 = vpop.f32.mrf.mxu1 }
  0xdc   : > { %v769_v36 = vpop.f32.mrf.mxu1 }
  0xde   : > { %v3175_v13 = vpop.f32.mrf.mxu1 }
  0xe0   : > { %v3126_v18 = vpop.f32.mrf.mxu0  ;;  %v781_v58 = vpop.f32.mrf.mxu1 }
  0xe1   : > { %v429_v10 = vadd.f32 %v3126_v18, %v4090_v8 }
  0xe2   : > { %v418_v23 = vpop.f32.mrf.mxu0  ;;  %v3178_v22 = vpop.f32.mrf.mxu1 }
  0xe3   : > { %v4093_v62 = vadd.f32 %v3172_v29, %v429_v10  ;;  %v419_v61 = vadd.f32 %v4090_v8, %v418_v23 }
  0xe4   : > { %v3129_v47 = vpop.f32.mrf.mxu0  ;;  %v793_v11 = vpop.f32.mrf.mxu1 }
  0xe5   : > { %v4096_v27 = vadd.f32 %v769_v36, %v419_v61  ;;  %v449_v55 = vadd.f32 %v3129_v47, %v4090_v8 }
  0xe6   : > { %v438_v21 = vpop.f32.mrf.mxu0  ;;  %v3181_v51 = vpop.f32.mrf.mxu1 }
  0xe7   : > { %v4099_v38 = vadd.f32 %v3175_v13, %v449_v55  ;;  %v439_v39 = vadd.f32 %v4090_v8, %v438_v21 }
  0xe8   : > { %v3132_v0 = vpop.f32.mrf.mxu0  ;;  %v805_v46 = vpop.f32.mrf.mxu1 }
  0xe9   : > { %v4102_v1 = vadd.f32 %v781_v58, %v439_v39  ;;  %v469_v54 = vadd.f32 %v3132_v0, %v4090_v8 }
  0xea   : > { %v458_v16 = vpop.f32.mrf.mxu0  ;;  %v3184_v17 = vpop.f32.mrf.mxu1 }
  0xeb   : > { %v4105_v48 = vadd.f32 %v3178_v22, %v469_v54  ;;  %v459_v24 = vadd.f32 %v4090_v8, %v458_v16 }
  0xec   : > { %v3135_v63 = vpop.f32.mrf.mxu0  ;;  %v817_v37 = vpop.f32.mrf.mxu1 }
  0xed   : > { %v4108_v50 = vadd.f32 %v793_v11, %v459_v24  ;;  %v489_v60 = vadd.f32 %v3135_v63, %v4090_v8 }
  0xee   : > { %v478_v43 = vpop.f32.mrf.mxu0  ;;  %v3187_v42 = vpop.f32.mrf.mxu1 }
  0xef   : > { %v4111_v9 = vadd.f32 %v3181_v51, %v489_v60  ;;  %v479_v49 = vadd.f32 %v4090_v8, %v478_v43 }
  0xf0   : > { %v3138_v2 = vpop.f32.mrf.mxu0  ;;  %v829_v30 = vpop.f32.mrf.mxu1 }
  0xf1   : > { %v4114_v3 = vadd.f32 %v805_v46, %v479_v49  ;;  %v509_v6 = vadd.f32 %v3138_v2, %v4090_v8 }
  0xf2   : > { %v498_v31 = vpop.f32.mrf.mxu0  ;;  %v3190_v34 = vpop.f32.mrf.mxu1 }
  0xf3   : > { %v4117_v7 = vadd.f32 %v3184_v17, %v509_v6  ;;  %v499_v35 = vadd.f32 %v4090_v8, %v498_v31 }
  0xf4   : > { %v3141_v40 = vpop.f32.mrf.mxu0  ;;  %v841_v41 = vpop.f32.mrf.mxu1 }
  0xf5   : > { %v4120_v52 = vadd.f32 %v817_v37, %v499_v35  ;;  %v529_v53 = vadd.f32 %v3141_v40, %v4090_v8 }
  0xf6   : > { %v518_v4 = vpop.f32.mrf.mxu0  ;;  %v3193_v28 = vpop.f32.mrf.mxu1 }
  0xf7   : > { %v4123_v56 = vadd.f32 %v3187_v42, %v529_v53  ;;  %v519_v5 = vadd.f32 %v4090_v8, %v518_v4 }
  0xf8   : > { %v3144_v57 = vpop.f32.mrf.mxu0  ;;  %v853_v59 = vpop.f32.mrf.mxu1 }
  0xf9   : > { %v4126_v12 = vadd.f32 %v829_v30, %v519_v5  ;;  %v549_v19 = vadd.f32 %v3144_v57, %v4090_v8 }
  0xfa   : > { %v538_v20 = vpop.f32.mrf.mxu0  ;;  %v3196_v25 = vpop.f32.mrf.mxu1 }
  0xfb   : > { %v4129_v26 = vadd.f32 %v3190_v34, %v549_v19  ;;  %v539_v32 = vadd.f32 %v4090_v8, %v538_v20 }
  0xfc   : > { %v3147_v33 = vpop.f32.mrf.mxu0  ;;  %v865_v44 = vpop.f32.mrf.mxu1 }
  0xfd   : > { %v4132_v45 = vadd.f32 %v841_v41, %v539_v32  ;;  %v569_v14 = vadd.f32 %v3147_v33, %v4090_v8 }
  0xfe   : > { %v558_v15 = vpop.f32.mrf.mxu0  ;;  %v3199_v29 = vpop.f32.mrf.mxu1 }
  0xff   : > { %v4135_v36 = vadd.f32 %v3193_v28, %v569_v14  ;;  %v559_v13 = vadd.f32 %v4090_v8, %v558_v15 }
 0x100   : > { %v3150_v18 = vpop.f32.mrf.mxu0  ;;  %v877_v58 = vpop.f32.mrf.mxu1 }
 0x101   : > { %v4138_v10 = vadd.f32 %v853_v59, %v559_v13  ;;  %v589_v23 = vadd.f32 %v3150_v18, %v4090_v8 }
 0x102   : > { %v578_v22 = vpop.f32.mrf.mxu0  ;;  %v3202_v61 = vpop.f32.mrf.mxu1 }
 0x103   : > { %v4141_v47 = vadd.f32 %v3196_v25, %v589_v23  ;;  %v579_v11 = vadd.f32 %v4090_v8, %v578_v22 }
 0x104   : > { %v3153_v55 = vpop.f32.mrf.mxu0  ;;  %v889_v21 = vpop.f32.mrf.mxu1 }
 0x105   : > { %v4144_v51 = vadd.f32 %v865_v44, %v579_v11  ;;  %v609_v39 = vadd.f32 %v3153_v55, %v4090_v8 }
 0x106   : > { %v598_v0 = vpop.f32.mrf.mxu0  ;;  %v3205_v46 = vpop.f32.mrf.mxu1 }
 0x107   : > { %v4147_v54 = vadd.f32 %v3199_v29, %v609_v39  ;;  %v599_v16 = vadd.f32 %v4090_v8, %v598_v0 }
 0x108   : > { %v3156_v17 = vpop.f32.mrf.mxu0  ;;  %v901_v24 = vpop.f32.mrf.mxu1 }
 0x109   : > { %v4150_v63 = vadd.f32 %v877_v58, %v599_v16  ;;  %v629_v37 = vadd.f32 %v3156_v17, %v4090_v8 }
 0x10a   : > { %v618_v60 = vpop.f32.mrf.mxu0  ;;  %v3208_v43 = vpop.f32.mrf.mxu1 }
 0x10b   : > { %v4153_v42 = vadd.f32 %v3202_v61, %v629_v37  ;;  %v619_v49 = vadd.f32 %v4090_v8, %v618_v60 }
 0x10c   : > { %v3159_v2 = vpop.f32.mrf.mxu0  ;;  %v913_v30 = vpop.f32.mrf.mxu1 }
 0x10d   : > { %v4156_v6 = vadd.f32 %v889_v21, %v619_v49  ;;  %v649_v31 = vadd.f32 %v3159_v2, %v4090_v8 }
 0x10e   : > { %v638_v34 = vpop.f32.mrf.mxu0  ;;  %v3211_v35 = vpop.f32.mrf.mxu1 }
 0x10f   : > { %v4159_v40 = vadd.f32 %v3205_v46, %v649_v31  ;;  %v639_v41 = vadd.f32 %v4090_v8, %v638_v34 }
 0x110   : > { %v3162_v53 = vpop.f32.mrf.mxu0  ;;  %v925_v4 = vpop.f32.mrf.mxu1 }
 0x111   : > { %v4162_v28 = vadd.f32 %v901_v24, %v639_v41  ;;  %v669_v5 = vadd.f32 %v3162_v53, %v4090_v8 }
 0x112   : > { %v658_v57 = vpop.f32.mrf.mxu0  ;;  %v4165_v59 = vpop.f32.mrf.mxu1 }
 0x113   : > { %v4167_v19 = vadd.f32 %v3208_v43, %v669_v5  ;;  %v659_v20 = vadd.f32 %v4090_v8, %v658_v57 }
 0x114   : > { %v3165_v25 = vpop.f32.mrf.mxu0  ;;  %v4170_v32 = vpop.f32.mrf.mxu1 }
 0x115   : > { %v4172_v33 = vadd.f32 %v913_v30, %v659_v20  ;;  %v689_v44 = vadd.f32 %v3165_v25, %v4090_v8 }
 0x116   : > { %v678_v14 = vpop.f32.mrf.mxu0  ;;  %v4175_v15 = vpop.f32.mrf.mxu1 }
 0x117   : > { %v4177_v29 = vadd.f32 %v3211_v35, %v689_v44  ;;  %v679_v13 = vadd.f32 %v4090_v8, %v678_v14 }
 0x118   : > { %v4180_v18 = vpop.f32.mrf.mxu0  ;;  %v4182_v58 = vpop.f32.mrf.mxu1 }
 0x119   : > { %v4184_v23 = vadd.f32 %v925_v4, %v679_v13 }
 0x11a   : > { %v4186_v22 = vpop.f32.mrf.mxu0  ;;  %v4188_v61 = vpop.f32.mrf.mxu1 }
 0x11c   : > { %v4190_v11 = vpop.f32.mrf.mxu0  ;;  %v4192_v55 = vpop.f32.mrf.mxu1 }
 0x11e   : > { %v4194_v21 = vpop.f32.mrf.mxu0  ;;  %v4196_v39 = vpop.f32.mrf.mxu1 }
 0x120   : > { %v4198_v0 = vpop.f32.mrf.mxu0  ;;  %v4200_v8 = vpop.f32.mrf.mxu1 }
 0x122   : > { %v4202_v46 = vpop.f32.mrf.mxu0  ;;  %v3276_v16 = vpop.f32.mrf.mxu1 }
 0x124   : > { %v4204_v17 = vpop.f32.mrf.mxu0  ;;  %v1335_v24 = vpop.f32.mrf.mxu1 }
 0x126   : > { %v4206_v37 = vpop.f32.mrf.mxu0  ;;  %v3279_v60 = vpop.f32.mrf.mxu1 }
 0x128   : > { %v3230_v43 = vpop.f32.mrf.mxu0  ;;  %v1351_v49 = vpop.f32.mrf.mxu1 }
 0x129   : > { %v1071_v2 = vadd.f32 %v3230_v43, %v4117_v7 }
 0x12a   : > { %v1063_v30 = vpop.f32.mrf.mxu0  ;;  %v3282_v31 = vpop.f32.mrf.mxu1 }
 0x12b   : > { %v4209_v34 = vadd.f32 %v3276_v16, %v1071_v2  ;;  %v1064_v35 = vadd.f32 %v1063_v30, %v4120_v52 }
 0x12c   : > { %v3233_v41 = vpop.f32.mrf.mxu0  ;;  %v1367_v53 = vpop.f32.mrf.mxu1 }
 0x12d   : > { %v4212_v4 = vadd.f32 %v1335_v24, %v1064_v35  ;;  %v1085_v5 = vadd.f32 %v3233_v41, %v4123_v56 }
 0x12e   : > { %v1077_v57 = vpop.f32.mrf.mxu0  ;;  %v3285_v20 = vpop.f32.mrf.mxu1 }
 0x12f   : > { %v4215_v25 = vadd.f32 %v3279_v60, %v1085_v5  ;;  %v1078_v44 = vadd.f32 %v1077_v57, %v4126_v12 }
 0x130   : > { %v3236_v14 = vpop.f32.mrf.mxu0  ;;  %v1383_v7 = vpop.f32.mrf.mxu1 }
 0x131   : > { %v4218_v13 = vadd.f32 %v1351_v49, %v1078_v44  ;;  %v1099_v16 = vadd.f32 %v3236_v14, %v4129_v26 }
 0x132   : > { %v1091_v43 = vpop.f32.mrf.mxu0  ;;  %v3288_v52 = vpop.f32.mrf.mxu1 }
 0x133   : > { %v4221_v2 = vadd.f32 %v3282_v31, %v1099_v16  ;;  %v1092_v24 = vadd.f32 %v1091_v43, %v4132_v45 }
 0x134   : > { %v3239_v30 = vpop.f32.mrf.mxu0  ;;  %v1399_v56 = vpop.f32.mrf.mxu1 }
 0x135   : > { %v4224_v35 = vadd.f32 %v1367_v53, %v1092_v24  ;;  %v1113_v60 = vadd.f32 %v3239_v30, %v4135_v36 }
 0x136   : > { %v1105_v41 = vpop.f32.mrf.mxu0  ;;  %v3291_v12 = vpop.f32.mrf.mxu1 }
 0x137   : > { %v4227_v5 = vadd.f32 %v3285_v20, %v1113_v60  ;;  %v1106_v49 = vadd.f32 %v1105_v41, %v4138_v10 }
 0x138   : > { %v3242_v57 = vpop.f32.mrf.mxu0  ;;  %v1415_v26 = vpop.f32.mrf.mxu1 }
 0x139   : > { %v4230_v44 = vadd.f32 %v1383_v7, %v1106_v49  ;;  %v1127_v31 = vadd.f32 %v3242_v57, %v4141_v47 }
 0x13a   : > { %v1119_v14 = vpop.f32.mrf.mxu0  ;;  %v3294_v45 = vpop.f32.mrf.mxu1 }
 0x13b   : > { %v4233_v16 = vadd.f32 %v3288_v52, %v1127_v31  ;;  %v1120_v53 = vadd.f32 %v1119_v14, %v4144_v51 }
 0x13c   : > { %v3245_v43 = vpop.f32.mrf.mxu0  ;;  %v1431_v36 = vpop.f32.mrf.mxu1 }
 0x13d   : > { %v4236_v24 = vadd.f32 %v1399_v56, %v1120_v53  ;;  %v1141_v20 = vadd.f32 %v3245_v43, %v4147_v54 }
 0x13e   : > { %v1133_v30 = vpop.f32.mrf.mxu0  ;;  %v3297_v10 = vpop.f32.mrf.mxu1 }
 0x13f   : > { %v4239_v60 = vadd.f32 %v3291_v12, %v1141_v20  ;;  %v1134_v7 = vadd.f32 %v1133_v30, %v4150_v63 }
 0x140   : > { %v3248_v41 = vpop.f32.mrf.mxu0  ;;  %v1447_v47 = vpop.f32.mrf.mxu1 }
 0x141   : > { %v4242_v49 = vadd.f32 %v1415_v26, %v1134_v7  ;;  %v1155_v52 = vadd.f32 %v3248_v41, %v4153_v42 }
 0x142   : > { %v1147_v57 = vpop.f32.mrf.mxu0  ;;  %v3300_v51 = vpop.f32.mrf.mxu1 }
 0x143   : > { %v4245_v31 = vadd.f32 %v3294_v45, %v1155_v52  ;;  %v1148_v56 = vadd.f32 %v1147_v57, %v4156_v6 }
 0x144   : > { %v3251_v14 = vpop.f32.mrf.mxu0  ;;  %v1463_v54 = vpop.f32.mrf.mxu1 }
 0x145   : > { %v4248_v53 = vadd.f32 %v1431_v36, %v1148_v56  ;;  %v1169_v12 = vadd.f32 %v3251_v14, %v4159_v40  ;;  %v1015_v36 = vadd.f32 %v4180_v18, %v4093_v62  ;;  %v1029_v14 = vadd.f32 %v4190_v11, %v4099_v38  ;;  %v1966_v11 = vld [vmem:[%s4277_s30 + $0x8] sm:$0xff] }
 0x146   : > { %v1161_v43 = vpop.f32.mrf.mxu0  ;;  %v3303_v63 = vpop.f32.mrf.mxu1  ;;  %v1022_v38 = vadd.f32 %v4194_v21, %v4102_v1 }
 0x147   : > { %v4251_v20 = vadd.f32 %v3297_v10, %v1169_v12  ;;  %v1162_v26 = vadd.f32 %v1161_v43, %v4162_v28  ;;  %v1008_v28 = vadd.f32 %v4186_v22, %v4096_v27 }
 0x148   : > { %v3254_v30 = vpop.f32.mrf.mxu0  ;;  %v1479_v42 = vpop.f32.mrf.mxu1  ;;  %v1288_v1 = vadd.f32 %v4182_v58, %v1022_v38 }
 0x149   : > { %v4254_v7 = vadd.f32 %v1447_v47, %v1162_v26  ;;  %v1183_v45 = vadd.f32 %v3254_v30, %v4167_v19  ;;  %v1280_v19 = vadd.f32 %v4165_v59, %v1015_v36  ;;  %v1965_v26 = vld [vmem:[%s4277_s30] sm:$0xff] }
 0x14a   : > { %v1175_v6 = vpop.f32.mrf.mxu0  ;;  %v3356_v52 = vpop.f32.mrf.mxu1 }
 0x14b   : > { %5021 = vst [vmem:[#allocation2_spill] sm:$0xff] %v4254_v7  ;;  %v4259_v41 = vadd.f32 %v3300_v51, %v1183_v45  ;;  %v1176_v40 = vadd.f32 %v1175_v6, %v4172_v33 }
 0x14c   : > { %v3257_v10 = vpop.f32.mrf.mxu0  ;;  %v1799_v27 = vpop.f32.mrf.mxu1 }
 0x14d   : > { %5022 = vst [vmem:[#allocation3_spill] sm:$0xff] %v4259_v41  ;;  %v4264_v57 = vadd.f32 %v1463_v54, %v1176_v40  ;;  %v1197_v47 = vadd.f32 %v3257_v10, %v4177_v29  ;;  %v1272_v29 = vadd.f32 %v4170_v32, %v1008_v28  ;;  %v1968_v40 = vld [vmem:[%s4277_s30 + $0x18] sm:$0xff] }
 0x14e   : > { %v1189_v56 = vpop.f32.mrf.mxu0  ;;  %v3359_v43 = vpop.f32.mrf.mxu1 }
 0x14f   : > { %5023 = vst [vmem:[#allocation4_spill] sm:$0xff] %v4264_v57  ;;  %v4270_v62 = vadd.f32 %v3303_v63, %v1197_v47  ;;  %v1190_v18 = vadd.f32 %v1189_v56, %v4184_v23  ;;  %v1296_v23 = vadd.f32 %v4175_v15, %v1029_v14  ;;  %v1043_v63 = vadd.f32 %v4198_v0, %v4105_v48  ;;  %v1967_v56 = vld [vmem:[%s4277_s30 + $0x10] sm:$0xff] }
 0x150   : > { %v3310_v33 = vpop.f32.mrf.mxu0 }
 0x151   : > { %5024 = vst [vmem:[#allocation5_spill] sm:$0xff] %v4270_v62  ;;  %v4280_v22 = vadd.f32 %v1479_v42, %v1190_v18  ;;  %v1571_v59 = vadd.f32 %v3310_v33, %v1280_v19  ;;  %v1312_v48 = vadd.f32 %v4188_v61, %v1043_v63 }
 0x152   : > { %v1564_v51 = vpop.f32.mrf.mxu0 }
 0x153   : > { %5025 = vst [vmem:[#allocation6_spill] sm:$0xff] %v4280_v22  ;;  %v1806_v54 = vadd.f32 %v3356_v52, %v1571_v59  ;;  %v1565_v12 = vadd.f32 %v1564_v51, %v1272_v29  ;;  %v1811_v52 = vpop.f32.mrf.mxu1  ;;  %v1973_v22 = vld [vmem:[%s4277_s30 + $0x40] sm:$0xff] }
 0x154   : > { %v3313_v30 = vpop.f32.mrf.mxu0 }
 0x155   : > { %v4289_v32 = vadd.f32 %v1966_v11, %v1806_v54  ;;  %v1800_v42 = vadd.f32 %v1799_v27, %v1565_v12  ;;  %v1583_v45 = vadd.f32 %v3313_v30, %v1296_v23  ;;  %v1036_v27 = vadd.f32 %v4202_v46, %v4108_v50  ;;  %v3362_v29 = vpop.f32.mrf.mxu1  ;;  %v1970_v50 = vld [vmem:[%s4277_s30 + $0x28] sm:$0xff] }
 0x156   : > { %v1576_v21 = vpop.f32.mrf.mxu0 }
 0x157   : > { %v4293_v6 = vmul.f32 0.70710677, %v4289_v32  ;;  %v4295_v15 = vadd.f32 %v1965_v26, %v1800_v42  ;;  %v1818_v36 = vadd.f32 %v3359_v43, %v1583_v45  ;;  %v1577_v0 = vadd.f32 %v1576_v21, %v1288_v1  ;;  %v1823_v42 = vpop.f32.mrf.mxu1 }
 0x158   : > { %v3316_v10 = vpop.f32.mrf.mxu0  ;;  %v1304_v46 = vadd.f32 %v4192_v55, %v1036_v27  ;;  %v1057_v26 = vadd.f32 %v4204_v17, %v4111_v9  ;;  %v1050_v45 = vadd.f32 %v4206_v37, %v4114_v3 }
 0x159   : > { %v2078_v28 = vand.u32 2147483647, %v4293_v6  ;;  %v4301_v47 = vmul.f32 0.70710677, %v4295_v15  ;;  %v4304_v58 = vadd.f32 %v1968_v40, %v1818_v36  ;;  %v1812_v19 = vadd.f32 %v1811_v52, %v1577_v0  ;;  %v3365_v3 = vpop.f32.mrf.mxu1 }
 0x15a   : > { %v1595_v14 = vadd.f32 %v3316_v10, %v1312_v48  ;;  %v1588_v18 = vpop.f32.mrf.mxu0  ;;  %v1328_v9 = vadd.f32 %v4196_v39, %v1057_v26  ;;  %v1320_v37 = vadd.f32 %v4200_v8, %v1050_v45  ;;  %v4335_v39 = vmul.f32 0.5, %v4289_v32  ;;  %v1972_v26 = vld [vmem:[%s4277_s30 + $0x38] sm:$0xff] }
 0x15b   : > { %v2106_v33 = vmul.f32 0.3275911, %v2078_v28  ;;  %v2077_v61 = vand.u32 2147483647, %v4301_v47  ;;  %v4310_v59 = vmul.f32 0.70710677, %v4304_v58  ;;  %v4312_v38 = vadd.f32 %v1967_v56, %v1812_v19 }
 0x15c   : > { %v2470_v51 = vsub.f32 0.0, %v2078_v28  ;;  %v1830_v54 = vadd.f32 %v3362_v29, %v1595_v14  ;;  %v3319_v12 = vpop.f32.mrf.mxu0  ;;  %v1589_v48 = vadd.f32 %v1588_v18, %v1304_v46  ;;  %v1969_v19 = vld [vmem:[%s4277_s30 + $0x20] sm:$0xff]  ;;  %v4346_v32 = vmul.f32 0.5, %v4295_v15 }
 0x15d   : > { %v2134_v11 = vadd.f32 1.0, %v2106_v33  ;;  %v2105_v23 = vmul.f32 0.3275911, %v2077_v61  ;;  %v2080_v43 = vand.u32 2147483647, %v4310_v59  ;;  %v2469_v40 = vsub.f32 0.0, %v2077_v61 }
 0x15e   : > { %v4316_v63 = vmul.f32 0.70710677, %v4312_v38  ;;  %v2498_v36 = vmul.f32 %v2470_v51, %v2078_v28  ;;  %v4325_v52 = vadd.f32 %v1970_v50, %v1830_v54  ;;  %v1600_v0 = vpop.f32.mrf.mxu0  ;;  %v1824_v14 = vadd.f32 %v1823_v42, %v1589_v48  ;;  %v1971_v42 = vld [vmem:[%s4277_s30 + $0x30] sm:$0xff] }
 0x15f   : > { %3404 = vrcp.f32 %v2134_v11  ;;  %v2133_v30 = vadd.f32 1.0, %v2105_v23  ;;  %v2108_v1 = vmul.f32 0.3275911, %v2080_v43  ;;  %v2472_v17 = vsub.f32 0.0, %v2080_v43 }
 0x160   : > { %v2079_v21 = vand.u32 2147483647, %v4316_v63  ;;  %v4329_v56 = vmul.f32 0.70710677, %v4325_v52  ;;  %v2527_v18 = vmul.f32 1.442695, %v2498_v36  ;;  %v2497_v27 = vmul.f32 %v2469_v40, %v2077_v61  ;;  %v3322_v11 = vpop.f32.mrf.mxu0 }
 0x161   : > { %3406 = vrcp.f32 %v2133_v30  ;;  %v2136_v55 = vadd.f32 1.0, %v2108_v1  ;;  %v1607_v29 = vadd.f32 %v3319_v12, %v1328_v9  ;;  %v4337_v23 = vadd.f32 %v1969_v19, %v1824_v14  ;;  %v1835_v30 = vpop.f32.mrf.mxu1 }
 0x162   : > { %v2107_v10 = vmul.f32 0.3275911, %v2079_v21  ;;  %v2082_v33 = vand.u32 2147483647, %v4329_v56  ;;  %v2471_v51 = vsub.f32 0.0, %v2079_v21  ;;  %v1601_v54 = vadd.f32 %v1600_v0, %v1320_v37 }
 0x163   : > { %3408 = vrcp.f32 %v2136_v55  ;;  %v2500_v50 = vmul.f32 %v2472_v17, %v2080_v43  ;;  %v4342_v61 = vmul.f32 0.70710677, %v4337_v23  ;;  %v1842_v45 = vadd.f32 %v3365_v3, %v1607_v29  ;;  %v3368_v17 = vpop.f32.mrf.mxu1 }
 0x164   : > { %v2135_v28 = vadd.f32 1.0, %v2107_v10  ;;  %v2110_v8 = vmul.f32 0.3275911, %v2082_v33  ;;  %v2474_v46 = vsub.f32 0.0, %v2082_v33  ;;  %v1836_v12 = vadd.f32 %v1835_v30, %v1601_v54 }
 0x165   : > { %v1619_v1 = vadd.f32 %v3322_v11, %v4209_v34  ;;  %v2525_v36 = vmul.f32 1.442695, %v2497_v27  ;;  %v2499_v43 = vmul.f32 %v2471_v51, %v2079_v21  ;;  %v2081_v48 = vand.u32 2147483647, %v4342_v61 }
 0x166   : > { %3410 = vrcp.f32 %v2135_v28  ;;  %v2138_v40 = vadd.f32 1.0, %v2110_v8  ;;  %v4349_v0 = vadd.f32 %v1972_v26, %v1842_v45  ;;  %v4351_v55 = vadd.f32 %v1971_v42, %v1836_v12 }
 0x167   : > { %3412 = vpow2.f32 %v2527_v18  ;;  %v4354_v10 = vmul.f32 0.5, %v4304_v58  ;;  %v2531_v9 = vmul.f32 1.442695, %v2500_v50  ;;  %v2502_v34 = vmul.f32 %v2474_v46, %v2082_v33  ;;  %v1974_v18 = vld [vmem:[%s4277_s30 + $0x48] sm:$0xff] }
 0x168   : > { %3414 = vrcp.f32 %v2138_v40  ;;  %v2109_v15 = vmul.f32 0.3275911, %v2081_v48  ;;  %v2473_v3 = vsub.f32 0.0, %v2081_v48  ;;  %v4359_v21 = vmul.f32 0.70710677, %v4349_v0 }
 0x169   : > { %v1854_v37 = vadd.f32 %v3368_v17, %v1619_v1  ;;  %3416 = vpow2.f32 %v2525_v36  ;;  %v4363_v14 = vmul.f32 0.5, %v4312_v38  ;;  %v4366_v58 = vmul.f32 0.70710677, %v4351_v55 }
 0x16a   : > { %v2529_v27 = vmul.f32 1.442695, %v2499_v43  ;;  %v2137_v33 = vadd.f32 1.0, %v2109_v15  ;;  %v2501_v29 = vmul.f32 %v2473_v3, %v2081_v48  ;;  %v2084_v11 = vand.u32 2147483647, %v4359_v21  ;;  %v1612_v48 = vpop.f32.mrf.mxu0 }
 0x16b   : > { %3418 = vpow2.f32 %v2531_v9  ;;  %v2535_v50 = vmul.f32 1.442695, %v2502_v34  ;;  %v2083_v8 = vand.u32 2147483647, %v4366_v58  ;;  %v4374_v26 = vadd.f32 %v1974_v18, %v1854_v37 }
 0x16c   : > { %v4356_v19 = vpop.eup %3404  ;;  %3420 = vrcp.f32 %v2137_v33  ;;  %v2112_v38 = vmul.f32 0.3275911, %v2084_v11  ;;  %v2533_v45 = vmul.f32 1.442695, %v2501_v29  ;;  %v2476_v12 = vsub.f32 0.0, %v2084_v11 }
 0x16d   : > { %v2218_v28 = vmul.f32 1.0614054, %v4356_v19  ;;  %v2111_v1 = vmul.f32 0.3275911, %v2083_v8  ;;  %3422 = vpow2.f32 %v2529_v27  ;;  %v2475_v15 = vsub.f32 0.0, %v2083_v8 }
 0x16e   : > { %v4370_v51 = vpop.eup %3406  ;;  %v2140_v43 = vadd.f32 1.0, %v2112_v38  ;;  %v2504_v34 = vmul.f32 %v2476_v12, %v2084_v11  ;;  %v4384_v18 = vmul.f32 0.70710677, %v4374_v26  ;;  %v1613_v27 = vadd.f32 %v1612_v48, %v4212_v4 }
 0x16f   : > { %v2883_v54 = vadd.f32 -1.4531521, %v2218_v28  ;;  %v2217_v46 = vmul.f32 1.0614054, %v4370_v51  ;;  %v2139_v17 = vadd.f32 1.0, %v2111_v1  ;;  %v2503_v1 = vmul.f32 %v2475_v15, %v2083_v8 }
 0x170   : > { %v4376_v30 = vpop.eup %3408  ;;  %3424 = vrcp.f32 %v2140_v43  ;;  %v2086_v38 = vand.u32 2147483647, %v4384_v18  ;;  %vm2638_vm1 = vcmp.lt.f32.partialorder %v4293_v6, 0.0  ;;  %vm2637_vm2 = vcmp.lt.f32.partialorder %v4301_v47, 0.0 }
 0x171   : > { %v2274_v42 = vmul.f32 %v4356_v19, %v2883_v54  ;;  %v2882_v36 = vadd.f32 -1.4531521, %v2217_v46  ;;  %v2220_v40 = vmul.f32 1.0614054, %v4376_v30  ;;  %3426 = vrcp.f32 %v2139_v17 }
 0x172   : > { %3428 = vpow2.f32 %v2535_v50  ;;  %v2114_v17 = vmul.f32 0.3275911, %v2086_v38  ;;  %v2537_v41 = vmul.f32 1.442695, %v2503_v1  ;;  %vm2640_vm3 = vcmp.lt.f32.partialorder %v4310_v59, 0.0 }
 0x173   : > { %v2302_v9 = vadd.f32 1.4214138, %v2274_v42  ;;  %v4380_v3 = vpop.eup %3410  ;;  %v2273_v37 = vmul.f32 %v4370_v51, %v2882_v36  ;;  %v2885_v28 = vadd.f32 -1.4531521, %v2220_v40  ;;  %3430 = vpow2.f32 %v2533_v45 }
 0x174   : > { %v2219_v29 = vmul.f32 1.0614054, %v4380_v3  ;;  %v3413_v54 = vpop.eup %3412  ;;  %v2142_v45 = vadd.f32 1.0, %v2114_v17  ;;  %vm2639_vm4 = vcmp.lt.f32.partialorder %v4316_v63, 0.0  ;;  %vm2642_vm5 = vcmp.lt.f32.partialorder %v4329_v56, 0.0 }
 0x175   : > { %v2330_v33 = vmul.f32 %v4356_v19, %v2302_v9  ;;  %v2301_v11 = vadd.f32 1.4214138, %v2273_v37  ;;  %v2276_v46 = vmul.f32 %v4376_v30, %v2885_v28  ;;  %v4391_v36 = vpop.eup %3414  ;;  %v2539_v9 = vmul.f32 1.442695, %v2504_v34  ;;  %v1847_v28 = vpop.f32.mrf.mxu1 }
 0x176   : > { %v2884_v12 = vadd.f32 -1.4531521, %v2219_v29  ;;  %v2222_v50 = vmul.f32 1.0614054, %v4391_v36  ;;  %v2478_v37 = vsub.f32 0.0, %v2086_v38  ;;  %v1848_v15 = vadd.f32 %v1847_v28, %v1613_v27 }
 0x177   : > { %v2911_v42 = vadd.f32 -0.28449672, %v2330_v33  ;;  %v2329_v40 = vmul.f32 %v4370_v51, %v2301_v11  ;;  %v2304_v43 = vadd.f32 1.4214138, %v2276_v46  ;;  %v3417_v33 = vpop.eup %3416  ;;  %3432 = vrcp.f32 %v2142_v45 }
 0x178   : > { %v2275_v48 = vmul.f32 %v4380_v3, %v2884_v12  ;;  %v2887_v46 = vadd.f32 -1.4531521, %v2222_v50  ;;  %v2506_v34 = vmul.f32 %v2478_v37, %v2086_v38  ;;  %v3419_v57 = vpop.eup %3418  ;;  %v4406_v17 = vadd.f32 %v1973_v22, %v1848_v15 }
 0x179   : > { %v2386_v4 = vmul.f32 %v4356_v19, %v2911_v42  ;;  %v2910_v29 = vadd.f32 -0.28449672, %v2329_v40  ;;  %v2332_v8 = vmul.f32 %v4376_v30, %v2304_v43  ;;  %v4401_v7 = vpop.eup %3420  ;;  %3434 = vpow2.f32 %v2539_v9 }
 0x17a   : > { %v2303_v11 = vadd.f32 1.4214138, %v2275_v48  ;;  %v2278_v27 = vmul.f32 %v4391_v36, %v2887_v46  ;;  %v2221_v48 = vmul.f32 1.0614054, %v4401_v7  ;;  %v3423_v50 = vpop.eup %3422  ;;  %3436 = vpow2.f32 %v2537_v41 }
 0x17b   : > { %v2414_v62 = vadd.f32 0.2548296, %v2386_v4  ;;  %v2385_v42 = vmul.f32 %v4370_v51, %v2910_v29  ;;  %v2913_v12 = vadd.f32 -0.28449672, %v2332_v8  ;;  %v2543_v29 = vmul.f32 1.442695, %v2506_v34 }
 0x17c   : > { %v2331_v43 = vmul.f32 %v4380_v3, %v2303_v11  ;;  %v2306_v28 = vadd.f32 1.4214138, %v2278_v27  ;;  %v2886_v8 = vadd.f32 -1.4531521, %v2221_v48  ;;  %vm2641_vm6 = vcmp.lt.f32.partialorder %v4342_v61, 0.0 }
 0x17d   : > { %v2442_v40 = vmul.f32 %v4356_v19, %v2414_v62  ;;  %v2413_v4 = vadd.f32 0.2548296, %v2385_v42  ;;  %v2388_v38 = vmul.f32 %v4376_v30, %v2913_v12  ;;  %v4412_v22 = vpop.eup %3424  ;;  %3438 = vpow2.f32 %v2543_v29 }
 0x17e   : > { %v2912_v1 = vadd.f32 -0.28449672, %v2331_v43  ;;  %v2334_v9 = vmul.f32 %v4391_v36, %v2306_v28  ;;  %v4420_v11 = vpop.eup %3426  ;;  %v2277_v34 = vmul.f32 %v4401_v7, %v2886_v8  ;;  %v2224_v41 = vmul.f32 1.0614054, %v4412_v22 }
 0x17f   : > { %v2582_v37 = vmul.f32 %v3413_v54, %v2442_v40  ;;  %v2441_v62 = vmul.f32 %v4370_v51, %v2413_v4  ;;  %v2416_v19 = vadd.f32 0.2548296, %v2388_v38  ;;  %v4418_v54 = vmul.f32 0.70710677, %v4406_v17  ;;  %v3429_v42 = vpop.eup %3428 }
 0x180   : > { %v2387_v15 = vmul.f32 %v4380_v3, %v2912_v1  ;;  %v2915_v43 = vadd.f32 -0.28449672, %v2334_v9  ;;  %v3431_v27 = vpop.eup %3430  ;;  %v2305_v48 = vadd.f32 1.4214138, %v2277_v34  ;;  %v2223_v28 = vmul.f32 1.0614054, %v4420_v11 }
 0x181   : > { %v2610_v45 = vsub.f32 1.0, %v2582_v37  ;;  %v2581_v46 = vmul.f32 %v3417_v33, %v2441_v62  ;;  %v2444_v51 = vmul.f32 %v4376_v30, %v2416_v19  ;;  %v2889_v37 = vadd.f32 -1.4531521, %v2224_v41 }
 0x182   : > { %v2415_v40 = vadd.f32 0.2548296, %v2387_v15  ;;  %v2390_v1 = vmul.f32 %v4391_v36, %v2915_v43  ;;  %v2333_v29 = vmul.f32 %v4401_v7, %v2305_v48  ;;  %vm2644_vm7 = vcmp.lt.f32.partialorder %v4359_v21, 0.0 }
 0x183   : > { %v2666_v12 = vsub.f32 0.0, %v2610_v45  ;;  %v2609_v4 = vsub.f32 1.0, %v2581_v46  ;;  %v2584_v38 = vmul.f32 %v3419_v57, %v2444_v51  ;;  %vm2643_vm8 = vcmp.lt.f32.partialorder %v4366_v58, 0.0 }
 0x184   : > { %v2443_v33 = vmul.f32 %v4380_v3, %v2415_v40  ;;  %v2418_v6 = vadd.f32 0.2548296, %v2390_v1  ;;  %v2888_v3 = vadd.f32 -1.4531521, %v2223_v28  ;;  %v2914_v51 = vadd.f32 -0.28449672, %v2333_v29  ;;  %v4443_v34 = vpop.eup %3432 }
 0x185   : > { %v2694_v30 = vsel %vm2638_vm1, %v2666_v12, %v2610_v45  ;;  %v2665_v19 = vsub.f32 0.0, %v2609_v4  ;;  %v2612_v8 = vsub.f32 1.0, %v2584_v38  ;;  %v2280_v45 = vmul.f32 %v4412_v22, %v2889_v37 }
 0x186   : > { %v2722_v62 = vadd.f32 1.0, %v2694_v30  ;;  %v2583_v57 = vmul.f32 %v3423_v50, %v2443_v33  ;;  %v2446_v40 = vmul.f32 %v4391_v36, %v2418_v6  ;;  %v2389_v47 = vmul.f32 %v4401_v7, %v2914_v51  ;;  %v3435_v38 = vpop.eup %3434  ;;  %v3325_v36 = vpop.f32.mrf.mxu0 }
 0x187   : > { %v2693_v9 = vsel %vm2637_vm2, %v2665_v19, %v2609_v4  ;;  %v2668_v46 = vsub.f32 0.0, %v2612_v8  ;;  %v2308_v50 = vadd.f32 1.4214138, %v2280_v45  ;;  %v2279_v43 = vmul.f32 %v4420_v11, %v2888_v3  ;;  %v3437_v19 = vpop.eup %3436 }
 0x188   : > { %v2750_v15 = vmul.f32 %v2722_v62, %v4335_v39  ;;  %v2721_v41 = vadd.f32 1.0, %v2693_v9  ;;  %v2611_v12 = vsub.f32 1.0, %v2583_v57  ;;  %v2226_v4 = vmul.f32 1.0614054, %v4443_v34 }
 0x189   : > { %v2696_v39 = vsel %vm2640_vm3, %v2668_v46, %v2612_v8  ;;  %v2586_v33 = vmul.f32 %v3429_v42, %v2446_v40  ;;  %v2417_v1 = vadd.f32 0.2548296, %v2389_v47  ;;  %v2336_v28 = vmul.f32 %v4412_v22, %v2308_v50  ;;  %v1624_v46 = vpop.f32.mrf.mxu0  ;;  %v3371_v50 = vpop.f32.mrf.mxu1 }
 0x18a   : > { %2778 = vst.msk [vmem:[%s4436_s7 + $0x8] sm:$0xff] %vm260_vm0, %v2750_v15  ;;  %v2749_v48 = vmul.f32 %v2721_v41, %v4346_v32  ;;  %v2724_v37 = vadd.f32 1.0, %v2696_v39  ;;  %v2667_v30 = vsub.f32 0.0, %v2611_v12  ;;  %v2307_v59 = vadd.f32 1.4214138, %v2279_v43  ;;  %v4470_v51 = vpop.eup %3438 }
 0x18b   : > { %v2891_v62 = vadd.f32 -1.4531521, %v2226_v4  ;;  %v2614_v57 = vsub.f32 1.0, %v2586_v33  ;;  %v4461_v32 = vand.u32 2147483647, %v4418_v54  ;;  %v2445_v6 = vmul.f32 %v4401_v7, %v2417_v1 }
 0x18c   : > { %2777 = vst.msk [vmem:[%s4436_s7] sm:$0xff] %vm260_vm0, %v2749_v48  ;;  %v2752_v8 = vmul.f32 %v2724_v37, %v4354_v10  ;;  %v2695_v29 = vsel %vm2639_vm4, %v2667_v30, %v2611_v12  ;;  %v2917_v45 = vadd.f32 -0.28449672, %v2336_v28  ;;  %v2335_v3 = vmul.f32 %v4420_v11, %v2307_v59 }
 0x18d   : > { %v2723_v42 = vadd.f32 1.0, %v2695_v29  ;;  %v2670_v15 = vsub.f32 0.0, %v2614_v57  ;;  %v2282_v9 = vmul.f32 %v4443_v34, %v2891_v62  ;;  %v2113_v10 = vmul.f32 0.3275911, %v4461_v32  ;;  %v1859_v62 = vpop.f32.mrf.mxu1 }
 0x18e   : > { %2780 = vst.msk [vmem:[%s4436_s7 + $0x18] sm:$0xff] %vm260_vm0, %v2752_v8  ;;  %v1631_v63 = vadd.f32 %v3325_v36, %v4215_v25  ;;  %v2585_v7 = vmul.f32 %v3431_v27, %v2445_v6  ;;  %v2392_v12 = vmul.f32 %v4412_v22, %v2917_v45  ;;  %v2916_v40 = vadd.f32 -0.28449672, %v2335_v3  ;;  %v3328_v36 = vpop.f32.mrf.mxu0 }
 0x18f   : > { %v2751_v41 = vmul.f32 %v2723_v42, %v4363_v14  ;;  %v2026_v39 = vmul.f32 0.5, %v4325_v52  ;;  %v2698_v47 = vsel %vm2642_vm5, %v2670_v15, %v2614_v57  ;;  %v2310_v43 = vadd.f32 1.4214138, %v2282_v9  ;;  %v1976_v14 = vld [vmem:[%s4277_s30 + $0x58] sm:$0xff]  ;;  %v1975_v9 = vld [vmem:[%s4277_s30 + $0x50] sm:$0xff] }
 0x190   : > { %v2141_v4 = vadd.f32 1.0, %v2113_v10  ;;  %v2726_v25 = vadd.f32 1.0, %v2698_v47  ;;  %v2613_v48 = vsub.f32 1.0, %v2585_v7  ;;  %v2420_v37 = vadd.f32 0.2548296, %v2392_v12  ;;  %v1636_v12 = vpop.f32.mrf.mxu0  ;;  %v1978_v47 = vld [vmem:[%s4277_s30 + $0x68] sm:$0xff] }
 0x191   : > { %2779 = vst.msk [vmem:[%s4436_s7 + $0x10] sm:$0xff] %vm260_vm0, %v2751_v41  ;;  %v2391_v30 = vmul.f32 %v4420_v11, %v2916_v40  ;;  %v2025_v27 = vmul.f32 0.5, %v4337_v23  ;;  %v2338_v33 = vmul.f32 %v4443_v34, %v2310_v43  ;;  %v1866_v52 = vadd.f32 %v3371_v50, %v1631_v63 }
 0x192   : > { %3440 = vrcp.f32 %v2141_v4  ;;  %v2754_v56 = vmul.f32 %v2726_v25, %v2026_v39  ;;  %v2669_v1 = vsub.f32 0.0, %v2613_v48  ;;  %v2448_v28 = vmul.f32 %v4412_v22, %v2420_v37  ;;  %v3331_v58 = vpop.f32.mrf.mxu0 }
 0x193   : > { %v2419_v59 = vadd.f32 0.2548296, %v2391_v30  ;;  %v2919_v8 = vadd.f32 -0.28449672, %v2338_v33  ;;  %v4485_v29 = vadd.f32 %v1976_v14, %v1866_v52  ;;  %v1625_v57 = vadd.f32 %v1624_v46, %v4218_v13  ;;  %v3374_v46 = vpop.f32.mrf.mxu1 }
 0x194   : > { %2782 = vst.msk [vmem:[%s4436_s7 + $0x28] sm:$0xff] %vm260_vm0, %v2754_v56  ;;  %v2697_v23 = vsel %vm2641_vm6, %v2669_v1, %v2613_v48  ;;  %v2588_v42 = vmul.f32 %v3435_v38, %v2448_v28  ;;  %v1643_v45 = vadd.f32 %v3328_v36, %v4221_v2  ;;  %v2477_v15 = vsub.f32 0.0, %v4461_v32  ;;  %v1977_v28 = vld [vmem:[%s4277_s30 + $0x60] sm:$0xff] }
 0x195   : > { %v2447_v6 = vmul.f32 %v4420_v11, %v2419_v59  ;;  %v2725_v3 = vadd.f32 1.0, %v2697_v23  ;;  %v2394_v22 = vmul.f32 %v4443_v34, %v2919_v8  ;;  %v4495_v61 = vmul.f32 0.70710677, %v4485_v29  ;;  %v1871_v1 = vpop.f32.mrf.mxu1 }
 0x196   : > { %v2028_v13 = vmul.f32 0.5, %v4349_v0  ;;  %v2616_v10 = vsub.f32 1.0, %v2588_v42  ;;  %v1860_v38 = vadd.f32 %v1859_v62, %v1625_v57  ;;  %v1878_v7 = vadd.f32 %v3374_v46, %v1643_v45 }
 0x197   : > { %v2587_v63 = vmul.f32 %v3437_v19, %v2447_v6  ;;  %v2753_v11 = vmul.f32 %v2725_v3, %v2025_v27  ;;  %v2422_v41 = vadd.f32 0.2548296, %v2394_v22  ;;  %v2088_v2 = vand.u32 2147483647, %v4495_v61  ;;  %v1648_v6 = vpop.f32.mrf.mxu0 }
 0x198   : > { %v2672_v40 = vsub.f32 0.0, %v2616_v10  ;;  %v4501_v39 = vadd.f32 %v1975_v9, %v1860_v38  ;;  %v2505_v19 = vmul.f32 %v2477_v15, %v4461_v32  ;;  %v1637_v21 = vadd.f32 %v1636_v12, %v4224_v35 }
 0x199   : > { %v2615_v50 = vsub.f32 1.0, %v2587_v63  ;;  %2781 = vst.msk [vmem:[%s4436_s7 + $0x20] sm:$0xff] %vm260_vm0, %v2753_v11  ;;  %v2450_v0 = vmul.f32 %v4443_v34, %v2422_v41  ;;  %v2116_v43 = vmul.f32 0.3275911, %v2088_v2  ;;  %v4514_v27 = vadd.f32 %v1978_v47, %v1878_v7  ;;  %v3334_v7 = vpop.f32.mrf.mxu0  ;;  %v1980_v47 = vld [vmem:[%s4277_s30 + $0x78] sm:$0xff] }
 0x19a   : > { %v2700_v4 = vsel %vm2644_vm7, %v2672_v40, %v2616_v10  ;;  %v4510_v48 = vmul.f32 0.70710677, %v4501_v39  ;;  %v2027_v34 = vmul.f32 0.5, %v4351_v55  ;;  %v2480_v59 = vsub.f32 0.0, %v2088_v2  ;;  %v3377_v10 = vpop.f32.mrf.mxu1 }
 0x19b   : > { %v2671_v25 = vsub.f32 0.0, %v2615_v50  ;;  %v2728_v37 = vadd.f32 1.0, %v2700_v4  ;;  %v2590_v30 = vmul.f32 %v4470_v51, %v2450_v0  ;;  %v2144_v14 = vadd.f32 1.0, %v2116_v43  ;;  %v1979_v4 = vld [vmem:[%s4277_s30 + $0x70] sm:$0xff] }
 0x19c   : > { %v2087_v33 = vand.u32 2147483647, %v4510_v48  ;;  %v2541_v51 = vmul.f32 1.442695, %v2505_v19  ;;  %v1872_v8 = vadd.f32 %v1871_v1, %v1637_v21  ;;  %v4525_v42 = vmul.f32 0.70710677, %v4514_v27  ;;  %v1883_v43 = vpop.f32.mrf.mxu1 }
 0x19d   : > { %v2699_v32 = vsel %vm2643_vm8, %v2671_v25, %v2615_v50  ;;  %v2756_v52 = vmul.f32 %v2728_v37, %v2028_v13  ;;  %v2618_v56 = vsub.f32 1.0, %v2590_v30  ;;  %3442 = vrcp.f32 %v2144_v14 }
 0x19e   : > { %v2727_v36 = vadd.f32 1.0, %v2699_v32  ;;  %v2115_v62 = vmul.f32 0.3275911, %v2087_v33  ;;  %vm2646_vm9 = vcmp.lt.f32.partialorder %v4384_v18, 0.0  ;;  %v2479_v3 = vsub.f32 0.0, %v2087_v33 }
 0x19f   : > { %v4519_v35 = vpop.eup %3440  ;;  %2784 = vst.msk [vmem:[%s4436_s7 + $0x38] sm:$0xff] %vm260_vm0, %v2756_v52  ;;  %v2674_v55 = vsub.f32 0.0, %v2618_v56  ;;  %v4528_v22 = vadd.f32 %v1977_v28, %v1872_v8  ;;  %v2090_v13 = vand.u32 2147483647, %v4525_v42  ;;  %v2030_v63 = vmul.f32 0.5, %v4374_v26 }
 0x1a0   : > { %v2755_v57 = vmul.f32 %v2727_v36, %v2027_v34  ;;  %v2225_v23 = vmul.f32 1.0614054, %v4519_v35  ;;  %v2143_v45 = vadd.f32 1.0, %v2115_v62  ;;  %v2508_v46 = vmul.f32 %v2480_v59, %v2088_v2  ;;  %v1660_v59 = vpop.f32.mrf.mxu0 }
 0x1a1   : > { %v2702_v15 = vsel %vm2646_vm9, %v2674_v55, %v2618_v56  ;;  %v2118_v11 = vmul.f32 0.3275911, %v2090_v13  ;;  %v4536_v41 = vmul.f32 0.70710677, %v4528_v22  ;;  %v2507_v40 = vmul.f32 %v2479_v3, %v2087_v33  ;;  %v3380_v56 = vpop.f32.mrf.mxu1 }
 0x1a2   : > { %2783 = vst.msk [vmem:[%s4436_s7 + $0x30] sm:$0xff] %vm260_vm0, %v2755_v57  ;;  %v2890_v9 = vadd.f32 -1.4531521, %v2225_v23  ;;  %v2730_v38 = vadd.f32 1.0, %v2702_v15  ;;  %3444 = vrcp.f32 %v2143_v45  ;;  %v1655_v50 = vadd.f32 %v3331_v58, %v4227_v5  ;;  %v1982_v57 = vld [vmem:[%s4277_s30 + $0x88] sm:$0xff] }
 0x1a3   : > { %3446 = vpow2.f32 %v2541_v51  ;;  %v1649_v26 = vadd.f32 %v1648_v6, %v4230_v44  ;;  %v2146_v2 = vadd.f32 1.0, %v2118_v11  ;;  %v2089_v19 = vand.u32 2147483647, %v4536_v41 }
 0x1a4   : > { %v2281_v18 = vmul.f32 %v4519_v35, %v2890_v9  ;;  %v2758_v12 = vmul.f32 %v2730_v38, %v2030_v63  ;;  %v2547_v25 = vmul.f32 1.442695, %v2508_v46  ;;  %v1890_v21 = vadd.f32 %v3377_v10, %v1655_v50 }
 0x1a5   : > { %v1884_v37 = vadd.f32 %v1883_v43, %v1649_v26  ;;  %v1667_v30 = vadd.f32 %v3334_v7, %v4233_v16  ;;  %3448 = vrcp.f32 %v2146_v2  ;;  %v2117_v5 = vmul.f32 0.3275911, %v2089_v19 }
 0x1a6   : > { %v2309_v0 = vadd.f32 1.4214138, %v2281_v18  ;;  %2786 = vst.msk [vmem:[%s4436_s7 + $0x48] sm:$0xff] %vm260_vm0, %v2758_v12  ;;  %v2545_v58 = vmul.f32 1.442695, %v2507_v40  ;;  %v2482_v34 = vsub.f32 0.0, %v2090_v13  ;;  %v4547_v44 = vadd.f32 %v1980_v47, %v1890_v21 }
 0x1a7   : > { %v4549_v32 = vadd.f32 %v1979_v4, %v1884_v37  ;;  %v4552_v33 = vmul.f32 0.5, %v4406_v17  ;;  %v2145_v36 = vadd.f32 1.0, %v2117_v5  ;;  %3450 = vpow2.f32 %v2547_v25  ;;  %v1895_v25 = vpop.f32.mrf.mxu1 }
 0x1a8   : > { %v2337_v14 = vmul.f32 %v4519_v35, %v2309_v0  ;;  %v2481_v16 = vsub.f32 0.0, %v2089_v19  ;;  %v4557_v28 = vmul.f32 0.70710677, %v4547_v44  ;;  %v1902_v51 = vadd.f32 %v3380_v56, %v1667_v30 }
 0x1a9   : > { %3452 = vrcp.f32 %v2145_v36  ;;  %v4562_v17 = vmul.f32 0.70710677, %v4549_v32  ;;  %v4566_v55 = vmul.f32 0.5, %v4485_v29  ;;  %v2510_v23 = vmul.f32 %v2482_v34, %v2090_v13 }
 0x1aa   : > { %v2918_v52 = vadd.f32 -0.28449672, %v2337_v14  ;;  %v4554_v1 = vpop.eup %3442  ;;  %3454 = vpow2.f32 %v2545_v58  ;;  %v2092_v6 = vand.u32 2147483647, %v4557_v28  ;;  %v1661_v9 = vadd.f32 %v1660_v59, %v4236_v24  ;;  %v1981_v14 = vld [vmem:[%s4277_s30 + $0x80] sm:$0xff] }
 0x1ab   : > { %v2228_v8 = vmul.f32 1.0614054, %v4554_v1  ;;  %v2091_v15 = vand.u32 2147483647, %v4562_v17  ;;  %vm2645_vm10 = vcmp.lt.f32.partialorder %v4418_v54, 0.0  ;;  %v2509_v10 = vmul.f32 %v2481_v16, %v2089_v19 }
 0x1ac   : > { %v2393_v62 = vmul.f32 %v4519_v35, %v2918_v52  ;;  %v2120_v63 = vmul.f32 0.3275911, %v2092_v6  ;;  %v2484_v38 = vsub.f32 0.0, %v2092_v6  ;;  %v4572_v46 = vadd.f32 %v1982_v57, %v1902_v51  ;;  %v3337_v57 = vpop.f32.mrf.mxu0 }
 0x1ad   : > { %v2893_v3 = vadd.f32 -1.4531521, %v2228_v8  ;;  %v2119_v11 = vmul.f32 0.3275911, %v2091_v15  ;;  %v2483_v7 = vsub.f32 0.0, %v2091_v15  ;;  %v1896_v30 = vadd.f32 %v1895_v25, %v1661_v9 }
 0x1ae   : > { %v2421_v45 = vadd.f32 0.2548296, %v2393_v62  ;;  %v2551_v50 = vmul.f32 1.442695, %v2510_v23  ;;  %v2148_v24 = vadd.f32 1.0, %v2120_v63  ;;  %v2512_v47 = vmul.f32 %v2484_v38, %v2092_v6 }
 0x1af   : > { %v4574_v18 = vpop.eup %3444  ;;  %v2284_v13 = vmul.f32 %v4554_v1, %v2893_v3  ;;  %v2147_v2 = vadd.f32 1.0, %v2119_v11  ;;  %v2511_v19 = vmul.f32 %v2483_v7, %v2091_v15  ;;  %v2549_v4 = vmul.f32 1.442695, %v2509_v10 }
 0x1b0   : > { %v2449_v29 = vmul.f32 %v4519_v35, %v2421_v45  ;;  %v3447_v12 = vpop.eup %3446  ;;  %v2227_v40 = vmul.f32 1.0614054, %v4574_v18  ;;  %3456 = vrcp.f32 %v2148_v24  ;;  %v4580_v35 = vmul.f32 0.70710677, %v4572_v46 }
 0x1b1   : > { %v2312_v0 = vadd.f32 1.4214138, %v2284_v13  ;;  %3458 = vrcp.f32 %v2147_v2  ;;  %v2555_v34 = vmul.f32 1.442695, %v2512_v47  ;;  %v2553_v52 = vmul.f32 1.442695, %v2511_v19 }
 0x1b2   : > { %v2589_v26 = vmul.f32 %v3447_v12, %v2449_v29  ;;  %v2892_v43 = vadd.f32 -1.4531521, %v2227_v40  ;;  %v4584_v5 = vpop.eup %3448  ;;  %v2094_v36 = vand.u32 2147483647, %v4580_v35  ;;  %3460 = vpow2.f32 %v2551_v50 }
 0x1b3   : > { %v2340_v37 = vmul.f32 %v4554_v1, %v2312_v0  ;;  %v2230_v51 = vmul.f32 1.0614054, %v4584_v5  ;;  %3462 = vpow2.f32 %v2549_v4  ;;  %v4592_v15 = vadd.f32 %v1981_v14, %v1896_v30 }
 0x1b4   : > { %v2617_v21 = vsub.f32 1.0, %v2589_v26  ;;  %v2283_v58 = vmul.f32 %v4574_v18, %v2892_v43  ;;  %v2122_v62 = vmul.f32 0.3275911, %v2094_v36  ;;  %v2486_v8 = vsub.f32 0.0, %v2094_v36  ;;  %v3451_v23 = vpop.eup %3450 }
 0x1b5   : > { %v2921_v16 = vadd.f32 -0.28449672, %v2340_v37  ;;  %v2895_v3 = vadd.f32 -1.4531521, %v2230_v51  ;;  %v1679_v12 = vadd.f32 %v3337_v57, %v4239_v60  ;;  %vm2648_vm11 = vcmp.lt.f32.partialorder %v4495_v61, 0.0  ;;  %v1672_v37 = vpop.f32.mrf.mxu0 }
 0x1b6   : > { %v2673_v56 = vsub.f32 0.0, %v2617_v21  ;;  %v2311_v59 = vadd.f32 1.4214138, %v2283_v58  ;;  %v4594_v9 = vpop.eup %3452  ;;  %v2150_v38 = vadd.f32 1.0, %v2122_v62  ;;  %v2514_v29 = vmul.f32 %v2486_v8, %v2094_v36 }
 0x1b7   : > { %v2396_v45 = vmul.f32 %v4554_v1, %v2921_v16  ;;  %v3455_v13 = vpop.eup %3454  ;;  %v2286_v7 = vmul.f32 %v4584_v5, %v2895_v3  ;;  %v2229_v54 = vmul.f32 1.0614054, %v4594_v9  ;;  %v4604_v2 = vmul.f32 0.70710677, %v4592_v15 }
 0x1b8   : > { %v2701_v6 = vsel %vm2645_vm10, %v2673_v56, %v2617_v21  ;;  %v2339_v63 = vmul.f32 %v4574_v18, %v2311_v59  ;;  %3464 = vrcp.f32 %v2150_v38  ;;  %v2559_v24 = vmul.f32 1.442695, %v2514_v29  ;;  %v3383_v21 = vpop.f32.mrf.mxu1  ;;  %v1984_v56 = vld [vmem:[%s4277_s30 + $0x98] sm:$0xff] }
 0x1b9   : > { %v2729_v10 = vadd.f32 1.0, %v2701_v6  ;;  %v2424_v11 = vadd.f32 0.2548296, %v2396_v45  ;;  %v2314_v26 = vadd.f32 1.4214138, %v2286_v7  ;;  %v4609_v19 = vmul.f32 0.5, %v4501_v39 }
 0x1ba   : > { %v2920_v50 = vadd.f32 -0.28449672, %v2339_v63  ;;  %v2894_v0 = vadd.f32 -1.4531521, %v2229_v54  ;;  %3466 = vpow2.f32 %v2555_v34  ;;  %v4618_v25 = vand.u32 2147483647, %v4604_v2 }
 0x1bb   : > { %v2757_v40 = vmul.f32 %v2729_v10, %v4552_v33  ;;  %v2452_v47 = vmul.f32 %v4554_v1, %v2424_v11  ;;  %v4613_v33 = vmul.f32 0.5, %v4514_v27  ;;  %v2342_v1 = vmul.f32 %v4584_v5, %v2314_v26 }
 0x1bc   : > { %v2395_v60 = vmul.f32 %v4574_v18, %v2920_v50  ;;  %v2285_v4 = vmul.f32 %v4594_v9, %v2894_v0  ;;  %v4621_v39 = vmul.f32 0.5, %v4528_v22  ;;  %3468 = vpow2.f32 %v2553_v52 }
 0x1bd   : > { %2785 = vst.msk [vmem:[%s4436_s7 + $0x40] sm:$0xff] %vm260_vm0, %v2757_v40  ;;  %v2592_v43 = vmul.f32 %v3451_v23, %v2452_v47  ;;  %v1914_v14 = vadd.f32 %v3383_v21, %v1679_v12  ;;  %v4623_v27 = vpop.eup %3456  ;;  %vm2647_vm12 = vcmp.lt.f32.partialorder %v4510_v48, 0.0  ;;  %v2923_v34 = vadd.f32 -0.28449672, %v2342_v1 }
 0x1be   : > { %v2423_v30 = vadd.f32 0.2548296, %v2395_v60  ;;  %v2313_v36 = vadd.f32 1.4214138, %v2285_v4  ;;  %3470 = vpow2.f32 %v2559_v24  ;;  %v4627_v16 = vpop.eup %3458  ;;  %v2232_v59 = vmul.f32 1.0614054, %v4623_v27  ;;  %v1907_v60 = vpop.f32.mrf.mxu1 }
 0x1bf   : > { %v2620_v58 = vsub.f32 1.0, %v2592_v43  ;;  %v2121_v22 = vmul.f32 0.3275911, %v4618_v25  ;;  %v1673_v52 = vadd.f32 %v1672_v37, %v4242_v49  ;;  %v2398_v8 = vmul.f32 %v4584_v5, %v2923_v34  ;;  %v3461_v6 = vpop.eup %3460 }
 0x1c0   : > { %v2451_v51 = vmul.f32 %v4574_v18, %v2423_v30  ;;  %v2341_v57 = vmul.f32 %v4594_v9, %v2313_v36  ;;  %v2231_v23 = vmul.f32 1.0614054, %v4627_v16  ;;  %v2897_v3 = vadd.f32 -1.4531521, %v2232_v59  ;;  %v3463_v18 = vpop.eup %3462  ;;  %v1983_v59 = vld [vmem:[%s4277_s30 + $0x90] sm:$0xff] }
 0x1c1   : > { %v2676_v62 = vsub.f32 0.0, %v2620_v58  ;;  %v2149_v10 = vadd.f32 1.0, %v2121_v22  ;;  %v4636_v63 = vadd.f32 %v1984_v56, %v1914_v14  ;;  %v2426_v29 = vadd.f32 0.2548296, %v2398_v8 }
 0x1c2   : > { %v2591_v45 = vmul.f32 %v3455_v13, %v2451_v51  ;;  %v2922_v11 = vadd.f32 -0.28449672, %v2341_v57  ;;  %v2896_v49 = vadd.f32 -1.4531521, %v2231_v23  ;;  %vm2650_vm13 = vcmp.lt.f32.partialorder %v4525_v42, 0.0 }
 0x1c3   : > { %v2704_v38 = vsel %vm2648_vm11, %v2676_v62, %v2620_v58  ;;  %v2288_v12 = vmul.f32 %v4623_v27, %v2897_v3  ;;  %3472 = vrcp.f32 %v2149_v10  ;;  %v2454_v13 = vmul.f32 %v4584_v5, %v2426_v29 }
 0x1c4   : > { %v2732_v7 = vadd.f32 1.0, %v2704_v38  ;;  %v2619_v54 = vsub.f32 1.0, %v2591_v45  ;;  %v2397_v40 = vmul.f32 %v4594_v9, %v2922_v11  ;;  %v2287_v50 = vmul.f32 %v4627_v16, %v2896_v49 }
 0x1c5   : > { %v2485_v61 = vsub.f32 0.0, %v4618_v25  ;;  %v2316_v26 = vadd.f32 1.4214138, %v2288_v12  ;;  %v4648_v0 = vmul.f32 0.70710677, %v4636_v63  ;;  %v4650_v43 = vpop.eup %3464  ;;  %v2594_v1 = vmul.f32 %v3461_v6, %v2454_v13 }
 0x1c6   : > { %v2760_v24 = vmul.f32 %v2732_v7, %v4566_v55  ;;  %v2675_v47 = vsub.f32 0.0, %v2619_v54  ;;  %v2425_v4 = vadd.f32 0.2548296, %v2397_v40  ;;  %v2315_v5 = vadd.f32 1.4214138, %v2287_v50 }
 0x1c7   : > { %v1908_v21 = vadd.f32 %v1907_v60, %v1673_v52  ;;  %v2344_v55 = vmul.f32 %v4623_v27, %v2316_v26  ;;  %v2234_v30 = vmul.f32 1.0614054, %v4650_v43  ;;  %v2096_v14 = vand.u32 2147483647, %v4648_v0  ;;  %v3467_v58 = vpop.eup %3466 }
 0x1c8   : > { %2788 = vst.msk [vmem:[%s4436_s7 + $0x58] sm:$0xff] %vm260_vm0, %v2760_v24  ;;  %v2703_v37 = vsel %vm2647_vm12, %v2675_v47, %v2619_v54  ;;  %v2622_v36 = vsub.f32 1.0, %v2594_v1  ;;  %v2453_v56 = vmul.f32 %v4594_v9, %v2425_v4  ;;  %v2343_v51 = vmul.f32 %v4627_v16, %v2315_v5  ;;  %v3340_v54 = vpop.f32.mrf.mxu0 }
 0x1c9   : > { %v2731_v34 = vadd.f32 1.0, %v2703_v37  ;;  %v2925_v22 = vadd.f32 -0.28449672, %v2344_v55  ;;  %v2899_v52 = vadd.f32 -1.4531521, %v2234_v30  ;;  %v2513_v48 = vmul.f32 %v2485_v61, %v4618_v25  ;;  %v3469_v8 = vpop.eup %3468  ;;  %v3386_v55 = vpop.f32.mrf.mxu1 }
 0x1ca   : > { %v2124_v62 = vmul.f32 0.3275911, %v2096_v14  ;;  %v2678_v23 = vsub.f32 0.0, %v2622_v36  ;;  %v2593_v6 = vmul.f32 %v3463_v18, %v2453_v56  ;;  %v2924_v45 = vadd.f32 -0.28449672, %v2343_v51  ;;  %v1986_v56 = vld [vmem:[%s4277_s30 + $0xa8] sm:$0xff] }
 0x1cb   : > { %v2759_v57 = vmul.f32 %v2731_v34, %v4609_v19  ;;  %v4664_v3 = vpop.eup %3470  ;;  %v2400_v10 = vmul.f32 %v4623_v27, %v2925_v22  ;;  %v2290_v9 = vmul.f32 %v4650_v43, %v2899_v52  ;;  %v4668_v29 = vadd.f32 %v1983_v59, %v1908_v21 }
 0x1cc   : > { %v2152_v38 = vadd.f32 1.0, %v2124_v62  ;;  %v2706_v25 = vsel %vm2650_vm13, %v2678_v23, %v2622_v36  ;;  %v2621_v11 = vsub.f32 1.0, %v2593_v6  ;;  %vm2649_vm14 = vcmp.lt.f32.partialorder %v4536_v41, 0.0  ;;  %v1919_v6 = vpop.f32.mrf.mxu1 }
 0x1cd   : > { %2787 = vst.msk [vmem:[%s4436_s7 + $0x50] sm:$0xff] %vm260_vm0, %v2759_v57  ;;  %v2399_v19 = vmul.f32 %v4627_v16, %v2924_v45  ;;  %v2734_v18 = vadd.f32 1.0, %v2706_v25  ;;  %v2428_v49 = vadd.f32 0.2548296, %v2400_v10  ;;  %v2318_v7 = vadd.f32 1.4214138, %v2290_v9 }
 0x1ce   : > { %3474 = vrcp.f32 %v2152_v38  ;;  %v2677_v12 = vsub.f32 0.0, %v2621_v11  ;;  %v2036_v13 = vmul.f32 0.5, %v4547_v44  ;;  %v2557_v50 = vmul.f32 1.442695, %v2513_v48  ;;  %v1985_v38 = vld [vmem:[%s4277_s30 + $0xa0] sm:$0xff] }
 0x1cf   : > { %v2427_v40 = vadd.f32 0.2548296, %v2399_v19  ;;  %v2762_v61 = vmul.f32 %v2734_v18, %v4613_v33  ;;  %v2456_v42 = vmul.f32 %v4623_v27, %v2428_v49  ;;  %v2346_v24 = vmul.f32 %v4650_v43, %v2318_v7 }
 0x1d0   : > { %v4681_v47 = vmul.f32 0.70710677, %v4668_v29  ;;  %v4683_v26 = vpop.eup %3472  ;;  %v2705_v60 = vsel %vm2649_vm14, %v2677_v12, %v2621_v11  ;;  %v2488_v4 = vsub.f32 0.0, %v2096_v14  ;;  %v1691_v44 = vadd.f32 %v3340_v54, %v4245_v31 }
 0x1d1   : > { %v2455_v1 = vmul.f32 %v4627_v16, %v2427_v40  ;;  %2790 = vst.msk [vmem:[%s4436_s7 + $0x68] sm:$0xff] %vm260_vm0, %v2762_v61  ;;  %v2733_v33 = vadd.f32 1.0, %v2705_v60  ;;  %v2596_v27 = vmul.f32 %v3467_v58, %v2456_v42  ;;  %v2927_v5 = vadd.f32 -0.28449672, %v2346_v24  ;;  %v1684_v16 = vpop.f32.mrf.mxu0 }
 0x1d2   : > { %v2233_v21 = vmul.f32 1.0614054, %v4683_v26  ;;  %vm2652_vm15 = vcmp.lt.f32.partialorder %v4557_v28, 0.0  ;;  %3476 = vpow2.f32 %v2557_v50  ;;  %v2095_v41 = vand.u32 2147483647, %v4681_v47 }
 0x1d3   : > { %v2595_v37 = vmul.f32 %v3469_v8, %v2455_v1  ;;  %v2761_v30 = vmul.f32 %v2733_v33, %v4621_v39  ;;  %v2624_v31 = vsub.f32 1.0, %v2596_v27  ;;  %v2402_v34 = vmul.f32 %v4650_v43, %v2927_v5  ;;  %v3343_v28 = vpop.f32.mrf.mxu0 }
 0x1d4   : > { %v2898_v36 = vadd.f32 -1.4531521, %v2233_v21  ;;  %v2516_v51 = vmul.f32 %v2488_v4, %v2096_v14  ;;  %v2123_v59 = vmul.f32 0.3275911, %v2095_v41  ;;  %v1926_v22 = vadd.f32 %v3386_v55, %v1691_v44  ;;  %v3389_v21 = vpop.f32.mrf.mxu1 }
 0x1d5   : > { %v2623_v58 = vsub.f32 1.0, %v2595_v37  ;;  %2789 = vst.msk [vmem:[%s4436_s7 + $0x60] sm:$0xff] %vm260_vm0, %v2761_v30  ;;  %v2680_v52 = vsub.f32 0.0, %v2624_v31  ;;  %v2430_v48 = vadd.f32 0.2548296, %v2402_v34  ;;  %v1685_v8 = vadd.f32 %v1684_v16, %v4248_v53  ;;  %v1696_v44 = vpop.f32.mrf.mxu0  ;;  %v1988_v37 = vld [vmem:[%s4277_s30 + $0xb8] sm:$0xff] }
 0x1d6   : > { %v2289_v62 = vmul.f32 %v4683_v26, %v2898_v36  ;;  %vm2651_vm1 = vcmp.lt.f32.partialorder %v4562_v17, 0.0  ;;  %v2151_v57 = vadd.f32 1.0, %v2123_v59  ;;  %v4702_v23 = vadd.f32 %v1986_v56, %v1926_v22 }
 0x1d7   : > { %v2679_v39 = vsub.f32 0.0, %v2623_v58  ;;  %v2708_v14 = vsel %vm2652_vm15, %v2680_v52, %v2624_v31  ;;  %v2458_v45 = vmul.f32 %v4650_v43, %v2430_v48  ;;  %v1920_v9 = vadd.f32 %v1919_v6, %v1685_v8  ;;  %v3346_v22 = vpop.f32.mrf.mxu0  ;;  %v1931_v48 = vpop.f32.mrf.mxu1 }
 0x1d8   : > { %v2317_v10 = vadd.f32 1.4214138, %v2289_v62  ;;  %v2736_v25 = vadd.f32 1.0, %v2708_v14  ;;  %v2035_v11 = vmul.f32 0.5, %v4549_v32  ;;  %3478 = vrcp.f32 %v2151_v57  ;;  %v5027_v14 = vld [vmem:[#allocation3_spill] sm:$0xff] }
 0x1d9   : > { %v2707_v19 = vsel %vm2651_vm1, %v2679_v39, %v2623_v58  ;;  %v2598_v17 = vmul.f32 %v4664_v3, %v2458_v45  ;;  %v2563_v49 = vmul.f32 1.442695, %v2516_v51  ;;  %v2487_v54 = vsub.f32 0.0, %v2095_v41 }
 0x1da   : > { %v2735_v53 = vadd.f32 1.0, %v2707_v19  ;;  %v2345_v18 = vmul.f32 %v4683_v26, %v2317_v10  ;;  %v2764_v43 = vmul.f32 %v2736_v25, %v2036_v13  ;;  %v4714_v12 = vmul.f32 0.70710677, %v4702_v23 }
 0x1db   : > { %v4711_v7 = vpop.eup %3474  ;;  %v4716_v40 = vadd.f32 %v1985_v38, %v1920_v9  ;;  %v2626_v50 = vsub.f32 1.0, %v2598_v17  ;;  %vm2654_vm2 = vcmp.lt.f32.partialorder %v4580_v35, 0.0  ;;  %v1703_v4 = vadd.f32 %v3343_v28, %v4251_v20 }
 0x1dc   : > { %v2763_v32 = vmul.f32 %v2735_v53, %v2035_v11  ;;  %v2926_v61 = vadd.f32 -0.28449672, %v2345_v18  ;;  %v2236_v42 = vmul.f32 1.0614054, %v4711_v7  ;;  %2792 = vst.msk [vmem:[%s4436_s7 + $0x78] sm:$0xff] %vm260_vm0, %v2764_v43  ;;  %3480 = vpow2.f32 %v2563_v49  ;;  %v1987_v11 = vld [vmem:[%s4277_s30 + $0xb0] sm:$0xff]  ;;  %v3392_v18 = vpop.f32.mrf.mxu1 }
 0x1dd   : > { %v2098_v3 = vand.u32 2147483647, %v4714_v12  ;;  %v4724_v13 = vmul.f32 0.70710677, %v4716_v40  ;;  %v2682_v24 = vsub.f32 0.0, %v2626_v50  ;;  %v2515_v33 = vmul.f32 %v2487_v54, %v2095_v41  ;;  %v1990_v49 = vld [vmem:[%s4277_s30 + $0xc8] sm:$0xff] }
 0x1de   : > { %2791 = vst.msk [vmem:[%s4436_s7 + $0x70] sm:$0xff] %vm260_vm0, %v2763_v32  ;;  %v2401_v60 = vmul.f32 %v4683_v26, %v2926_v61  ;;  %v2901_v1 = vadd.f32 -1.4531521, %v2236_v42  ;;  %v1938_v34 = vadd.f32 %v3389_v21, %v1703_v4  ;;  %v2038_v20 = vmul.f32 0.5, %v4572_v46  ;;  %v1708_v32 = vpop.f32.mrf.mxu0 }
 0x1df   : > { %v2126_v27 = vmul.f32 0.3275911, %v2098_v3  ;;  %v4731_v5 = vand.u32 2147483647, %v4724_v13  ;;  %v3477_v55 = vpop.eup %3476  ;;  %v2710_v16 = vsel %vm2654_vm2, %v2682_v24, %v2626_v50  ;;  %v2561_v39 = vmul.f32 1.442695, %v2515_v33 }
 0x1e0   : > { %v2429_v30 = vadd.f32 0.2548296, %v2401_v60  ;;  %v2292_v31 = vmul.f32 %v4711_v7, %v2901_v1  ;;  %v2738_v36 = vadd.f32 1.0, %v2710_v16  ;;  %v4740_v59 = vadd.f32 %v1988_v37, %v1938_v34 }
 0x1e1   : > { %v2154_v56 = vadd.f32 1.0, %v2126_v27  ;;  %v2125_v41 = vmul.f32 0.3275911, %v4731_v5  ;;  %v2490_v46 = vsub.f32 0.0, %v2098_v3  ;;  %v1715_v45 = vadd.f32 %v3346_v22, %v5027_v14  ;;  %v5028_v27 = vld [vmem:[#allocation4_spill] sm:$0xff] }
 0x1e2   : > { %v2457_v58 = vmul.f32 %v4683_v26, %v2429_v30  ;;  %v2320_v51 = vadd.f32 1.4214138, %v2292_v31  ;;  %v2766_v52 = vmul.f32 %v2738_v36, %v2038_v20  ;;  %v4746_v57 = vmul.f32 0.70710677, %v4740_v59  ;;  %v5026_v26 = vld [vmem:[#allocation2_spill] sm:$0xff] }
 0x1e3   : > { %3482 = vrcp.f32 %v2154_v56  ;;  %v2153_v35 = vadd.f32 1.0, %v2125_v41  ;;  %v1697_v6 = vadd.f32 %v1696_v44, %v5026_v26  ;;  %v2037_v9 = vmul.f32 0.5, %v4592_v15  ;;  %v1943_v41 = vpop.f32.mrf.mxu1 }
 0x1e4   : > { %v2597_v62 = vmul.f32 %v3477_v55, %v2457_v58  ;;  %v2348_v8 = vmul.f32 %v4711_v7, %v2320_v51  ;;  %2794 = vst.msk [vmem:[%s4436_s7 + $0x88] sm:$0xff] %vm260_vm0, %v2766_v52  ;;  %vm2653_vm3 = vcmp.lt.f32.partialorder %v4604_v2, 0.0  ;;  %v2100_v53 = vand.u32 2147483647, %v4746_v57  ;;  %v1989_v52 = vld [vmem:[%s4277_s30 + $0xc0] sm:$0xff] }
 0x1e5   : > { %v4750_v10 = vpop.eup %3478  ;;  %3484 = vrcp.f32 %v2153_v35  ;;  %v1932_v17 = vadd.f32 %v1931_v48, %v1697_v6  ;;  %v1950_v54 = vadd.f32 %v3392_v18, %v1715_v45  ;;  %v2518_v50 = vmul.f32 %v2490_v46, %v2098_v3 }
 0x1e6   : > { %v2625_v38 = vsub.f32 1.0, %v2597_v62  ;;  %v2929_v25 = vadd.f32 -0.28449672, %v2348_v8  ;;  %v2235_v19 = vmul.f32 1.0614054, %v4750_v10  ;;  %3486 = vpow2.f32 %v2561_v39 }
 0x1e7   : > { %v2128_v61 = vmul.f32 0.3275911, %v2100_v53  ;;  %v4759_v42 = vadd.f32 %v1987_v11, %v1932_v17  ;;  %v2489_v60 = vsub.f32 0.0, %v4731_v5  ;;  %v4762_v1 = vadd.f32 %v1990_v49, %v1950_v54 }
 0x1e8   : > { %v2681_v28 = vsub.f32 0.0, %v2625_v38  ;;  %v2404_v43 = vmul.f32 %v4711_v7, %v2929_v25  ;;  %v2900_v15 = vadd.f32 -1.4531521, %v2235_v19  ;;  %v1709_v21 = vadd.f32 %v1708_v32, %v5028_v27 }
 0x1e9   : > { %v2156_v33 = vadd.f32 1.0, %v2128_v61  ;;  %v3481_v37 = vpop.eup %3480  ;;  %v4768_v3 = vmul.f32 0.70710677, %v4759_v42  ;;  %v2492_v31 = vsub.f32 0.0, %v2100_v53  ;;  %v2040_v34 = vmul.f32 0.5, %v4636_v63 }
 0x1ea   : > { %v2709_v24 = vsel %vm2653_vm3, %v2681_v28, %v2625_v38  ;;  %v2432_v2 = vadd.f32 0.2548296, %v2404_v43  ;;  %v2291_v44 = vmul.f32 %v4750_v10, %v2900_v15  ;;  %v4775_v56 = vmul.f32 0.70710677, %v4762_v1 }
 0x1eb   : > { %v2737_v4 = vadd.f32 1.0, %v2709_v24  ;;  %3488 = vrcp.f32 %v2156_v33  ;;  %v4772_v36 = vand.u32 2147483647, %v4768_v3  ;;  %v2567_v58 = vmul.f32 1.442695, %v2518_v50 }
 0x1ec   : > { %v2460_v55 = vmul.f32 %v4711_v7, %v2432_v2  ;;  %v2319_v30 = vadd.f32 1.4214138, %v2291_v44  ;;  %v2517_v51 = vmul.f32 %v2489_v60, %v4731_v5  ;;  %v1944_v22 = vadd.f32 %v1943_v41, %v1709_v21  ;;  %v3349_v5 = vpop.f32.mrf.mxu0  ;;  %v1992_v21 = vld [vmem:[%s4277_s30 + $0xd8] sm:$0xff] }
 0x1ed   : > { %v2765_v16 = vmul.f32 %v2737_v4, %v2037_v9  ;;  %vm2656_vm4 = vcmp.lt.f32.partialorder %v4648_v0, 0.0  ;;  %v2127_v48 = vmul.f32 0.3275911, %v4772_v36  ;;  %v4787_v62 = vand.u32 2147483647, %v4775_v56  ;;  %v3395_v4 = vpop.f32.mrf.mxu1 }
 0x1ee   : > { %v2600_v20 = vmul.f32 %v3481_v37, %v2460_v55  ;;  %v2347_v7 = vmul.f32 %v4750_v10, %v2319_v30  ;;  %v4790_v8 = vmul.f32 0.5, %v4668_v29  ;;  %v2520_v26 = vmul.f32 %v2492_v31, %v2100_v53  ;;  %v5029_v53 = vld [vmem:[#allocation5_spill] sm:$0xff]  ;;  %v1720_v0 = vpop.f32.mrf.mxu0  ;;  %v5030_v30 = vld [vmem:[#allocation6_spill] sm:$0xff] }
 0x1ef   : > { %2793 = vst.msk [vmem:[%s4436_s7 + $0x80] sm:$0xff] %vm260_vm0, %v2765_v16  ;;  %v2155_v14 = vadd.f32 1.0, %v2127_v48  ;;  %v2130_v45 = vmul.f32 0.3275911, %v4787_v62  ;;  %v4794_v9 = vadd.f32 %v1989_v52, %v1944_v22  ;;  %3490 = vpow2.f32 %v2567_v58  ;;  %v1955_v22 = vpop.f32.mrf.mxu1 }
 0x1f0   : > { %v4782_v35 = vpop.eup %3482  ;;  %v2628_v63 = vsub.f32 1.0, %v2600_v20  ;;  %v2928_v39 = vadd.f32 -0.28449672, %v2347_v7  ;;  %v2565_v19 = vmul.f32 1.442695, %v2517_v51  ;;  %v1727_v18 = vadd.f32 %v3349_v5, %v5029_v53 }
 0x1f1   : > { %v2238_v46 = vmul.f32 1.0614054, %v4782_v35  ;;  %3492 = vrcp.f32 %v2155_v14  ;;  %v2158_v32 = vadd.f32 1.0, %v2130_v45  ;;  %v2571_v50 = vmul.f32 1.442695, %v2520_v26 }
 0x1f2   : > { %v2684_v6 = vsub.f32 0.0, %v2628_v63  ;;  %v4796_v38 = vpop.eup %3484  ;;  %v2403_v25 = vmul.f32 %v4750_v10, %v2928_v39  ;;  %v4805_v61 = vmul.f32 0.70710677, %v4794_v9  ;;  %v2491_v33 = vsub.f32 0.0, %v4772_v36 }
 0x1f3   : > { %v2903_v11 = vadd.f32 -1.4531521, %v2238_v46  ;;  %v2237_v17 = vmul.f32 1.0614054, %v4796_v38  ;;  %v3487_v49 = vpop.eup %3486  ;;  %3494 = vrcp.f32 %v2158_v32  ;;  %v1962_v16 = vadd.f32 %v3395_v4, %v1727_v18  ;;  %v1991_v46 = vld [vmem:[%s4277_s30 + $0xd0] sm:$0xff] }
 0x1f4   : > { %v2712_v29 = vsel %vm2656_vm4, %v2684_v6, %v2628_v63  ;;  %v2431_v43 = vadd.f32 0.2548296, %v2403_v25  ;;  %3496 = vpow2.f32 %v2565_v19  ;;  %v4811_v27 = vand.u32 2147483647, %v4805_v61 }
 0x1f5   : > { %v2740_v28 = vadd.f32 1.0, %v2712_v29  ;;  %v2294_v54 = vmul.f32 %v4782_v35, %v2903_v11  ;;  %v2902_v15 = vadd.f32 -1.4531521, %v2237_v17  ;;  %vm2655_vm5 = vcmp.lt.f32.partialorder %v4681_v47, 0.0 }
 0x1f6   : > { %v2459_v2 = vmul.f32 %v4750_v10, %v2431_v43  ;;  %v1721_v10 = vadd.f32 %v1720_v0, %v5030_v30  ;;  %3498 = vpow2.f32 %v2571_v50  ;;  %v2129_v20 = vmul.f32 0.3275911, %v4811_v27 }
 0x1f7   : > { %v2768_v24 = vmul.f32 %v2740_v28, %v2040_v34  ;;  %v2322_v60 = vadd.f32 1.4214138, %v2294_v54  ;;  %v2293_v44 = vmul.f32 %v4796_v38, %v2902_v15  ;;  %v4823_v51 = vadd.f32 %v1992_v21, %v1962_v16 }
 0x1f8   : > { %v2599_v37 = vmul.f32 %v3487_v49, %v2459_v2  ;;  %v4818_v31 = vpop.eup %3488  ;;  %v2494_v63 = vsub.f32 0.0, %v4787_v62  ;;  %v2157_v48 = vadd.f32 1.0, %v2129_v20  ;;  %v1956_v39 = vadd.f32 %v1955_v22, %v1721_v10 }
 0x1f9   : > { %2796 = vst.msk [vmem:[%s4436_s7 + $0x98] sm:$0xff] %vm260_vm0, %v2768_v24  ;;  %v2350_v55 = vmul.f32 %v4782_v35, %v2322_v60  ;;  %v2321_v34 = vadd.f32 1.4214138, %v2293_v44  ;;  %v2240_v58 = vmul.f32 1.0614054, %v4818_v31  ;;  %v2519_v14 = vmul.f32 %v2491_v33, %v4772_v36 }
 0x1fa   : > { %v2627_v41 = vsub.f32 1.0, %v2599_v37  ;;  %v4831_v45 = vmul.f32 0.5, %v4702_v23  ;;  %3500 = vrcp.f32 %v2157_v48  ;;  %v4834_v11 = vmul.f32 0.70710677, %v4823_v51 }
 0x1fb   : > { %v2931_v7 = vadd.f32 -0.28449672, %v2350_v55  ;;  %v2349_v52 = vmul.f32 %v4796_v38, %v2321_v34  ;;  %v2905_v6 = vadd.f32 -1.4531521, %v2240_v58  ;;  %v4839_v53 = vadd.f32 %v1991_v46, %v1956_v39 }
 0x1fc   : > { %v2683_v26 = vsub.f32 0.0, %v2627_v41  ;;  %v3491_v18 = vpop.eup %3490  ;;  %vm2658_vm6 = vcmp.lt.f32.partialorder %v4714_v12, 0.0  ;;  %v2522_v36 = vmul.f32 %v2494_v63, %v4787_v62  ;;  %v4845_v28 = vand.u32 2147483647, %v4834_v11 }
 0x1fd   : > { %v2406_v5 = vmul.f32 %v4782_v35, %v2931_v7  ;;  %v2930_v25 = vadd.f32 -0.28449672, %v2349_v52  ;;  %v2296_v17 = vmul.f32 %v4818_v31, %v2905_v6  ;;  %v2041_v54 = vmul.f32 0.5, %v4716_v40 }
 0x1fe   : > { %v2711_v19 = vsel %vm2655_vm5, %v2683_v26, %v2627_v41  ;;  %v4847_v43 = vpop.eup %3492  ;;  %v2569_v15 = vmul.f32 1.442695, %v2519_v14  ;;  %v2132_v2 = vmul.f32 0.3275911, %v4845_v28  ;;  %v2493_v4 = vsub.f32 0.0, %v4811_v27 }
 0x1ff   : > { %v2434_v29 = vadd.f32 0.2548296, %v2406_v5  ;;  %v2739_v49 = vadd.f32 1.0, %v2711_v19  ;;  %v2405_v23 = vmul.f32 %v4796_v38, %v2930_v25  ;;  %v2324_v32 = vadd.f32 1.4214138, %v2296_v17 }
 0x200   : > { %v2239_v24 = vmul.f32 1.0614054, %v4847_v43  ;;  %v4857_v44 = vmul.f32 0.70710677, %v4839_v53  ;;  %v2575_v33 = vmul.f32 1.442695, %v2522_v36  ;;  %3502 = vpow2.f32 %v2569_v15 }
 0x201   : > { %v2462_v47 = vmul.f32 %v4782_v35, %v2434_v29  ;;  %v2767_v50 = vmul.f32 %v2739_v49, %v4790_v8  ;;  %v2433_v0 = vadd.f32 0.2548296, %v2405_v23  ;;  %v2352_v60 = vmul.f32 %v4818_v31, %v2324_v32  ;;  %v4859_v35 = vpop.eup %3494 }
 0x202   : > { %v2904_v8 = vadd.f32 -1.4531521, %v2239_v24  ;;  %v2160_v21 = vadd.f32 1.0, %v2132_v2  ;;  %v3497_v37 = vpop.eup %3496  ;;  %v2242_v30 = vmul.f32 1.0614054, %v4859_v35  ;;  %v2521_v22 = vmul.f32 %v2493_v4, %v4811_v27 }
 0x203   : > { %v2602_v62 = vmul.f32 %v3491_v18, %v2462_v47  ;;  %2795 = vst.msk [vmem:[%s4436_s7 + $0x90] sm:$0xff] %vm260_vm0, %v2767_v50  ;;  %v2461_v40 = vmul.f32 %v4796_v38, %v2433_v0  ;;  %v2933_v16 = vadd.f32 -0.28449672, %v2352_v60  ;;  %v4867_v20 = vand.u32 2147483647, %v4857_v44  ;;  %v3499_v41 = vpop.eup %3498 }
 0x204   : > { %v2295_v34 = vmul.f32 %v4847_v43, %v2904_v8  ;;  %3504 = vrcp.f32 %v2160_v21  ;;  %v2907_v58 = vadd.f32 -1.4531521, %v2242_v30  ;;  %vm2657_vm7 = vcmp.lt.f32.partialorder %v4724_v13, 0.0 }
 0x205   : > { %v2630_v55 = vsub.f32 1.0, %v2602_v62  ;;  %v2601_v10 = vmul.f32 %v3497_v37, %v2461_v40  ;;  %v2408_v38 = vmul.f32 %v4818_v31, %v2933_v16  ;;  %v2131_v48 = vmul.f32 0.3275911, %v4867_v20 }
 0x206   : > { %v2323_v63 = vadd.f32 1.4214138, %v2295_v34  ;;  %v2298_v26 = vmul.f32 %v4859_v35, %v2907_v58  ;;  %3506 = vpow2.f32 %v2575_v33  ;;  %v2573_v17 = vmul.f32 1.442695, %v2521_v22 }
 0x207   : > { %v2686_v7 = vsub.f32 0.0, %v2630_v55  ;;  %v2629_v52 = vsub.f32 1.0, %v2601_v10  ;;  %v2436_v46 = vadd.f32 0.2548296, %v2408_v38  ;;  %v2159_v25 = vadd.f32 1.0, %v2131_v48  ;;  %v4877_v27 = vpop.eup %3500 }
 0x208   : > { %v2351_v14 = vmul.f32 %v4847_v43, %v2323_v63  ;;  %v2326_v29 = vadd.f32 1.4214138, %v2298_v26  ;;  %v2496_v18 = vsub.f32 0.0, %v4845_v28  ;;  %v2241_v36 = vmul.f32 1.0614054, %v4877_v27 }
 0x209   : > { %v2714_v39 = vsel %vm2658_vm6, %v2686_v7, %v2630_v55  ;;  %v2685_v6 = vsub.f32 0.0, %v2629_v52  ;;  %v2464_v19 = vmul.f32 %v4818_v31, %v2436_v46  ;;  %3508 = vrcp.f32 %v2159_v25 }
 0x20a   : > { %v2742_v5 = vadd.f32 1.0, %v2714_v39  ;;  %v2932_v23 = vadd.f32 -0.28449672, %v2351_v14  ;;  %v2354_v15 = vmul.f32 %v4859_v35, %v2326_v29  ;;  %v2906_v50 = vadd.f32 -1.4531521, %v2241_v36 }
 0x20b   : > { %v2713_v49 = vsel %vm2657_vm7, %v2685_v6, %v2629_v52  ;;  %v2604_v32 = vmul.f32 %v3499_v41, %v2464_v19  ;;  %v2524_v13 = vmul.f32 %v2496_v18, %v4845_v28  ;;  %3510 = vpow2.f32 %v2573_v17 }
 0x20c   : > { %v2770_v12 = vmul.f32 %v2742_v5, %v4831_v45  ;;  %v2741_v47 = vadd.f32 1.0, %v2713_v49  ;;  %v2407_v31 = vmul.f32 %v4847_v43, %v2932_v23  ;;  %v2935_v45 = vadd.f32 -0.28449672, %v2354_v15 }
 0x20d   : > { %v2632_v24 = vsub.f32 1.0, %v2604_v32  ;;  %v2297_v62 = vmul.f32 %v4877_v27, %v2906_v50  ;;  %v3503_v40 = vpop.eup %3502  ;;  %v2044_v8 = vmul.f32 0.5, %v4740_v59  ;;  %vm2660_vm8 = vcmp.lt.f32.partialorder %v4746_v57, 0.0 }
 0x20e   : > { %2798 = vst.msk [vmem:[%s4436_s7 + $0xa8] sm:$0xff] %vm260_vm0, %v2770_v12  ;;  %v2769_v0 = vmul.f32 %v2741_v47, %v2041_v54  ;;  %v2435_v2 = vadd.f32 0.2548296, %v2407_v31  ;;  %v2410_v4 = vmul.f32 %v4859_v35, %v2935_v45  ;;  %v2579_v55 = vmul.f32 1.442695, %v2524_v13 }
 0x20f   : > { %v2688_v60 = vsub.f32 0.0, %v2632_v24  ;;  %v2325_v33 = vadd.f32 1.4214138, %v2297_v62  ;;  %v2495_v16 = vsub.f32 0.0, %v4867_v20  ;;  %vm2659_vm9 = vcmp.lt.f32.partialorder %v4768_v3, 0.0 }
 0x210   : > { %2797 = vst.msk [vmem:[%s4436_s7 + $0xa0] sm:$0xff] %vm260_vm0, %v2769_v0  ;;  %v2463_v54 = vmul.f32 %v4847_v43, %v2435_v2  ;;  %v2438_v28 = vadd.f32 0.2548296, %v2410_v4  ;;  %3512 = vpow2.f32 %v2579_v55  ;;  %vm2662_vm10 = vcmp.lt.f32.partialorder %v4775_v56, 0.0 }
 0x211   : > { %v3505_v21 = vpop.eup %3504  ;;  %v2716_v37 = vsel %vm2660_vm8, %v2688_v60, %v2632_v24  ;;  %v2353_v34 = vmul.f32 %v4877_v27, %v2325_v33  ;;  %v2523_v52 = vmul.f32 %v2495_v16, %v4867_v20  ;;  %vm2661_vm11 = vcmp.lt.f32.partialorder %v4805_v61, 0.0 }
 0x212   : > { %v2744_v30 = vadd.f32 1.0, %v2716_v37  ;;  %v2603_v10 = vmul.f32 %v3503_v40, %v2463_v54  ;;  %v2244_v41 = vmul.f32 1.0614054, %v3505_v21  ;;  %v2466_v7 = vmul.f32 %v4859_v35, %v2438_v28 }
 0x213   : > { %v3507_v59 = vpop.eup %3506  ;;  %v2934_v58 = vadd.f32 -0.28449672, %v2353_v34  ;;  %v2043_v35 = vmul.f32 0.5, %v4759_v42  ;;  %v2577_v29 = vmul.f32 1.442695, %v2523_v52  ;;  %v2046_v42 = vmul.f32 0.5, %v4762_v1 }
 0x214   : > { %v2772_v38 = vmul.f32 %v2744_v30, %v2044_v8  ;;  %v2631_v57 = vsub.f32 1.0, %v2603_v10  ;;  %v2909_v43 = vadd.f32 -1.4531521, %v2244_v41  ;;  %v2606_v22 = vmul.f32 %v3507_v59, %v2466_v7 }
 0x215   : > { %v2409_v48 = vmul.f32 %v4877_v27, %v2934_v58  ;;  %3514 = vpow2.f32 %v2577_v29  ;;  %v2045_v62 = vmul.f32 0.5, %v4794_v9  ;;  %vm2664_vm12 = vcmp.lt.f32.partialorder %v4834_v11, 0.0 }
 0x216   : > { %2800 = vst.msk [vmem:[%s4436_s7 + $0xb8] sm:$0xff] %vm260_vm0, %v2772_v38  ;;  %v2687_v63 = vsub.f32 0.0, %v2631_v57  ;;  %v2300_v39 = vmul.f32 %v3505_v21, %v2909_v43  ;;  %v2634_v46 = vsub.f32 1.0, %v2606_v22  ;;  %v3509_v26 = vpop.eup %3508  ;;  %v2048_v16 = vmul.f32 0.5, %v4823_v51 }
 0x217   : > { %v2437_v6 = vadd.f32 0.2548296, %v2409_v48  ;;  %v2243_v20 = vmul.f32 1.0614054, %v3509_v26  ;;  %vm2663_vm13 = vcmp.lt.f32.partialorder %v4857_v44, 0.0  ;;  %v2047_v59 = vmul.f32 0.5, %v4839_v53 }
 0x218   : > { %v2715_v5 = vsel %vm2659_vm9, %v2687_v63, %v2631_v57  ;;  %v2328_v14 = vadd.f32 1.4214138, %v2300_v39  ;;  %v2690_v19 = vsub.f32 0.0, %v2634_v46  ;;  %v3511_v12 = vpop.eup %3510 }
 0x219   : > { %v2743_v25 = vadd.f32 1.0, %v2715_v5  ;;  %v2465_v17 = vmul.f32 %v4877_v27, %v2437_v6  ;;  %v2908_v23 = vadd.f32 -1.4531521, %v2243_v20 }
 0x21a   : > { %v2356_v18 = vmul.f32 %v3505_v21, %v2328_v14  ;;  %v2718_v49 = vsel %vm2662_vm10, %v2690_v19, %v2634_v46 }
 0x21b   : > { %v2771_v3 = vmul.f32 %v2743_v25, %v2043_v35  ;;  %v2746_v36 = vadd.f32 1.0, %v2718_v49  ;;  %v2605_v47 = vmul.f32 %v3511_v12, %v2465_v17  ;;  %v2299_v15 = vmul.f32 %v3509_v26, %v2908_v23 }
 0x21c   : > { %v2937_v32 = vadd.f32 -0.28449672, %v2356_v18 }
 0x21d   : > { %2799 = vst.msk [vmem:[%s4436_s7 + $0xb0] sm:$0xff] %vm260_vm0, %v2771_v3  ;;  %v2774_v31 = vmul.f32 %v2746_v36, %v2046_v42  ;;  %v2633_v50 = vsub.f32 1.0, %v2605_v47  ;;  %v2327_v0 = vadd.f32 1.4214138, %v2299_v15  ;;  %v3513_v2 = vpop.eup %3512 }
 0x21e   : > { %v2412_v56 = vmul.f32 %v3505_v21, %v2937_v32 }
 0x21f   : > { %2802 = vst.msk [vmem:[%s4436_s7 + $0xc8] sm:$0xff] %vm260_vm0, %v2774_v31  ;;  %v2689_v27 = vsub.f32 0.0, %v2633_v50  ;;  %v2355_v45 = vmul.f32 %v3509_v26, %v2327_v0 }
 0x220   : > { %v2440_v24 = vadd.f32 0.2548296, %v2412_v56 }
 0x221   : > { %v2717_v1 = vsel %vm2661_vm11, %v2689_v27, %v2633_v50  ;;  %v2936_v4 = vadd.f32 -0.28449672, %v2355_v45 }
 0x222   : > { %v2468_v13 = vmul.f32 %v3505_v21, %v2440_v24  ;;  %v2745_v60 = vadd.f32 1.0, %v2717_v1  ;;  %v3515_v55 = vpop.eup %3514 }
 0x223   : > { %v2411_v54 = vmul.f32 %v3509_v26, %v2936_v4 }
 0x224   : > { %v2608_v40 = vmul.f32 %v3513_v2, %v2468_v13  ;;  %v2773_v8 = vmul.f32 %v2745_v60, %v2045_v62 }
 0x225   : > { %v2439_v37 = vadd.f32 0.2548296, %v2411_v54 }
 0x226   : > { %v2636_v33 = vsub.f32 1.0, %v2608_v40  ;;  %2801 = vst.msk [vmem:[%s4436_s7 + $0xc0] sm:$0xff] %vm260_vm0, %v2773_v8 }
 0x227   : > { %v2467_v61 = vmul.f32 %v3509_v26, %v2439_v37 }
 0x228   : > { %v2692_v28 = vsub.f32 0.0, %v2636_v33 }
 0x229   : > { %v2607_v30 = vmul.f32 %v3515_v55, %v2467_v61 }
 0x22a   : > { %v2720_v21 = vsel %vm2664_vm12, %v2692_v28, %v2636_v33 }
 0x22b   : > { %v2748_v9 = vadd.f32 1.0, %v2720_v21  ;;  %v2635_v34 = vsub.f32 1.0, %v2607_v30 }
 0x22d   : > { %v2776_v10 = vmul.f32 %v2748_v9, %v2048_v16  ;;  %v2691_v41 = vsub.f32 0.0, %v2635_v34 }
 0x22f   : > { %2804 = vst.msk [vmem:[%s4436_s7 + $0xd8] sm:$0xff] %vm260_vm0, %v2776_v10  ;;  %v2719_v7 = vsel %vm2663_vm13, %v2691_v41, %v2635_v34 }
 0x230   : > { %v2747_v38 = vadd.f32 1.0, %v2719_v7 }
 0x232   : > { %v2775_v11 = vmul.f32 %v2747_v38, %v2047_v59 }
 0x234   : > { %2803 = vst.msk [vmem:[%s4436_s7 + $0xd0] sm:$0xff] %vm260_vm0, %v2775_v11 }
 0x235 PF: > { %s14_s15 = sadd.s32 1, %s3522_s15  }
 0x236   : > { %p11_p4 = scmp.ge.s32.totalorder %s14_s15, 4  }
 0x238   :  { %13 = sbr.rel (!%p11_p4) target bundleno = 1 (0x1), region = 69 }

// kernel: fno_forward.10
= control target key start
LH: loop header
LB: loop body
LE: loop exit
PB: predicated region body
PF: predicated region fallthrough
CT: control target
= control target key end

     0   :  { %s2625_s15 = smov 0   ;;  %s3532_s0 = inlined_call_operand.vmem [shape: f32[448,16], index: 0, kind: input, shape index: {}]   ;;  %s3533_s1 = inlined_call_operand.vmem [shape: f32[448,16], index: 1, kind: input, shape index: {}]   ;;  %s3534_s2 = inlined_call_operand.vmem [shape: f32[16,16], index: 2, kind: input, shape index: {}]   ;;  %s3535_s3 = inlined_call_operand.vmem [shape: f32[1,16], index: 3, kind: input, shape index: {}]   ;;  %s3536_s4 = inlined_call_operand.vmem [shape: f32[448,16], index: 4, kind: output, shape index: {}]  }
   0x1 LB: > { %s2117_s16 = sadd.s32 4294967295, %s2598_s15   ;;  %p2121_p0 = scmp.ge.s32.totalorder %s2598_s15, 1  ;;  %s2598_s15 = sphi %s2625_s15, %s14_s15  }
   0x2   : > { %p174_p1 = scmp.lt.s32.totalorder %s2598_s15, 3 }
   0x4   : > { %p175_p2 = pnand %p2121_p0, %p174_p1 }
   0x6   : > { %178 = sbr.rel (%p175_p2) target bundleno = 398 (0x18e), region = 36 }
   0xb   : > { %v252_v0 = vld [vmem:[%s3534_s2 + $0x8] sm:$0xff]  ;;  %v251_v1 = vld [vmem:[%s3534_s2] sm:$0xff]  ;;  %s205_s21 = smul.u32 28, %s2117_s16  ;;  %vm260_vm0 = vcmask 130048  }
   0xc   : > { %v2639_v2 = vand.u32 4294901760, %v252_v0  ;;  %v2641_v3 = vand.u32 4294901760, %v251_v1 }
   0xd   : > { %p206_p3 = scmp.lt.s32.totalorder %s205_s21, 55 }
   0xe   : > { %2308 = vmatprep.subr.mxu0 %v2639_v2  ;;  %v2645_v4 = vsub.f32 %v252_v0, %v2639_v2  ;;  %v2648_v5 = vsub.f32 %v251_v1, %v2641_v3 }
   0xf   : > { %2309 = vmatpush3.msra.mxu0 %v2639_v2  ;;  %s3690_s21 = smov (!%p206_p3, %s205_s21), 55 }
  0x10   : > { %v2652_v6 = vand.u32 4294901760, %v2645_v4  ;;  %2310 = vmatprep.subr.mxu0 %v2641_v3  ;;  %v2656_v7 = vand.u32 4294901760, %v2648_v5  ;;  %s2659_s22 = sshll.u32 %s3690_s21, 3 }
  0x11   : > { %2311 = vmatpush3.msra.mxu0 %v2641_v3  ;;  %s2669_s25 = scalar_lea.vmem %s3532_s0, %s2659_s22  ;;  %s3362_s30 = scalar_lea.vmem %s3533_s1, %s2659_s22 }
  0x12   : > { %v724_v8 = vsub.f32 %v2645_v4, %v2652_v6  ;;  %v731_v9 = vsub.f32 %v2648_v5, %v2656_v7  ;;  %2400 = vmatprep.subr.mxu0 %v2645_v4  ;;  %v223_v10 = vld [vmem:[%s2669_s25] sm:$0xff]  ;;  %v224_v11 = vld [vmem:[%s2669_s25 + $0x8] sm:$0xff]  ;;  %v225_v12 = vld [vmem:[%s2669_s25 + $0x10] sm:$0xff]  ;;  %s3375_s7 = scalar_lea.vmem %s3536_s4, %s2659_s22 }
  0x13   : > { %v262_v15 = vsel %vm260_vm0, %v223_v10, 0  ;;  %v265_v16 = vsel %vm260_vm0, %v224_v11, 0  ;;  %v226_v17 = vld [vmem:[%s2669_s25 + $0x18] sm:$0xff]  ;;  %v227_v18 = vld [vmem:[%s2669_s25 + $0x20] sm:$0xff]  ;;  %v268_v21 = vsel %vm260_vm0, %v225_v12, 0  ;;  %v228_v23 = vld [vmem:[%s2669_s25 + $0x28] sm:$0xff] }
  0x14   : > { %v725_v13 = vand.u32 4294901760, %v724_v8  ;;  %v732_v14 = vand.u32 4294901760, %v731_v9  ;;  %v2679_v19 = vand.u32 4294901760, %v262_v15  ;;  %v2681_v20 = vand.u32 4294901760, %v265_v16  ;;  %v229_v24 = vld [vmem:[%s2669_s25 + $0x30] sm:$0xff]  ;;  %v230_v29 = vld [vmem:[%s2669_s25 + $0x38] sm:$0xff] }
  0x15   : > { %v271_v22 = vsel %vm260_vm0, %v226_v17, 0  ;;  %v2687_v25 = vand.u32 4294901760, %v268_v21  ;;  %v274_v27 = vsel %vm260_vm0, %v227_v18, 0  ;;  %v277_v28 = vsel %vm260_vm0, %v228_v23, 0  ;;  %v231_v54 = vld [vmem:[%s2669_s25 + $0x40] sm:$0xff]  ;;  %v232_v55 = vld [vmem:[%s2669_s25 + $0x48] sm:$0xff] }
  0x16   : > { %2354 = vmatprep.subr.mxu1 %v725_v13  ;;  %v2689_v26 = vand.u32 4294901760, %v271_v22  ;;  %v2695_v30 = vsub.f32 %v262_v15, %v2679_v19  ;;  %2358 = vmatprep.mubr.f32.mxu1 %v2679_v19  ;;  %v2699_v31 = vsub.f32 %v265_v16, %v2681_v20  ;;  %v2701_v32 = vand.u32 4294901760, %v274_v27  ;;  %v233_v59 = vld [vmem:[%s2669_s25 + $0x50] sm:$0xff]  ;;  %v234_v0 = vld [vmem:[%s2669_s25 + $0x58] sm:$0xff]  ;;  %v235_v1 = vld [vmem:[%s2669_s25 + $0x60] sm:$0xff] }
  0x17   : > { %2355 = vmatpush3.msra.mxu1 %v725_v13  ;;  %v2703_v33 = vand.u32 4294901760, %v277_v28  ;;  %v2706_v34 = vsub.f32 %v268_v21, %v2687_v25  ;;  %v280_v36 = vsel %vm260_vm0, %v229_v24, 0  ;;  %v283_v37 = vsel %vm260_vm0, %v230_v29, 0  ;;  %v236_v8 = vld [vmem:[%s2669_s25 + $0x68] sm:$0xff]  ;;  %v238_v23 = vld [vmem:[%s2669_s25 + $0x78] sm:$0xff] }
  0x18   : > { %2356 = vmatprep.subr.mxu1 %v732_v14  ;;  %v2709_v35 = vsub.f32 %v271_v22, %v2689_v26  ;;  %v3551_v38 = vand.u32 4294901760, %v2695_v30  ;;  %v3550_v39 = vand.u32 4294901760, %v2699_v31  ;;  %v2716_v40 = vsub.f32 %v274_v27, %v2701_v32  ;;  %v237_v22 = vld [vmem:[%s2669_s25 + $0x70] sm:$0xff] }
  0x19   : > { %2357 = vmatpush3.msra.mxu1 %v732_v14  ;;  %v2719_v41 = vsub.f32 %v277_v28, %v2703_v33  ;;  %v3549_v42 = vand.u32 4294901760, %v2706_v34  ;;  %v2725_v44 = vand.u32 4294901760, %v280_v36  ;;  %v2727_v45 = vand.u32 4294901760, %v283_v37 }
  0x1a   : > { %2359 = vmatmul.mubr.f32.vlgmr.msra.gmra.mxu1 %v2681_v20  ;;  %2446 = vmatprep.subr.mxu1 %v2639_v2  ;;  %v3547_v43 = vand.u32 4294901760, %v2709_v35  ;;  %v415_v46 = vsub.f32 %v2695_v30, %v3551_v38  ;;  %v425_v47 = vsub.f32 %v2699_v31, %v3550_v39  ;;  %v3546_v48 = vand.u32 4294901760, %v2716_v40 }
  0x1b   : > { %2447 = vmatpush3.msra.mxu1 %v2639_v2  ;;  %2361 = vmatprep.mubr.f32.mxu1 %v2687_v25  ;;  %v3544_v49 = vand.u32 4294901760, %v2719_v41  ;;  %v435_v50 = vsub.f32 %v2706_v34, %v3549_v42  ;;  %v2746_v52 = vsub.f32 %v280_v36, %v2725_v44  ;;  %v2749_v53 = vsub.f32 %v283_v37, %v2727_v45  ;;  %v247_v42 = vld [vmem:[%s2669_s25 + $0xc0] sm:$0xff] }
  0x1c   : > { %v445_v51 = vsub.f32 %v2709_v35, %v3547_v43  ;;  %2448 = vmatprep.subr.mxu1 %v2641_v3  ;;  %v416_v56 = vand.u32 4294901760, %v415_v46  ;;  %v426_v57 = vand.u32 4294901760, %v425_v47  ;;  %v455_v58 = vsub.f32 %v2716_v40, %v3546_v48 }
  0x1d   : > { %2449 = vmatpush3.msra.mxu1 %v2641_v3  ;;  %v436_v60 = vand.u32 4294901760, %v435_v50  ;;  %v465_v61 = vsub.f32 %v2719_v41, %v3544_v49  ;;  %v3543_v62 = vand.u32 4294901760, %v2746_v52  ;;  %v3541_v63 = vand.u32 4294901760, %v2749_v53 }
  0x1e   : > { %2362 = vmatmul.mubr.f32.gmra.mxu1 %v2689_v26  ;;  %2538 = vmatprep.subr.mxu1 %v2639_v2  ;;  %v446_v9 = vand.u32 4294901760, %v445_v51  ;;  %v286_v10 = vsel %vm260_vm0, %v231_v54, 0  ;;  %v289_v11 = vsel %vm260_vm0, %v232_v55, 0  ;;  %v456_v12 = vand.u32 4294901760, %v455_v58 }
  0x1f   : > { %2312 = vmatprep.mubr.f32.mxu0 %v416_v56  ;;  %2364 = vmatprep.mubr.f32.mxu1 %v2701_v32  ;;  %v475_v13 = vsub.f32 %v2746_v52, %v3543_v62  ;;  %v2775_v14 = vand.u32 4294901760, %v286_v10  ;;  %v2777_v15 = vand.u32 4294901760, %v289_v11  ;;  %v292_v16 = vsel %vm260_vm0, %v233_v59, 0  ;;  %v245_v62 = vld [vmem:[%s2669_s25 + $0xb0] sm:$0xff] }
  0x20   : > { %2313 = vmatmul.mubr.f32.vlgmr.msra.gmra.mxu0 %v426_v57  ;;  %v295_v17 = vsel %vm260_vm0, %v234_v0, 0  ;;  %v298_v18 = vsel %vm260_vm0, %v235_v1, 0  ;;  %v301_v21 = vsel %vm260_vm0, %v236_v8, 0  ;;  %v466_v24 = vand.u32 4294901760, %v465_v61 }
  0x21   : > { %2401 = vmatpush3.msra.mxu0 %v2645_v4  ;;  %2315 = vmatprep.mubr.f32.mxu0 %v436_v60  ;;  %v485_v27 = vsub.f32 %v2749_v53, %v3541_v63  ;;  %v2791_v4 = vsub.f32 %v286_v10, %v2775_v14  ;;  %v2794_v28 = vsub.f32 %v289_v11, %v2777_v15  ;;  %v2798_v29 = vand.u32 4294901760, %v292_v16  ;;  %v240_v10 = vld [vmem:[%s2669_s25 + $0x88] sm:$0xff] }
  0x22   : > { %2365 = vmatmul.mubr.f32.gmra.mxu1 %v2703_v33  ;;  %2402 = vmatprep.subr.mxu0 %v2648_v5  ;;  %v2800_v36 = vand.u32 4294901760, %v295_v17  ;;  %v2802_v37 = vand.u32 4294901760, %v298_v18  ;;  %v2804_v46 = vand.u32 4294901760, %v301_v21  ;;  %v304_v51 = vsel %vm260_vm0, %v237_v22, 0  ;;  %v244_v63 = vld [vmem:[%s2669_s25 + $0xa8] sm:$0xff] }
  0x23   : > { %2367 = vmatprep.mubr.f32.mxu1 %v2725_v44  ;;  %2403 = vmatpush3.msra.mxu0 %v2648_v5  ;;  %v3539_v47 = vand.u32 4294901760, %v2791_v4  ;;  %v3538_v50 = vand.u32 4294901760, %v2794_v28  ;;  %v307_v54 = vsel %vm260_vm0, %v238_v23, 0  ;;  %v476_v55 = vand.u32 4294901760, %v475_v13  ;;  %v241_v23 = vld [vmem:[%s2669_s25 + $0x90] sm:$0xff] }
  0x24   : > { %3576 = vst [vmem:[#allocation2_spill] sm:$0xff] %v2800_v36  ;;  %3577 = vst [vmem:[#allocation3_spill] sm:$0xff] %v2802_v37  ;;  %2316 = vmatmul.mubr.f32.gmra.mxu0 %v446_v9  ;;  %2492 = vmatprep.subr.mxu0 %v2652_v6  ;;  %v2813_v56 = vsub.f32 %v292_v16, %v2798_v29  ;;  %v2816_v5 = vsub.f32 %v295_v17, %v2800_v36  ;;  %v2828_v60 = vand.u32 4294901760, %v304_v51  ;;  %v239_v9 = vld [vmem:[%s2669_s25 + $0x80] sm:$0xff] }
  0x25   : > { %3578 = vst [vmem:[#allocation4_spill] sm:$0xff] %v2804_v46  ;;  %2318 = vmatprep.mubr.f32.mxu0 %v456_v12  ;;  %v2819_v57 = vsub.f32 %v298_v18, %v2802_v37  ;;  %v495_v58 = vsub.f32 %v2791_v4, %v3539_v47  ;;  %v2826_v59 = vsub.f32 %v301_v21, %v2804_v46  ;;  %v2836_v8 = vand.u32 4294901760, %v307_v54 }
  0x26   : > { %2368 = vmatmul.mubr.f32.gmra.mxu1 %v2727_v45  ;;  %3579 = vst [vmem:[#allocation5_spill] sm:$0xff] %v2828_v60  ;;  %v505_v61 = vsub.f32 %v2794_v28, %v3538_v50  ;;  %v3537_v0 = vand.u32 4294901760, %v2813_v56  ;;  %v3540_v1 = vand.u32 4294901760, %v2816_v5  ;;  %v486_v11 = vand.u32 4294901760, %v485_v27  ;;  %v243_v27 = vld [vmem:[%s2669_s25 + $0xa0] sm:$0xff] }
  0x27   : > { %2370 = vmatprep.mubr.f32.mxu1 %v2775_v14  ;;  %3580 = vst [vmem:[#allocation6_spill] sm:$0xff] %v2836_v8  ;;  %v3542_v12 = vand.u32 4294901760, %v2819_v57  ;;  %v2842_v13 = vsub.f32 %v304_v51, %v2828_v60  ;;  %v496_v16 = vand.u32 4294901760, %v495_v58  ;;  %v3545_v18 = vand.u32 4294901760, %v2826_v59 }
  0x28   : > { %2319 = vmatmul.mubr.f32.gmra.mxu0 %v466_v24  ;;  %v515_v17 = vsub.f32 %v2813_v56, %v3537_v0  ;;  %v310_v21 = vsel %vm260_vm0, %v239_v9, 0  ;;  %v313_v22 = vsel %vm260_vm0, %v240_v10, 0  ;;  %v242_v24 = vld [vmem:[%s2669_s25 + $0x98] sm:$0xff]  ;;  %v506_v51 = vand.u32 4294901760, %v505_v61 }
  0x29   : > { %2321 = vmatprep.mubr.f32.mxu0 %v476_v55  ;;  %v525_v55 = vsub.f32 %v2816_v5, %v3540_v1  ;;  %v2859_v58 = vsub.f32 %v307_v54, %v2836_v8  ;;  %v535_v9 = vsub.f32 %v2819_v57, %v3542_v12  ;;  %v3548_v10 = vand.u32 4294901760, %v2842_v13 }
  0x2a   : > { %2371 = vmatmul.mubr.f32.gmra.mxu1 %v2777_v15  ;;  %v2865_v0 = vand.u32 4294901760, %v310_v21  ;;  %v2867_v61 = vand.u32 4294901760, %v313_v22  ;;  %v516_v50 = vand.u32 4294901760, %v515_v17  ;;  %v316_v47 = vsel %vm260_vm0, %v241_v23, 0 }
  0x2b   : > { %2373 = vmatprep.mubr.f32.mxu1 %v2798_v29  ;;  %v319_v1 = vsel %vm260_vm0, %v242_v24, 0  ;;  %v322_v54 = vsel %vm260_vm0, %v243_v27, 0  ;;  %v3552_v17 = vand.u32 4294901760, %v2859_v58  ;;  %v2886_v24 = vand.u32 4294901760, %v316_v47 }
  0x2c   : > { %2322 = vmatmul.mubr.f32.gmra.mxu0 %v486_v11  ;;  %3581 = vst [vmem:[#allocation7_spill] sm:$0xff] %v2865_v0  ;;  %3582 = vst [vmem:[#allocation8_spill] sm:$0xff] %v2867_v61  ;;  %v545_v11 = vsub.f32 %v2826_v59, %v3545_v18  ;;  %v2878_v12 = vsub.f32 %v310_v21, %v2865_v0  ;;  %v2884_v23 = vsub.f32 %v313_v22, %v2867_v61 }
  0x2d   : > { %2324 = vmatprep.mubr.f32.mxu0 %v496_v16  ;;  %v526_v16 = vand.u32 4294901760, %v525_v55  ;;  %3583 = vst [vmem:[#allocation9_spill] sm:$0xff] %v2886_v24  ;;  %v536_v27 = vand.u32 4294901760, %v535_v9  ;;  %v2888_v49 = vand.u32 4294901760, %v319_v1  ;;  %v2890_v18 = vand.u32 4294901760, %v322_v54  ;;  %v246_v9 = vld [vmem:[%s2669_s25 + $0xb8] sm:$0xff] }
  0x2e   : > { %2374 = vmatmul.mubr.f32.gmra.mxu1 %v2800_v36  ;;  %v325_v21 = vsel %vm260_vm0, %v244_v63, 0  ;;  %v555_v55 = vsub.f32 %v2842_v13, %v3548_v10  ;;  %v3555_v48 = vand.u32 4294901760, %v2878_v12  ;;  %v2898_v22 = vsub.f32 %v316_v47, %v2886_v24 }
  0x2f   : > { %2376 = vmatprep.mubr.f32.mxu1 %v2802_v37  ;;  %3584 = vst [vmem:[#allocation10_spill] sm:$0xff] %v2888_v49  ;;  %3585 = vst [vmem:[#allocation11_spill] sm:$0xff] %v2890_v18  ;;  %v546_v43 = vand.u32 4294901760, %v545_v11  ;;  %v565_v63 = vsub.f32 %v2859_v58, %v3552_v17  ;;  %v2908_v10 = vand.u32 4294901760, %v325_v21  ;;  %v2915_v47 = vsub.f32 %v322_v54, %v2890_v18 }
  0x30   : > { %2325 = vmatmul.mubr.f32.gmra.mxu0 %v506_v51  ;;  %v328_v51 = vsel %vm260_vm0, %v245_v62, 0  ;;  %v2912_v62 = vsub.f32 %v319_v1, %v2888_v49  ;;  %v331_v39 = vsel %vm260_vm0, %v246_v9, 0  ;;  %v556_v38 = vand.u32 4294901760, %v555_v55  ;;  %v249_v9 = vld [vmem:[%s2669_s25 + $0xd0] sm:$0xff] }
  0x31   : > { %2327 = vmatprep.mubr.f32.mxu0 %v516_v50  ;;  %v2917_v11 = vand.u32 4294901760, %v328_v51  ;;  %v575_v17 = vsub.f32 %v2878_v12, %v3555_v48  ;;  %v334_v1 = vsel %vm260_vm0, %v247_v42, 0  ;;  %v3586_v54 = vand.u32 4294901760, %v2884_v23 }
  0x32   : > { %2377 = vmatmul.mubr.f32.gmra.mxu1 %v2804_v46  ;;  %v2934_v55 = vand.u32 4294901760, %v331_v39  ;;  %v566_v48 = vand.u32 4294901760, %v565_v63  ;;  %v3566_v42 = vand.u32 4294901760, %v2915_v47  ;;  %v250_v63 = vld [vmem:[%s2669_s25 + $0xd8] sm:$0xff] }
  0x33   : > { %2379 = vmatprep.mubr.f32.mxu1 %v2828_v60  ;;  %v585_v60 = vsub.f32 %v2884_v23, %v3586_v54  ;;  %v3587_v54 = vand.u32 4294901760, %v2898_v22 }
  0x34   : > { %2328 = vmatmul.mubr.f32.gmra.mxu0 %v526_v16  ;;  %v248_v16 = vld [vmem:[%s2669_s25 + $0xc8] sm:$0xff] }
  0x35   : > { %2330 = vmatprep.mubr.f32.mxu0 %v536_v27  ;;  %v2932_v27 = vsub.f32 %v325_v21, %v2908_v10  ;;  %v595_v46 = vsub.f32 %v2898_v22, %v3587_v54  ;;  %v2945_v21 = vand.u32 4294901760, %v334_v1  ;;  %v337_v37 = vsel %vm260_vm0, %v248_v16, 0 }
  0x36   : > { %2380 = vmatmul.mubr.f32.gmra.mxu1 %v2836_v8  ;;  %v2940_v8 = vsub.f32 %v328_v51, %v2917_v11  ;;  %v586_v50 = vand.u32 4294901760, %v585_v60  ;;  %v615_v16 = vsub.f32 %v2915_v47, %v3566_v42 }
  0x37   : > { %2382 = vmatprep.mubr.f32.mxu1 %v2865_v0  ;;  %v576_v0 = vand.u32 4294901760, %v575_v17  ;;  %v3588_v17 = vand.u32 4294901760, %v2912_v62  ;;  %v596_v60 = vand.u32 4294901760, %v595_v46  ;;  %v2966_v51 = vsub.f32 %v334_v1, %v2945_v21 }
  0x38   : > { %2331 = vmatmul.mubr.f32.gmra.mxu0 %v546_v43  ;;  %v340_v43 = vsel %vm260_vm0, %v249_v9, 0 }
  0x39   : > { %2333 = vmatprep.mubr.f32.mxu0 %v556_v38  ;;  %v2954_v38 = vsub.f32 %v331_v39, %v2934_v55  ;;  %v605_v54 = vsub.f32 %v2912_v62, %v3588_v17  ;;  %v2968_v39 = vand.u32 4294901760, %v340_v43  ;;  %v3589_v17 = vand.u32 4294901760, %v2932_v27 }
  0x3a   : > { %2383 = vmatmul.mubr.f32.gmra.mxu1 %v2867_v61  ;;  %v2963_v61 = vand.u32 4294901760, %v337_v37 }
  0x3b   : > { %2385 = vmatprep.mubr.f32.mxu1 %v2886_v24  ;;  %v625_v42 = vsub.f32 %v2932_v27, %v3589_v17  ;;  %v606_v9 = vand.u32 4294901760, %v605_v54  ;;  %v616_v24 = vand.u32 4294901760, %v615_v16  ;;  %v2987_v36 = vsub.f32 %v340_v43, %v2968_v39 }
  0x3c   : > { %2334 = vmatmul.mubr.f32.gmra.mxu0 %v566_v48  ;;  %v343_v48 = vsel %vm260_vm0, %v250_v63, 0  ;;  %v2978_v46 = vsub.f32 %v337_v37, %v2963_v61  ;;  %v3590_v63 = vand.u32 4294901760, %v2940_v8 }
  0x3d   : > { %2336 = vmatprep.mubr.f32.mxu0 %v576_v0  ;;  %v644_v0 = vand.u32 4294901760, %v2954_v38  ;;  %v2980_v1 = vand.u32 4294901760, %v343_v48  ;;  %v626_v37 = vand.u32 4294901760, %v625_v42  ;;  %v3575_v17 = vand.u32 4294901760, %v2987_v36 }
  0x3e   : > { %2386 = vmatmul.mubr.f32.gmra.mxu1 %v2888_v49  ;;  %v635_v49 = vsub.f32 %v2940_v8, %v3590_v63  ;;  %v664_v54 = vand.u32 4294901760, %v2978_v46 }
  0x3f   : > { %2388 = vmatprep.mubr.f32.mxu1 %v2890_v18  ;;  %v654_v18 = vand.u32 4294901760, %v2966_v51  ;;  %v2996_v16 = vsub.f32 %v343_v48, %v2980_v1 }
  0x40   : > { %2337 = vmatmul.mubr.f32.gmra.mxu0 %v586_v50  ;;  %v645_v50 = vsub.f32 %v2954_v38, %v644_v0 }
  0x41   : > { %2339 = vmatprep.mubr.f32.mxu0 %v596_v60  ;;  %v636_v60 = vand.u32 4294901760, %v635_v49  ;;  %v655_v43 = vsub.f32 %v2966_v51, %v654_v18  ;;  %v684_v48 = vand.u32 4294901760, %v2996_v16 }
  0x42   : > { %2389 = vmatmul.mubr.f32.gmra.mxu1 %v2908_v10  ;;  %v646_v42 = vand.u32 4294901760, %v645_v50 }
  0x43   : > { %2391 = vmatprep.mubr.f32.mxu1 %v2917_v11  ;;  %v656_v49 = vand.u32 4294901760, %v655_v43 }
  0x44   : > { %2340 = vmatmul.mubr.f32.gmra.mxu0 %v606_v9  ;;  %v665_v9 = vsub.f32 %v2978_v46, %v664_v54 }
  0x45   : > { %2342 = vmatprep.mubr.f32.mxu0 %v616_v24  ;;  %v675_v24 = vsub.f32 %v2987_v36, %v3575_v17  ;;  %v3592_v17 = vand.u32 4294901760, %v2699_v31 }
  0x46   : > { %2392 = vmatmul.mubr.f32.gmra.mxu1 %v2934_v55  ;;  %v666_v63 = vand.u32 4294901760, %v665_v9  ;;  %v3594_v9 = vand.u32 4294901760, %v2709_v35 }
  0x47   : > { %2394 = vmatprep.mubr.f32.mxu1 %v2945_v21  ;;  %v676_v50 = vand.u32 4294901760, %v675_v24 }
  0x48   : > { %2343 = vmatmul.mubr.f32.gmra.mxu0 %v626_v37  ;;  %v685_v37 = vsub.f32 %v2996_v16, %v684_v48 }
  0x49   : > { %2345 = vmatprep.mubr.f32.mxu0 %v636_v60  ;;  %v3591_v60 = vand.u32 4294901760, %v2695_v30 }
  0x4a   : > { %2395 = vmatmul.mubr.f32.gmra.mxu1 %v2963_v61  ;;  %v686_v43 = vand.u32 4294901760, %v685_v37 }
  0x4b   : > { %2397 = vmatprep.mubr.f32.mxu1 %v2968_v39 }
  0x4c   : > { %2346 = vmatmul.mubr.f32.gmra.mxu0 %v646_v42  ;;  %v3593_v42 = vand.u32 4294901760, %v2706_v34 }
  0x4d   : > { %2348 = vmatprep.mubr.f32.mxu0 %v656_v49  ;;  %v3595_v49 = vand.u32 4294901760, %v2716_v40 }
  0x4e   : > { %2398 = vmatmul.mubr.f32.gmra.mxu1 %v2980_v1 }
  0x4f   : > { %2450 = vmatprep.mubr.f32.mxu1 %v3591_v60 }
  0x50   : > { %2349 = vmatmul.mubr.f32.gmra.mxu0 %v666_v63 }
  0x51   : > { %2351 = vmatprep.mubr.f32.mxu0 %v676_v50 }
  0x52   : > { %2451 = vmatmul.mubr.f32.vlgmr.msra.gmra.mxu1 %v3592_v17 }
  0x53   : > { %2539 = vmatpush3.msra.mxu1 %v2639_v2  ;;  %2453 = vmatprep.mubr.f32.mxu1 %v3593_v42  ;;  %v3596_v2 = vand.u32 4294901760, %v2719_v41 }
  0x54   : > { %2352 = vmatmul.mubr.f32.gmra.mxu0 %v686_v43  ;;  %2540 = vmatprep.subr.mxu1 %v2641_v3 }
  0x55   : > { %2404 = vmatprep.mubr.f32.mxu0 %v2695_v30  ;;  %2541 = vmatpush3.msra.mxu1 %v2641_v3  ;;  %v3597_v30 = vand.u32 4294901760, %v2746_v52  ;;  %v3598_v3 = vand.u32 4294901760, %v2749_v53 }
  0x56   : > { %2454 = vmatmul.mubr.f32.gmra.mxu1 %v3594_v9 }
  0x57   : > { %2456 = vmatprep.mubr.f32.mxu1 %v3595_v49 }
  0x58   : > { %2405 = vmatmul.mubr.f32.vlgmr.msra.gmra.mxu0 %v2699_v31  ;;  %v3600_v31 = vand.u32 4294901760, %v2794_v28 }
  0x59   : > { %2493 = vmatpush3.msra.mxu0 %v2652_v6  ;;  %2407 = vmatprep.mubr.f32.mxu0 %v2706_v34  ;;  %v3599_v6 = vand.u32 4294901760, %v2791_v4  ;;  %v3601_v34 = vand.u32 4294901760, %v2813_v56 }
  0x5a   : > { %2457 = vmatmul.mubr.f32.gmra.mxu1 %v3596_v2  ;;  %2494 = vmatprep.subr.mxu0 %v2656_v7 }
  0x5b   : > { %2459 = vmatprep.mubr.f32.mxu1 %v3597_v30  ;;  %2495 = vmatpush3.msra.mxu0 %v2656_v7  ;;  %v3602_v7 = vand.u32 4294901760, %v2816_v5 }
  0x5c   : > { %2408 = vmatmul.mubr.f32.gmra.mxu0 %v2709_v35  ;;  %v3603_v35 = vand.u32 4294901760, %v2819_v57 }
  0x5d   : > { %2410 = vmatprep.mubr.f32.mxu0 %v2716_v40  ;;  %v3604_v40 = vand.u32 4294901760, %v2826_v59 }
  0x5e   : > { %2460 = vmatmul.mubr.f32.gmra.mxu1 %v3598_v3 }
  0x5f   : > { %2462 = vmatprep.mubr.f32.mxu1 %v3599_v6 }
  0x60   : > { %2411 = vmatmul.mubr.f32.gmra.mxu0 %v2719_v41  ;;  %v3605_v41 = vand.u32 4294901760, %v2842_v13 }
  0x61   : > { %2413 = vmatprep.mubr.f32.mxu0 %v2746_v52  ;;  %v3606_v52 = vand.u32 4294901760, %v2859_v58 }
  0x62   : > { %2463 = vmatmul.mubr.f32.gmra.mxu1 %v3600_v31 }
  0x63   : > { %2465 = vmatprep.mubr.f32.mxu1 %v3601_v34 }
  0x64   : > { %2414 = vmatmul.mubr.f32.gmra.mxu0 %v2749_v53  ;;  %v3607_v53 = vand.u32 4294901760, %v2878_v12 }
  0x65   : > { %2416 = vmatprep.mubr.f32.mxu0 %v2791_v4  ;;  %v3608_v4 = vand.u32 4294901760, %v2884_v23 }
  0x66   : > { %2466 = vmatmul.mubr.f32.gmra.mxu1 %v3602_v7 }
  0x67   : > { %2468 = vmatprep.mubr.f32.mxu1 %v3603_v35 }
  0x68   : > { %2417 = vmatmul.mubr.f32.gmra.mxu0 %v2794_v28  ;;  %v3609_v28 = vand.u32 4294901760, %v2898_v22 }
  0x69   : > { %2419 = vmatprep.mubr.f32.mxu0 %v2813_v56  ;;  %v3610_v56 = vand.u32 4294901760, %v2912_v62 }
  0x6a   : > { %2469 = vmatmul.mubr.f32.gmra.mxu1 %v3604_v40 }
  0x6b   : > { %2471 = vmatprep.mubr.f32.mxu1 %v3605_v41 }
  0x6c   : > { %2420 = vmatmul.mubr.f32.gmra.mxu0 %v2816_v5  ;;  %v3611_v5 = vand.u32 4294901760, %v2915_v47 }
  0x6d   : > { %2422 = vmatprep.mubr.f32.mxu0 %v2819_v57  ;;  %v3612_v57 = vand.u32 4294901760, %v2932_v27 }
  0x6e   : > { %2472 = vmatmul.mubr.f32.gmra.mxu1 %v3606_v52 }
  0x6f   : > { %2474 = vmatprep.mubr.f32.mxu1 %v3607_v53 }
  0x70   : > { %2423 = vmatmul.mubr.f32.gmra.mxu0 %v2826_v59  ;;  %v3613_v59 = vand.u32 4294901760, %v2940_v8 }
  0x71   : > { %2425 = vmatprep.mubr.f32.mxu0 %v2842_v13 }
  0x72   : > { %2475 = vmatmul.mubr.f32.gmra.mxu1 %v3608_v4 }
  0x73   : > { %2477 = vmatprep.mubr.f32.mxu1 %v3609_v28 }
  0x74   : > { %2426 = vmatmul.mubr.f32.gmra.mxu0 %v2859_v58 }
  0x75   : > { %2428 = vmatprep.mubr.f32.mxu0 %v2878_v12  ;;  %v3614_v12 = vand.u32 4294901760, %v2987_v36 }
  0x76   : > { %2478 = vmatmul.mubr.f32.gmra.mxu1 %v3610_v56 }
  0x77   : > { %2480 = vmatprep.mubr.f32.mxu1 %v3611_v5 }
  0x78   : > { %2429 = vmatmul.mubr.f32.gmra.mxu0 %v2884_v23 }
  0x79   : > { %2431 = vmatprep.mubr.f32.mxu0 %v2898_v22 }
  0x7a   : > { %2481 = vmatmul.mubr.f32.gmra.mxu1 %v3612_v57 }
  0x7b   : > { %2483 = vmatprep.mubr.f32.mxu1 %v3613_v59 }
  0x7c   : > { %2432 = vmatmul.mubr.f32.gmra.mxu0 %v2912_v62 }
  0x7d   : > { %2434 = vmatprep.mubr.f32.mxu0 %v2915_v47 }
  0x7e   : > { %2484 = vmatmul.mubr.f32.gmra.mxu1 %v644_v0 }
  0x7f   : > { %2486 = vmatprep.mubr.f32.mxu1 %v654_v18 }
  0x80   : > { %2435 = vmatmul.mubr.f32.gmra.mxu0 %v2932_v27 }
  0x81   : > { %2437 = vmatprep.mubr.f32.mxu0 %v2940_v8  ;;  %v3166_v8 = vld [vmem:[%s3535_s3] ss:$0 sm:$0xff] }
  0x82   : > { %2487 = vmatmul.mubr.f32.gmra.mxu1 %v664_v54 }
  0x83   : > { %2489 = vmatprep.mubr.f32.mxu1 %v3614_v12 }
  0x84   : > { %2438 = vmatmul.mubr.f32.gmra.mxu0 %v2954_v38 }
  0x85   : > { %2440 = vmatprep.mubr.f32.mxu0 %v2966_v51 }
  0x86   : > { %2490 = vmatmul.mubr.f32.gmra.mxu1 %v684_v48 }
  0x87   : > { %2542 = vmatprep.mubr.f32.mxu1 %v2679_v19 }
  0x88   : > { %2441 = vmatmul.mubr.f32.gmra.mxu0 %v2978_v46 }
  0x89   : > { %2443 = vmatprep.mubr.f32.mxu0 %v2987_v36 }
  0x8a   : > { %2543 = vmatmul.mubr.f32.vlgmr.msra.gmra.mxu1 %v2681_v20 }
  0x8b   : > { %2545 = vmatprep.mubr.f32.mxu1 %v2687_v25 }
  0x8c   : > { %2444 = vmatmul.mubr.f32.gmra.mxu0 %v2996_v16 }
  0x8d   : > { %2496 = vmatprep.mubr.f32.mxu0 %v2679_v19  ;;  %v3615_v19 = vld [vmem:[#allocation2_spill] sm:$0xff] }
  0x8e   : > { %2546 = vmatmul.mubr.f32.gmra.mxu1 %v2689_v26 }
  0x8f   : > { %2548 = vmatprep.mubr.f32.mxu1 %v2701_v32 }
  0x90   : > { %2497 = vmatmul.mubr.f32.vlgmr.msra.gmra.mxu0 %v2681_v20  ;;  %v3616_v20 = vld [vmem:[#allocation3_spill] sm:$0xff] }
  0x91   : > { %2499 = vmatprep.mubr.f32.mxu0 %v2687_v25  ;;  %v3617_v25 = vld [vmem:[#allocation4_spill] sm:$0xff] }
  0x92   : > { %2549 = vmatmul.mubr.f32.gmra.mxu1 %v2703_v33 }
  0x93   : > { %2551 = vmatprep.mubr.f32.mxu1 %v2725_v44 }
  0x94   : > { %2500 = vmatmul.mubr.f32.gmra.mxu0 %v2689_v26  ;;  %v3618_v26 = vld [vmem:[#allocation5_spill] sm:$0xff] }
  0x95   : > { %2502 = vmatprep.mubr.f32.mxu0 %v2701_v32  ;;  %v3619_v32 = vld [vmem:[#allocation6_spill] sm:$0xff] }
  0x96   : > { %2552 = vmatmul.mubr.f32.gmra.mxu1 %v2727_v45 }
  0x97   : > { %2554 = vmatprep.mubr.f32.mxu1 %v2775_v14 }
  0x98   : > { %2503 = vmatmul.mubr.f32.gmra.mxu0 %v2703_v33  ;;  %v3620_v33 = vld [vmem:[#allocation7_spill] sm:$0xff] }
  0x99   : > { %2505 = vmatprep.mubr.f32.mxu0 %v2725_v44  ;;  %v3621_v44 = vld [vmem:[#allocation8_spill] sm:$0xff] }
  0x9a   : > { %2555 = vmatmul.mubr.f32.gmra.mxu1 %v2777_v15 }
  0x9b   : > { %2557 = vmatprep.mubr.f32.mxu1 %v2798_v29 }
  0x9c   : > { %2506 = vmatmul.mubr.f32.gmra.mxu0 %v2727_v45  ;;  %v3622_v45 = vld [vmem:[#allocation9_spill] sm:$0xff] }
  0x9d   : > { %2508 = vmatprep.mubr.f32.mxu0 %v2775_v14  ;;  %v3623_v14 = vld [vmem:[#allocation10_spill] sm:$0xff] }
  0x9e   : > { %2558 = vmatmul.mubr.f32.gmra.mxu1 %v3615_v19 }
  0x9f   : > { %2560 = vmatprep.mubr.f32.mxu1 %v3616_v20 }
  0xa0   : > { %2509 = vmatmul.mubr.f32.gmra.mxu0 %v2777_v15  ;;  %v3624_v15 = vld [vmem:[#allocation11_spill] sm:$0xff] }
  0xa1   : > { %2511 = vmatprep.mubr.f32.mxu0 %v2798_v29 }
  0xa2   : > { %2561 = vmatmul.mubr.f32.gmra.mxu1 %v3617_v25 }
  0xa3   : > { %2563 = vmatprep.mubr.f32.mxu1 %v3618_v26 }
  0xa4   : > { %2512 = vmatmul.mubr.f32.gmra.mxu0 %v3615_v19 }
  0xa5   : > { %2514 = vmatprep.mubr.f32.mxu0 %v3616_v20 }
  0xa6   : > { %2564 = vmatmul.mubr.f32.gmra.mxu1 %v3619_v32 }
  0xa7   : > { %2566 = vmatprep.mubr.f32.mxu1 %v3620_v33 }
  0xa8   : > { %2515 = vmatmul.mubr.f32.gmra.mxu0 %v3617_v25 }
  0xa9   : > { %2517 = vmatprep.mubr.f32.mxu0 %v3618_v26 }
  0xaa   : > { %2567 = vmatmul.mubr.f32.gmra.mxu1 %v3621_v44 }
  0xab   : > { %2569 = vmatprep.mubr.f32.mxu1 %v3622_v45 }
  0xac   : > { %2518 = vmatmul.mubr.f32.gmra.mxu0 %v3619_v32 }
  0xad   : > { %2520 = vmatprep.mubr.f32.mxu0 %v3620_v33 }
  0xae   : > { %2570 = vmatmul.mubr.f32.gmra.mxu1 %v3623_v14 }
  0xaf   : > { %2572 = vmatprep.mubr.f32.mxu1 %v3624_v15 }
  0xb0   : > { %2521 = vmatmul.mubr.f32.gmra.mxu0 %v3621_v44 }
  0xb1   : > { %2523 = vmatprep.mubr.f32.mxu0 %v3622_v45 }
  0xb2   : > { %2573 = vmatmul.mubr.f32.gmra.mxu1 %v2908_v10 }
  0xb3   : > { %2575 = vmatprep.mubr.f32.mxu1 %v2917_v11 }
  0xb4   : > { %2524 = vmatmul.mubr.f32.gmra.mxu0 %v3623_v14 }
  0xb5   : > { %2526 = vmatprep.mubr.f32.mxu0 %v3624_v15 }
  0xb6   : > { %2576 = vmatmul.mubr.f32.gmra.mxu1 %v2934_v55 }
  0xb7   : > { %2578 = vmatprep.mubr.f32.mxu1 %v2945_v21 }
  0xb8   : > { %2527 = vmatmul.mubr.f32.gmra.mxu0 %v2908_v10 }
  0xb9   : > { %2529 = vmatprep.mubr.f32.mxu0 %v2917_v11 }
  0xba   : > { %2579 = vmatmul.mubr.f32.gmra.mxu1 %v2963_v61 }
  0xbb   : > { %2581 = vmatprep.mubr.f32.mxu1 %v2968_v39 }
  0xbc   : > { %2530 = vmatmul.mubr.f32.gmra.mxu0 %v2934_v55 }
  0xbd   : > { %2532 = vmatprep.mubr.f32.mxu0 %v2945_v21 }
  0xbe   : > { %2582 = vmatmul.mubr.f32.gmra.mxu1 %v2980_v1 }
  0xc0   : > { %2533 = vmatmul.mubr.f32.gmra.mxu0 %v2963_v61 }
  0xc1   : > { %2535 = vmatprep.mubr.f32.mxu0 %v2968_v39 }
  0xc4   : > { %2536 = vmatmul.mubr.f32.gmra.mxu0 %v2980_v1 }
  0xda   : > { %v2360_v29 = vpop.f32.mrf.mxu1 }
  0xdc   : > { %v769_v36 = vpop.f32.mrf.mxu1 }
  0xde   : > { %v2363_v13 = vpop.f32.mrf.mxu1 }
  0xe0   : > { %v2314_v18 = vpop.f32.mrf.mxu0  ;;  %v781_v58 = vpop.f32.mrf.mxu1 }
  0xe1   : > { %v429_v10 = vadd.f32 %v2314_v18, %v3166_v8 }
  0xe2   : > { %v418_v23 = vpop.f32.mrf.mxu0  ;;  %v2366_v22 = vpop.f32.mrf.mxu1 }
  0xe3   : > { %v3169_v62 = vadd.f32 %v2360_v29, %v429_v10  ;;  %v419_v61 = vadd.f32 %v3166_v8, %v418_v23 }
  0xe4   : > { %v2317_v47 = vpop.f32.mrf.mxu0  ;;  %v793_v11 = vpop.f32.mrf.mxu1 }
  0xe5   : > { %v3172_v27 = vadd.f32 %v769_v36, %v419_v61  ;;  %v449_v55 = vadd.f32 %v2317_v47, %v3166_v8 }
  0xe6   : > { %v438_v21 = vpop.f32.mrf.mxu0  ;;  %v2369_v51 = vpop.f32.mrf.mxu1 }
  0xe7   : > { %v3175_v38 = vadd.f32 %v2363_v13, %v449_v55  ;;  %v439_v39 = vadd.f32 %v3166_v8, %v438_v21 }
  0xe8   : > { %v2320_v0 = vpop.f32.mrf.mxu0  ;;  %v805_v46 = vpop.f32.mrf.mxu1 }
  0xe9   : > { %v3178_v1 = vadd.f32 %v781_v58, %v439_v39  ;;  %v469_v54 = vadd.f32 %v2320_v0, %v3166_v8 }
  0xea   : > { %v458_v16 = vpop.f32.mrf.mxu0  ;;  %v2372_v17 = vpop.f32.mrf.mxu1 }
  0xeb   : > { %v3181_v48 = vadd.f32 %v2366_v22, %v469_v54  ;;  %v459_v24 = vadd.f32 %v3166_v8, %v458_v16 }
  0xec   : > { %v2323_v63 = vpop.f32.mrf.mxu0  ;;  %v817_v37 = vpop.f32.mrf.mxu1 }
  0xed   : > { %v3184_v50 = vadd.f32 %v793_v11, %v459_v24  ;;  %v489_v60 = vadd.f32 %v2323_v63, %v3166_v8 }
  0xee   : > { %v478_v43 = vpop.f32.mrf.mxu0  ;;  %v2375_v42 = vpop.f32.mrf.mxu1 }
  0xef   : > { %v3187_v9 = vadd.f32 %v2369_v51, %v489_v60  ;;  %v479_v49 = vadd.f32 %v3166_v8, %v478_v43 }
  0xf0   : > { %v2326_v2 = vpop.f32.mrf.mxu0  ;;  %v829_v30 = vpop.f32.mrf.mxu1 }
  0xf1   : > { %v3190_v3 = vadd.f32 %v805_v46, %v479_v49  ;;  %v509_v6 = vadd.f32 %v2326_v2, %v3166_v8 }
  0xf2   : > { %v498_v31 = vpop.f32.mrf.mxu0  ;;  %v2378_v34 = vpop.f32.mrf.mxu1 }
  0xf3   : > { %v3193_v7 = vadd.f32 %v2372_v17, %v509_v6  ;;  %v499_v35 = vadd.f32 %v3166_v8, %v498_v31 }
  0xf4   : > { %v2329_v40 = vpop.f32.mrf.mxu0  ;;  %v841_v41 = vpop.f32.mrf.mxu1 }
  0xf5   : > { %v3196_v52 = vadd.f32 %v817_v37, %v499_v35  ;;  %v529_v53 = vadd.f32 %v2329_v40, %v3166_v8 }
  0xf6   : > { %v518_v4 = vpop.f32.mrf.mxu0  ;;  %v2381_v28 = vpop.f32.mrf.mxu1 }
  0xf7   : > { %v3199_v56 = vadd.f32 %v2375_v42, %v529_v53  ;;  %v519_v5 = vadd.f32 %v3166_v8, %v518_v4 }
  0xf8   : > { %v2332_v57 = vpop.f32.mrf.mxu0  ;;  %v853_v59 = vpop.f32.mrf.mxu1 }
  0xf9   : > { %v3202_v12 = vadd.f32 %v829_v30, %v519_v5  ;;  %v549_v19 = vadd.f32 %v2332_v57, %v3166_v8 }
  0xfa   : > { %v538_v20 = vpop.f32.mrf.mxu0  ;;  %v2384_v25 = vpop.f32.mrf.mxu1 }
  0xfb   : > { %v3205_v26 = vadd.f32 %v2378_v34, %v549_v19  ;;  %v539_v32 = vadd.f32 %v3166_v8, %v538_v20 }
  0xfc   : > { %v2335_v33 = vpop.f32.mrf.mxu0  ;;  %v865_v44 = vpop.f32.mrf.mxu1 }
  0xfd   : > { %v3208_v45 = vadd.f32 %v841_v41, %v539_v32  ;;  %v569_v14 = vadd.f32 %v2335_v33, %v3166_v8 }
  0xfe   : > { %v558_v15 = vpop.f32.mrf.mxu0  ;;  %v2387_v29 = vpop.f32.mrf.mxu1 }
  0xff   : > { %v3211_v36 = vadd.f32 %v2381_v28, %v569_v14  ;;  %v559_v13 = vadd.f32 %v3166_v8, %v558_v15 }
 0x100   : > { %v2338_v18 = vpop.f32.mrf.mxu0  ;;  %v877_v58 = vpop.f32.mrf.mxu1 }
 0x101   : > { %v3214_v10 = vadd.f32 %v853_v59, %v559_v13  ;;  %v589_v23 = vadd.f32 %v2338_v18, %v3166_v8 }
 0x102   : > { %v578_v22 = vpop.f32.mrf.mxu0  ;;  %v2390_v61 = vpop.f32.mrf.mxu1 }
 0x103   : > { %v3217_v47 = vadd.f32 %v2384_v25, %v589_v23  ;;  %v579_v11 = vadd.f32 %v3166_v8, %v578_v22 }
 0x104   : > { %v2341_v55 = vpop.f32.mrf.mxu0  ;;  %v889_v21 = vpop.f32.mrf.mxu1 }
 0x105   : > { %v3220_v51 = vadd.f32 %v865_v44, %v579_v11  ;;  %v609_v39 = vadd.f32 %v2341_v55, %v3166_v8 }
 0x106   : > { %v598_v0 = vpop.f32.mrf.mxu0  ;;  %v2393_v46 = vpop.f32.mrf.mxu1 }
 0x107   : > { %v3223_v54 = vadd.f32 %v2387_v29, %v609_v39  ;;  %v599_v16 = vadd.f32 %v3166_v8, %v598_v0 }
 0x108   : > { %v2344_v17 = vpop.f32.mrf.mxu0  ;;  %v901_v24 = vpop.f32.mrf.mxu1 }
 0x109   : > { %3625 = vst [vmem:[#allocation2_spill] sm:$0xff] %v3223_v54  ;;  %v3226_v63 = vadd.f32 %v877_v58, %v599_v16  ;;  %v629_v37 = vadd.f32 %v2344_v17, %v3166_v8 }
 0x10a   : > { %v618_v60 = vpop.f32.mrf.mxu0  ;;  %v2396_v43 = vpop.f32.mrf.mxu1 }
 0x10b   : > { %3626 = vst [vmem:[#allocation3_spill] sm:$0xff] %v3226_v63  ;;  %v3229_v42 = vadd.f32 %v2390_v61, %v629_v37  ;;  %v619_v49 = vadd.f32 %v3166_v8, %v618_v60 }
 0x10c   : > { %v2347_v2 = vpop.f32.mrf.mxu0  ;;  %v913_v30 = vpop.f32.mrf.mxu1 }
 0x10d   : > { %3627 = vst [vmem:[#allocation4_spill] sm:$0xff] %v3229_v42  ;;  %v3232_v6 = vadd.f32 %v889_v21, %v619_v49  ;;  %v649_v31 = vadd.f32 %v2347_v2, %v3166_v8 }
 0x10e   : > { %v638_v34 = vpop.f32.mrf.mxu0  ;;  %v2399_v35 = vpop.f32.mrf.mxu1 }
 0x10f   : > { %3628 = vst [vmem:[#allocation5_spill] sm:$0xff] %v3232_v6  ;;  %v3235_v40 = vadd.f32 %v2393_v46, %v649_v31  ;;  %v639_v41 = vadd.f32 %v3166_v8, %v638_v34 }
 0x110   : > { %v2350_v53 = vpop.f32.mrf.mxu0  ;;  %v925_v4 = vpop.f32.mrf.mxu1 }
 0x111   : > { %3629 = vst [vmem:[#allocation6_spill] sm:$0xff] %v3235_v40  ;;  %v3238_v28 = vadd.f32 %v901_v24, %v639_v41  ;;  %v669_v5 = vadd.f32 %v2350_v53, %v3166_v8 }
 0x112   : > { %v658_v57 = vpop.f32.mrf.mxu0  ;;  %v3241_v59 = vpop.f32.mrf.mxu1 }
 0x113   : > { %3630 = vst [vmem:[#allocation7_spill] sm:$0xff] %v3238_v28  ;;  %v3243_v19 = vadd.f32 %v2396_v43, %v669_v5  ;;  %v659_v20 = vadd.f32 %v3166_v8, %v658_v57 }
 0x114   : > { %v2353_v25 = vpop.f32.mrf.mxu0  ;;  %v3246_v32 = vpop.f32.mrf.mxu1 }
 0x115   : > { %3631 = vst [vmem:[#allocation8_spill] sm:$0xff] %v3243_v19  ;;  %v3248_v33 = vadd.f32 %v913_v30, %v659_v20  ;;  %v689_v44 = vadd.f32 %v2353_v25, %v3166_v8 }
 0x116   : > { %v678_v14 = vpop.f32.mrf.mxu0  ;;  %v3251_v15 = vpop.f32.mrf.mxu1 }
 0x117   : > { %3632 = vst [vmem:[#allocation9_spill] sm:$0xff] %v3248_v33  ;;  %v3253_v29 = vadd.f32 %v2399_v35, %v689_v44  ;;  %v679_v13 = vadd.f32 %v3166_v8, %v678_v14 }
 0x118   : > { %v2406_v18 = vpop.f32.mrf.mxu0  ;;  %v3256_v58 = vpop.f32.mrf.mxu1 }
 0x119   : > { %3633 = vst [vmem:[#allocation10_spill] sm:$0xff] %v3253_v29  ;;  %v3258_v23 = vadd.f32 %v925_v4, %v679_v13 }
 0x11a   : > { %v1007_v22 = vpop.f32.mrf.mxu0  ;;  %v3260_v61 = vpop.f32.mrf.mxu1 }
 0x11b   : > { %3634 = vst [vmem:[#allocation11_spill] sm:$0xff] %v3258_v23 }
 0x11c   : > { %v2409_v11 = vpop.f32.mrf.mxu0  ;;  %v3262_v55 = vpop.f32.mrf.mxu1 }
 0x11e   : > { %v1021_v21 = vpop.f32.mrf.mxu0  ;;  %v3264_v39 = vpop.f32.mrf.mxu1 }
 0x120   : > { %v2412_v0 = vpop.f32.mrf.mxu0  ;;  %v3266_v46 = vpop.f32.mrf.mxu1 }
 0x122   : > { %v3268_v16 = vpop.f32.mrf.mxu0  ;;  %v3270_v8 = vpop.f32.mrf.mxu1 }
 0x124   : > { %v3272_v17 = vpop.f32.mrf.mxu0  ;;  %v3274_v24 = vpop.f32.mrf.mxu1 }
 0x126   : > { %v3276_v37 = vpop.f32.mrf.mxu0  ;;  %v3278_v60 = vpop.f32.mrf.mxu1 }
 0x128   : > { %v3280_v43 = vpop.f32.mrf.mxu0  ;;  %v3282_v49 = vpop.f32.mrf.mxu1 }
 0x12a   : > { %v3284_v2 = vpop.f32.mrf.mxu0  ;;  %v3286_v30 = vpop.f32.mrf.mxu1 }
 0x12c   : > { %v3288_v31 = vpop.f32.mrf.mxu0  ;;  %v3290_v34 = vpop.f32.mrf.mxu1 }
 0x12e   : > { %v3292_v35 = vpop.f32.mrf.mxu0  ;;  %v3294_v41 = vpop.f32.mrf.mxu1 }
 0x130   : > { %v3296_v53 = vpop.f32.mrf.mxu0  ;;  %v3298_v4 = vpop.f32.mrf.mxu1 }
 0x132   : > { %v3300_v5 = vpop.f32.mrf.mxu0  ;;  %v3302_v57 = vpop.f32.mrf.mxu1 }
 0x133   : > { %3635 = vst [vmem:[#allocation12_spill] sm:$0xff] %v3302_v57 }
 0x134   : > { %v3304_v20 = vpop.f32.mrf.mxu0  ;;  %v3306_v25 = vpop.f32.mrf.mxu1 }
 0x135   : > { %3636 = vst [vmem:[#allocation13_spill] sm:$0xff] %v3306_v25 }
 0x136   : > { %v3308_v44 = vpop.f32.mrf.mxu0  ;;  %v3310_v14 = vpop.f32.mrf.mxu1 }
 0x137   : > { %3637 = vst [vmem:[#allocation14_spill] sm:$0xff] %v3310_v14 }
 0x138   : > { %v3312_v13 = vpop.f32.mrf.mxu0  ;;  %v3314_v23 = vpop.f32.mrf.mxu1 }
 0x139   : > { %3638 = vst [vmem:[#allocation15_spill] sm:$0xff] %v3314_v23 }
 0x13a   : > { %v3316_v29 = vpop.f32.mrf.mxu0  ;;  %v3318_v33 = vpop.f32.mrf.mxu1 }
 0x13b   : > { %3639 = vst [vmem:[#allocation16_spill] sm:$0xff] %v3318_v33 }
 0x13c   : > { %v3320_v19 = vpop.f32.mrf.mxu0  ;;  %v3322_v28 = vpop.f32.mrf.mxu1 }
 0x13d   : > { %3640 = vst [vmem:[#allocation17_spill] sm:$0xff] %v3320_v19  ;;  %3641 = vst [vmem:[#allocation18_spill] sm:$0xff] %v3322_v28 }
 0x13e   : > { %v3324_v40 = vpop.f32.mrf.mxu0  ;;  %v3326_v6 = vpop.f32.mrf.mxu1 }
 0x13f   : > { %3642 = vst [vmem:[#allocation19_spill] sm:$0xff] %v3324_v40  ;;  %3643 = vst [vmem:[#allocation20_spill] sm:$0xff] %v3326_v6 }
 0x140   : > { %v3328_v42 = vpop.f32.mrf.mxu0  ;;  %v3330_v63 = vpop.f32.mrf.mxu1 }
 0x141   : > { %3644 = vst [vmem:[#allocation21_spill] sm:$0xff] %v3328_v42  ;;  %3645 = vst [vmem:[#allocation22_spill] sm:$0xff] %v3330_v63 }
 0x142   : > { %v3332_v14 = vpop.f32.mrf.mxu0  ;;  %v3334_v25 = vpop.f32.mrf.mxu1 }
 0x143   : > { %3646 = vst [vmem:[#allocation23_spill] sm:$0xff] %v3332_v14  ;;  %3647 = vst [vmem:[#allocation24_spill] sm:$0xff] %v3334_v25  ;;  %v1015_v14 = vadd.f32 %v2406_v18, %v3169_v62 }
 0x144   : > { %v3336_v23 = vpop.f32.mrf.mxu0  ;;  %v3338_v33 = vpop.f32.mrf.mxu1 }
 0x145   : > { %3648 = vst [vmem:[#allocation25_spill] sm:$0xff] %v3336_v23  ;;  %3649 = vst [vmem:[#allocation26_spill] sm:$0xff] %v3338_v33  ;;  %v1008_v23 = vadd.f32 %v1007_v22, %v3172_v27  ;;  %v1022_v27 = vadd.f32 %v1021_v21, %v3178_v1  ;;  %v1965_v1 = vld [vmem:[%s3362_s30] sm:$0xff] }
 0x146   : > { %v3340_v19 = vpop.f32.mrf.mxu0  ;;  %v3342_v28 = vpop.f32.mrf.mxu1 }
 0x147   : > { %3650 = vst [vmem:[#allocation27_spill] sm:$0xff] %v3340_v19  ;;  %3651 = vst [vmem:[#allocation28_spill] sm:$0xff] %v3342_v28  ;;  %v1280_v19 = vadd.f32 %v3241_v59, %v1015_v14  ;;  %v1029_v28 = vadd.f32 %v2409_v11, %v3175_v38  ;;  %v1966_v59 = vld [vmem:[%s3362_s30 + $0x8] sm:$0xff] }
 0x148   : > { %v3344_v40 = vpop.f32.mrf.mxu0  ;;  %v3346_v6 = vpop.f32.mrf.mxu1 }
 0x149   : > { %3652 = vst [vmem:[#allocation29_spill] sm:$0xff] %v3344_v40  ;;  %3653 = vst [vmem:[#allocation30_spill] sm:$0xff] %v3346_v6  ;;  %v1272_v6 = vadd.f32 %v3246_v32, %v1008_v23  ;;  %v1296_v11 = vadd.f32 %v3251_v15, %v1029_v28  ;;  %v1036_v40 = vadd.f32 %v3268_v16, %v3184_v50  ;;  %v1968_v28 = vld [vmem:[%s3362_s30 + $0x18] sm:$0xff] }
 0x14a   : > { %v3348_v42 = vpop.f32.mrf.mxu0  ;;  %v2544_v63 = vpop.f32.mrf.mxu1  ;;  %v1288_v32 = vadd.f32 %v3256_v58, %v1022_v27 }
 0x14b   : > { %3654 = vst [vmem:[#allocation31_spill] sm:$0xff] %v3348_v42 }
 0x14c   : > { %v3351_v54 = vpop.f32.mrf.mxu0  ;;  %v1799_v25 = vpop.f32.mrf.mxu1 }
 0x14d   : > { %3655 = vst [vmem:[#allocation32_spill] sm:$0xff] %v3351_v54 }
 0x14e   : > { %v3354_v57 = vpop.f32.mrf.mxu0  ;;  %v2547_v33 = vpop.f32.mrf.mxu1 }
 0x14f   : > { %3656 = vst [vmem:[#allocation33_spill] sm:$0xff] %v3354_v57  ;;  %v1043_v57 = vadd.f32 %v2412_v0, %v3181_v48  ;;  %v1057_v0 = vadd.f32 %v3272_v17, %v3187_v9  ;;  %v1970_v17 = vld [vmem:[%s3362_s30 + $0x28] sm:$0xff] }
 0x150   : > { %v2498_v62 = vpop.f32.mrf.mxu0  ;;  %v1811_v18 = vpop.f32.mrf.mxu1 }
 0x151   : > { %v1571_v22 = vadd.f32 %v2498_v62, %v1280_v19 }
 0x152   : > { %v1564_v14 = vpop.f32.mrf.mxu0  ;;  %v2550_v38 = vpop.f32.mrf.mxu1 }
 0x153   : > { %v1806_v54 = vadd.f32 %v2544_v63, %v1571_v22  ;;  %v1565_v42 = vadd.f32 %v1564_v14, %v1272_v6  ;;  %v1312_v6 = vadd.f32 %v3260_v61, %v1043_v57  ;;  %v1050_v61 = vadd.f32 %v3276_v37, %v3190_v3 }
 0x154   : > { %v2501_v19 = vpop.f32.mrf.mxu0  ;;  %v1823_v48 = vpop.f32.mrf.mxu1  ;;  %v1064_v37 = vadd.f32 %v3284_v2, %v3196_v52  ;;  %v1085_v52 = vadd.f32 %v3288_v31, %v3199_v56  ;;  %v1099_v31 = vadd.f32 %v3296_v53, %v3205_v26 }
 0x155   : > { %v1994_v23 = vadd.f32 %v1966_v59, %v1806_v54  ;;  %v1800_v21 = vadd.f32 %v1799_v25, %v1565_v42  ;;  %v1583_v63 = vadd.f32 %v2501_v19, %v1296_v11  ;;  %v1304_v54 = vadd.f32 %v3262_v55, %v1036_v40  ;;  %v1967_v42 = vld [vmem:[%s3362_s30 + $0x10] sm:$0xff] }
 0x156   : > { %v1576_v50 = vpop.f32.mrf.mxu0  ;;  %v2553_v15 = vpop.f32.mrf.mxu1  ;;  %v1328_v40 = vadd.f32 %v3264_v39, %v1057_v0 }
 0x157   : > { %2022 = vst.msk [vmem:[%s3375_s7 + $0x8] sm:$0xff] %vm260_vm0, %v1994_v23  ;;  %v1993_v16 = vadd.f32 %v1965_v1, %v1800_v21  ;;  %v1818_v62 = vadd.f32 %v2547_v33, %v1583_v63  ;;  %v1577_v22 = vadd.f32 %v1576_v50, %v1288_v32  ;;  %v1071_v33 = vadd.f32 %v3280_v43, %v3193_v7 }
 0x158   : > { %v2504_v58 = vpop.f32.mrf.mxu0  ;;  %v1835_v25 = vpop.f32.mrf.mxu1  ;;  %v1320_v7 = vadd.f32 %v3266_v46, %v1050_v61 }
 0x159   : > { %2021 = vst.msk [vmem:[%s3375_s7] sm:$0xff] %vm260_vm0, %v1993_v16  ;;  %v1996_v57 = vadd.f32 %v1968_v28, %v1818_v62  ;;  %v1812_v27 = vadd.f32 %v1811_v18, %v1577_v22  ;;  %v1595_v9 = vadd.f32 %v2504_v58, %v1312_v6  ;;  %v1969_v18 = vld [vmem:[%s3362_s30 + $0x20] sm:$0xff]  ;;  %v1344_v23 = vadd.f32 %v3270_v8, %v1071_v33  ;;  %v1976_v33 = vld [vmem:[%s3362_s30 + $0x58] sm:$0xff] }
 0x15a   : > { %v1588_v59 = vpop.f32.mrf.mxu0  ;;  %v2556_v14 = vpop.f32.mrf.mxu1  ;;  %v1336_v28 = vadd.f32 %v3274_v24, %v1064_v37  ;;  %v1078_v8 = vadd.f32 %v3292_v35, %v3202_v12  ;;  %v1360_v24 = vadd.f32 %v3278_v60, %v1085_v52  ;;  %v1092_v35 = vadd.f32 %v3300_v5, %v3208_v45 }
 0x15b   : > { %2024 = vst.msk [vmem:[%s3375_s7 + $0x18] sm:$0xff] %vm260_vm0, %v1996_v57  ;;  %v1995_v55 = vadd.f32 %v1967_v42, %v1812_v27  ;;  %v1830_v11 = vadd.f32 %v2550_v38, %v1595_v9  ;;  %v1589_v3 = vadd.f32 %v1588_v59, %v1304_v54  ;;  %v1972_v38 = vld [vmem:[%s3362_s30 + $0x38] sm:$0xff]  ;;  %v1376_v9 = vadd.f32 %v3286_v30, %v1099_v31  ;;  %v3661_v31 = vld [vmem:[#allocation3_spill] sm:$0xff] }
 0x15c   : > { %v2507_v1 = vpop.f32.mrf.mxu0  ;;  %v1847_v19 = vpop.f32.mrf.mxu1  ;;  %v1352_v26 = vadd.f32 %v3282_v49, %v1078_v8  ;;  %v1113_v45 = vadd.f32 %v3304_v20, %v3211_v36  ;;  %v1106_v30 = vadd.f32 %v3308_v44, %v3214_v10  ;;  %v1127_v20 = vadd.f32 %v3312_v13, %v3217_v47 }
 0x15d   : > { %2023 = vst.msk [vmem:[%s3375_s7 + $0x10] sm:$0xff] %vm260_vm0, %v1995_v55  ;;  %v1998_v43 = vadd.f32 %v1970_v17, %v1830_v11  ;;  %v1824_v32 = vadd.f32 %v1823_v48, %v1589_v3  ;;  %v1607_v39 = vadd.f32 %v2507_v1, %v1328_v40  ;;  %v1971_v48 = vld [vmem:[%s3362_s30 + $0x30] sm:$0xff]  ;;  %v1368_v40 = vadd.f32 %v3290_v34, %v1092_v35  ;;  %v1978_v1 = vld [vmem:[%s3362_s30 + $0x68] sm:$0xff] }
 0x15e   : > { %v1600_v21 = vpop.f32.mrf.mxu0  ;;  %v2559_v63 = vpop.f32.mrf.mxu1  ;;  %v1975_v55 = vld [vmem:[%s3362_s30 + $0x50] sm:$0xff]  ;;  %v1392_v34 = vadd.f32 %v3294_v41, %v1113_v45  ;;  %v1120_v44 = vadd.f32 %v3316_v29, %v3220_v51  ;;  %v1384_v47 = vadd.f32 %v3298_v4, %v1106_v30  ;;  %v1981_v45 = vld [vmem:[%s3362_s30 + $0x80] sm:$0xff] }
 0x15f   : > { %2026 = vst.msk [vmem:[%s3375_s7 + $0x28] sm:$0xff] %vm260_vm0, %v1998_v43  ;;  %v1997_v2 = vadd.f32 %v1969_v18, %v1824_v32  ;;  %v1842_v6 = vadd.f32 %v2553_v15, %v1607_v39  ;;  %v1601_v46 = vadd.f32 %v1600_v21, %v1320_v7  ;;  %v1974_v15 = vld [vmem:[%s3362_s30 + $0x48] sm:$0xff]  ;;  %v1977_v39 = vld [vmem:[%s3362_s30 + $0x60] sm:$0xff]  ;;  %v3669_v30 = vld [vmem:[#allocation16_spill] sm:$0xff] }
 0x160   : > { %v2510_v50 = vpop.f32.mrf.mxu0  ;;  %v1859_v0 = vpop.f32.mrf.mxu1 }
 0x161   : > { %2025 = vst.msk [vmem:[%s3375_s7 + $0x20] sm:$0xff] %vm260_vm0, %v1997_v2  ;;  %v2000_v16 = vadd.f32 %v1972_v38, %v1842_v6  ;;  %v1836_v62 = vadd.f32 %v1835_v25, %v1601_v46  ;;  %v1619_v56 = vadd.f32 %v2510_v50, %v1344_v23  ;;  %v1973_v25 = vld [vmem:[%s3362_s30 + $0x40] sm:$0xff]  ;;  %v1980_v2 = vld [vmem:[%s3362_s30 + $0x78] sm:$0xff] }
 0x162   : > { %v1612_v22 = vpop.f32.mrf.mxu0  ;;  %v2562_v54 = vpop.f32.mrf.mxu1 }
 0x163   : > { %2028 = vst.msk [vmem:[%s3375_s7 + $0x38] sm:$0xff] %vm260_vm0, %v2000_v16  ;;  %v1999_v42 = vadd.f32 %v1971_v48, %v1836_v62  ;;  %v1854_v58 = vadd.f32 %v2556_v14, %v1619_v56  ;;  %v1613_v12 = vadd.f32 %v1612_v22, %v1336_v28  ;;  %v3658_v28 = vld [vmem:[#allocation2_spill] sm:$0xff]  ;;  %v3659_v48 = vld [vmem:[#allocation17_spill] sm:$0xff]  ;;  %v1979_v16 = vld [vmem:[%s3362_s30 + $0x70] sm:$0xff] }
 0x164   : > { %v2513_v61 = vpop.f32.mrf.mxu0  ;;  %v1871_v57 = vpop.f32.mrf.mxu1  ;;  %v1141_v51 = vadd.f32 %v3659_v48, %v3658_v28 }
 0x165   : > { %2027 = vst.msk [vmem:[%s3375_s7 + $0x30] sm:$0xff] %vm260_vm0, %v1999_v42  ;;  %v2002_v53 = vadd.f32 %v1974_v15, %v1854_v58  ;;  %v1848_v27 = vadd.f32 %v1847_v19, %v1613_v12  ;;  %v1631_v60 = vadd.f32 %v2513_v61, %v1360_v24  ;;  %v3662_v15 = vld [vmem:[#allocation19_spill] sm:$0xff]  ;;  %v3663_v58 = vld [vmem:[#allocation4_spill] sm:$0xff]  ;;  %v3664_v12 = vld [vmem:[#allocation21_spill] sm:$0xff] }
 0x166   : > { %v1624_v17 = vpop.f32.mrf.mxu0  ;;  %v2565_v59 = vpop.f32.mrf.mxu1  ;;  %v1134_v22 = vadd.f32 %v3662_v15, %v3661_v31  ;;  %v1155_v35 = vadd.f32 %v3664_v12, %v3663_v58  ;;  %v1985_v31 = vld [vmem:[%s3362_s30 + $0xa0] sm:$0xff]  ;;  %v3681_v12 = vld [vmem:[#allocation24_spill] sm:$0xff] }
 0x167   : > { %2030 = vst.msk [vmem:[%s3375_s7 + $0x48] sm:$0xff] %vm260_vm0, %v2002_v53  ;;  %v2001_v5 = vadd.f32 %v1973_v25, %v1848_v27  ;;  %v1866_v14 = vadd.f32 %v2559_v63, %v1631_v60  ;;  %v1625_v49 = vadd.f32 %v1624_v17, %v1352_v26  ;;  %v3657_v63 = vld [vmem:[#allocation12_spill] sm:$0xff]  ;;  %v1982_v25 = vld [vmem:[%s3362_s30 + $0x88] sm:$0xff]  ;;  %v3665_v26 = vld [vmem:[#allocation14_spill] sm:$0xff] }
 0x168   : > { %v2516_v11 = vpop.f32.mrf.mxu0  ;;  %v1883_v3 = vpop.f32.mrf.mxu1  ;;  %v1408_v52 = vadd.f32 %v3657_v63, %v1127_v20  ;;  %v1424_v53 = vadd.f32 %v3665_v26, %v1141_v51  ;;  %v3667_v17 = vld [vmem:[#allocation23_spill] sm:$0xff]  ;;  %v3677_v51 = vld [vmem:[#allocation20_spill] sm:$0xff] }
 0x169   : > { %2029 = vst.msk [vmem:[%s3375_s7 + $0x40] sm:$0xff] %vm260_vm0, %v2001_v5  ;;  %v2004_v37 = vadd.f32 %v1976_v33, %v1866_v14  ;;  %v1860_v18 = vadd.f32 %v1859_v0, %v1625_v49  ;;  %v1643_v36 = vadd.f32 %v2516_v11, %v1376_v9  ;;  %v3660_v0 = vld [vmem:[#allocation13_spill] sm:$0xff]  ;;  %v3668_v49 = vld [vmem:[#allocation15_spill] sm:$0xff]  ;;  %v3683_v26 = vld [vmem:[#allocation32_spill] sm:$0xff] }
 0x16a   : > { %v1636_v19 = vpop.f32.mrf.mxu0  ;;  %v2568_v7 = vpop.f32.mrf.mxu1  ;;  %v1400_v8 = vadd.f32 %v3660_v0, %v1120_v44  ;;  %v3666_v33 = vld [vmem:[#allocation5_spill] sm:$0xff] }
 0x16b   : > { %2032 = vst.msk [vmem:[%s3375_s7 + $0x58] sm:$0xff] %vm260_vm0, %v2004_v37  ;;  %v2003_v43 = vadd.f32 %v1975_v55, %v1860_v18  ;;  %v1878_v32 = vadd.f32 %v2562_v54, %v1643_v36  ;;  %v1637_v10 = vadd.f32 %v1636_v19, %v1368_v40  ;;  %v1416_v40 = vadd.f32 %v3668_v49, %v1134_v22  ;;  %v1984_v18 = vld [vmem:[%s3362_s30 + $0x98] sm:$0xff]  ;;  %v3680_v22 = vld [vmem:[#allocation22_spill] sm:$0xff] }
 0x16c   : > { %v2519_v23 = vpop.f32.mrf.mxu0  ;;  %v1895_v38 = vpop.f32.mrf.mxu1  ;;  %v1440_v37 = vadd.f32 %v3669_v30, %v1155_v35  ;;  %v3671_v19 = vld [vmem:[#allocation25_spill] sm:$0xff]  ;;  %v1990_v30 = vld [vmem:[%s3362_s30 + $0xc8] sm:$0xff] }
 0x16d   : > { %2031 = vst.msk [vmem:[%s3375_s7 + $0x50] sm:$0xff] %vm260_vm0, %v2003_v43  ;;  %v2006_v13 = vadd.f32 %v1978_v1, %v1878_v32  ;;  %v1872_v21 = vadd.f32 %v1871_v57, %v1637_v10  ;;  %v1655_v41 = vadd.f32 %v2519_v23, %v1392_v34  ;;  %v3670_v1 = vld [vmem:[#allocation6_spill] sm:$0xff]  ;;  %v3686_v49 = vld [vmem:[#allocation33_spill] sm:$0xff] }
 0x16e   : > { %v1648_v6 = vpop.f32.mrf.mxu0  ;;  %v2571_v46 = vpop.f32.mrf.mxu1  ;;  %v3672_v10 = vld [vmem:[#allocation18_spill] sm:$0xff] }
 0x16f   : > { %2034 = vst.msk [vmem:[%s3375_s7 + $0x68] sm:$0xff] %vm260_vm0, %v2006_v13  ;;  %v2005_v29 = vadd.f32 %v1977_v39, %v1872_v21  ;;  %v1890_v50 = vadd.f32 %v2565_v59, %v1655_v41  ;;  %v1649_v4 = vadd.f32 %v1648_v6, %v1384_v47  ;;  %v1148_v59 = vadd.f32 %v3667_v17, %v3666_v33  ;;  %v1983_v39 = vld [vmem:[%s3362_s30 + $0x90] sm:$0xff]  ;;  %v3673_v47 = vld [vmem:[#allocation7_spill] sm:$0xff]  ;;  %v3676_v6 = vld [vmem:[#allocation29_spill] sm:$0xff] }
 0x170   : > { %v2522_v62 = vpop.f32.mrf.mxu0  ;;  %v1907_v56 = vpop.f32.mrf.mxu1  ;;  %v3674_v13 = vld [vmem:[#allocation27_spill] sm:$0xff]  ;;  %v3684_v33 = vld [vmem:[#allocation26_spill] sm:$0xff] }
 0x171   : > { %2033 = vst.msk [vmem:[%s3375_s7 + $0x60] sm:$0xff] %vm260_vm0, %v2005_v29  ;;  %v2008_v54 = vadd.f32 %v1980_v2, %v1890_v50  ;;  %v1884_v24 = vadd.f32 %v1883_v3, %v1649_v4  ;;  %v1667_v42 = vadd.f32 %v2522_v62, %v1408_v52  ;;  %v1432_v44 = vadd.f32 %v3672_v10, %v1148_v59  ;;  %v3675_v2 = vld [vmem:[#allocation8_spill] sm:$0xff] }
 0x172   : > { %v1660_v61 = vpop.f32.mrf.mxu0  ;;  %v2574_v57 = vpop.f32.mrf.mxu1  ;;  %v1162_v21 = vadd.f32 %v3674_v13, %v3673_v47  ;;  %v1183_v28 = vadd.f32 %v3676_v6, %v3675_v2  ;;  %v1987_v59 = vld [vmem:[%s3362_s30 + $0xb0] sm:$0xff] }
 0x173   : > { %2036 = vst.msk [vmem:[%s3375_s7 + $0x78] sm:$0xff] %vm260_vm0, %v2008_v54  ;;  %v2007_v27 = vadd.f32 %v1979_v16, %v1884_v24  ;;  %v1902_v60 = vadd.f32 %v2568_v7, %v1667_v42  ;;  %v1661_v9 = vadd.f32 %v1660_v61, %v1400_v8  ;;  %v1169_v7 = vadd.f32 %v3671_v19, %v3670_v1  ;;  %v3678_v8 = vld [vmem:[#allocation9_spill] sm:$0xff]  ;;  %v3679_v16 = vld [vmem:[#allocation31_spill] sm:$0xff] }
 0x174   : > { %v2525_v5 = vpop.f32.mrf.mxu0  ;;  %v1919_v14 = vpop.f32.mrf.mxu1  ;;  %v1176_v62 = vadd.f32 %v3679_v16, %v3678_v8  ;;  %v1448_v54 = vadd.f32 %v3680_v22, %v1162_v21  ;;  %v1472_v35 = vadd.f32 %v3681_v12, %v1183_v28 }
 0x175   : > { %2035 = vst.msk [vmem:[%s3375_s7 + $0x70] sm:$0xff] %vm260_vm0, %v2007_v27  ;;  %v2010_v55 = vadd.f32 %v1982_v25, %v1902_v60  ;;  %v1896_v11 = vadd.f32 %v1895_v38, %v1661_v9  ;;  %v1679_v3 = vadd.f32 %v2525_v5, %v1424_v53  ;;  %v1456_v29 = vadd.f32 %v3677_v51, %v1169_v7  ;;  %v1988_v25 = vld [vmem:[%s3362_s30 + $0xb8] sm:$0xff]  ;;  %v1989_v7 = vld [vmem:[%s3362_s30 + $0xc0] sm:$0xff] }
 0x176   : > { %v1672_v36 = vpop.f32.mrf.mxu0  ;;  %v2577_v20 = vpop.f32.mrf.mxu1  ;;  %v1464_v17 = vadd.f32 %v3684_v33, %v1176_v62 }
 0x177   : > { %2038 = vst.msk [vmem:[%s3375_s7 + $0x88] sm:$0xff] %vm260_vm0, %v2010_v55  ;;  %v2009_v34 = vadd.f32 %v1981_v45, %v1896_v11  ;;  %v1914_v43 = vadd.f32 %v2571_v46, %v1679_v3  ;;  %v1673_v32 = vadd.f32 %v1672_v36, %v1416_v40  ;;  %v1986_v46 = vld [vmem:[%s3362_s30 + $0xa8] sm:$0xff] }
 0x178   : > { %v2528_v23 = vpop.f32.mrf.mxu0  ;;  %v1931_v38 = vpop.f32.mrf.mxu1 }
 0x179   : > { %2037 = vst.msk [vmem:[%s3375_s7 + $0x80] sm:$0xff] %vm260_vm0, %v2009_v34  ;;  %v2012_v41 = vadd.f32 %v1984_v18, %v1914_v43  ;;  %v1908_v63 = vadd.f32 %v1907_v56, %v1673_v32  ;;  %v1691_v52 = vadd.f32 %v2528_v23, %v1440_v37  ;;  %v3687_v18 = vld [vmem:[#allocation28_spill] sm:$0xff]  ;;  %v3688_v32 = vld [vmem:[#allocation30_spill] sm:$0xff] }
 0x17a   : > { %v1684_v48 = vpop.f32.mrf.mxu0  ;;  %v2580_v15 = vpop.f32.mrf.mxu1 }
 0x17b   : > { %2040 = vst.msk [vmem:[%s3375_s7 + $0x98] sm:$0xff] %vm260_vm0, %v2012_v41  ;;  %v2011_v50 = vadd.f32 %v1983_v39, %v1908_v63  ;;  %v1926_v4 = vadd.f32 %v2574_v57, %v1691_v52  ;;  %v1685_v0 = vadd.f32 %v1684_v48, %v1432_v44  ;;  %v3682_v57 = vld [vmem:[#allocation10_spill] sm:$0xff]  ;;  %v1991_v52 = vld [vmem:[%s3362_s30 + $0xd0] sm:$0xff] }
 0x17c   : > { %v2531_v56 = vpop.f32.mrf.mxu0  ;;  %v1197_v53 = vadd.f32 %v3683_v26, %v3682_v57  ;;  %v1943_v5 = vpop.f32.mrf.mxu1 }
 0x17d   : > { %2039 = vst.msk [vmem:[%s3375_s7 + $0x90] sm:$0xff] %vm260_vm0, %v2011_v50  ;;  %v2014_v24 = vadd.f32 %v1986_v46, %v1926_v4  ;;  %v1920_v42 = vadd.f32 %v1919_v14, %v1685_v0  ;;  %v1703_v58 = vadd.f32 %v2531_v56, %v1456_v29  ;;  %v3685_v14 = vld [vmem:[#allocation11_spill] sm:$0xff] }
 0x17e   : > { %v1696_v61 = vpop.f32.mrf.mxu0  ;;  %v1190_v40 = vadd.f32 %v3686_v49, %v3685_v14  ;;  %v1488_v36 = vadd.f32 %v3687_v18, %v1197_v53  ;;  %v2583_v43 = vpop.f32.mrf.mxu1 }
 0x17f   : > { %2042 = vst.msk [vmem:[%s3375_s7 + $0xa8] sm:$0xff] %vm260_vm0, %v2014_v24  ;;  %v2013_v27 = vadd.f32 %v1985_v31, %v1920_v42  ;;  %v1938_v60 = vadd.f32 %v2577_v20, %v1703_v58  ;;  %v1697_v9 = vadd.f32 %v1696_v61, %v1448_v54 }
 0x180   : > { %v2534_v45 = vpop.f32.mrf.mxu0  ;;  %v1480_v10 = vadd.f32 %v3688_v32, %v1190_v40  ;;  %v1955_v63 = vpop.f32.mrf.mxu1 }
 0x181   : > { %2041 = vst.msk [vmem:[%s3375_s7 + $0xa0] sm:$0xff] %vm260_vm0, %v2013_v27  ;;  %v2016_v55 = vadd.f32 %v1988_v25, %v1938_v60  ;;  %v1932_v11 = vadd.f32 %v1931_v38, %v1697_v9  ;;  %v1715_v3 = vadd.f32 %v2534_v45, %v1472_v35  ;;  %v1992_v38 = vld [vmem:[%s3362_s30 + $0xd8] sm:$0xff] }
 0x182   : > { %v1708_v37 = vpop.f32.mrf.mxu0 }
 0x183   : > { %2044 = vst.msk [vmem:[%s3375_s7 + $0xb8] sm:$0xff] %vm260_vm0, %v2016_v55  ;;  %v2015_v20 = vadd.f32 %v1987_v59, %v1932_v11  ;;  %v1950_v1 = vadd.f32 %v2580_v15, %v1715_v3  ;;  %v1709_v19 = vadd.f32 %v1708_v37, %v1464_v17 }
 0x184   : > { %v2537_v34 = vpop.f32.mrf.mxu0 }
 0x185   : > { %2043 = vst.msk [vmem:[%s3375_s7 + $0xb0] sm:$0xff] %vm260_vm0, %v2015_v20  ;;  %v2018_v44 = vadd.f32 %v1990_v30, %v1950_v1  ;;  %v1944_v39 = vadd.f32 %v1943_v5, %v1709_v19  ;;  %v1727_v23 = vadd.f32 %v2537_v34, %v1488_v36 }
 0x186   : > { %v1720_v47 = vpop.f32.mrf.mxu0 }
 0x187   : > { %2046 = vst.msk [vmem:[%s3375_s7 + $0xc8] sm:$0xff] %vm260_vm0, %v2018_v44  ;;  %v2017_v13 = vadd.f32 %v1989_v7, %v1944_v39  ;;  %v1962_v21 = vadd.f32 %v2583_v43, %v1727_v23  ;;  %v1721_v41 = vadd.f32 %v1720_v47, %v1480_v10 }
 0x189   : > { %2045 = vst.msk [vmem:[%s3375_s7 + $0xc0] sm:$0xff] %vm260_vm0, %v2017_v13  ;;  %v2020_v2 = vadd.f32 %v1992_v38, %v1962_v21  ;;  %v1956_v6 = vadd.f32 %v1955_v63, %v1721_v41 }
 0x18b   : > { %2048 = vst.msk [vmem:[%s3375_s7 + $0xd8] sm:$0xff] %vm260_vm0, %v2020_v2  ;;  %v2019_v28 = vadd.f32 %v1991_v52, %v1956_v6 }
 0x18d   : > { %2047 = vst.msk [vmem:[%s3375_s7 + $0xd0] sm:$0xff] %vm260_vm0, %v2019_v28 }
 0x18e PF: > { %s14_s15 = sadd.s32 1, %s2598_s15  }
 0x18f   : > { %p11_p4 = scmp.ge.s32.totalorder %s14_s15, 4  }
 0x191   :  { %13 = sbr.rel (!%p11_p4) target bundleno = 1 (0x1), region = 69 }

// kernel: fno_forward.11
= control target key start
LH: loop header
LB: loop body
LE: loop exit
PB: predicated region body
PF: predicated region fallthrough
CT: control target
= control target key end

     0   :  { %s4184_s20 = smov 0   ;;  %s5823_s0 = inlined_call_operand.vmem [shape: f32[256,16], index: 0, kind: input, shape index: {}]   ;;  %s5824_s1 = inlined_call_operand.vmem [shape: f32[16,128], index: 1, kind: input, shape index: {}]   ;;  %s5825_s2 = inlined_call_operand.vmem [shape: f32[1,128], index: 2, kind: input, shape index: {}]   ;;  %s5826_s3 = inlined_call_operand.vmem [shape: f32[128,1], index: 3, kind: input, shape index: {}]   ;;  %s5827_s4 = inlined_call_operand.<no memory space> [shape: f32[1,1], index: 4, kind: input, shape index: {}]   ;;  %s5828_s5 = inlined_call_operand.vmem [shape: f32[256,1], index: 5, kind: output, shape index: {}]  }
   0x1   :  { %v10_v0 = vstv %s5827_s4 }
   0x2   :  { %11 = vst [vmem:[#allocation2] sm:$0x1] %v10_v0 }
   0x3 LB: > { %s3222_s21 = sadd.s32 4294967295, %s4149_s20   ;;  %p3226_p0 = scmp.ge.s32.totalorder %s4149_s20, 1  ;;  %s4149_s20 = sphi %s4184_s20, %s17_s20  }
   0x4   : > { %p190_p1 = scmp.lt.s32.totalorder %s4149_s20, 3 }
   0x6   : > { %p191_p2 = pnand %p3226_p0, %p190_p1 }
   0x8   : > { %194 = sbr.rel (%p191_p2) target bundleno = 720 (0x2d0), region = 40 }
   0xd   : > { %v247_v1 = vld [vmem:[%s5824_s1 + $0x8] sm:$0xff]  ;;  %v246_v2 = vld [vmem:[%s5824_s1] sm:$0xff]  ;;  %s3227_s25 = sshll.u32 %s3222_s21, 4  ;;  %vm255_vm0 = vcmask 130048  }
   0xe   : > { %v4198_v3 = vand.u32 4294901760, %v247_v1  ;;  %v4200_v4 = vand.u32 4294901760, %v246_v2  ;;  %p219_p3 = scmp.lt.s32.totalorder %s3227_s25, 31 }
  0x10   : > { %3567 = vmatprep.subr.mxu0 %v4198_v3  ;;  %v4204_v5 = vsub.f32 %v247_v1, %v4198_v3  ;;  %v4207_v6 = vsub.f32 %v246_v2, %v4200_v4  ;;  %s6092_s25 = smov (!%p219_p3, %s3227_s25), 31 }
  0x11   : > { %3568 = vmatpush3.msra.mxu0 %v4198_v3  ;;  %s3228_s26 = sshll.u32 %s6092_s25, 3 }
  0x12   : > { %v4213_v7 = vand.u32 4294901760, %v4204_v5  ;;  %3569 = vmatprep.subr.mxu0 %v4200_v4  ;;  %v4217_v8 = vand.u32 4294901760, %v4207_v6  ;;  %s4226_s29 = scalar_lea.vmem %s5823_s0, %s3228_s26  ;;  %s5736_s18 = scalar_lea.vmem %s5828_s5, %s3228_s26 }
  0x13   : > { %3570 = vmatpush3.msra.mxu0 %v4200_v4  ;;  %v230_v11 = vld [vmem:[%s4226_s29] sm:$0xff]  ;;  %v231_v12 = vld [vmem:[%s4226_s29 + $0x8] sm:$0xff]  ;;  %v232_v13 = vld [vmem:[%s4226_s29 + $0x10] sm:$0xff] }
  0x14   : > { %v563_v9 = vsub.f32 %v4204_v5, %v4213_v7  ;;  %v570_v10 = vsub.f32 %v4207_v6, %v4217_v8  ;;  %3623 = vmatprep.subr.mxu0 %v4204_v5  ;;  %v257_v14 = vsel %vm255_vm0, %v230_v11, 0  ;;  %v260_v15 = vsel %vm255_vm0, %v231_v12, 0  ;;  %v233_v17 = vld [vmem:[%s4226_s29 + $0x18] sm:$0xff]  ;;  %v234_v18 = vld [vmem:[%s4226_s29 + $0x20] sm:$0xff]  ;;  %v235_v19 = vld [vmem:[%s4226_s29 + $0x28] sm:$0xff] }
  0x15   : > { %v263_v16 = vsel %vm255_vm0, %v232_v13, 0  ;;  %v4242_v22 = vand.u32 4294901760, %v257_v14  ;;  %v4244_v23 = vand.u32 4294901760, %v260_v15  ;;  %v236_v24 = vld [vmem:[%s4226_s29 + $0x30] sm:$0xff]  ;;  %v237_v25 = vld [vmem:[%s4226_s29 + $0x38] sm:$0xff]  ;;  %v266_v27 = vsel %vm255_vm0, %v233_v17, 0 }
  0x16   : > { %v564_v20 = vand.u32 4294901760, %v563_v9  ;;  %v571_v21 = vand.u32 4294901760, %v570_v10  ;;  %v4248_v26 = vand.u32 4294901760, %v263_v16  ;;  %v269_v28 = vsel %vm255_vm0, %v234_v18, 0  ;;  %v238_v54 = vld [vmem:[%s4226_s29 + $0x40] sm:$0xff]  ;;  %v239_v55 = vld [vmem:[%s4226_s29 + $0x48] sm:$0xff] }
  0x17   : > { %v272_v29 = vsel %vm255_vm0, %v235_v19, 0  ;;  %v4254_v30 = vsub.f32 %v257_v14, %v4242_v22  ;;  %3599 = vmatprep.mubr.f32.mxu1 %v4242_v22  ;;  %v4258_v31 = vsub.f32 %v260_v15, %v4244_v23  ;;  %v4260_v32 = vand.u32 4294901760, %v266_v27  ;;  %v240_v0 = vld [vmem:[%s4226_s29 + $0x50] sm:$0xff]  ;;  %v241_v1 = vld [vmem:[%s4226_s29 + $0x58] sm:$0xff]  ;;  %v242_v2 = vld [vmem:[%s4226_s29 + $0x60] sm:$0xff] }
  0x18   : > { %3595 = vmatprep.subr.mxu1 %v564_v20  ;;  %v4262_v33 = vand.u32 4294901760, %v269_v28  ;;  %v4265_v34 = vsub.f32 %v263_v16, %v4248_v26  ;;  %v4267_v35 = vand.u32 4294901760, %v272_v29  ;;  %v275_v36 = vsel %vm255_vm0, %v236_v24, 0  ;;  %v243_v16 = vld [vmem:[%s4226_s29 + $0x68] sm:$0xff] }
  0x19   : > { %3596 = vmatpush3.msra.mxu1 %v564_v20  ;;  %v278_v37 = vsel %vm255_vm0, %v237_v25, 0  ;;  %v373_v38 = vand.u32 4294901760, %v4254_v30  ;;  %v383_v39 = vand.u32 4294901760, %v4258_v31  ;;  %v4274_v40 = vsub.f32 %v266_v27, %v4260_v32 }
  0x1a   : > { %3597 = vmatprep.subr.mxu1 %v571_v21  ;;  %v4277_v41 = vsub.f32 %v269_v28, %v4262_v33  ;;  %v393_v42 = vand.u32 4294901760, %v4265_v34  ;;  %v4281_v43 = vsub.f32 %v272_v29, %v4267_v35  ;;  %v4283_v44 = vand.u32 4294901760, %v275_v36 }
  0x1b   : > { %3598 = vmatpush3.msra.mxu1 %v571_v21  ;;  %v4285_v45 = vand.u32 4294901760, %v278_v37  ;;  %v374_v46 = vsub.f32 %v4254_v30, %v373_v38  ;;  %v384_v47 = vsub.f32 %v4258_v31, %v383_v39  ;;  %v403_v48 = vand.u32 4294901760, %v4274_v40  ;;  %v244_v21 = vld [vmem:[%s4226_s29 + $0x70] sm:$0xff] }
  0x1c   : > { %3600 = vmatmul.mubr.f32.vlgmr.msra.gmra.mxu1 %v4244_v23  ;;  %3651 = vmatprep.subr.mxu1 %v4198_v3  ;;  %v413_v49 = vand.u32 4294901760, %v4277_v41  ;;  %v394_v50 = vsub.f32 %v4265_v34, %v393_v42  ;;  %v423_v51 = vand.u32 4294901760, %v4281_v43  ;;  %v4304_v52 = vsub.f32 %v275_v36, %v4283_v44 }
  0x1d   : > { %3652 = vmatpush3.msra.mxu1 %v4198_v3  ;;  %3602 = vmatprep.mubr.f32.mxu1 %v4248_v26  ;;  %v4307_v53 = vsub.f32 %v278_v37, %v4285_v45  ;;  %v375_v56 = vand.u32 4294901760, %v374_v46  ;;  %v385_v57 = vand.u32 4294901760, %v384_v47  ;;  %v404_v58 = vsub.f32 %v4274_v40, %v403_v48  ;;  %v245_v46 = vld [vmem:[%s4226_s29 + $0x78] sm:$0xff] }
  0x1e   : > { %v414_v59 = vsub.f32 %v4277_v41, %v413_v49  ;;  %3653 = vmatprep.subr.mxu1 %v4200_v4  ;;  %v395_v60 = vand.u32 4294901760, %v394_v50  ;;  %v424_v61 = vsub.f32 %v4281_v43, %v423_v51  ;;  %v433_v62 = vand.u32 4294901760, %v4304_v52 }
  0x1f   : > { %v443_v63 = vand.u32 4294901760, %v4307_v53  ;;  %3654 = vmatpush3.msra.mxu1 %v4200_v4  ;;  %3571 = vmatprep.mubr.f32.mxu0 %v375_v56  ;;  %v405_v9 = vand.u32 4294901760, %v404_v58  ;;  %v281_v10 = vsel %vm255_vm0, %v238_v54, 0  ;;  %v284_v11 = vsel %vm255_vm0, %v239_v55, 0 }
  0x20   : > { %3603 = vmatmul.mubr.f32.gmra.mxu1 %v4260_v32  ;;  %3572 = vmatmul.mubr.f32.vlgmr.msra.gmra.mxu0 %v385_v57  ;;  %v415_v12 = vand.u32 4294901760, %v414_v59  ;;  %v425_v13 = vand.u32 4294901760, %v424_v61  ;;  %v434_v14 = vsub.f32 %v4304_v52, %v433_v62  ;;  %v4334_v15 = vand.u32 4294901760, %v281_v10 }
  0x21   : > { %3605 = vmatprep.mubr.f32.mxu1 %v4262_v33  ;;  %3624 = vmatpush3.msra.mxu0 %v4204_v5  ;;  %v4338_v17 = vand.u32 4294901760, %v284_v11  ;;  %v287_v18 = vsel %vm255_vm0, %v240_v0, 0  ;;  %v290_v19 = vsel %vm255_vm0, %v241_v1, 0  ;;  %v293_v20 = vsel %vm255_vm0, %v242_v2, 0 }
  0x22   : > { %3574 = vmatprep.mubr.f32.mxu0 %v395_v60  ;;  %v435_v24 = vand.u32 4294901760, %v434_v14  ;;  %v444_v25 = vsub.f32 %v4307_v53, %v443_v63  ;;  %v4348_v27 = vsub.f32 %v281_v10, %v4334_v15  ;;  %3625 = vmatprep.subr.mxu0 %v4207_v6  ;;  %v4351_v5 = vand.u32 4294901760, %v287_v18 }
  0x23   : > { %3707 = vmatprep.subr.mxu1 %v4198_v3  ;;  %v4356_v28 = vsub.f32 %v284_v11, %v4338_v17  ;;  %3626 = vmatpush3.msra.mxu0 %v4207_v6  ;;  %v4359_v29 = vand.u32 4294901760, %v290_v19  ;;  %v4361_v36 = vand.u32 4294901760, %v293_v20  ;;  %v296_v37 = vsel %vm255_vm0, %v243_v16, 0 }
  0x24   : > { %3606 = vmatmul.mubr.f32.gmra.mxu1 %v4267_v35  ;;  %3575 = vmatmul.mubr.f32.gmra.mxu0 %v405_v9  ;;  %v453_v47 = vand.u32 4294901760, %v4348_v27  ;;  %v4368_v50 = vsub.f32 %v287_v18, %v4351_v5  ;;  %v4370_v54 = vand.u32 4294901760, %v296_v37  ;;  %v299_v55 = vsel %vm255_vm0, %v244_v21, 0 }
  0x25   : > { %3608 = vmatprep.mubr.f32.mxu1 %v4283_v44  ;;  %3577 = vmatprep.mubr.f32.mxu0 %v415_v12  ;;  %v463_v6 = vand.u32 4294901760, %v4356_v28  ;;  %v4375_v56 = vsub.f32 %v290_v19, %v4359_v29  ;;  %v4378_v57 = vsub.f32 %v293_v20, %v4361_v36  ;;  %v4380_v58 = vand.u32 4294901760, %v299_v55 }
  0x26   : > { %3679 = vmatprep.subr.mxu0 %v4213_v7  ;;  %v454_v59 = vsub.f32 %v4348_v27, %v453_v47  ;;  %v473_v60 = vand.u32 4294901760, %v4368_v50  ;;  %v302_v61 = vsel %vm255_vm0, %v245_v46, 0  ;;  %v445_v0 = vand.u32 4294901760, %v444_v25 }
  0x27   : > { %v464_v1 = vsub.f32 %v4356_v28, %v463_v6  ;;  %v483_v2 = vand.u32 4294901760, %v4375_v56  ;;  %v4395_v9 = vsub.f32 %v296_v37, %v4370_v54  ;;  %v4397_v10 = vand.u32 4294901760, %v302_v61 }
  0x28   : > { %3609 = vmatmul.mubr.f32.gmra.mxu1 %v4285_v45  ;;  %3578 = vmatmul.mubr.f32.gmra.mxu0 %v425_v13  ;;  %v455_v11 = vand.u32 4294901760, %v454_v59  ;;  %v474_v12 = vsub.f32 %v4368_v50, %v473_v60  ;;  %v493_v13 = vand.u32 4294901760, %v4378_v57  ;;  %v4404_v14 = vsub.f32 %v299_v55, %v4380_v58 }
  0x29   : > { %3611 = vmatprep.mubr.f32.mxu1 %v4334_v15  ;;  %3580 = vmatprep.mubr.f32.mxu0 %v435_v24  ;;  %v465_v16 = vand.u32 4294901760, %v464_v1  ;;  %v484_v18 = vsub.f32 %v4375_v56, %v483_v2  ;;  %v503_v19 = vand.u32 4294901760, %v4395_v9  ;;  %v4413_v20 = vsub.f32 %v302_v61, %v4397_v10 }
  0x2a   : > { %v475_v21 = vand.u32 4294901760, %v474_v12  ;;  %v494_v24 = vsub.f32 %v4378_v57, %v493_v13  ;;  %v513_v25 = vand.u32 4294901760, %v4404_v14 }
  0x2b   : > { %v485_v37 = vand.u32 4294901760, %v484_v18  ;;  %v504_v46 = vsub.f32 %v4395_v9, %v503_v19  ;;  %v523_v55 = vand.u32 4294901760, %v4413_v20 }
  0x2c   : > { %3612 = vmatmul.mubr.f32.gmra.mxu1 %v4338_v17  ;;  %3581 = vmatmul.mubr.f32.gmra.mxu0 %v445_v0  ;;  %v495_v59 = vand.u32 4294901760, %v494_v24  ;;  %v514_v61 = vsub.f32 %v4404_v14, %v513_v25 }
  0x2d   : > { %3614 = vmatprep.mubr.f32.mxu1 %v4351_v5  ;;  %3583 = vmatprep.mubr.f32.mxu0 %v455_v11  ;;  %v505_v0 = vand.u32 4294901760, %v504_v46  ;;  %v524_v1 = vsub.f32 %v4413_v20, %v523_v55 }
  0x2e   : > { %v515_v11 = vand.u32 4294901760, %v514_v61 }
  0x2f   : > { %v525_v12 = vand.u32 4294901760, %v524_v1 }
  0x30   : > { %3615 = vmatmul.mubr.f32.gmra.mxu1 %v4359_v29  ;;  %3584 = vmatmul.mubr.f32.gmra.mxu0 %v465_v16 }
  0x31   : > { %3617 = vmatprep.mubr.f32.mxu1 %v4361_v36  ;;  %3586 = vmatprep.mubr.f32.mxu0 %v475_v21 }
  0x34   : > { %3618 = vmatmul.mubr.f32.gmra.mxu1 %v4370_v54  ;;  %3587 = vmatmul.mubr.f32.gmra.mxu0 %v485_v37  ;;  %v1851_v37 = vld [vmem:[%s5826_s3 + $0x58] sm:$0xff] }
  0x35   : > { %3620 = vmatprep.mubr.f32.mxu1 %v4380_v58  ;;  %3589 = vmatprep.mubr.f32.mxu0 %v495_v59 }
  0x38   : > { %3621 = vmatmul.mubr.f32.gmra.mxu1 %v4397_v10  ;;  %3590 = vmatmul.mubr.f32.gmra.mxu0 %v505_v0 }
  0x39   : > { %3655 = vmatprep.mubr.f32.mxu1 %v373_v38  ;;  %3592 = vmatprep.mubr.f32.mxu0 %v515_v11 }
  0x3c   : > { %3656 = vmatmul.mubr.f32.vlgmr.msra.gmra.mxu1 %v383_v39  ;;  %3593 = vmatmul.mubr.f32.gmra.mxu0 %v525_v12  ;;  %v4606_v12 = vand.u32 4294901760, %v1851_v37 }
  0x3d   : > { %3708 = vmatpush3.msra.mxu1 %v4198_v3  ;;  %3627 = vmatprep.mubr.f32.mxu0 %v4254_v30 }
  0x3e   : > { %3658 = vmatprep.mubr.f32.mxu1 %v393_v42  ;;  %3709 = vmatprep.subr.mxu1 %v4200_v4  ;;  %5952 = vst [vmem:[#allocation10_spill] sm:$0xff] %v4606_v12 }
  0x3f   : > { %3710 = vmatpush3.msra.mxu1 %v4200_v4 }
  0x40   : > { %3659 = vmatmul.mubr.f32.gmra.mxu1 %v403_v48  ;;  %3628 = vmatmul.mubr.f32.vlgmr.msra.gmra.mxu0 %v4258_v31 }
  0x41   : > { %3661 = vmatprep.mubr.f32.mxu1 %v413_v49  ;;  %3680 = vmatpush3.msra.mxu0 %v4213_v7 }
  0x42   : > { %3630 = vmatprep.mubr.f32.mxu0 %v4265_v34  ;;  %3681 = vmatprep.subr.mxu0 %v4217_v8 }
  0x43   : > { %3682 = vmatpush3.msra.mxu0 %v4217_v8 }
  0x44   : > { %3662 = vmatmul.mubr.f32.gmra.mxu1 %v423_v51  ;;  %3631 = vmatmul.mubr.f32.gmra.mxu0 %v4274_v40  ;;  %v1855_v40 = vld [vmem:[%s5826_s3 + $0x78] sm:$0xff] }
  0x45   : > { %3664 = vmatprep.mubr.f32.mxu1 %v433_v62  ;;  %3633 = vmatprep.mubr.f32.mxu0 %v4277_v41  ;;  %v4534_v41 = vld [vmem:[%s5825_s2] ss:$0 sm:$0xff] }
  0x48   : > { %3665 = vmatmul.mubr.f32.gmra.mxu1 %v443_v63  ;;  %3634 = vmatmul.mubr.f32.gmra.mxu0 %v4281_v43  ;;  %v4536_v43 = vand.u32 4294901760, %v1855_v40 }
  0x49   : > { %3667 = vmatprep.mubr.f32.mxu1 %v453_v47  ;;  %3636 = vmatprep.mubr.f32.mxu0 %v4304_v52 }
  0x4a   : > { %v4540_v49 = vsub.f32 %v1855_v40, %v4536_v43  ;;  %3735 = vmatprep.subr.mxu0 %v4536_v43 }
  0x4c   : > { %3668 = vmatmul.mubr.f32.gmra.mxu1 %v463_v6  ;;  %3637 = vmatmul.mubr.f32.gmra.mxu0 %v4307_v53  ;;  %5945 = vst [vmem:[#allocation3_spill] sm:$0xff] %v4540_v49  ;;  %v4548_v63 = vand.u32 4294901760, %v4540_v49 }
  0x4d   : > { %3670 = vmatprep.mubr.f32.mxu1 %v473_v60  ;;  %3639 = vmatprep.mubr.f32.mxu0 %v4348_v27 }
  0x4e   : > { %5946 = vst [vmem:[#allocation4_spill] sm:$0xff] %v4548_v63 }
  0x50   : > { %3671 = vmatmul.mubr.f32.gmra.mxu1 %v483_v2  ;;  %3640 = vmatmul.mubr.f32.gmra.mxu0 %v4356_v28  ;;  %v2108_v28 = vsub.f32 %v4540_v49, %v4548_v63 }
  0x51   : > { %3673 = vmatprep.mubr.f32.mxu1 %v493_v13  ;;  %3642 = vmatprep.mubr.f32.mxu0 %v4368_v50 }
  0x54   : > { %3674 = vmatmul.mubr.f32.gmra.mxu1 %v503_v19  ;;  %3643 = vmatmul.mubr.f32.gmra.mxu0 %v4375_v56  ;;  %v2109_v56 = vand.u32 4294901760, %v2108_v28 }
  0x55   : > { %3676 = vmatprep.mubr.f32.mxu1 %v513_v25  ;;  %3645 = vmatprep.mubr.f32.mxu0 %v4378_v57  ;;  %v1853_v57 = vld [vmem:[%s5826_s3 + $0x68] sm:$0xff] }
  0x56   : > { %3791 = vmatprep.subr.mxu1 %v2109_v56 }
  0x58   : > { %3677 = vmatmul.mubr.f32.gmra.mxu1 %v523_v55  ;;  %3646 = vmatmul.mubr.f32.gmra.mxu0 %v4395_v9 }
  0x59   : > { %3711 = vmatprep.mubr.f32.mxu1 %v4242_v22  ;;  %3648 = vmatprep.mubr.f32.mxu0 %v4404_v14  ;;  %v1852_v14 = vld [vmem:[%s5826_s3 + $0x60] sm:$0xff] }
  0x5a   : > { %v4589_v25 = vand.u32 4294901760, %v1852_v14 }
  0x5c   : > { %3712 = vmatmul.mubr.f32.vlgmr.msra.gmra.mxu1 %v4244_v23  ;;  %3649 = vmatmul.mubr.f32.gmra.mxu0 %v4413_v20  ;;  %v4604_v11 = vsub.f32 %v1852_v14, %v4589_v25 }
  0x5d   : > { %3714 = vmatprep.mubr.f32.mxu1 %v4248_v26  ;;  %3683 = vmatprep.mubr.f32.mxu0 %v4242_v22 }
  0x5e   : > { %3792 = vmatpush3.msra.mxu1 %v2109_v56  ;;  %5951 = vst [vmem:[#allocation9_spill] sm:$0xff] %v4604_v11 }
  0x60   : > { %3715 = vmatmul.mubr.f32.gmra.mxu1 %v4260_v32  ;;  %3684 = vmatmul.mubr.f32.vlgmr.msra.gmra.mxu0 %v4244_v23 }
  0x61   : > { %3717 = vmatprep.mubr.f32.mxu1 %v4262_v33  ;;  %3686 = vmatprep.mubr.f32.mxu0 %v4248_v26 }
  0x62   : > { %3736 = vmatpush3.msra.mxu0 %v4536_v43 }
  0x64   : > { %3718 = vmatmul.mubr.f32.gmra.mxu1 %v4267_v35  ;;  %3687 = vmatmul.mubr.f32.gmra.mxu0 %v4260_v32 }
  0x65   : > { %3720 = vmatprep.mubr.f32.mxu1 %v4283_v44  ;;  %3689 = vmatprep.mubr.f32.mxu0 %v4262_v33 }
  0x68   : > { %3721 = vmatmul.mubr.f32.gmra.mxu1 %v4285_v45  ;;  %3690 = vmatmul.mubr.f32.gmra.mxu0 %v4267_v35 }
  0x69   : > { %3723 = vmatprep.mubr.f32.mxu1 %v4334_v15  ;;  %3692 = vmatprep.mubr.f32.mxu0 %v4283_v44 }
  0x6c   : > { %3724 = vmatmul.mubr.f32.gmra.mxu1 %v4338_v17  ;;  %3693 = vmatmul.mubr.f32.gmra.mxu0 %v4285_v45 }
  0x6d   : > { %3726 = vmatprep.mubr.f32.mxu1 %v4351_v5  ;;  %3695 = vmatprep.mubr.f32.mxu0 %v4334_v15 }
  0x70   : > { %3727 = vmatmul.mubr.f32.gmra.mxu1 %v4359_v29  ;;  %3696 = vmatmul.mubr.f32.gmra.mxu0 %v4338_v17 }
  0x71   : > { %3729 = vmatprep.mubr.f32.mxu1 %v4361_v36  ;;  %3698 = vmatprep.mubr.f32.mxu0 %v4351_v5 }
  0x74   : > { %3730 = vmatmul.mubr.f32.gmra.mxu1 %v4370_v54  ;;  %3699 = vmatmul.mubr.f32.gmra.mxu0 %v4359_v29  ;;  %v1854_v29 = vld [vmem:[%s5826_s3 + $0x70] sm:$0xff] }
  0x75   : > { %3732 = vmatprep.mubr.f32.mxu1 %v4380_v58  ;;  %3701 = vmatprep.mubr.f32.mxu0 %v4361_v36 }
  0x78   : > { %3733 = vmatmul.mubr.f32.gmra.mxu1 %v4397_v10  ;;  %3702 = vmatmul.mubr.f32.gmra.mxu0 %v4370_v54  ;;  %v4561_v54 = vand.u32 4294901760, %v1854_v29 }
  0x79   : > { %3704 = vmatprep.mubr.f32.mxu0 %v4380_v58 }
  0x7a   : > { %v4570_v9 = vsub.f32 %v1854_v29, %v4561_v54  ;;  %3737 = vmatprep.subr.mxu0 %v4561_v54 }
  0x7b   : > { %3738 = vmatpush3.msra.mxu0 %v4561_v54 }
  0x7c   : > { %3705 = vmatmul.mubr.f32.gmra.mxu0 %v4397_v10  ;;  %5947 = vst [vmem:[#allocation5_spill] sm:$0xff] %v4570_v9  ;;  %v4572_v10 = vand.u32 4294901760, %v1853_v57  ;;  %v4583_v20 = vand.u32 4294901760, %v4570_v9 }
  0x7e   : > { %5948 = vst [vmem:[#allocation6_spill] sm:$0xff] %v4583_v20  ;;  %v4586_v21 = vsub.f32 %v1853_v57, %v4572_v10  ;;  %3739 = vmatprep.subr.mxu0 %v4572_v10  ;;  %v2115_v61 = vsub.f32 %v4570_v9, %v4583_v20  ;;  %v1848_v57 = vld [vmem:[%s5826_s3 + $0x40] sm:$0xff] }
  0x7f   : > { %3740 = vmatpush3.msra.mxu0 %v4572_v10 }
  0x80   : > { %5949 = vst [vmem:[#allocation7_spill] sm:$0xff] %v4586_v21  ;;  %v4601_v0 = vand.u32 4294901760, %v4586_v21  ;;  %3741 = vmatprep.subr.mxu0 %v4589_v25 }
  0x81   : > { %3742 = vmatpush3.msra.mxu0 %v4589_v25 }
  0x82   : > { %5950 = vst [vmem:[#allocation8_spill] sm:$0xff] %v4601_v0  ;;  %3743 = vmatprep.subr.mxu0 %v4606_v12 }
  0x83   : > { %3744 = vmatpush3.msra.mxu0 %v4606_v12 }
  0xdc   : > { %v4504_v3 = vpop.f32.mrf.mxu1 }
  0xde   : > { %v4506_v4 = vpop.f32.mrf.mxu1 }
  0xe0   : > { %v4508_v7 = vpop.f32.mrf.mxu1  ;;  %v4510_v8 = vpop.f32.mrf.mxu0 }
  0xe2   : > { %v4512_v22 = vpop.f32.mrf.mxu1  ;;  %v4514_v23 = vpop.f32.mrf.mxu0 }
  0xe4   : > { %v4516_v26 = vpop.f32.mrf.mxu1  ;;  %v4518_v30 = vpop.f32.mrf.mxu0 }
  0xe6   : > { %v4520_v31 = vpop.f32.mrf.mxu1  ;;  %v4522_v32 = vpop.f32.mrf.mxu0 }
  0xe8   : > { %v3610_v33 = vpop.f32.mrf.mxu1  ;;  %v4524_v34 = vpop.f32.mrf.mxu0 }
  0xea   : > { %v644_v35 = vpop.f32.mrf.mxu1  ;;  %v4526_v38 = vpop.f32.mrf.mxu0 }
  0xec   : > { %v3613_v39 = vpop.f32.mrf.mxu1  ;;  %v3582_v42 = vpop.f32.mrf.mxu0 }
  0xed   : > { %v448_v44 = vadd.f32 %v3582_v42, %v4534_v41  ;;  %v2116_v42 = vand.u32 4294901760, %v2115_v61  ;;  %v1847_v61 = vld [vmem:[%s5826_s3 + $0x38] sm:$0xff] }
  0xee   : > { %v656_v45 = vpop.f32.mrf.mxu1  ;;  %v437_v48 = vpop.f32.mrf.mxu0 }
  0xef   : > { %v4543_v51 = vadd.f32 %v3610_v33, %v448_v44  ;;  %v438_v52 = vadd.f32 %v4534_v41, %v437_v48  ;;  %v1850_v33 = vld [vmem:[%s5826_s3 + $0x50] sm:$0xff]  ;;  %v2122_v44 = vsub.f32 %v4586_v21, %v4601_v0  ;;  %v4621_v48 = vand.u32 4294901760, %v4604_v11  ;;  %3793 = vmatprep.subr.mxu1 %v2116_v42 }
  0xf0   : > { %v3616_v53 = vpop.f32.mrf.mxu1  ;;  %v3585_v62 = vpop.f32.mrf.mxu0  ;;  %3794 = vmatpush3.msra.mxu1 %v2116_v42 }
  0xf1   : > { %v4550_v15 = vadd.f32 %v644_v35, %v438_v52  ;;  %v468_v17 = vadd.f32 %v3585_v62, %v4534_v41  ;;  %5953 = vst [vmem:[#allocation11_spill] sm:$0xff] %v4621_v48  ;;  %v4624_v52 = vsub.f32 %v1851_v37, %v4606_v12  ;;  %v1849_v62 = vld [vmem:[%s5826_s3 + $0x48] sm:$0xff]  ;;  %v2123_v28 = vand.u32 4294901760, %v2122_v44 }
  0xf2   : > { %v668_v27 = vpop.f32.mrf.mxu1  ;;  %v457_v5 = vpop.f32.mrf.mxu0  ;;  %v4637_v29 = vand.u32 4294901760, %v1849_v62 }
  0xf3   : > { %v4558_v36 = vadd.f32 %v3613_v39, %v468_v17  ;;  %v458_v47 = vadd.f32 %v4534_v41, %v457_v5  ;;  %5954 = vst [vmem:[#allocation12_spill] sm:$0xff] %v4624_v52  ;;  %3795 = vmatprep.subr.mxu1 %v2123_v28 }
  0xf4   : > { %v3619_v50 = vpop.f32.mrf.mxu1  ;;  %v3588_v6 = vpop.f32.mrf.mxu0  ;;  %5956 = vst [vmem:[#allocation14_spill] sm:$0xff] %v4637_v29  ;;  %v4658_v14 = vsub.f32 %v1849_v62, %v4637_v29  ;;  %3796 = vmatpush3.msra.mxu1 %v2123_v28 }
  0xf5   : > { %v4566_v58 = vadd.f32 %v656_v45, %v458_v47  ;;  %v488_v60 = vadd.f32 %v3588_v6, %v4534_v41  ;;  %v4643_v6 = vand.u32 4294901760, %v4624_v52 }
  0xf6   : > { %v680_v2 = vpop.f32.mrf.mxu1  ;;  %v477_v13 = vpop.f32.mrf.mxu0  ;;  %5959 = vst [vmem:[#allocation17_spill] sm:$0xff] %v4658_v14 }
  0xf7   : > { %v4579_v16 = vadd.f32 %v3616_v53, %v488_v60  ;;  %v478_v18 = vadd.f32 %v4534_v41, %v477_v13  ;;  %v4626_v53 = vand.u32 4294901760, %v1850_v33  ;;  %5957 = vst [vmem:[#allocation15_spill] sm:$0xff] %v4643_v6 }
  0xf8   : > { %v3622_v19 = vpop.f32.mrf.mxu1  ;;  %v3591_v24 = vpop.f32.mrf.mxu0 }
  0xf9   : > { %v4595_v46 = vadd.f32 %v668_v27, %v478_v18  ;;  %v508_v55 = vadd.f32 %v3591_v24, %v4534_v41  ;;  %5955 = vst [vmem:[#allocation13_spill] sm:$0xff] %v4626_v53  ;;  %v4646_v56 = vsub.f32 %v1850_v33, %v4626_v53  ;;  %3745 = vmatprep.subr.mxu0 %v4626_v53  ;;  %v4660_v18 = vand.u32 4294901760, %v1848_v57 }
  0xfa   : > { %v692_v59 = vpop.f32.mrf.mxu1  ;;  %v497_v1 = vpop.f32.mrf.mxu0  ;;  %3746 = vmatpush3.msra.mxu0 %v4626_v53 }
  0xfb   : > { %v4612_v35 = vadd.f32 %v3619_v50, %v508_v55  ;;  %v498_v39 = vadd.f32 %v4534_v41, %v497_v1  ;;  %v2129_v50 = vsub.f32 %v4604_v11, %v4621_v48  ;;  %5958 = vst [vmem:[#allocation16_spill] sm:$0xff] %v4646_v56  ;;  %5960 = vst [vmem:[#allocation18_spill] sm:$0xff] %v4660_v18  ;;  %v4668_v55 = vand.u32 4294901760, %v4646_v56 }
  0xfc   : > { %v4615_v40 = vpop.f32.mrf.mxu1  ;;  %v3594_v45 = vpop.f32.mrf.mxu0  ;;  %3747 = vmatprep.subr.mxu0 %v4637_v29  ;;  %v4682_v42 = vsub.f32 %v1848_v57, %v4660_v18 }
  0xfd   : > { %v4632_v17 = vadd.f32 %v680_v2, %v498_v39  ;;  %v528_v27 = vadd.f32 %v3594_v45, %v4534_v41  ;;  %v2130_v37 = vand.u32 4294901760, %v2129_v50  ;;  %5961 = vst [vmem:[#allocation19_spill] sm:$0xff] %v4668_v55  ;;  %v4679_v39 = vand.u32 4294901760, %v4658_v14  ;;  %3748 = vmatpush3.msra.mxu0 %v4637_v29 }
  0xfe   : > { %v4635_v5 = vpop.f32.mrf.mxu1  ;;  %v517_v47 = vpop.f32.mrf.mxu0  ;;  %5963 = vst [vmem:[#allocation21_spill] sm:$0xff] %v4682_v42  ;;  %v2143_v62 = vsub.f32 %v4646_v56, %v4668_v55  ;;  %3749 = vmatprep.subr.mxu0 %v4660_v18  ;;  %v4700_v50 = vand.u32 4294901760, %v4682_v42 }
  0xff   : > { %v4652_v60 = vadd.f32 %v3622_v19, %v528_v27  ;;  %v518_v2 = vadd.f32 %v4534_v41, %v517_v47  ;;  %v2136_v19 = vsub.f32 %v4624_v52, %v4643_v6  ;;  %5962 = vst [vmem:[#allocation20_spill] sm:$0xff] %v4679_v39  ;;  %3797 = vmatprep.subr.mxu1 %v2130_v37  ;;  %v4689_v27 = vand.u32 4294901760, %v1847_v61 }
 0x100   : > { %v4655_v13 = vpop.f32.mrf.mxu1  ;;  %v4663_v24 = vpop.f32.mrf.mxu0  ;;  %3798 = vmatpush3.msra.mxu1 %v2130_v37  ;;  %v2150_v47 = vsub.f32 %v4658_v14, %v4679_v39  ;;  %5965 = vst [vmem:[#allocation23_spill] sm:$0xff] %v4700_v50  ;;  %3750 = vmatpush3.msra.mxu0 %v4660_v18  ;;  %v1845_v37 = vld [vmem:[%s5826_s3 + $0x28] sm:$0xff]  ;;  %v2157_v48 = vsub.f32 %v4682_v42, %v4700_v50 }
 0x101   : > { %v4674_v1 = vadd.f32 %v692_v59, %v518_v2  ;;  %v2137_v45 = vand.u32 4294901760, %v2136_v19  ;;  %5964 = vst [vmem:[#allocation22_spill] sm:$0xff] %v4689_v27  ;;  %v1846_v59 = vld [vmem:[%s5826_s3 + $0x30] sm:$0xff]  ;;  %v2144_v2 = vand.u32 4294901760, %v2143_v62  ;;  %v4706_v19 = vsub.f32 %v1847_v61, %v4689_v27  ;;  %3751 = vmatprep.subr.mxu0 %v4689_v27 }
 0x102   : > { %v4676_v33 = vpop.f32.mrf.mxu1  ;;  %v4685_v44 = vpop.f32.mrf.mxu0  ;;  %v4708_v55 = vand.u32 4294901760, %v1846_v59  ;;  %v2151_v6 = vand.u32 4294901760, %v2150_v47  ;;  %3752 = vmatpush3.msra.mxu0 %v4689_v27  ;;  %v4727_v20 = vand.u32 4294901760, %v1845_v37  ;;  %v2158_v50 = vand.u32 4294901760, %v2157_v48  ;;  %v1843_v48 = vld [vmem:[%s5826_s3 + $0x18] sm:$0xff] }
 0x103   : > { %3799 = vmatprep.subr.mxu1 %v2137_v45  ;;  %5966 = vst [vmem:[#allocation24_spill] sm:$0xff] %v4706_v19  ;;  %v4722_v61 = vand.u32 4294901760, %v4706_v19  ;;  %v4757_v11 = vand.u32 4294901760, %v1843_v48 }
 0x104   : > { %v4695_v28 = vpop.f32.mrf.mxu1  ;;  %v4703_v57 = vpop.f32.mrf.mxu0  ;;  %5967 = vst [vmem:[#allocation25_spill] sm:$0xff] %v4708_v55  ;;  %3800 = vmatpush3.msra.mxu1 %v2137_v45  ;;  %v4725_v0 = vsub.f32 %v1846_v59, %v4708_v55  ;;  %5970 = vst [vmem:[#allocation28_spill] sm:$0xff] %v4727_v20  ;;  %v1844_v45 = vld [vmem:[%s5826_s3 + $0x20] sm:$0xff]  ;;  %3753 = vmatprep.subr.mxu0 %v4708_v55  ;;  %v4746_v56 = vsub.f32 %v1845_v37, %v4727_v20 }
 0x105   : > { %3801 = vmatprep.subr.mxu1 %v2144_v2  ;;  %5968 = vst [vmem:[#allocation26_spill] sm:$0xff] %v4722_v61  ;;  %v4735_v63 = vand.u32 4294901760, %v1844_v45  ;;  %3754 = vmatpush3.msra.mxu0 %v4708_v55  ;;  %v2164_v59 = vsub.f32 %v4706_v19, %v4722_v61  ;;  %5975 = vst [vmem:[#allocation33_spill] sm:$0xff] %v4757_v11 }
 0x106   : > { %v4714_v39 = vpop.f32.mrf.mxu1  ;;  %v4719_v62 = vpop.f32.mrf.mxu0  ;;  %5969 = vst [vmem:[#allocation27_spill] sm:$0xff] %v4725_v0  ;;  %3802 = vmatpush3.msra.mxu1 %v2144_v2  ;;  %v4743_v14 = vand.u32 4294901760, %v4725_v0  ;;  %5973 = vst [vmem:[#allocation31_spill] sm:$0xff] %v4746_v56  ;;  %3755 = vmatprep.subr.mxu0 %v4727_v20  ;;  %v4765_v21 = vand.u32 4294901760, %v4746_v56 }
 0x107   : > { %5971 = vst [vmem:[#allocation29_spill] sm:$0xff] %v4735_v63  ;;  %3803 = vmatprep.subr.mxu1 %v2151_v6  ;;  %v4755_v52 = vsub.f32 %v1844_v45, %v4735_v63  ;;  %3756 = vmatpush3.msra.mxu0 %v4727_v20  ;;  %v2165_v37 = vand.u32 4294901760, %v2164_v59  ;;  %v4775_v20 = vsub.f32 %v1843_v48, %v4757_v11 }
 0x108   : > { %v4733_v47 = vpop.f32.mrf.mxu1  ;;  %v4738_v42 = vpop.f32.mrf.mxu0  ;;  %5972 = vst [vmem:[#allocation30_spill] sm:$0xff] %v4743_v14  ;;  %3804 = vmatpush3.msra.mxu1 %v2151_v6  ;;  %v2171_v19 = vsub.f32 %v4725_v0, %v4743_v14  ;;  %5976 = vst [vmem:[#allocation34_spill] sm:$0xff] %v4765_v21  ;;  %v1842_v6 = vld [vmem:[%s5826_s3 + $0x10] sm:$0xff]  ;;  %3757 = vmatprep.subr.mxu0 %v4735_v63  ;;  %v2178_v0 = vsub.f32 %v4746_v56, %v4765_v21 }
 0x109   : > { %5974 = vst [vmem:[#allocation32_spill] sm:$0xff] %v4755_v52  ;;  %3805 = vmatprep.subr.mxu1 %v2158_v50  ;;  %v4772_v9 = vand.u32 4294901760, %v4755_v52  ;;  %5978 = vst [vmem:[#allocation36_spill] sm:$0xff] %v4775_v20  ;;  %3758 = vmatpush3.msra.mxu0 %v4735_v63  ;;  %v4782_v55 = vand.u32 4294901760, %v1842_v6  ;;  %v4793_v63 = vand.u32 4294901760, %v4775_v20 }
 0x10a   : > { %v4752_v2 = vpop.f32.mrf.mxu1  ;;  %v4760_v61 = vpop.f32.mrf.mxu0  ;;  %3806 = vmatpush3.msra.mxu1 %v2158_v50  ;;  %v2172_v14 = vand.u32 4294901760, %v2171_v19  ;;  %v1841_v50 = vld [vmem:[%s5826_s3 + $0x8] sm:$0xff]  ;;  %3759 = vmatprep.subr.mxu0 %v4757_v11  ;;  %v2179_v21 = vand.u32 4294901760, %v2178_v0 }
 0x10b   : > { %5977 = vst [vmem:[#allocation35_spill] sm:$0xff] %v4772_v9  ;;  %3807 = vmatprep.subr.mxu1 %v2165_v37  ;;  %5979 = vst [vmem:[#allocation37_spill] sm:$0xff] %v4782_v55  ;;  %v2185_v48 = vsub.f32 %v4755_v52, %v4772_v9  ;;  %3760 = vmatpush3.msra.mxu0 %v4757_v11  ;;  %v4799_v56 = vsub.f32 %v1842_v6, %v4782_v55  ;;  %v4801_v18 = vand.u32 4294901760, %v1841_v50 }
 0x10c   : > { %v3669_v45 = vpop.f32.mrf.mxu1  ;;  %v4778_v59 = vpop.f32.mrf.mxu0  ;;  %3808 = vmatpush3.msra.mxu1 %v2165_v37  ;;  %5980 = vst [vmem:[#allocation38_spill] sm:$0xff] %v4793_v63  ;;  %v1840_v37 = vld [vmem:[%s5826_s3] sm:$0xff]  ;;  %3761 = vmatprep.subr.mxu0 %v4782_v55  ;;  %v2192_v11 = vsub.f32 %v4775_v20, %v4793_v63 }
 0x10d   : > { %3809 = vmatprep.subr.mxu1 %v2172_v14  ;;  %5981 = vst [vmem:[#allocation39_spill] sm:$0xff] %v4799_v56  ;;  %5982 = vst [vmem:[#allocation40_spill] sm:$0xff] %v4801_v18  ;;  %v2186_v52 = vand.u32 4294901760, %v2185_v48  ;;  %3762 = vmatpush3.msra.mxu0 %v4782_v55  ;;  %v4811_v6 = vand.u32 4294901760, %v4799_v56  ;;  %v4814_v29 = vsub.f32 %v1841_v50, %v4801_v18  ;;  %v4816_v53 = vand.u32 4294901760, %v1840_v37 }
 0x10e   : > { %v4788_v27 = vpop.f32.mrf.mxu1  ;;  %v4796_v19 = vpop.f32.mrf.mxu0  ;;  %3810 = vmatpush3.msra.mxu1 %v2172_v14  ;;  %3763 = vmatprep.subr.mxu0 %v4801_v18  ;;  %v2193_v12 = vand.u32 4294901760, %v2192_v11 }
 0x10f   : > { %3811 = vmatprep.subr.mxu1 %v2179_v21  ;;  %5983 = vst [vmem:[#allocation41_spill] sm:$0xff] %v4811_v6  ;;  %5984 = vst [vmem:[#allocation42_spill] sm:$0xff] %v4814_v29  ;;  %3764 = vmatpush3.msra.mxu0 %v4801_v18  ;;  %v2199_v20 = vsub.f32 %v4799_v56, %v4811_v6  ;;  %v4826_v50 = vand.u32 4294901760, %v4814_v29  ;;  %v4829_v55 = vsub.f32 %v1840_v37, %v4816_v53 }
 0x110   : > { %v3672_v9 = vpop.f32.mrf.mxu1  ;;  %v3641_v0 = vpop.f32.mrf.mxu0  ;;  %5985 = vst [vmem:[#allocation43_spill] sm:$0xff] %v4816_v53  ;;  %3812 = vmatpush3.msra.mxu1 %v2179_v21  ;;  %3765 = vmatprep.subr.mxu0 %v4816_v53  ;;  %v388_v37 = vadd.f32 %v4510_v8, %v4534_v41 }
 0x111   : > { %v838_v14 = vadd.f32 %v3641_v0, %v4558_v36  ;;  %3813 = vmatprep.subr.mxu1 %v2186_v52  ;;  %5986 = vst [vmem:[#allocation44_spill] sm:$0xff] %v4826_v50  ;;  %5987 = vst [vmem:[#allocation45_spill] sm:$0xff] %v4829_v55  ;;  %3766 = vmatpush3.msra.mxu0 %v4816_v53  ;;  %v2200_v0 = vand.u32 4294901760, %v2199_v20  ;;  %v2206_v6 = vsub.f32 %v4814_v29, %v4826_v50 }
 0x112   : > { %v1034_v48 = vpop.f32.mrf.mxu1  ;;  %v4821_v63 = vpop.f32.mrf.mxu0  ;;  %3814 = vmatpush3.msra.mxu1 %v2186_v52  ;;  %v4838_v56 = vand.u32 4294901760, %v4829_v55  ;;  %3847 = vmatprep.subr.mxu0 %v4540_v49  ;;  %v378_v50 = vadd.f32 %v4534_v41, %v4514_v23 }
 0x113   : > { %v4832_v36 = vadd.f32 %v3669_v45, %v838_v14  ;;  %3815 = vmatprep.subr.mxu1 %v2193_v12  ;;  %v2207_v53 = vand.u32 4294901760, %v2206_v6  ;;  %v408_v6 = vadd.f32 %v4518_v30, %v4534_v41  ;;  %v398_v30 = vadd.f32 %v4534_v41, %v4522_v32 }
 0x114   : > { %v3675_v21 = vpop.f32.mrf.mxu1  ;;  %v3644_v11 = vpop.f32.mrf.mxu0  ;;  %5988 = vst [vmem:[#allocation46_spill] sm:$0xff] %v4838_v56  ;;  %3816 = vmatpush3.msra.mxu1 %v2193_v12  ;;  %v2213_v20 = vsub.f32 %v4829_v55, %v4838_v56  ;;  %v615_v12 = vadd.f32 %v4504_v3, %v388_v37 }
 0x115   : > { %v852_v45 = vadd.f32 %v3644_v11, %v4579_v16  ;;  %3817 = vmatprep.subr.mxu1 %v2200_v0 }
 0x116   : > { %v1050_v14 = vpop.f32.mrf.mxu1  ;;  %v844_v52 = vpop.f32.mrf.mxu0  ;;  %3818 = vmatpush3.msra.mxu1 %v2200_v0  ;;  %v2214_v16 = vand.u32 4294901760, %v2213_v20 }
 0x117   : > { %v4848_v29 = vadd.f32 %v3672_v9, %v852_v45  ;;  %v845_v49 = vadd.f32 %v844_v52, %v4595_v46  ;;  %3819 = vmatprep.subr.mxu1 %v2207_v53  ;;  %v609_v9 = vadd.f32 %v4506_v4, %v378_v50  ;;  %v782_v46 = vadd.f32 %v4663_v24, %v615_v12 }
 0x118   : > { %v3678_v18 = vpop.f32.mrf.mxu1  ;;  %v3647_v8 = vpop.f32.mrf.mxu0  ;;  %3820 = vmatpush3.msra.mxu1 %v2207_v53 }
 0x119   : > { %v4854_v11 = vadd.f32 %v1034_v48, %v845_v49  ;;  %v866_v56 = vadd.f32 %v3647_v8, %v4612_v35  ;;  %3821 = vmatprep.subr.mxu1 %v2214_v16  ;;  %v627_v35 = vadd.f32 %v4508_v7, %v408_v6  ;;  %v775_v53 = vadd.f32 %v4685_v44, %v609_v9 }
 0x11a   : > { %v1066_v55 = vpop.f32.mrf.mxu1  ;;  %v858_v23 = vpop.f32.mrf.mxu0  ;;  %3822 = vmatpush3.msra.mxu1 %v2214_v16  ;;  %v963_v50 = vadd.f32 %v4615_v40, %v782_v46  ;;  %v621_v7 = vadd.f32 %v4512_v22, %v398_v30 }
 0x11b   : > { %v4859_v0 = vadd.f32 %v3675_v21, %v866_v56  ;;  %v859_v45 = vadd.f32 %v858_v23, %v4632_v17  ;;  %3903 = vmatprep.subr.mxu1 %v4536_v43  ;;  %v428_v17 = vadd.f32 %v4524_v34, %v4534_v41  ;;  %v796_v32 = vadd.f32 %v4703_v57, %v627_v35 }
 0x11c   : > { %v3713_v3 = vpop.f32.mrf.mxu1  ;;  %v3650_v49 = vpop.f32.mrf.mxu0  ;;  %v418_v34 = vadd.f32 %v4534_v41, %v4526_v38  ;;  %v789_v40 = vadd.f32 %v4719_v62, %v621_v7 }
 0x11d   : > { %v4867_v48 = vadd.f32 %v1050_v14, %v859_v45  ;;  %v880_v4 = vadd.f32 %v3650_v49, %v4652_v60  ;;  %v955_v14 = vadd.f32 %v4635_v5, %v775_v53  ;;  %v979_v57 = vadd.f32 %v4655_v13, %v796_v32 }
 0x11e   : > { %v1314_v56 = vpop.f32.mrf.mxu1  ;;  %v872_v24 = vpop.f32.mrf.mxu0  ;;  %v633_v41 = vadd.f32 %v4520_v31, %v418_v34  ;;  %v971_v62 = vadd.f32 %v4676_v33, %v789_v40  ;;  %v817_v32 = vadd.f32 %v4796_v19, %v4550_v15  ;;  %v831_v15 = vadd.f32 %v4821_v63, %v4566_v58 }
 0x11f   : > { %v4874_v21 = vadd.f32 %v3678_v18, %v880_v4  ;;  %v873_v37 = vadd.f32 %v872_v24, %v4674_v1  ;;  %v639_v18 = vadd.f32 %v4516_v26, %v428_v17 }
 0x120   : > { %v3685_v44 = vpop.f32.mrf.mxu0  ;;  %v3716_v20 = vpop.f32.mrf.mxu1  ;;  %v803_v9 = vadd.f32 %v4760_v61, %v633_v41  ;;  %v824_v61 = vadd.f32 %v4778_v59, %v4543_v51  ;;  %v4933_v63 = vadd.f32 %v4788_v27, %v831_v15 }
 0x121   : > { %v4879_v52 = vadd.f32 %v1066_v55, %v873_v37  ;;  %v1158_v60 = vadd.f32 %v3685_v44, %v963_v50  ;;  %v810_v5 = vadd.f32 %v4738_v42, %v639_v18  ;;  %v1003_v18 = vadd.f32 %v4752_v2, %v817_v32 }
 0x122   : > { %v1151_v8 = vpop.f32.mrf.mxu0  ;;  %v1326_v38 = vpop.f32.mrf.mxu1  ;;  %v987_v24 = vadd.f32 %v4714_v39, %v803_v9  ;;  %v1011_v59 = vadd.f32 %v4733_v47, %v824_v61 }
 0x123   : > { %v4886_v1 = vadd.f32 %v3713_v3, %v1158_v60  ;;  %v1152_v22 = vadd.f32 %v1151_v8, %v955_v14  ;;  %v995_v3 = vadd.f32 %v4695_v28, %v810_v5 }
 0x124   : > { %v3688_v16 = vpop.f32.mrf.mxu0  ;;  %v3719_v35 = vpop.f32.mrf.mxu1 }
 0x125   : > { %v4890_v55 = vmul.f32 0.70710677, %v4886_v1  ;;  %v4892_v12 = vadd.f32 %v1314_v56, %v1152_v22  ;;  %v1170_v6 = vadd.f32 %v3688_v16, %v979_v57 }
 0x126   : > { %v1163_v26 = vpop.f32.mrf.mxu0  ;;  %v1338_v44 = vpop.f32.mrf.mxu1 }
 0x127   : > { %v1441_v13 = vand.u32 2147483647, %v4890_v55  ;;  %v4898_v23 = vmul.f32 0.70710677, %v4892_v12  ;;  %v1333_v42 = vadd.f32 %v3716_v20, %v1170_v6  ;;  %v1164_v46 = vadd.f32 %v1163_v26, %v971_v62 }
 0x128   : > { %v3691_v45 = vpop.f32.mrf.mxu0  ;;  %v3722_v22 = vpop.f32.mrf.mxu1  ;;  %v4944_v27 = vmul.f32 0.5, %v4892_v12  ;;  %vm1761_vm1 = vcmp.lt.f32.partialorder %v4890_v55, 0.0 }
 0x129   : > { %v1457_v30 = vmul.f32 0.3275911, %v1441_v13  ;;  %v1440_v49 = vand.u32 2147483647, %v4898_v23  ;;  %v4903_v31 = vmul.f32 0.70710677, %v1333_v42  ;;  %v4905_v33 = vadd.f32 %v1326_v38, %v1164_v46 }
 0x12a   : > { %v1175_v53 = vpop.f32.mrf.mxu0  ;;  %v1182_v17 = vadd.f32 %v3691_v45, %v995_v3  ;;  %v1665_v37 = vsub.f32 0.0, %v1441_v13  ;;  %v1350_v9 = vpop.f32.mrf.mxu1  ;;  %vm1760_vm2 = vcmp.lt.f32.partialorder %v4898_v23, 0.0 }
 0x12b   : > { %v1473_v4 = vadd.f32 1.0, %v1457_v30  ;;  %v1456_v56 = vmul.f32 0.3275911, %v1440_v49  ;;  %v1443_v50 = vand.u32 2147483647, %v4903_v31  ;;  %v1664_v39 = vsub.f32 0.0, %v1440_v49 }
 0x12c   : > { %v4912_v28 = vmul.f32 0.70710677, %v4905_v33  ;;  %v3694_v14 = vpop.f32.mrf.mxu0  ;;  %v4917_v34 = vadd.f32 %v3719_v35, %v1182_v17  ;;  %v1176_v51 = vadd.f32 %v1175_v53, %v987_v24  ;;  %v1681_v19 = vmul.f32 %v1665_v37, %v1441_v13 }
 0x12d   : > { %4079 = vrcp.f32 %v1473_v4  ;;  %v1472_v7 = vadd.f32 1.0, %v1456_v56  ;;  %v1459_v60 = vmul.f32 0.3275911, %v1443_v50  ;;  %v1667_v5 = vsub.f32 0.0, %v1443_v50 }
 0x12e   : > { %v1442_v20 = vand.u32 2147483647, %v4912_v28  ;;  %v4924_v57 = vmul.f32 0.70710677, %v4917_v34  ;;  %v1187_v16 = vpop.f32.mrf.mxu0  ;;  %v4926_v38 = vadd.f32 %v1338_v44, %v1176_v51  ;;  %v1680_v47 = vmul.f32 %v1664_v39, %v1440_v49 }
 0x12f   : > { %4081 = vrcp.f32 %v1472_v7  ;;  %v1475_v40 = vadd.f32 1.0, %v1459_v60  ;;  %v1194_v62 = vadd.f32 %v3694_v14, %v1011_v59  ;;  %v1188_v26 = vadd.f32 %v1187_v16, %v1003_v18 }
 0x130   : > { %v1458_v8 = vmul.f32 0.3275911, %v1442_v20  ;;  %v1445_v41 = vand.u32 2147483647, %v4924_v57  ;;  %v4930_v2 = vmul.f32 0.70710677, %v4926_v38  ;;  %v1683_v46 = vmul.f32 %v1667_v5, %v1443_v50  ;;  %v3697_v49 = vpop.f32.mrf.mxu0 }
 0x131   : > { %4083 = vrcp.f32 %v1475_v40  ;;  %v1698_v58 = vmul.f32 1.442695, %v1681_v19  ;;  %v4936_v3 = vadd.f32 %v3722_v22, %v1194_v62  ;;  %v4938_v30 = vadd.f32 %v1350_v9, %v1188_v26 }
 0x132   : > { %v1474_v6 = vadd.f32 1.0, %v1458_v8  ;;  %v1461_v13 = vmul.f32 0.3275911, %v1445_v41  ;;  %v1444_v45 = vand.u32 2147483647, %v4930_v2  ;;  %v4941_v35 = vmul.f32 0.5, %v4886_v1  ;;  %v1199_v26 = vpop.f32.mrf.mxu0 }
 0x133   : > { %v1696_v53 = vmul.f32 1.442695, %v1680_v47  ;;  %v1666_v4 = vsub.f32 0.0, %v1442_v20  ;;  %v4946_v17 = vmul.f32 0.5, %v1333_v42  ;;  %v4949_v61 = vmul.f32 0.70710677, %v4936_v3 }
 0x134   : > { %4085 = vrcp.f32 %v1474_v6  ;;  %v1477_v56 = vadd.f32 1.0, %v1461_v13  ;;  %v1460_v24 = vmul.f32 0.3275911, %v1444_v45  ;;  %v1669_v50 = vsub.f32 0.0, %v1445_v41 }
 0x135   : > { %v4952_v32 = vmul.f32 0.70710677, %v4938_v30  ;;  %v1206_v1 = vadd.f32 %v3697_v49, %v4832_v36  ;;  %v1702_v7 = vmul.f32 1.442695, %v1683_v46  ;;  %v1447_v12 = vand.u32 2147483647, %v4949_v61  ;;  %v3725_v36 = vpop.f32.mrf.mxu1 }
 0x136   : > { %4087 = vrcp.f32 %v1477_v56  ;;  %v1476_v44 = vadd.f32 1.0, %v1460_v24  ;;  %v1682_v14 = vmul.f32 %v1666_v4, %v1442_v20  ;;  %v4961_v39 = vmul.f32 0.5, %v4905_v33 }
 0x137   : > { %4089 = vpow2.f32 %v1698_v58  ;;  %v1446_v60 = vand.u32 2147483647, %v4952_v32  ;;  %v1668_v51 = vsub.f32 0.0, %v1444_v45  ;;  %v1463_v59 = vmul.f32 0.3275911, %v1447_v12 }
 0x138   : > { %4091 = vpow2.f32 %v1696_v53  ;;  %v1685_v18 = vmul.f32 %v1669_v50, %v1445_v41  ;;  %v4965_v19 = vadd.f32 %v3725_v36, %v1206_v1  ;;  %v1671_v16 = vsub.f32 0.0, %v1447_v12 }
 0x139   : > { %4093 = vrcp.f32 %v1476_v44  ;;  %v1462_v15 = vmul.f32 0.3275911, %v1446_v60  ;;  %v1479_v20 = vadd.f32 1.0, %v1463_v59  ;;  %v1700_v6 = vmul.f32 1.442695, %v1682_v14 }
 0x13a   : > { %v4955_v37 = vpop.eup %4079  ;;  %4095 = vpow2.f32 %v1702_v7  ;;  %v1670_v62 = vsub.f32 0.0, %v1446_v60  ;;  %v1684_v41 = vmul.f32 %v1668_v51, %v1444_v45  ;;  %v1706_v46 = vmul.f32 1.442695, %v1685_v18 }
 0x13b   : > { %v1521_v42 = vmul.f32 1.0614054, %v4955_v37  ;;  %v1478_v47 = vadd.f32 1.0, %v1462_v15  ;;  %4097 = vrcp.f32 %v1479_v20  ;;  %v4973_v49 = vmul.f32 0.70710677, %v4965_v19 }
 0x13c   : > { %v4963_v40 = vpop.eup %4081  ;;  %v1687_v24 = vmul.f32 %v1671_v16, %v1447_v12  ;;  %v1200_v50 = vadd.f32 %v1199_v26, %v4933_v63  ;;  %v1686_v45 = vmul.f32 %v1670_v62, %v1446_v60  ;;  %v1704_v59 = vmul.f32 1.442695, %v1684_v41 }
 0x13d   : > { %v3233_v8 = vadd.f32 -1.4531521, %v1521_v42  ;;  %v1520_v22 = vmul.f32 1.0614054, %v4963_v40  ;;  %4099 = vrcp.f32 %v1478_v47  ;;  %v4982_v44 = vand.u32 2147483647, %v4973_v49  ;;  %v1362_v42 = vpop.f32.mrf.mxu1 }
 0x13e   : > { %v4968_v5 = vpop.eup %4083  ;;  %v4985_v36 = vadd.f32 %v1362_v42, %v1200_v50  ;;  %4101 = vpow2.f32 %v1700_v6  ;;  %v1708_v62 = vmul.f32 1.442695, %v1686_v45  ;;  %vm1763_vm3 = vcmp.lt.f32.partialorder %v4903_v31, 0.0 }
 0x13f   : > { %v1553_v33 = vmul.f32 %v4955_v37, %v3233_v8  ;;  %v3232_v58 = vadd.f32 -1.4531521, %v1520_v22  ;;  %v1523_v13 = vmul.f32 1.0614054, %v4968_v5  ;;  %v1465_v63 = vmul.f32 0.3275911, %v4982_v44 }
 0x140   : > { %4103 = vpow2.f32 %v1706_v46  ;;  %v1710_v22 = vmul.f32 1.442695, %v1687_v24  ;;  %v4996_v41 = vmul.f32 0.70710677, %v4985_v36  ;;  %vm1762_vm4 = vcmp.lt.f32.partialorder %v4912_v28, 0.0 }
 0x141   : > { %v1569_v9 = vadd.f32 1.4214138, %v1553_v33  ;;  %v4975_v53 = vpop.eup %4085  ;;  %v1552_v4 = vmul.f32 %v4963_v40, %v3232_v58  ;;  %v3235_v56 = vadd.f32 -1.4531521, %v1523_v13  ;;  %v1481_v13 = vadd.f32 1.0, %v1465_v63 }
 0x142   : > { %v1522_v7 = vmul.f32 1.0614054, %v4975_v53  ;;  %4105 = vpow2.f32 %v1704_v59  ;;  %vm1765_vm5 = vcmp.lt.f32.partialorder %v4924_v57, 0.0  ;;  %vm1764_vm6 = vcmp.lt.f32.partialorder %v4930_v2, 0.0 }
 0x143   : > { %v1585_v1 = vmul.f32 %v4955_v37, %v1569_v9  ;;  %v1568_v14 = vadd.f32 1.4214138, %v1552_v4  ;;  %v1555_v51 = vmul.f32 %v4968_v5, %v3235_v56  ;;  %v4988_v12 = vpop.eup %4087  ;;  %4107 = vpow2.f32 %v1710_v22 }
 0x144   : > { %v3234_v18 = vadd.f32 -1.4531521, %v1522_v7  ;;  %v4090_v20 = vpop.eup %4089  ;;  %v1525_v47 = vmul.f32 1.0614054, %v4988_v12  ;;  %4109 = vpow2.f32 %v1708_v62  ;;  %v5011_v22 = vand.u32 2147483647, %v4996_v41 }
 0x145   : > { %v3249_v8 = vadd.f32 -0.28449672, %v1585_v1  ;;  %v1584_v15 = vmul.f32 %v4963_v40, %v1568_v14  ;;  %v1571_v60 = vadd.f32 1.4214138, %v1555_v51  ;;  %v4092_v26 = vpop.eup %4091  ;;  %4111 = vrcp.f32 %v1481_v13 }
 0x146   : > { %v1554_v33 = vmul.f32 %v4975_v53, %v3234_v18  ;;  %v4998_v9 = vpop.eup %4093  ;;  %v3237_v56 = vadd.f32 -1.4531521, %v1525_v47  ;;  %vm1767_vm7 = vcmp.lt.f32.partialorder %v4949_v61, 0.0  ;;  %vm1766_vm8 = vcmp.lt.f32.partialorder %v4952_v32, 0.0 }
 0x147   : > { %v1617_v16 = vmul.f32 %v4955_v37, %v3249_v8  ;;  %v3248_v58 = vadd.f32 -0.28449672, %v1584_v15  ;;  %v1587_v6 = vmul.f32 %v4968_v5, %v1571_v60  ;;  %v1524_v1 = vmul.f32 1.0614054, %v4998_v9  ;;  %v4096_v7 = vpop.eup %4095 }
 0x148   : > { %v1570_v4 = vadd.f32 1.4214138, %v1554_v33  ;;  %v1557_v14 = vmul.f32 %v4988_v12, %v3237_v56  ;;  %v5007_v18 = vpop.eup %4097  ;;  %vm1769_vm9 = vcmp.lt.f32.partialorder %v4973_v49, 0.0  ;;  %vm1768_vm10 = vcmp.lt.f32.partialorder %v4996_v41, 0.0 }
 0x149   : > { %v1633_v46 = vadd.f32 0.2548296, %v1617_v16  ;;  %v1616_v24 = vmul.f32 %v4963_v40, %v3248_v58  ;;  %v3251_v50 = vadd.f32 -0.28449672, %v1587_v6  ;;  %v3236_v59 = vadd.f32 -1.4531521, %v1524_v1 }
 0x14a   : > { %v1586_v42 = vmul.f32 %v4975_v53, %v1570_v4  ;;  %v1573_v60 = vadd.f32 1.4214138, %v1557_v14  ;;  %v1527_v62 = vmul.f32 1.0614054, %v5007_v18 }
 0x14b   : > { %v1649_v45 = vmul.f32 %v4955_v37, %v1633_v46  ;;  %v1632_v51 = vadd.f32 0.2548296, %v1616_v24  ;;  %v1619_v8 = vmul.f32 %v4968_v5, %v3251_v50  ;;  %v5013_v37 = vpop.eup %4099  ;;  %v1556_v47 = vmul.f32 %v4998_v9, %v3236_v59 }
 0x14c   : > { %v3250_v15 = vadd.f32 -0.28449672, %v1586_v42  ;;  %v1589_v6 = vmul.f32 %v4988_v12, %v1573_v60  ;;  %v1526_v13 = vmul.f32 1.0614054, %v5013_v37  ;;  %v3239_v24 = vadd.f32 -1.4531521, %v1527_v62  ;;  %v4102_v42 = vpop.eup %4101 }
 0x14d   : > { %v1729_v63 = vmul.f32 %v4090_v20, %v1649_v45  ;;  %v1648_v16 = vmul.f32 %v4963_v40, %v1632_v51  ;;  %v1635_v33 = vadd.f32 0.2548296, %v1619_v8  ;;  %v1572_v56 = vadd.f32 1.4214138, %v1556_v47 }
 0x14e   : > { %v1618_v20 = vmul.f32 %v4975_v53, %v3250_v15  ;;  %v3253_v1 = vadd.f32 -0.28449672, %v1589_v6  ;;  %v1673_v45 = vsub.f32 0.0, %v4982_v44  ;;  %v1559_v59 = vmul.f32 %v5007_v18, %v3239_v24 }
 0x14f   : > { %v1745_v58 = vsub.f32 1.0, %v1729_v63  ;;  %v1728_v46 = vmul.f32 %v4092_v26, %v1648_v16  ;;  %v1651_v4 = vmul.f32 %v4968_v5, %v1635_v33  ;;  %v1588_v8 = vmul.f32 %v4998_v9, %v1572_v56  ;;  %v4104_v63 = vpop.eup %4103 }
 0x150   : > { %v1634_v50 = vadd.f32 0.2548296, %v1618_v20  ;;  %v1621_v15 = vmul.f32 %v4988_v12, %v3253_v1  ;;  %v3238_v60 = vadd.f32 -1.4531521, %v1526_v13  ;;  %v1575_v6 = vadd.f32 1.4214138, %v1559_v59 }
 0x151   : > { %v1777_v40 = vsub.f32 0.0, %v1745_v58  ;;  %v1744_v14 = vsub.f32 1.0, %v1728_v46  ;;  %v1731_v51 = vmul.f32 %v4096_v7, %v1651_v4  ;;  %v3252_v62 = vadd.f32 -0.28449672, %v1588_v8  ;;  %v4106_v4 = vpop.eup %4105 }
 0x152   : > { %v1650_v26 = vmul.f32 %v4975_v53, %v1634_v50  ;;  %v1637_v20 = vadd.f32 0.2548296, %v1621_v15  ;;  %v1558_v46 = vmul.f32 %v5013_v37, %v3238_v60  ;;  %v4108_v13 = vpop.eup %4107  ;;  %v1591_v1 = vmul.f32 %v5007_v18, %v1575_v6  ;;  %v3700_v6 = vpop.f32.mrf.mxu0 }
 0x153   : > { %v1793_v5 = vsel %vm1761_vm1, %v1777_v40, %v1745_v58  ;;  %v1776_v33 = vsub.f32 0.0, %v1744_v14  ;;  %v1747_v47 = vsub.f32 1.0, %v1731_v51  ;;  %v1620_v58 = vmul.f32 %v4998_v9, %v3252_v62 }
 0x154   : > { %v1809_v16 = vadd.f32 1.0, %v1793_v5  ;;  %v1730_v7 = vmul.f32 %v4102_v42, %v1650_v26  ;;  %v1653_v50 = vmul.f32 %v4988_v12, %v1637_v20  ;;  %v5041_v42 = vpop.eup %4109  ;;  %v1574_v23 = vadd.f32 1.4214138, %v1558_v46 }
 0x155   : > { %v1792_v55 = vsel %vm1760_vm2, %v1776_v33, %v1744_v14  ;;  %v1779_v53 = vsub.f32 0.0, %v1747_v47  ;;  %v1636_v51 = vadd.f32 0.2548296, %v1620_v58  ;;  %v1464_v14 = vmul.f32 0.3275911, %v5011_v22  ;;  %v5046_v8 = vpop.eup %4111 }
 0x156   : > { %v5033_v56 = vmul.f32 %v1809_v16, %v4941_v35  ;;  %v1808_v24 = vadd.f32 1.0, %v1792_v55  ;;  %v1746_v40 = vsub.f32 1.0, %v1730_v7  ;;  %v1733_v15 = vmul.f32 %v4104_v63, %v1653_v50 }
 0x157   : > { %v1795_v35 = vsel %vm1763_vm3, %v1779_v53, %v1747_v47  ;;  %v1652_v12 = vmul.f32 %v4998_v9, %v1636_v51  ;;  %v3255_v60 = vadd.f32 -0.28449672, %v1591_v1  ;;  %v1590_v16 = vmul.f32 %v5013_v37, %v1574_v23 }
 0x158   : > { %v5049_v59 = vmul.f32 %v1808_v24, %v4944_v27  ;;  %v1811_v5 = vadd.f32 1.0, %v1795_v35  ;;  %v1778_v26 = vsub.f32 0.0, %v1746_v40  ;;  %v1689_v31 = vmul.f32 %v1673_v45, %v4982_v44 }
 0x159   : > { %v5055_v33 = vand.u32 4294901760, %v5033_v56  ;;  %v1749_v62 = vsub.f32 1.0, %v1733_v15  ;;  %v1732_v9 = vmul.f32 %v4106_v4, %v1652_v12  ;;  %v1623_v20 = vmul.f32 %v5007_v18, %v3255_v60  ;;  %v3728_v60 = vpop.f32.mrf.mxu1 }
 0x15a   : > { %v5058_v47 = vand.u32 4294901760, %v5049_v59  ;;  %v1794_v27 = vsel %vm1762_vm4, %v1778_v26, %v1746_v40  ;;  %v5063_v7 = vmul.f32 %v1811_v5, %v4946_v17  ;;  %v3254_v44 = vadd.f32 -0.28449672, %v1590_v16  ;;  %v1211_v16 = vpop.f32.mrf.mxu0 }
 0x15b   : > { %5989 = vst [vmem:[#allocation47_spill] sm:$0xff] %v5055_v33  ;;  %v1810_v63 = vadd.f32 1.0, %v1794_v27  ;;  %v1781_v46 = vsub.f32 0.0, %v1749_v62  ;;  %v1480_v45 = vadd.f32 1.0, %v1464_v14  ;;  %v1748_v28 = vsub.f32 1.0, %v1732_v9 }
 0x15c   : > { %5990 = vst [vmem:[#allocation48_spill] sm:$0xff] %v5058_v47  ;;  %3823 = vmatprep.mubr.f32.mxu1 %v5058_v47  ;;  %v1639_v53 = vadd.f32 0.2548296, %v1623_v20  ;;  %v1714_v58 = vmul.f32 1.442695, %v1689_v31  ;;  %v1622_v4 = vmul.f32 %v5013_v37, %v3254_v44  ;;  %v1218_v40 = vadd.f32 %v3700_v6, %v4848_v29  ;;  %v3703_v44 = vpop.f32.mrf.mxu0 }
 0x15d   : > { %v5069_v55 = vmul.f32 %v1810_v63, %v4961_v39  ;;  %3824 = vmatmul.mubr.f32.vlgmr.msra.gmra.mxu1 %v5055_v33  ;;  %v1797_v17 = vsel %vm1765_vm5, %v1781_v46, %v1749_v62  ;;  %v1529_v24 = vmul.f32 1.0614054, %v5046_v8  ;;  %v5079_v50 = vand.u32 4294901760, %v5063_v7 }
 0x15e   : > { %3904 = vmatpush3.msra.mxu1 %v4536_v43  ;;  %v1813_v1 = vadd.f32 1.0, %v1797_v17  ;;  %v1780_v35 = vsub.f32 0.0, %v1748_v28  ;;  %v1655_v57 = vmul.f32 %v5007_v18, %v1639_v53  ;;  %v1638_v51 = vadd.f32 0.2548296, %v1622_v4 }
 0x15f   : > { %5991 = vst [vmem:[#allocation49_spill] sm:$0xff] %v5079_v50  ;;  %v5082_v39 = vand.u32 4294901760, %v5069_v55  ;;  %3905 = vmatprep.subr.mxu1 %v4561_v54  ;;  %v3241_v23 = vadd.f32 -1.4531521, %v1529_v24  ;;  %4113 = vrcp.f32 %v1480_v45  ;;  %v1413_v29 = vmul.f32 0.5, %v4917_v34  ;;  %v5994_v45 = vld [vmem:[#allocation10_spill] sm:$0xff]  ;;  %v1374_v24 = vpop.f32.mrf.mxu1 }
 0x160   : > { %3906 = vmatpush3.msra.mxu1 %v4561_v54  ;;  %v1412_v14 = vmul.f32 0.5, %v4926_v38  ;;  %v1796_v5 = vsel %vm1764_vm6, %v1780_v35, %v1748_v28  ;;  %4115 = vpow2.f32 %v1714_v58  ;;  %v1735_v15 = vmul.f32 %v4108_v13, %v1655_v57 }
 0x161   : > { %5992 = vst [vmem:[#allocation50_spill] sm:$0xff] %v5082_v39  ;;  %3826 = vmatprep.mubr.f32.mxu1 %v5082_v39  ;;  %3907 = vmatprep.subr.mxu1 %v4572_v10  ;;  %v1812_v26 = vadd.f32 1.0, %v1796_v5  ;;  %v1654_v18 = vmul.f32 %v5013_v37, %v1638_v51  ;;  %v1561_v12 = vmul.f32 %v5046_v8, %v3241_v23  ;;  %v1672_v38 = vsub.f32 0.0, %v5011_v22  ;;  %v1223_v23 = vpop.f32.mrf.mxu0 }
 0x162   : > { %3827 = vmatmul.mubr.f32.gmra.mxu1 %v5079_v50  ;;  %v5096_v34 = vmul.f32 %v1813_v1, %v1413_v29  ;;  %v5099_v2 = vadd.f32 %v3728_v60, %v1218_v40  ;;  %v1751_v27 = vsub.f32 1.0, %v1735_v15  ;;  %v1415_v62 = vmul.f32 0.5, %v4936_v3 }
 0x163   : > { %3908 = vmatpush3.msra.mxu1 %v4572_v10  ;;  %v5102_v31 = vmul.f32 %v1812_v26, %v1412_v14  ;;  %v1734_v13 = vmul.f32 %v5041_v42, %v1654_v18  ;;  %v1577_v37 = vadd.f32 1.4214138, %v1561_v12  ;;  %v1414_v63 = vmul.f32 0.5, %v4938_v30  ;;  %v5997_v26 = vld [vmem:[#allocation14_spill] sm:$0xff] }
 0x164   : > { %3909 = vmatprep.subr.mxu1 %v4589_v25  ;;  %v5110_v9 = vmul.f32 0.70710677, %v5099_v2  ;;  %v1783_v6 = vsub.f32 0.0, %v1751_v27  ;;  %v5120_v3 = vsub.f32 %v5033_v56, %v5055_v33  ;;  %v5123_v30 = vand.u32 4294901760, %v5096_v34  ;;  %v5996_v56 = vld [vmem:[#allocation13_spill] sm:$0xff] }
 0x165   : > { %3910 = vmatpush3.msra.mxu1 %v4589_v25  ;;  %v5114_v20 = vand.u32 4294901760, %v5102_v31  ;;  %v1750_v46 = vsub.f32 1.0, %v1734_v13  ;;  %v1593_v42 = vmul.f32 %v5046_v8, %v1577_v37  ;;  %v1212_v28 = vadd.f32 %v1211_v16, %v4854_v11 }
 0x166   : > { %3911 = vmatprep.subr.mxu1 %v5994_v45  ;;  %5995 = vst [vmem:[#allocation10_spill] sm:$0xff] %v5123_v30  ;;  %v5126_v61 = vand.u32 2147483647, %v5110_v9  ;;  %v1799_v53 = vsel %vm1767_vm7, %v1783_v6, %v1751_v27  ;;  %v1688_v4 = vmul.f32 %v1672_v38, %v5011_v22  ;;  %v5139_v57 = vmul.f32 0.5, %v4965_v19  ;;  %v5998_v27 = vld [vmem:[#allocation18_spill] sm:$0xff] }
 0x167   : > { %5993 = vst [vmem:[#allocation51_spill] sm:$0xff] %v5114_v20  ;;  %3912 = vmatpush3.msra.mxu1 %v5994_v45  ;;  %v1782_v58 = vsub.f32 0.0, %v1750_v46  ;;  %v3257_v17 = vadd.f32 -0.28449672, %v1593_v42  ;;  %3829 = vmatprep.mubr.f32.mxu1 %v5114_v20  ;;  %v1815_v40 = vadd.f32 1.0, %v1799_v53  ;;  %v5135_v35 = vadd.f32 %v1374_v24, %v1212_v28  ;;  %v3706_v42 = vpop.f32.mrf.mxu0 }
 0x168   : > { %3913 = vmatprep.subr.mxu1 %v5996_v56  ;;  %v1467_v1 = vmul.f32 0.3275911, %v5126_v61  ;;  %3830 = vmatmul.mubr.f32.gmra.mxu1 %v5123_v30  ;;  %v1230_v51 = vadd.f32 %v3703_v44, %v4859_v0  ;;  %v5916_v29 = vand.u32 4294901760, %v5120_v3  ;;  %v5146_v14 = vmul.f32 0.5, %v4985_v36  ;;  %v3731_v0 = vpop.f32.mrf.mxu1  ;;  %v6000_v44 = vld [vmem:[#allocation22_spill] sm:$0xff] }
 0x169   : > { %v1798_v11 = vsel %vm1766_vm8, %v1782_v58, %v1750_v46  ;;  %v1625_v22 = vmul.f32 %v5046_v8, %v3257_v17  ;;  %3914 = vmatpush3.msra.mxu1 %v5996_v56  ;;  %v5149_v15 = vmul.f32 %v1815_v40, %v1415_v62  ;;  %v1712_v18 = vmul.f32 1.442695, %v1688_v4 }
 0x16a   : > { %v1814_v32 = vadd.f32 1.0, %v1798_v11  ;;  %v1483_v5 = vadd.f32 1.0, %v1467_v1  ;;  %3915 = vmatprep.subr.mxu1 %v5997_v26  ;;  %v5152_v12 = vmul.f32 0.70710677, %v5135_v35  ;;  %v5160_v36 = vadd.f32 %v3731_v0, %v1230_v51  ;;  %v1386_v4 = vpop.f32.mrf.mxu1  ;;  %v6002_v1 = vld [vmem:[#allocation25_spill] sm:$0xff] }
 0x16b   : > { %v1641_v19 = vadd.f32 0.2548296, %v1625_v22  ;;  %3916 = vmatpush3.msra.mxu1 %v5997_v26  ;;  %v1224_v38 = vadd.f32 %v1223_v23, %v4867_v48  ;;  %v5166_v37 = vsub.f32 %v5049_v59, %v5058_v47  ;;  %v5175_v46 = vsub.f32 %v5120_v3, %v5916_v29 }
 0x16c   : > { %v5155_v60 = vpop.eup %4113  ;;  %v5157_v16 = vmul.f32 %v1814_v32, %v1414_v63  ;;  %4117 = vrcp.f32 %v1483_v5  ;;  %3917 = vmatprep.subr.mxu1 %v5998_v27  ;;  %v1450_v63 = vand.u32 2147483647, %v5152_v12  ;;  %v5179_v48 = vsub.f32 %v5063_v7, %v5079_v50 }
 0x16d   : > { %v4116_v13 = vpop.eup %4115  ;;  %v1657_v62 = vmul.f32 %v5046_v8, %v1641_v19  ;;  %v1528_v6 = vmul.f32 1.0614054, %v5155_v60  ;;  %3918 = vmatpush3.msra.mxu1 %v5998_v27  ;;  %v1675_v8 = vsub.f32 0.0, %v5126_v61  ;;  %v5187_v28 = vand.u32 4294901760, %v5149_v15 }
 0x16e   : > { %v5182_v59 = vand.u32 4294901760, %v5157_v16  ;;  %3919 = vmatprep.subr.mxu1 %v6000_v44  ;;  %v1466_v17 = vmul.f32 0.3275911, %v1450_v63  ;;  %4119 = vpow2.f32 %v1712_v18  ;;  %v1674_v7 = vsub.f32 0.0, %v1450_v63 }
 0x16f   : > { %6001 = vst [vmem:[#allocation14_spill] sm:$0xff] %v5187_v28  ;;  %v1737_v53 = vmul.f32 %v4116_v13, %v1657_v62  ;;  %v3240_v58 = vadd.f32 -1.4531521, %v1528_v6  ;;  %3920 = vmatpush3.msra.mxu1 %v6000_v44  ;;  %v5191_v24 = vmul.f32 0.70710677, %v5160_v36  ;;  %v5193_v40 = vadd.f32 %v1386_v4, %v1224_v38  ;;  %v6004_v4 = vld [vmem:[#allocation29_spill] sm:$0xff] }
 0x170   : > { %5999 = vst [vmem:[#allocation13_spill] sm:$0xff] %v5182_v59  ;;  %3832 = vmatprep.mubr.f32.mxu1 %v5182_v59  ;;  %3921 = vmatprep.subr.mxu1 %v6002_v1  ;;  %v1482_v51 = vadd.f32 1.0, %v1466_v17  ;;  %v1242_v23 = vadd.f32 %v3706_v42, %v4874_v21  ;;  %v1691_v5 = vmul.f32 %v1675_v8, %v5126_v61  ;;  %v6003_v21 = vld [vmem:[#allocation28_spill] sm:$0xff]  ;;  %v3734_v8 = vpop.f32.mrf.mxu1  ;;  %v5226_v32 = vmul.f32 0.5, %v5099_v2 }
 0x171   : > { %v1753_v11 = vsub.f32 1.0, %v1737_v53  ;;  %v1560_v22 = vmul.f32 %v5155_v60, %v3240_v58  ;;  %3833 = vmatmul.mubr.f32.gmra.mxu1 %v5187_v28  ;;  %v1453_v19 = vand.u32 2147483647, %v5191_v24  ;;  %v5204_v18 = vmul.f32 0.70710677, %v5193_v40 }
 0x172   : > { %3922 = vmatpush3.msra.mxu1 %v6002_v1  ;;  %v5209_v0 = vsub.f32 %v5069_v55, %v5082_v39  ;;  %4121 = vrcp.f32 %v1482_v51  ;;  %v1690_v62 = vmul.f32 %v1674_v7, %v1450_v63  ;;  %v5216_v53 = vsub.f32 %v5096_v34, %v5123_v30  ;;  %v6006_v30 = vld [vmem:[#allocation37_spill] sm:$0xff] }
 0x173   : > { %v1785_v38 = vsub.f32 0.0, %v1753_v11  ;;  %v1576_v13 = vadd.f32 1.4214138, %v1560_v22  ;;  %3923 = vmatprep.subr.mxu1 %v6003_v21  ;;  %v1469_v6 = vmul.f32 0.3275911, %v1453_v19  ;;  %v1677_v42 = vsub.f32 0.0, %v1453_v19 }
 0x174   : > { %v1452_v61 = vand.u32 2147483647, %v5204_v18  ;;  %3924 = vmatpush3.msra.mxu1 %v6003_v21  ;;  %v5221_v17 = vadd.f32 %v3734_v8, %v1242_v23  ;;  %v1718_v7 = vmul.f32 1.442695, %v1691_v5  ;;  %v1716_v23 = vmul.f32 1.442695, %v1690_v62 }
 0x175   : > { %v1801_v55 = vsel %vm1769_vm9, %v1785_v38, %v1753_v11  ;;  %v1592_v58 = vmul.f32 %v5155_v60, %v1576_v13  ;;  %3925 = vmatprep.subr.mxu1 %v6004_v4  ;;  %v1485_v22 = vadd.f32 1.0, %v1469_v6  ;;  %v1235_v11 = vpop.f32.mrf.mxu0  ;;  %v6005_v38 = vld [vmem:[#allocation33_spill] sm:$0xff]  ;;  %v1693_v13 = vmul.f32 %v1677_v42, %v1453_v19 }
 0x176   : > { %v1817_v63 = vadd.f32 1.0, %v1801_v55  ;;  %v1468_v51 = vmul.f32 0.3275911, %v1452_v61  ;;  %3926 = vmatpush3.msra.mxu1 %v6004_v4  ;;  %v1676_v34 = vsub.f32 0.0, %v1452_v61  ;;  %v5229_v49 = vmul.f32 0.70710677, %v5221_v17 }
 0x177   : > { %v3256_v29 = vadd.f32 -0.28449672, %v1592_v58  ;;  %3927 = vmatprep.subr.mxu1 %v6005_v38  ;;  %4123 = vrcp.f32 %v1485_v22  ;;  %v5237_v6 = vsub.f32 %v5102_v31, %v5114_v20  ;;  %v1236_v42 = vadd.f32 %v1235_v11, %v4879_v52 }
 0x178   : > { %v1484_v8 = vadd.f32 1.0, %v1468_v51  ;;  %3928 = vmatpush3.msra.mxu1 %v6005_v38  ;;  %v1833_v2 = vmul.f32 %v1817_v63, %v5139_v57  ;;  %v1455_v58 = vand.u32 2147483647, %v5229_v49  ;;  %4125 = vpow2.f32 %v1718_v7  ;;  %v6007_v63 = vld [vmem:[#allocation40_spill] sm:$0xff] }
 0x179   : > { %v5233_v5 = vpop.eup %4117  ;;  %v1624_v55 = vmul.f32 %v5155_v60, %v3256_v29  ;;  %3929 = vmatprep.subr.mxu1 %v6006_v30  ;;  %v1692_v19 = vmul.f32 %v1676_v34, %v1452_v61  ;;  %v5248_v31 = vsub.f32 %v5149_v15, %v5187_v28  ;;  %v1398_v29 = vpop.f32.mrf.mxu1  ;;  %v1722_v7 = vmul.f32 1.442695, %v1693_v13 }
 0x17a   : > { %v1531_v62 = vmul.f32 1.0614054, %v5233_v5  ;;  %3930 = vmatpush3.msra.mxu1 %v6006_v30  ;;  %4127 = vrcp.f32 %v1484_v8  ;;  %v1471_v57 = vmul.f32 0.3275911, %v1455_v58  ;;  %v5252_v61 = vadd.f32 %v1398_v29, %v1236_v42 }
 0x17b   : > { %v1640_v22 = vadd.f32 0.2548296, %v1624_v55  ;;  %3931 = vmatprep.subr.mxu1 %v6007_v63  ;;  %4129 = vpow2.f32 %v1716_v23  ;;  %v4120_v52 = vpop.eup %4119  ;;  %v5255_v34 = vand.u32 4294901760, %v1833_v2  ;;  %v5923_v8 = vand.u32 4294901760, %v5166_v37  ;;  %v6009_v55 = vld [vmem:[#allocation43_spill] sm:$0xff] }
 0x17c   : > { %v3243_v51 = vadd.f32 -1.4531521, %v1531_v62  ;;  %3932 = vmatpush3.msra.mxu1 %v6007_v63  ;;  %v1487_v11 = vadd.f32 1.0, %v1471_v57  ;;  %v1720_v20 = vmul.f32 1.442695, %v1692_v19  ;;  %v1679_v62 = vsub.f32 0.0, %v1455_v58 }
 0x17d   : > { %6008 = vst [vmem:[#allocation18_spill] sm:$0xff] %v5255_v34  ;;  %v1656_v15 = vmul.f32 %v5155_v60, %v1640_v22  ;;  %3933 = vmatprep.subr.mxu1 %v6009_v55  ;;  %v5262_v23 = vmul.f32 0.70710677, %v5252_v61  ;;  %v1947_v60 = vsub.f32 %v5166_v37, %v5923_v8  ;;  %v5274_v19 = vsub.f32 %v5157_v16, %v5182_v59 }
 0x17e   : > { %v1563_v28 = vmul.f32 %v5233_v5, %v3243_v51  ;;  %3934 = vmatpush3.msra.mxu1 %v6009_v55  ;;  %4131 = vrcp.f32 %v1487_v11  ;;  %v5278_v51 = vsub.f32 %v1833_v2, %v5255_v34  ;;  %v1695_v42 = vmul.f32 %v1679_v62, %v1455_v58 }
 0x17f   : > { %v1736_v13 = vmul.f32 %v4120_v52, %v1656_v15  ;;  %4015 = vmatprep.subr.mxu1 %v4536_v43  ;;  %v5270_v22 = vpop.eup %4121  ;;  %4133 = vpow2.f32 %v1722_v7  ;;  %v1454_v29 = vand.u32 2147483647, %v5262_v23  ;;  %v1948_v11 = vand.u32 4294901760, %v1947_v60 }
 0x180   : > { %v1579_v57 = vadd.f32 1.4214138, %v1563_v28  ;;  %v1530_v15 = vmul.f32 1.0614054, %v5270_v22  ;;  %4135 = vpow2.f32 %v1720_v20  ;;  %v6010_v16 = vand.u32 4294901760, %v5209_v0 }
 0x181   : > { %v1752_v52 = vsub.f32 1.0, %v1736_v13  ;;  %v1470_v50 = vmul.f32 0.3275911, %v1454_v29  ;;  %3767 = vmatprep.mubr.f32.mxu0 %v1948_v11  ;;  %v5933_v7 = vand.u32 4294901760, %v5179_v48  ;;  %v1678_v13 = vsub.f32 0.0, %v1454_v29  ;;  %v6013_v11 = vld [vmem:[#allocation5_spill] sm:$0xff] }
 0x182   : > { %v1595_v8 = vmul.f32 %v5233_v5, %v1579_v57  ;;  %v3242_v33 = vadd.f32 -1.4531521, %v1530_v15  ;;  %v1967_v28 = vsub.f32 %v5209_v0, %v6010_v16  ;;  %v6011_v55 = vand.u32 4294901760, %v5175_v46  ;;  %v6012_v57 = vld [vmem:[#allocation3_spill] sm:$0xff] }
 0x183   : > { %v1784_v39 = vsub.f32 0.0, %v1752_v52  ;;  %v1486_v59 = vadd.f32 1.0, %v1470_v50  ;;  %v5934_v60 = vand.u32 4294901760, %v5237_v6  ;;  %v1977_v50 = vsub.f32 %v5179_v48, %v5933_v7 }
 0x184   : > { %v3259_v2 = vadd.f32 -0.28449672, %v1595_v8  ;;  %3768 = vmatmul.mubr.f32.vlgmr.msra.gmra.mxu0 %v6011_v55  ;;  %v5289_v20 = vpop.eup %4123  ;;  %v1562_v62 = vmul.f32 %v5270_v22, %v3242_v33  ;;  %v1968_v15 = vand.u32 4294901760, %v1967_v28  ;;  %v5937_v7 = vand.u32 4294901760, %v5216_v53 }
 0x185   : > { %v1800_v58 = vsel %vm1768_vm10, %v1784_v39, %v1752_v52  ;;  %3848 = vmatpush3.msra.mxu0 %v6012_v57  ;;  %v1533_v55 = vmul.f32 1.0614054, %v5289_v20  ;;  %4137 = vrcp.f32 %v1486_v59  ;;  %v4126_v16 = vpop.eup %4125  ;;  %v1726_v39 = vmul.f32 1.442695, %v1695_v42  ;;  %v6014_v59 = vld [vmem:[#allocation7_spill] sm:$0xff] }
 0x186   : > { %v1816_v8 = vadd.f32 1.0, %v1800_v58  ;;  %v1627_v46 = vmul.f32 %v5233_v5, %v3259_v2  ;;  %3849 = vmatprep.subr.mxu0 %v6013_v11  ;;  %v1578_v41 = vadd.f32 1.4214138, %v1562_v62  ;;  %3770 = vmatprep.mubr.f32.mxu0 %v1968_v15  ;;  %v1978_v33 = vand.u32 4294901760, %v1977_v50 }
 0x187   : > { %3850 = vmatpush3.msra.mxu0 %v6013_v11  ;;  %v1987_v52 = vsub.f32 %v5237_v6, %v5934_v60  ;;  %v5305_v28 = vpop.eup %4127  ;;  %v3245_v57 = vadd.f32 -1.4531521, %v1533_v55  ;;  %vm1771_vm11 = vcmp.lt.f32.partialorder %v5110_v9, 0.0  ;;  %v1694_v50 = vmul.f32 %v1678_v13, %v1454_v29 }
 0x188   : > { %v1832_v2 = vmul.f32 %v1816_v8, %v5146_v14  ;;  %v1643_v58 = vadd.f32 0.2548296, %v1627_v46  ;;  %3851 = vmatprep.subr.mxu0 %v6014_v59  ;;  %v4130_v62 = vpop.eup %4129  ;;  %v1594_v42 = vmul.f32 %v5270_v22, %v1578_v41  ;;  %v1532_v15 = vmul.f32 1.0614054, %v5305_v28  ;;  %3771 = vmatmul.mubr.f32.gmra.mxu0 %v1978_v33  ;;  %v6016_v41 = vld [vmem:[#allocation9_spill] sm:$0xff] }
 0x189   : > { %v1988_v11 = vand.u32 4294901760, %v1987_v52  ;;  %v1565_v8 = vmul.f32 %v5289_v20, %v3245_v57  ;;  %3852 = vmatpush3.msra.mxu0 %v6014_v59  ;;  %v1997_v46 = vsub.f32 %v5216_v53, %v5937_v7  ;;  %v5942_v29 = vand.u32 4294901760, %v5274_v19  ;;  %v6017_v7 = vld [vmem:[#allocation12_spill] sm:$0xff] }
 0x18a   : > { %v5313_v60 = vand.u32 4294901760, %v1832_v2  ;;  %v1659_v14 = vmul.f32 %v5233_v5, %v1643_v58  ;;  %v3258_v55 = vadd.f32 -0.28449672, %v1594_v42  ;;  %v3244_v47 = vadd.f32 -1.4531521, %v1532_v15  ;;  %3853 = vmatprep.subr.mxu0 %v6016_v41 }
 0x18b   : > { %3773 = vmatprep.mubr.f32.mxu0 %v1988_v11  ;;  %v5944_v13 = vand.u32 4294901760, %v5248_v31  ;;  %v5324_v33 = vpop.eup %4131  ;;  %v1581_v58 = vadd.f32 1.4214138, %v1565_v8  ;;  %3854 = vmatpush3.msra.mxu0 %v6016_v41  ;;  %v1998_v57 = vand.u32 4294901760, %v1997_v46  ;;  %4139 = vpow2.f32 %v1726_v39 }
 0x18c   : > { %6015 = vst [vmem:[#allocation22_spill] sm:$0xff] %v5313_v60  ;;  %v5327_v5 = vsub.f32 %v1832_v2, %v5313_v60  ;;  %v1739_v52 = vmul.f32 %v4126_v16, %v1659_v14  ;;  %3835 = vmatprep.mubr.f32.mxu1 %v5313_v60  ;;  %v4134_v59 = vpop.eup %4133  ;;  %v1626_v42 = vmul.f32 %v5270_v22, %v3258_v55  ;;  %v1535_v11 = vmul.f32 1.0614054, %v5324_v33 }
 0x18d   : > { %v1564_v15 = vmul.f32 %v5305_v28, %v3244_v47  ;;  %3855 = vmatprep.subr.mxu0 %v6017_v7  ;;  %3836 = vmatmul.mubr.f32.gmra.mxu1 %v5255_v34  ;;  %v2007_v16 = vsub.f32 %v5274_v19, %v5942_v29  ;;  %v1597_v14 = vmul.f32 %v5289_v20, %v1581_v58  ;;  %v5344_v46 = vpop.eup %4135  ;;  %vm1770_vm12 = vcmp.lt.f32.partialorder %v5152_v12, 0.0 }
 0x18e   : > { %v1755_v2 = vsub.f32 1.0, %v1739_v52  ;;  %3774 = vmatmul.mubr.f32.gmra.mxu0 %v1998_v57  ;;  %v2017_v8 = vsub.f32 %v5248_v31, %v5944_v13  ;;  %v1642_v55 = vadd.f32 0.2548296, %v1626_v42  ;;  %v3247_v60 = vadd.f32 -1.4531521, %v1535_v11  ;;  %v6018_v52 = vld [vmem:[#allocation16_spill] sm:$0xff] }
 0x18f   : > { %v1580_v41 = vadd.f32 1.4214138, %v1564_v15  ;;  %3856 = vmatpush3.msra.mxu0 %v6017_v7  ;;  %v3261_v29 = vadd.f32 -0.28449672, %v1597_v14  ;;  %v2008_v58 = vand.u32 4294901760, %v2007_v16  ;;  %v6019_v42 = vand.u32 4294901760, %v5327_v5 }
 0x190   : > { %v1787_v34 = vsub.f32 0.0, %v1755_v2  ;;  %3857 = vmatprep.subr.mxu0 %v6018_v52  ;;  %v2018_v57 = vand.u32 4294901760, %v2017_v8  ;;  %v1658_v63 = vmul.f32 %v5270_v22, %v1642_v55  ;;  %v1567_v47 = vmul.f32 %v5324_v33, %v3247_v60  ;;  %v6020_v16 = vld [vmem:[#allocation17_spill] sm:$0xff] }
 0x191   : > { %v1596_v13 = vmul.f32 %v5305_v28, %v1580_v41  ;;  %3858 = vmatpush3.msra.mxu0 %v6018_v52  ;;  %v2027_v39 = vsub.f32 %v5327_v5, %v6019_v42  ;;  %v1629_v15 = vmul.f32 %v5289_v20, %v3261_v29  ;;  %v1724_v11 = vmul.f32 1.442695, %v1694_v50  ;;  %3776 = vmatprep.mubr.f32.mxu0 %v2008_v58 }
 0x192   : > { %v1803_v7 = vsel %vm1771_vm11, %v1787_v34, %v1755_v2  ;;  %3859 = vmatprep.subr.mxu0 %v6020_v16  ;;  %v2036_v22 = vand.u32 4294901760, %v5278_v51  ;;  %v5360_v14 = vpop.eup %4137  ;;  %v1738_v8 = vmul.f32 %v4130_v62, %v1658_v63  ;;  %v1583_v41 = vadd.f32 1.4214138, %v1567_v47  ;;  %3777 = vmatmul.mubr.f32.gmra.mxu0 %v2018_v57  ;;  %v6021_v62 = vld [vmem:[#allocation21_spill] sm:$0xff] }
 0x193   : > { %v1819_v60 = vadd.f32 1.0, %v1803_v7  ;;  %v3260_v55 = vadd.f32 -0.28449672, %v1596_v13  ;;  %v1645_v52 = vadd.f32 0.2548296, %v1629_v15  ;;  %3860 = vmatpush3.msra.mxu0 %v6020_v16  ;;  %v2028_v9 = vand.u32 4294901760, %v2027_v39 }
 0x194   : > { %v1534_v42 = vmul.f32 1.0614054, %v5360_v14  ;;  %v2037_v34 = vsub.f32 %v5278_v51, %v2036_v22  ;;  %v1754_v29 = vsub.f32 1.0, %v1738_v8  ;;  %v1599_v63 = vmul.f32 %v5324_v33, %v1583_v41  ;;  %3861 = vmatprep.subr.mxu0 %v6021_v62 }
 0x195   : > { %v1835_v50 = vmul.f32 %v1819_v60, %v5226_v32  ;;  %v1628_v2 = vmul.f32 %v5305_v28, %v3260_v55  ;;  %v1661_v13 = vmul.f32 %v5289_v20, %v1645_v52  ;;  %3862 = vmatpush3.msra.mxu0 %v6021_v62  ;;  %3779 = vmatprep.mubr.f32.mxu0 %v2028_v9  ;;  %v6022_v32 = vld [vmem:[#allocation24_spill] sm:$0xff]  ;;  %4141 = vpow2.f32 %v1724_v11  ;;  %v6024_v62 = vld [vmem:[#allocation31_spill] sm:$0xff] }
 0x196   : > { %v3246_v47 = vadd.f32 -1.4531521, %v1534_v42  ;;  %v2038_v58 = vand.u32 4294901760, %v2037_v34  ;;  %v1786_v39 = vsub.f32 0.0, %v1754_v29  ;;  %v3263_v15 = vadd.f32 -0.28449672, %v1599_v63  ;;  %3863 = vmatprep.subr.mxu0 %v6022_v32 }
 0x197   : > { %v5373_v57 = vand.u32 4294901760, %v1835_v50  ;;  %v1644_v7 = vadd.f32 0.2548296, %v1628_v2  ;;  %v1741_v16 = vmul.f32 %v4134_v59, %v1661_v13  ;;  %3864 = vmatpush3.msra.mxu0 %v6022_v32  ;;  %v1418_v41 = vmul.f32 0.5, %v5135_v35  ;;  %v6023_v34 = vld [vmem:[#allocation27_spill] sm:$0xff] }
 0x198   : > { %v1566_v60 = vmul.f32 %v5360_v14, %v3246_v47  ;;  %3780 = vmatmul.mubr.f32.gmra.mxu0 %v2038_v58  ;;  %v1802_v20 = vsel %vm1770_vm12, %v1786_v39, %v1754_v29  ;;  %v1631_v55 = vmul.f32 %v5324_v33, %v3263_v15  ;;  %3865 = vmatprep.subr.mxu0 %v6023_v34  ;;  %vm1773_vm13 = vcmp.lt.f32.partialorder %v5191_v24, 0.0  ;;  %v6025_v39 = vld [vmem:[#allocation32_spill] sm:$0xff] }
 0x199   : > { %v1660_v8 = vmul.f32 %v5305_v28, %v1644_v7  ;;  %v1818_v52 = vadd.f32 1.0, %v1802_v20  ;;  %v1757_v42 = vsub.f32 1.0, %v1741_v16  ;;  %v5384_v12 = vsub.f32 %v1835_v50, %v5373_v57  ;;  %3866 = vmatpush3.msra.mxu0 %v6023_v34  ;;  %v4140_v28 = vpop.eup %4139 }
 0x19a   : > { %v1582_v9 = vadd.f32 1.4214138, %v1566_v60  ;;  %v1647_v11 = vadd.f32 0.2548296, %v1631_v55  ;;  %3867 = vmatprep.subr.mxu0 %v6024_v62  ;;  %vm1772_vm14 = vcmp.lt.f32.partialorder %v5204_v18, 0.0  ;;  %v1420_v55 = vmul.f32 0.5, %v5193_v40 }
 0x19b   : > { %v1740_v59 = vmul.f32 %v5344_v46, %v1660_v8  ;;  %v1834_v29 = vmul.f32 %v1818_v52, %v1418_v41  ;;  %v1789_v2 = vsub.f32 0.0, %v1757_v42  ;;  %3868 = vmatpush3.msra.mxu0 %v6024_v62  ;;  %v1421_v46 = vmul.f32 0.5, %v5160_v36  ;;  %v6026_v36 = vld [vmem:[#allocation36_spill] sm:$0xff]  ;;  %v6027_v18 = vld [vmem:[#allocation39_spill] sm:$0xff] }
 0x19c   : > { %v1598_v63 = vmul.f32 %v5360_v14, %v1582_v9  ;;  %v1663_v13 = vmul.f32 %v5324_v33, %v1647_v11  ;;  %3869 = vmatprep.subr.mxu0 %v6025_v39  ;;  %v2056_v16 = vand.u32 4294901760, %v5384_v12  ;;  %vm1775_vm15 = vcmp.lt.f32.partialorder %v5229_v49, 0.0 }
 0x19d   : > { %v1756_v35 = vsub.f32 1.0, %v1740_v59  ;;  %v5393_v50 = vand.u32 4294901760, %v1834_v29  ;;  %v1805_v47 = vsel %vm1773_vm13, %v1789_v2, %v1757_v42  ;;  %3870 = vmatpush3.msra.mxu0 %v6025_v39  ;;  %v1423_v62 = vmul.f32 0.5, %v5221_v17 }
 0x19e   : > { %v3262_v58 = vadd.f32 -0.28449672, %v1598_v63  ;;  %v1821_v7 = vadd.f32 1.0, %v1805_v47  ;;  %v1743_v32 = vmul.f32 %v4140_v28, %v1663_v13  ;;  %3871 = vmatprep.subr.mxu0 %v6026_v36  ;;  %v2057_v59 = vsub.f32 %v5384_v12, %v2056_v16  ;;  %v6029_v47 = vld [vmem:[#allocation45_spill] sm:$0xff] }
 0x19f   : > { %v1788_v15 = vsub.f32 0.0, %v1756_v35  ;;  %v5400_v24 = vsub.f32 %v1834_v29, %v5393_v50  ;;  %3838 = vmatprep.mubr.f32.mxu1 %v5393_v50  ;;  %3872 = vmatpush3.msra.mxu0 %v6026_v36  ;;  %v6028_v29 = vld [vmem:[#allocation42_spill] sm:$0xff]  ;;  %vm1774_vm0 = vcmp.lt.f32.partialorder %v5262_v23, 0.0  ;;  %vm3149_vm1 = vcmask 7168  }
 0x1a0   : > { %v1630_v33 = vmul.f32 %v5360_v14, %v3262_v58  ;;  %v1837_v60 = vmul.f32 %v1821_v7, %v1421_v46  ;;  %v1759_v8 = vsub.f32 1.0, %v1743_v32  ;;  %3839 = vmatmul.mubr.f32.gmra.mxu1 %v5373_v57  ;;  %3873 = vmatprep.subr.mxu0 %v6027_v18  ;;  %v2058_v58 = vand.u32 4294901760, %v2057_v59 }
 0x1a1   : > { %v1804_v20 = vsel %vm1772_vm14, %v1788_v15, %v1756_v35  ;;  %v2046_v42 = vand.u32 4294901760, %v5400_v24  ;;  %3874 = vmatpush3.msra.mxu0 %v6027_v18 }
 0x1a2   : > { %v1820_v41 = vadd.f32 1.0, %v1804_v20  ;;  %v1646_v52 = vadd.f32 0.2548296, %v1630_v33  ;;  %v5411_v9 = vand.u32 4294901760, %v1837_v60  ;;  %v1791_v34 = vsub.f32 0.0, %v1759_v8  ;;  %3875 = vmatprep.subr.mxu0 %v6028_v29  ;;  %v4142_v2 = vpop.eup %4141 }
 0x1a3   : > { %v2047_v28 = vsub.f32 %v5400_v24, %v2046_v42  ;;  %3876 = vmatpush3.msra.mxu0 %v6028_v29 }
 0x1a4   : > { %v1836_v11 = vmul.f32 %v1820_v41, %v1420_v55  ;;  %v1662_v40 = vmul.f32 %v5360_v14, %v1646_v52  ;;  %v5424_v63 = vsub.f32 %v1837_v60, %v5411_v9  ;;  %v1807_v35 = vsel %vm1775_vm15, %v1791_v34, %v1759_v8  ;;  %3877 = vmatprep.subr.mxu0 %v6029_v47  ;;  %v6030_v60 = vld [vmem:[#allocation4_spill] sm:$0xff] }
 0x1a5   : > { %v1823_v49 = vadd.f32 1.0, %v1807_v35  ;;  %v2048_v14 = vand.u32 4294901760, %v2047_v28  ;;  %3878 = vmatpush3.msra.mxu0 %v6029_v47  ;;  %v1422_v41 = vmul.f32 0.5, %v5252_v61  ;;  %v6031_v61 = vand.u32 4294901760, %v5166_v37 }
 0x1a6   : > { %v5428_v13 = vand.u32 4294901760, %v1836_v11  ;;  %v1742_v46 = vmul.f32 %v4142_v2, %v1662_v40  ;;  %v2076_v39 = vand.u32 4294901760, %v5424_v63  ;;  %3959 = vmatprep.subr.mxu0 %v6030_v60  ;;  %v6032_v35 = vand.u32 4294901760, %v5120_v3 }
 0x1a7   : > { %v1839_v15 = vmul.f32 %v1823_v49, %v1423_v62  ;;  %3782 = vmatprep.mubr.f32.mxu0 %v2048_v14  ;;  %v6033_v49 = vand.u32 4294901760, %v5209_v0  ;;  %v6034_v47 = vand.u32 4294901760, %v5179_v48 }
 0x1a8   : > { %v5434_v7 = vsub.f32 %v1836_v11, %v5428_v13  ;;  %v1758_v17 = vsub.f32 1.0, %v1742_v46  ;;  %3841 = vmatprep.mubr.f32.mxu1 %v5428_v13  ;;  %3783 = vmatmul.mubr.f32.gmra.mxu0 %v2058_v58  ;;  %v2077_v20 = vsub.f32 %v5424_v63, %v2076_v39  ;;  %v6035_v58 = vand.u32 4294901760, %v5237_v6 }
 0x1a9   : > { %3842 = vmatmul.mubr.f32.gmra.mxu1 %v5411_v9  ;;  %v5438_v32 = vand.u32 4294901760, %v1839_v15 }
 0x1aa   : > { %v1790_v33 = vsub.f32 0.0, %v1758_v17  ;;  %v2066_v36 = vand.u32 4294901760, %v5434_v7  ;;  %v2078_v11 = vand.u32 4294901760, %v2077_v20 }
 0x1ab   : > { %v5451_v18 = vsub.f32 %v1839_v15, %v5438_v32 }
 0x1ac   : > { %v1806_v8 = vsel %vm1774_vm0, %v1790_v33, %v1758_v17  ;;  %v2067_v55 = vsub.f32 %v5434_v7, %v2066_v36 }
 0x1ad   : > { %v1822_v52 = vadd.f32 1.0, %v1806_v8  ;;  %v2096_v40 = vand.u32 4294901760, %v5451_v18 }
 0x1ae   : > { %v2068_v34 = vand.u32 4294901760, %v2067_v55 }
 0x1af   : > { %v1838_v59 = vmul.f32 %v1822_v52, %v1422_v41  ;;  %v2097_v2 = vsub.f32 %v5451_v18, %v2096_v40 }
 0x1b0   : > { %3785 = vmatprep.mubr.f32.mxu0 %v2068_v34 }
 0x1b1   : > { %v5453_v23 = vand.u32 4294901760, %v1838_v59  ;;  %3786 = vmatmul.mubr.f32.gmra.mxu0 %v2078_v11  ;;  %v2098_v14 = vand.u32 4294901760, %v2097_v2 }
 0x1b3   : > { %v5457_v28 = vsub.f32 %v1838_v59, %v5453_v23  ;;  %3844 = vmatprep.mubr.f32.mxu1 %v5453_v23 }
 0x1b4   : > { %3845 = vmatmul.mubr.f32.gmra.mxu1 %v5438_v32 }
 0x1b5   : > { %3935 = vmatprep.mubr.f32.mxu1 %v6031_v61  ;;  %v2086_v29 = vand.u32 4294901760, %v5457_v28 }
 0x1b7   : > { %v2087_v62 = vsub.f32 %v5457_v28, %v2086_v29 }
 0x1b8   : > { %3936 = vmatmul.mubr.f32.vlgmr.msra.gmra.mxu1 %v6032_v35 }
 0x1b9   : > { %3938 = vmatprep.mubr.f32.mxu1 %v6033_v49  ;;  %4016 = vmatpush3.msra.mxu1 %v4536_v43  ;;  %v2088_v46 = vand.u32 4294901760, %v2087_v62  ;;  %v6036_v43 = vand.u32 4294901760, %v5216_v53 }
 0x1ba   : > { %4017 = vmatprep.subr.mxu1 %v4561_v54 }
 0x1bb   : > { %3788 = vmatprep.mubr.f32.mxu0 %v2088_v46  ;;  %4018 = vmatpush3.msra.mxu1 %v4561_v54  ;;  %v6037_v54 = vand.u32 4294901760, %v5274_v19 }
 0x1bc   : > { %3789 = vmatmul.mubr.f32.gmra.mxu0 %v2098_v14  ;;  %3939 = vmatmul.mubr.f32.gmra.mxu1 %v6034_v47 }
 0x1bd   : > { %4019 = vmatprep.subr.mxu1 %v4572_v10  ;;  %3879 = vmatprep.mubr.f32.mxu0 %v5166_v37  ;;  %v6038_v37 = vld [vmem:[#allocation6_spill] sm:$0xff] }
 0x1be   : > { %3941 = vmatprep.mubr.f32.mxu1 %v6035_v58  ;;  %4020 = vmatpush3.msra.mxu1 %v4572_v10  ;;  %v6039_v10 = vld [vmem:[#allocation8_spill] sm:$0xff] }
 0x1bf   : > { %4021 = vmatprep.subr.mxu1 %v4589_v25 }
 0x1c0   : > { %4022 = vmatpush3.msra.mxu1 %v4589_v25  ;;  %3880 = vmatmul.mubr.f32.vlgmr.msra.gmra.mxu0 %v5120_v3  ;;  %v6040_v25 = vand.u32 4294901760, %v5248_v31  ;;  %v6042_v3 = vld [vmem:[#allocation11_spill] sm:$0xff] }
 0x1c1   : > { %3942 = vmatmul.mubr.f32.gmra.mxu1 %v6036_v43  ;;  %3960 = vmatpush3.msra.mxu0 %v6030_v60 }
 0x1c2   : > { %4023 = vmatprep.subr.mxu1 %v5994_v45  ;;  %3882 = vmatprep.mubr.f32.mxu0 %v5209_v0  ;;  %v6049_v0 = vld [vmem:[#allocation34_spill] sm:$0xff] }
 0x1c3   : > { %3944 = vmatprep.mubr.f32.mxu1 %v6037_v54  ;;  %3961 = vmatprep.subr.mxu0 %v6038_v37 }
 0x1c4   : > { %4024 = vmatpush3.msra.mxu1 %v5994_v45  ;;  %3962 = vmatpush3.msra.mxu0 %v6038_v37  ;;  %v6041_v45 = vand.u32 4294901760, %v5327_v5 }
 0x1c5   : > { %4025 = vmatprep.subr.mxu1 %v5996_v56  ;;  %3963 = vmatprep.subr.mxu0 %v6039_v10 }
 0x1c6   : > { %4026 = vmatpush3.msra.mxu1 %v5996_v56  ;;  %3883 = vmatmul.mubr.f32.gmra.mxu0 %v5179_v48  ;;  %v6043_v56 = vld [vmem:[#allocation15_spill] sm:$0xff] }
 0x1c7   : > { %3945 = vmatmul.mubr.f32.gmra.mxu1 %v6040_v25  ;;  %3964 = vmatpush3.msra.mxu0 %v6039_v10  ;;  %v6046_v48 = vld [vmem:[#allocation23_spill] sm:$0xff] }
 0x1c8   : > { %4027 = vmatprep.subr.mxu1 %v5997_v26  ;;  %3885 = vmatprep.mubr.f32.mxu0 %v5237_v6  ;;  %v6055_v6 = vld [vmem:[#allocation47_spill] sm:$0xff] }
 0x1c9   : > { %3947 = vmatprep.mubr.f32.mxu1 %v6041_v45  ;;  %3965 = vmatprep.subr.mxu0 %v6042_v3 }
 0x1ca   : > { %4028 = vmatpush3.msra.mxu1 %v5997_v26  ;;  %3966 = vmatpush3.msra.mxu0 %v6042_v3  ;;  %v6044_v26 = vld [vmem:[#allocation19_spill] sm:$0xff] }
 0x1cb   : > { %4029 = vmatprep.subr.mxu1 %v5998_v27  ;;  %3967 = vmatprep.subr.mxu0 %v6043_v56 }
 0x1cc   : > { %4030 = vmatpush3.msra.mxu1 %v5998_v27  ;;  %3886 = vmatmul.mubr.f32.gmra.mxu0 %v5216_v53  ;;  %v6045_v27 = vld [vmem:[#allocation20_spill] sm:$0xff]  ;;  %v6051_v53 = vld [vmem:[#allocation35_spill] sm:$0xff] }
 0x1cd   : > { %3948 = vmatmul.mubr.f32.gmra.mxu1 %v2036_v22  ;;  %3968 = vmatpush3.msra.mxu0 %v6043_v56  ;;  %v6060_v22 = vld [vmem:[#allocation46_spill] sm:$0xff] }
 0x1ce   : > { %4031 = vmatprep.subr.mxu1 %v6000_v44  ;;  %3888 = vmatprep.mubr.f32.mxu0 %v5274_v19  ;;  %v6057_v19 = vld [vmem:[#allocation50_spill] sm:$0xff] }
 0x1cf   : > { %3950 = vmatprep.mubr.f32.mxu1 %v2046_v42  ;;  %3969 = vmatprep.subr.mxu0 %v6044_v26  ;;  %v6064_v42 = vld [vmem:[#allocation14_spill] sm:$0xff] }
 0x1d0   : > { %4032 = vmatpush3.msra.mxu1 %v6000_v44  ;;  %3970 = vmatpush3.msra.mxu0 %v6044_v26  ;;  %v6047_v44 = vld [vmem:[#allocation26_spill] sm:$0xff] }
 0x1d1   : > { %4033 = vmatprep.subr.mxu1 %v6002_v1  ;;  %3971 = vmatprep.subr.mxu0 %v6045_v27 }
 0x1d2   : > { %4034 = vmatpush3.msra.mxu1 %v6002_v1  ;;  %3889 = vmatmul.mubr.f32.gmra.mxu0 %v5248_v31  ;;  %v6048_v1 = vld [vmem:[#allocation30_spill] sm:$0xff]  ;;  %v6056_v31 = vld [vmem:[#allocation41_spill] sm:$0xff] }
 0x1d3   : > { %3951 = vmatmul.mubr.f32.gmra.mxu1 %v2056_v16  ;;  %3972 = vmatpush3.msra.mxu0 %v6045_v27  ;;  %v6062_v16 = vld [vmem:[#allocation10_spill] sm:$0xff] }
 0x1d4   : > { %4035 = vmatprep.subr.mxu1 %v6003_v21  ;;  %3891 = vmatprep.mubr.f32.mxu0 %v5327_v5  ;;  %v6059_v5 = vld [vmem:[#allocation49_spill] sm:$0xff] }
 0x1d5   : > { %3953 = vmatprep.mubr.f32.mxu1 %v2066_v36  ;;  %3973 = vmatprep.subr.mxu0 %v6046_v48 }
 0x1d6   : > { %4036 = vmatpush3.msra.mxu1 %v6003_v21  ;;  %3974 = vmatpush3.msra.mxu0 %v6046_v48  ;;  %v6050_v21 = vld [vmem:[#allocation40_spill] sm:$0xff] }
 0x1d7   : > { %4037 = vmatprep.subr.mxu1 %v6004_v4  ;;  %3975 = vmatprep.subr.mxu0 %v6047_v44 }
 0x1d8   : > { %4038 = vmatpush3.msra.mxu1 %v6004_v4  ;;  %3892 = vmatmul.mubr.f32.gmra.mxu0 %v5278_v51  ;;  %v6052_v4 = vld [vmem:[#allocation48_spill] sm:$0xff] }
 0x1d9   : > { %3954 = vmatmul.mubr.f32.gmra.mxu1 %v2076_v39  ;;  %3976 = vmatpush3.msra.mxu0 %v6047_v44  ;;  %v6058_v51 = vld [vmem:[#allocation44_spill] sm:$0xff]  ;;  %v6066_v39 = vld [vmem:[#allocation18_spill] sm:$0xff] }
 0x1da   : > { %4039 = vmatprep.subr.mxu1 %v6005_v38  ;;  %3894 = vmatprep.mubr.f32.mxu0 %v5400_v24  ;;  %v6063_v24 = vld [vmem:[#allocation13_spill] sm:$0xff] }
 0x1db   : > { %3956 = vmatprep.mubr.f32.mxu1 %v2086_v29  ;;  %3977 = vmatprep.subr.mxu0 %v6048_v1 }
 0x1dc   : > { %4040 = vmatpush3.msra.mxu1 %v6005_v38  ;;  %3978 = vmatpush3.msra.mxu0 %v6048_v1  ;;  %v6054_v38 = vld [vmem:[#allocation38_spill] sm:$0xff] }
 0x1dd   : > { %4041 = vmatprep.subr.mxu1 %v6006_v30  ;;  %3979 = vmatprep.subr.mxu0 %v6049_v0 }
 0x1de   : > { %4042 = vmatpush3.msra.mxu1 %v6006_v30  ;;  %3895 = vmatmul.mubr.f32.gmra.mxu0 %v5384_v12  ;;  %v6053_v30 = vld [vmem:[#allocation43_spill] sm:$0xff] }
 0x1df   : > { %3957 = vmatmul.mubr.f32.gmra.mxu1 %v2096_v40  ;;  %3980 = vmatpush3.msra.mxu0 %v6049_v0  ;;  %v6061_v12 = vld [vmem:[#allocation51_spill] sm:$0xff] }
 0x1e0   : > { %4043 = vmatprep.subr.mxu1 %v6050_v21  ;;  %3897 = vmatprep.mubr.f32.mxu0 %v5434_v7 }
 0x1e1   : > { %3981 = vmatprep.subr.mxu0 %v6051_v53  ;;  %4044 = vmatpush3.msra.mxu1 %v6050_v21 }
 0x1e2   : > { %4047 = vmatprep.mubr.f32.mxu1 %v6052_v4  ;;  %3982 = vmatpush3.msra.mxu0 %v6051_v53 }
 0x1e3   : > { %4045 = vmatprep.subr.mxu1 %v6053_v30  ;;  %3983 = vmatprep.subr.mxu0 %v6054_v38 }
 0x1e4   : > { %4046 = vmatpush3.msra.mxu1 %v6053_v30  ;;  %3898 = vmatmul.mubr.f32.gmra.mxu0 %v5424_v63  ;;  %v6065_v63 = vld [vmem:[#allocation22_spill] sm:$0xff] }
 0x1e5   : > { %3984 = vmatpush3.msra.mxu0 %v6054_v38  ;;  %4048 = vmatmul.mubr.f32.vlgmr.msra.gmra.mxu1 %v6055_v6 }
 0x1e6   : > { %3900 = vmatprep.mubr.f32.mxu0 %v5457_v28  ;;  %3985 = vmatprep.subr.mxu0 %v6056_v31 }
 0x1e7   : > { %4050 = vmatprep.mubr.f32.mxu1 %v6057_v19  ;;  %3986 = vmatpush3.msra.mxu0 %v6056_v31 }
 0x1e8   : > { %3987 = vmatprep.subr.mxu0 %v6058_v51  ;;  %3901 = vmatmul.mubr.f32.gmra.mxu0 %v5451_v18 }
 0x1e9   : > { %3988 = vmatpush3.msra.mxu0 %v6058_v51  ;;  %4051 = vmatmul.mubr.f32.gmra.mxu1 %v6059_v5 }
 0x1ea   : > { %3989 = vmatprep.subr.mxu0 %v6060_v22  ;;  %3991 = vmatprep.mubr.f32.mxu0 %v6052_v4 }
 0x1eb   : > { %4053 = vmatprep.mubr.f32.mxu1 %v6061_v12  ;;  %3990 = vmatpush3.msra.mxu0 %v6060_v22 }
 0x1ec   : > { %3992 = vmatmul.mubr.f32.vlgmr.msra.gmra.mxu0 %v6055_v6 }
 0x1ed   : > { %4054 = vmatmul.mubr.f32.gmra.mxu1 %v6062_v16  ;;  %3994 = vmatprep.mubr.f32.mxu0 %v6057_v19 }
 0x1ee   : > { %4056 = vmatprep.mubr.f32.mxu1 %v6063_v24 }
 0x1f0   : > { %3995 = vmatmul.mubr.f32.gmra.mxu0 %v6059_v5  ;;  %v5696_v5 = vld [vmem:[#allocation2] ss:$0 sm:$0xff] }
 0x1f1   : > { %4057 = vmatmul.mubr.f32.gmra.mxu1 %v6064_v42  ;;  %3997 = vmatprep.mubr.f32.mxu0 %v6061_v12 }
 0x1f2   : > { %4059 = vmatprep.mubr.f32.mxu1 %v6065_v63 }
 0x1f4   : > { %3998 = vmatmul.mubr.f32.gmra.mxu0 %v6062_v16 }
 0x1f5   : > { %4060 = vmatmul.mubr.f32.gmra.mxu1 %v6066_v39  ;;  %4000 = vmatprep.mubr.f32.mxu0 %v6063_v24 }
 0x1f6   : > { %4062 = vmatprep.mubr.f32.mxu1 %v5393_v50 }
 0x1f8   : > { %4001 = vmatmul.mubr.f32.gmra.mxu0 %v6064_v42 }
 0x1f9   : > { %4063 = vmatmul.mubr.f32.gmra.mxu1 %v5373_v57  ;;  %4003 = vmatprep.mubr.f32.mxu0 %v6065_v63 }
 0x1fa   : > { %4065 = vmatprep.mubr.f32.mxu1 %v5428_v13 }
 0x1fc   : > { %4004 = vmatmul.mubr.f32.gmra.mxu0 %v6066_v39 }
 0x1fd   : > { %4066 = vmatmul.mubr.f32.gmra.mxu1 %v5411_v9  ;;  %4006 = vmatprep.mubr.f32.mxu0 %v5393_v50 }
 0x1fe   : > { %4068 = vmatprep.mubr.f32.mxu1 %v5453_v23 }
 0x200   : > { %4007 = vmatmul.mubr.f32.gmra.mxu0 %v5373_v57 }
 0x201   : > { %4069 = vmatmul.mubr.f32.gmra.mxu1 %v5438_v32  ;;  %4009 = vmatprep.mubr.f32.mxu0 %v5428_v13 }
 0x204   : > { %4010 = vmatmul.mubr.f32.gmra.mxu0 %v5411_v9 }
 0x205   : > { %4012 = vmatprep.mubr.f32.mxu0 %v5453_v23 }
 0x208   : > { %4013 = vmatmul.mubr.f32.gmra.mxu0 %v5438_v32 }
 0x21d   : > { %v5610_v7 = vpop.f32.mrf.mxu1 }
 0x21f   : > { %v5612_v15 = vpop.f32.mrf.mxu1 }
 0x222   : > { %v5614_v17 = vpop.f32.mrf.mxu1 }
 0x224   : > { %v5616_v33 = vpop.f32.mrf.mxu1 }
 0x228   : > { %v5618_v36 = vpop.f32.mrf.mxu1 }
 0x22a   : > { %v5620_v13 = vpop.f32.mrf.mxu1 }
 0x231   : > { %v5622_v20 = vpop.f32.mrf.mxu1 }
 0x233   : > { %v5624_v32 = vpop.f32.mrf.mxu1 }
 0x244   : > { %v3769_v50 = vpop.f32.mrf.mxu0 }
 0x245   : > { %v1961_v24 = vadd.f32 %v3769_v50, %v5696_v5 }
 0x246   : > { %v1950_v57 = vpop.f32.mrf.mxu0 }
 0x247   : > { %v1951_v63 = vadd.f32 %v5696_v5, %v1950_v57 }
 0x248   : > { %v3772_v60 = vpop.f32.mrf.mxu0 }
 0x24a   : > { %v1970_v9 = vpop.f32.mrf.mxu0 }
 0x24d   : > { %v5628_v41 = vpop.f32.mrf.mxu1 }
 0x24e   : > { %v3775_v8 = vpop.f32.mrf.mxu0 }
 0x24f   : > { %v5632_v18 = vpop.f32.mrf.mxu1 }
 0x250   : > { %v5626_v55 = vpop.f32.mrf.mxu0 }
 0x252   : > { %v5630_v52 = vpop.f32.mrf.mxu0 }
 0x254   : > { %v5634_v34 = vpop.f32.mrf.mxu0 }
 0x258   : > { %v5638_v11 = vpop.f32.mrf.mxu0 }
 0x25a   : > { %v5642_v40 = vpop.f32.mrf.mxu0 }
 0x260   : > { %v5636_v59 = vpop.f32.mrf.mxu1 }
 0x262   : > { %v5640_v23 = vpop.f32.mrf.mxu1 }
 0x268   : > { %v5646_v61 = vpop.f32.mrf.mxu0 }
 0x269   : > { %v5644_v28 = vpop.f32.mrf.mxu1 }
 0x26a   : > { %v5650_v2 = vpop.f32.mrf.mxu0 }
 0x26b   : > { %v5648_v29 = vpop.f32.mrf.mxu1 }
 0x26c   : > { %6067 = vst [vmem:[#allocation25_spill] sm:$0xff] %v5648_v29 }
 0x271   : > { %v5654_v35 = vpop.f32.mrf.mxu0 }
 0x273   : > { %v5658_v14 = vpop.f32.mrf.mxu0 }
 0x274   : > { %v5652_v62 = vpop.f32.mrf.mxu1 }
 0x275   : > { %6068 = vst [vmem:[#allocation28_spill] sm:$0xff] %v5652_v62  ;;  %v1971_v62 = vadd.f32 %v5696_v5, %v1970_v9 }
 0x276   : > { %v5656_v49 = vpop.f32.mrf.mxu1 }
 0x277   : > { %6069 = vst [vmem:[#allocation29_spill] sm:$0xff] %v5656_v49  ;;  %v2264_v9 = vadd.f32 %v5616_v33, %v1971_v62 }
 0x278   : > { %v3937_v46 = vpop.f32.mrf.mxu1 }
 0x27a   : > { %v2639_v47 = vpop.f32.mrf.mxu1 }
 0x27c   : > { %v5660_v58 = vpop.f32.mrf.mxu0  ;;  %v5662_v43 = vpop.f32.mrf.mxu1 }
 0x27e   : > { %v5664_v54 = vpop.f32.mrf.mxu0  ;;  %v5666_v37 = vpop.f32.mrf.mxu1 }
 0x27f   : > { %6070 = vst [vmem:[#allocation33_spill] sm:$0xff] %v5664_v54 }
 0x280   : > { %v3881_v10 = vpop.f32.mrf.mxu0 }
 0x281   : > { %v5668_v25 = vpop.f32.mrf.mxu1 }
 0x282   : > { %v2445_v45 = vpop.f32.mrf.mxu0 }
 0x283   : > { %v5670_v3 = vpop.f32.mrf.mxu1 }
 0x286   : > { %v3884_v56 = vpop.f32.mrf.mxu0 }
 0x287   : > { %v5672_v26 = vpop.f32.mrf.mxu1 }
 0x288   : > { %v2459_v27 = vpop.f32.mrf.mxu0 }
 0x289   : > { %v5674_v48 = vpop.f32.mrf.mxu1 }
 0x28c   : > { %v3887_v44 = vpop.f32.mrf.mxu0 }
 0x28d   : > { %v5676_v1 = vpop.f32.mrf.mxu1 }
 0x28e   : > { %v2473_v0 = vpop.f32.mrf.mxu0 }
 0x28f   : > { %v5678_v21 = vpop.f32.mrf.mxu1 }
 0x292   : > { %v5680_v53 = vpop.f32.mrf.mxu0 }
 0x293   : > { %v5682_v4 = vpop.f32.mrf.mxu1 }
 0x294   : > { %6071 = vst [vmem:[#allocation37_spill] sm:$0xff] %v5682_v4  ;;  %v5684_v30 = vpop.f32.mrf.mxu0  ;;  %v2252_v4 = vadd.f32 %v5612_v15, %v1951_v63 }
 0x295   : > { %v5686_v38 = vpop.f32.mrf.mxu1 }
 0x296   : > { %6072 = vst [vmem:[#allocation3_spill] sm:$0xff] %v5686_v38  ;;  %v2446_v57 = vadd.f32 %v2445_v45, %v2252_v4 }
 0x298   : > { %v5688_v6 = vpop.f32.mrf.mxu0 }
 0x299   : > { %v5690_v31 = vpop.f32.mrf.mxu1 }
 0x29a   : > { %6073 = vst [vmem:[#allocation5_spill] sm:$0xff] %v5690_v31  ;;  %v5692_v19 = vpop.f32.mrf.mxu0  ;;  %v1981_v31 = vadd.f32 %v3772_v60, %v5696_v5 }
 0x29b   : > { %v5694_v51 = vpop.f32.mrf.mxu1 }
 0x29c   : > { %6074 = vst [vmem:[#allocation7_spill] sm:$0xff] %v5694_v51  ;;  %v2258_v51 = vadd.f32 %v5610_v7, %v1961_v24  ;;  %v1991_v7 = vadd.f32 %v5696_v5, %v5626_v55  ;;  %v2011_v55 = vadd.f32 %v5696_v5, %v5634_v34  ;;  %v2041_v34 = vadd.f32 %v5638_v11, %v5696_v5 }
 0x29e   : > { %v5698_v22 = vpop.f32.mrf.mxu0 }
 0x29f   : > { %v5700_v12 = vpop.f32.mrf.mxu1 }
 0x2a0   : > { %6075 = vst [vmem:[#allocation9_spill] sm:$0xff] %v5700_v12  ;;  %v5702_v16 = vpop.f32.mrf.mxu0  ;;  %v2453_v12 = vadd.f32 %v3881_v10, %v2258_v51  ;;  %v2021_v51 = vadd.f32 %v5630_v52, %v5696_v5 }
 0x2a1   : > { %v5705_v42 = vpop.f32.mrf.mxu1 }
 0x2a2   : > { %6076 = vst [vmem:[#allocation12_spill] sm:$0xff] %v5705_v42  ;;  %v2001_v42 = vadd.f32 %v3775_v8, %v5696_v5  ;;  %v2648_v15 = vadd.f32 %v3937_v46, %v2453_v12  ;;  %v2460_v8 = vadd.f32 %v2459_v27, %v2264_v9 }
 0x2a4   : > { %v5708_v39 = vpop.f32.mrf.mxu0  ;;  %v2282_v45 = vadd.f32 %v5618_v36, %v2001_v42 }
 0x2a5   : > { %6077 = vst [vmem:[#allocation16_spill] sm:$0xff] %v5708_v39  ;;  %v4049_v49 = vpop.f32.mrf.mxu1  ;;  %v2270_v39 = vadd.f32 %v5614_v17, %v1981_v31  ;;  %v2640_v31 = vadd.f32 %v2639_v47, %v2446_v57 }
 0x2a6   : > { %v5712_v38 = vpop.f32.mrf.mxu0  ;;  %v2481_v52 = vadd.f32 %v3887_v44, %v2282_v45  ;;  %v2031_v44 = vadd.f32 %v5696_v5, %v5642_v40 }
 0x2a7   : > { %v3055_v29 = vpop.f32.mrf.mxu1  ;;  %v2467_v24 = vadd.f32 %v3884_v56, %v2270_v39 }
 0x2a8   : > { %v5716_v50 = vpop.f32.mrf.mxu0 }
 0x2a9   : > { %v4052_v54 = vpop.f32.mrf.mxu1  ;;  %v2664_v47 = vadd.f32 %v5662_v43, %v2467_v24  ;;  %v2288_v43 = vadd.f32 %v5624_v32, %v2011_v55 }
 0x2aa   : > { %v5722_v60 = vpop.f32.mrf.mxu0 }
 0x2ab   : > { %6078 = vst [vmem:[#allocation17_spill] sm:$0xff] %v5722_v60  ;;  %v3067_v10 = vpop.f32.mrf.mxu1  ;;  %v2276_v60 = vadd.f32 %v5620_v13, %v1991_v7  ;;  %v2294_v13 = vadd.f32 %v5622_v20, %v2021_v51  ;;  %v2488_v40 = vadd.f32 %v5684_v30, %v2288_v43 }
 0x2ac   : > { %v3993_v63 = vpop.f32.mrf.mxu0 }
 0x2ad   : > { %v2885_v17 = vadd.f32 %v3993_v63, %v2648_v15  ;;  %v4055_v4 = vpop.f32.mrf.mxu1  ;;  %v2474_v27 = vadd.f32 %v2473_v0, %v2276_v60  ;;  %v2495_v11 = vadd.f32 %v5680_v53, %v2294_v13  ;;  %v2061_v60 = vadd.f32 %v5646_v61, %v5696_v5 }
 0x2ae   : > { %v2878_v33 = vpop.f32.mrf.mxu0  ;;  %v2051_v15 = vadd.f32 %v5696_v5, %v5650_v2 }
 0x2af   : > { %v3062_v62 = vadd.f32 %v4049_v49, %v2885_v17  ;;  %v2879_v36 = vadd.f32 %v2878_v33, %v2640_v31  ;;  %v3079_v46 = vpop.f32.mrf.mxu1  ;;  %v2656_v49 = vadd.f32 %v5666_v37, %v2460_v8  ;;  %v2306_v37 = vadd.f32 %v5628_v41, %v2041_v34 }
 0x2b0   : > { %v3996_v56 = vpop.f32.mrf.mxu0  ;;  %v2081_v8 = vadd.f32 %v5654_v35, %v5696_v5  ;;  %v2071_v31 = vadd.f32 %v5696_v5, %v5658_v14 }
 0x2b1   : > { %3151 = vst.msk [vmem:[%s5736_s18 + $0x8] sm:$0xff] %vm3149_vm1, %v3062_v62  ;;  %v3056_v12 = vadd.f32 %v3055_v29, %v2879_v36  ;;  %v2897_v42 = vadd.f32 %v3996_v56, %v2664_v47  ;;  %v4058_v39 = vpop.f32.mrf.mxu1  ;;  %v2680_v29 = vadd.f32 %v5668_v25, %v2481_v52  ;;  %v2300_v25 = vadd.f32 %v5632_v18, %v2031_v44  ;;  %v6079_v47 = vld [vmem:[#allocation33_spill] sm:$0xff] }
 0x2b2   : > { %v2890_v57 = vpop.f32.mrf.mxu0  ;;  %v2509_v61 = vadd.f32 %v5688_v6, %v2306_v37  ;;  %v2101_v52 = vadd.f32 %v5660_v58, %v5696_v5  ;;  %v2091_v34 = vadd.f32 %v5696_v5, %v6079_v47  ;;  %v6081_v58 = vld [vmem:[#allocation16_spill] sm:$0xff] }
 0x2b3   : > { %3150 = vst.msk [vmem:[%s5736_s18] sm:$0xff] %vm3149_vm1, %v3056_v12  ;;  %v3074_v20 = vadd.f32 %v4052_v54, %v2897_v42  ;;  %v2891_v0 = vadd.f32 %v2890_v57, %v2656_v49  ;;  %v3091_v7 = vpop.f32.mrf.mxu1  ;;  %v2672_v54 = vadd.f32 %v5670_v3, %v2474_v27  ;;  %v2318_v3 = vadd.f32 %v5636_v59, %v2061_v60  ;;  %v6082_v12 = vld [vmem:[#allocation37_spill] sm:$0xff] }
 0x2b4   : > { %v3999_v24 = vpop.f32.mrf.mxu0  ;;  %v2502_v2 = vadd.f32 %v5692_v19, %v2300_v25  ;;  %v2712_v33 = vadd.f32 %v5676_v1, %v2509_v61  ;;  %v6080_v1 = vld [vmem:[#allocation25_spill] sm:$0xff] }
 0x2b5   : > { %3153 = vst.msk [vmem:[%s5736_s18 + $0x18] sm:$0xff] %vm3149_vm1, %v3074_v20  ;;  %v3068_v32 = vadd.f32 %v3067_v10, %v2891_v0  ;;  %v2909_v53 = vadd.f32 %v3999_v24, %v2680_v29  ;;  %v4061_v9 = vpop.f32.mrf.mxu1  ;;  %v2696_v10 = vadd.f32 %v5672_v26, %v2495_v11  ;;  %v2312_v26 = vadd.f32 %v5640_v23, %v2051_v15  ;;  %v6084_v11 = vld [vmem:[#allocation3_spill] sm:$0xff]  ;;  %v6085_v0 = vld [vmem:[#allocation29_spill] sm:$0xff] }
 0x2b6   : > { %v2902_v51 = vpop.f32.mrf.mxu0  ;;  %v2523_v35 = vadd.f32 %v5698_v22, %v2318_v3  ;;  %v2324_v13 = vadd.f32 %v6080_v1, %v2071_v31 }
 0x2b7   : > { %3152 = vst.msk [vmem:[%s5736_s18 + $0x10] sm:$0xff] %vm3149_vm1, %v3068_v32  ;;  %v3086_v41 = vadd.f32 %v4055_v4, %v2909_v53  ;;  %v2903_v30 = vadd.f32 %v2902_v51, %v2672_v54  ;;  %v3103_v63 = vpop.f32.mrf.mxu1  ;;  %v2688_v4 = vadd.f32 %v5674_v48, %v2488_v40  ;;  %v2330_v48 = vadd.f32 %v5644_v28, %v2081_v8  ;;  %v6086_v40 = vld [vmem:[#allocation5_spill] sm:$0xff]  ;;  %v6088_v51 = vld [vmem:[#allocation7_spill] sm:$0xff] }
 0x2b8   : > { %v4002_v45 = vpop.f32.mrf.mxu0  ;;  %v2516_v14 = vadd.f32 %v5702_v16, %v2312_v26  ;;  %v2728_v42 = vadd.f32 %v6082_v12, %v2523_v35 }
 0x2b9   : > { %3155 = vst.msk [vmem:[%s5736_s18 + $0x28] sm:$0xff] %vm3149_vm1, %v3086_v41  ;;  %v3080_v18 = vadd.f32 %v3079_v46, %v2903_v30  ;;  %v2921_v6 = vadd.f32 %v4002_v45, %v2696_v10  ;;  %v4064_v17 = vpop.f32.mrf.mxu1  ;;  %v2704_v46 = vadd.f32 %v5678_v21, %v2502_v2  ;;  %v2537_v27 = vadd.f32 %v6081_v58, %v2330_v48 }
 0x2ba   : > { %v2914_v55 = vpop.f32.mrf.mxu0  ;;  %v2530_v21 = vadd.f32 %v5712_v38, %v2324_v13  ;;  %v2720_v20 = vadd.f32 %v6084_v11, %v2516_v14 }
 0x2bb   : > { %3154 = vst.msk [vmem:[%s5736_s18 + $0x20] sm:$0xff] %vm3149_vm1, %v3080_v18  ;;  %v3098_v59 = vadd.f32 %v4058_v39, %v2921_v6  ;;  %v2915_v19 = vadd.f32 %v2914_v55, %v2688_v4  ;;  %v3115_v62 = vpop.f32.mrf.mxu1  ;;  %v6083_v39 = vld [vmem:[#allocation28_spill] sm:$0xff]  ;;  %v2744_v32 = vadd.f32 %v6086_v40, %v2537_v27 }
 0x2bc   : > { %v4005_v36 = vpop.f32.mrf.mxu0  ;;  %v2342_v49 = vadd.f32 %v6083_v39, %v2101_v52  ;;  %v2736_v61 = vadd.f32 %v6088_v51, %v2530_v21  ;;  %v6090_v18 = vld [vmem:[#allocation12_spill] sm:$0xff] }
 0x2bd   : > { %3157 = vst.msk [vmem:[%s5736_s18 + $0x38] sm:$0xff] %vm3149_vm1, %v3098_v59  ;;  %v3092_v23 = vadd.f32 %v3091_v7, %v2915_v19  ;;  %v2933_v22 = vadd.f32 %v4005_v36, %v2712_v33  ;;  %v4067_v44 = vpop.f32.mrf.mxu1  ;;  %v2336_v7 = vadd.f32 %v6085_v0, %v2091_v34 }
 0x2be   : > { %v2926_v56 = vpop.f32.mrf.mxu0  ;;  %v2551_v60 = vadd.f32 %v5716_v50, %v2342_v49 }
 0x2bf   : > { %3156 = vst.msk [vmem:[%s5736_s18 + $0x30] sm:$0xff] %vm3149_vm1, %v3092_v23  ;;  %v3110_v28 = vadd.f32 %v4061_v9, %v2933_v22  ;;  %v2927_v16 = vadd.f32 %v2926_v56, %v2704_v46  ;;  %v3127_v38 = vpop.f32.mrf.mxu1  ;;  %v6087_v9 = vld [vmem:[#allocation17_spill] sm:$0xff] }
 0x2c0   : > { %v4008_v43 = vpop.f32.mrf.mxu0  ;;  %v2544_v54 = vadd.f32 %v6087_v9, %v2336_v7 }
 0x2c1   : > { %3159 = vst.msk [vmem:[%s5736_s18 + $0x48] sm:$0xff] %vm3149_vm1, %v3110_v28  ;;  %v3104_v5 = vadd.f32 %v3103_v63, %v2927_v16  ;;  %v2945_v57 = vadd.f32 %v4008_v43, %v2728_v42  ;;  %v6089_v63 = vld [vmem:[#allocation9_spill] sm:$0xff]  ;;  %v4070_v8 = vpop.f32.mrf.mxu1 }
 0x2c2   : > { %v2938_v29 = vpop.f32.mrf.mxu0  ;;  %v2760_v10 = vadd.f32 %v6089_v63, %v2551_v60  ;;  %v2752_v6 = vadd.f32 %v6090_v18, %v2544_v54 }
 0x2c3   : > { %3158 = vst.msk [vmem:[%s5736_s18 + $0x40] sm:$0xff] %vm3149_vm1, %v3104_v5  ;;  %v3122_v37 = vadd.f32 %v4064_v17, %v2945_v57  ;;  %v2939_v24 = vadd.f32 %v2938_v29, %v2720_v20  ;;  %v3139_v26 = vpop.f32.mrf.mxu1 }
 0x2c4   : > { %v4011_v53 = vpop.f32.mrf.mxu0 }
 0x2c5   : > { %3161 = vst.msk [vmem:[%s5736_s18 + $0x58] sm:$0xff] %vm3149_vm1, %v3122_v37  ;;  %v3116_v15 = vadd.f32 %v3115_v62, %v2939_v24  ;;  %v2957_v25 = vadd.f32 %v4011_v53, %v2744_v32 }
 0x2c6   : > { %v2950_v41 = vpop.f32.mrf.mxu0 }
 0x2c7   : > { %3160 = vst.msk [vmem:[%s5736_s18 + $0x50] sm:$0xff] %vm3149_vm1, %v3116_v15  ;;  %v3134_v50 = vadd.f32 %v4067_v44, %v2957_v25  ;;  %v2951_v30 = vadd.f32 %v2950_v41, %v2736_v61 }
 0x2c8   : > { %v4014_v3 = vpop.f32.mrf.mxu0 }
 0x2c9   : > { %3163 = vst.msk [vmem:[%s5736_s18 + $0x68] sm:$0xff] %vm3149_vm1, %v3134_v50  ;;  %v3128_v45 = vadd.f32 %v3127_v38, %v2951_v30  ;;  %v2969_v2 = vadd.f32 %v4014_v3, %v2760_v10 }
 0x2ca   : > { %v2962_v17 = vpop.f32.mrf.mxu0 }
 0x2cb   : > { %3162 = vst.msk [vmem:[%s5736_s18 + $0x60] sm:$0xff] %vm3149_vm1, %v3128_v45  ;;  %v3146_v4 = vadd.f32 %v4070_v8, %v2969_v2  ;;  %v2963_v31 = vadd.f32 %v2962_v17, %v2752_v6 }
 0x2cd   : > { %3165 = vst.msk [vmem:[%s5736_s18 + $0x78] sm:$0xff] %vm3149_vm1, %v3146_v4  ;;  %v3140_v55 = vadd.f32 %v3139_v26, %v2963_v31 }
 0x2cf   : > { %3164 = vst.msk [vmem:[%s5736_s18 + $0x70] sm:$0xff] %vm3149_vm1, %v3140_v55 }
 0x2d0 PF: > { %s17_s20 = sadd.s32 1, %s4149_s20  }
 0x2d1   : > { %p14_p4 = scmp.ge.s32.totalorder %s17_s20, 4  }
 0x2d3   :  { %16 = sbr.rel (!%p14_p4) target bundleno = 3 (0x3), region = 70 }

</bundles_post_ra>
